<compile_context>
chip_gen: v7x
topology: tpu7x:2x2x1
jax: 0.10.0
libtpu: 0.0.40
codegen_flags: <defaults>
</compile_context>

<pallas_src>
import jax
import jax.numpy as jnp
from jax.experimental import pallas as pl
from jax.experimental.pallas import tpu as pltpu

# ---- hyper-parameters (module defaults, small test sizes) -------------------
DILATIONS = (1, 2, 1, 2, 1, 2, 1, 2)
IN_CHANNELS = 4
OUT_CHANNELS = 2
OUT_TIMESTEPS = 4
RESIDUAL_CH = 32
DILATION_CH = 32
SKIP_CH = 256
END_CH = 512

B = 2
T_IN = 8
N_NODES = 16
TOTAL_DILATION = sum(DILATIONS)                     # 12
T_PAD = max(T_IN, TOTAL_DILATION + 1)               # 13
C_OUT_FLAT = OUT_CHANNELS * OUT_TIMESTEPS           # 8

G_BLOCK = 8                                         # (t,b) node-blocks per GCN dot
GN_ROWS = G_BLOCK * N_NODES                         # 128 rows per GCN chunk


# ----------------------------- Pallas kernel ---------------------------------
def gwnet_kernel(x_ref, kadj_ref,
                 w_in_ref, b_in_ref,
                 wgate_ref, bgate_ref,
                 wskip_ref, bskip_ref,
                 wgcn_ref, bgcn_ref,
                 w_e1_ref, b_e1_ref, w_e2_ref, b_e2_ref,
                 out_ref):
    f32, bf16 = jnp.float32, jnp.bfloat16
    NE = out_ref.shape[0]              # nodes * batches folded into this step
    C_dil = wgcn_ref.shape[1]          # dilation channels (32)
    GN = kadj_ref.shape[0]             # 128: rows per block-diag adjacency chunk
    kadj = kadj_ref[...]               # (GN, GN) bf16 = kron(I_8, A_hat)

    # input 1x1 conv == channel matmul
    x = x_ref[0].astype(bf16)          # (T*NE, C_in)
    h = jnp.dot(x, w_in_ref[...], preferred_element_type=f32) + b_in_ref[...]

    T = x_ref.shape[1] // NE           # padded time length
    skip = jnp.zeros((NE, wskip_ref.shape[-1]), f32)

    for k, d in enumerate(DILATIONS):
        # -- skip 1x1 conv: only the final time step is consumed downstream --
        skip = skip + jnp.dot(h[-NE:, :].astype(bf16), wskip_ref[k],
                              preferred_element_type=f32) + bskip_ref[k]

        # -- gated dilated (1,2) temporal conv: both gates, both taps, 1 dot --
        Tn = T - d
        R = Tn * NE
        xg = jnp.concatenate([h[:R, :], h[d * NE:d * NE + R, :]], axis=-1)
        g12 = (jnp.dot(xg.astype(bf16), wgate_ref[k],
                       preferred_element_type=f32) + bgate_ref[k])
        g = jnp.tanh(g12[:, :C_dil]) * jax.nn.sigmoid(g12[:, C_dil:])
        gb = g.astype(bf16)

        # -- GCN node mixing: block-diagonal adjacency, 128-row chunks --------
        pieces = []
        for r0 in range(0, R, GN):
            rc = min(GN, R - r0)
            pieces.append(jnp.dot(kadj[:rc, :rc], gb[r0:r0 + rc, :],
                                  preferred_element_type=f32))
        gm = pieces[0] if len(pieces) == 1 else jnp.concatenate(pieces, axis=0)
        gout = jnp.dot(gm.astype(bf16), wgcn_ref[k],
                       preferred_element_type=f32) + bgcn_ref[k]

        # dropout -> identity (inference); BN result discarded in reference
        h = gout + h[-R:, :]
        T = Tn

    # skip_out[..., -1:] -> relu -> end1 (1x1) -> relu -> end2 (1x1)
    s = jnp.maximum(skip, 0.0)
    e = jnp.maximum(jnp.dot(s.astype(bf16), w_e1_ref[...],
                            preferred_element_type=f32) + b_e1_ref[...], 0.0)
    y = (jnp.dot(e.astype(bf16), w_e2_ref[...],
                 preferred_element_type=f32) + b_e2_ref[...])
    out_ref[...] = y                   # (NE, out_channels*out_timesteps)


def _full_spec(arr):
    nd = arr.ndim
    return pl.BlockSpec(arr.shape, lambda b, _nd=nd: (0,) * _nd)


def _batch_group(Bsz):
    """Batches folded per grid step: fold everything on single-TensorCore chips
    (v5e/v6e); keep a parallel batch grid so both v7x TensorCores get work."""
    try:
        kind = jax.devices()[0].device_kind.lower()
    except Exception:
        kind = ""
    if "7" in kind and Bsz > 1 and Bsz % 2 == 0:
        return Bsz // 2
    return Bsz


# ------------------------------- wrapper --------------------------------------
def graph_wavenet_forward(x, adj, params):
    """x: (B, T, N, C_in) float32 (PyTorch input layout); adj: (N, N)."""
    is_batched = x.ndim == 4
    if not is_batched:
        x = x[None]
    Bsz, Tin, N, Cin = x.shape
    assert N == N_NODES and Cin == IN_CHANNELS

    # --- glue: causal left-padding + (group, time, batch, node) row layout ---
    pad = TOTAL_DILATION - Tin + 1
    xk = jnp.pad(x, ((0, 0), (pad, 0), (0, 0), (0, 0))) if pad > 0 else x
    Tpad = xk.shape[1]
    assert Tpad == T_PAD

    BG = _batch_group(Bsz)             # batches folded into one grid step
    G = Bsz // BG                      # grid size
    NE = BG * N                        # effective "node" rows per time step
    xk = xk.reshape(G, BG, Tpad, N, Cin)
    xk = jnp.transpose(xk, (0, 2, 1, 3, 4)).reshape(G, Tpad * NE, Cin)

    # adaptive adjacency: computed and unused, exactly as in the reference
    _adp = jax.nn.softmax(jnp.maximum(params["e1"] @ params["e2"], 0.0), axis=1)
    del _adp

    # GCNConv assumption: y = row_norm(A + I) @ x @ W + b
    a_hat = adj.astype(jnp.float32) + jnp.eye(N, dtype=jnp.float32)
    a_hat = a_hat / jnp.sum(a_hat, axis=1, keepdims=True)
    # block-diagonal kron(I_8, A_hat): one dot mixes 8 (time, batch) node blocks
    kadj = jnp.kron(jnp.eye(G_BLOCK, dtype=jnp.float32), a_hat).astype(jnp.bfloat16)

    bf16 = jnp.bfloat16
    # pack both temporal taps of both gates into one (64, 64) weight per layer:
    # rows [0:32] multiply h[t], rows [32:64] multiply h[t+d];
    # cols [0:32] -> tanh gate (tcn_a), cols [32:64] -> sigmoid gate (tcn_b).
    wg0 = jnp.concatenate([params["wa"][:, 0], params["wb"][:, 0]], axis=-1)
    wg1 = jnp.concatenate([params["wa"][:, 1], params["wb"][:, 1]], axis=-1)
    wgate = jnp.concatenate([wg0, wg1], axis=1).astype(bf16)         # (L, 64, 64)
    bgate = jnp.concatenate([params["ba"], params["bb"]], axis=-1)   # (L, 1, 64)

    weights = (kadj,
               params["w_in"].astype(bf16), params["b_in"],
               wgate, bgate,
               params["wskip"].astype(bf16), params["bskip"],
               params["wgcn"].astype(bf16), params["bgcn"],
               params["w_e1"].astype(bf16), params["b_e1"],
               params["w_e2"].astype(bf16), params["b_e2"])

    in_specs = [pl.BlockSpec((1, Tpad * NE, Cin), lambda g: (g, 0, 0))]
    in_specs += [_full_spec(w) for w in weights]

    out = pl.pallas_call(
        gwnet_kernel,
        out_shape=jax.ShapeDtypeStruct((Bsz * N, C_OUT_FLAT), jnp.float32),
        grid=(G,),
        in_specs=in_specs,
        out_specs=pl.BlockSpec((NE, C_OUT_FLAT), lambda g: (g, 0)),
        compiler_params=pltpu.CompilerParams(dimension_semantics=("parallel",)),
    )(xk, *weights)

    # Reproduce PyTorch's flat reshape of the NCHW end2 output:
    # (B, C_out*T_out, N, 1).reshape(B, T_out, N, C_out)
    out = out.reshape(Bsz, N, C_OUT_FLAT)
    out = jnp.transpose(out, (0, 2, 1)).reshape(Bsz, OUT_TIMESTEPS, N, OUT_CHANNELS)
    if not is_batched:
        out = out[0]
    return out


# --------------------------- deterministic params -----------------------------
def init_params(key):
    L = len(DILATIONS)
    keys = iter(jax.random.split(key, 32))

    def W(shape, scale=None):
        fan_in = shape[-2] if len(shape) >= 2 else shape[-1]
        s = (1.0 / jnp.sqrt(fan_in)) if scale is None else scale
        return (s * jax.random.normal(next(keys), shape)).astype(jnp.float32)

    return dict(
        w_in=W((IN_CHANNELS, RESIDUAL_CH)),        b_in=W((1, RESIDUAL_CH), 0.05),
        wa=W((L, 2, RESIDUAL_CH, DILATION_CH)),    ba=W((L, 1, DILATION_CH), 0.05),
        wb=W((L, 2, RESIDUAL_CH, DILATION_CH)),    bb=W((L, 1, DILATION_CH), 0.05),
        wskip=W((L, RESIDUAL_CH, SKIP_CH)),        bskip=W((L, 1, SKIP_CH), 0.05),
        wgcn=W((L, DILATION_CH, RESIDUAL_CH)),     bgcn=W((L, 1, RESIDUAL_CH), 0.05),
        w_e1=W((SKIP_CH, END_CH)),                 b_e1=W((1, END_CH), 0.05),
        w_e2=W((END_CH, C_OUT_FLAT)),              b_e2=W((1, C_OUT_FLAT), 0.05),
        e1=W((N_NODES, 10)),                       e2=W((10, N_NODES)),
    )


if __name__ == "__main__":
    key = jax.random.PRNGKey(0)
    kx, ka, kp = jax.random.split(key, 3)
    x = jax.random.normal(kx, (B, T_IN, N_NODES, IN_CHANNELS), dtype=jnp.float32)
    adj = (jax.random.uniform(ka, (N_NODES, N_NODES)) > 0.7).astype(jnp.float32)
    adj = jnp.maximum(adj, adj.T)
    params = init_params(kp)

    out = graph_wavenet_forward(x, adj, params)
    out = jax.block_until_ready(out)
    assert out.shape == (B, OUT_TIMESTEPS, N_NODES, OUT_CHANNELS), out.shape
    assert bool(jnp.all(jnp.isfinite(out)))
    print("KERNEL_OK")
</pallas_src>

<mosaic_0001>
module attributes {stable_mosaic.version = 11 : i64} {
  func.func @gwnet_kernel(%arg0: i32, %arg1: memref<1x416x4xf32, #tpu.memory_space<vmem>>, %arg2: memref<128x128xbf16, #tpu.memory_space<vmem>>, %arg3: memref<4x32xbf16, #tpu.memory_space<vmem>>, %arg4: memref<1x32xf32, #tpu.memory_space<vmem>>, %arg5: memref<8x64x64xbf16, #tpu.memory_space<vmem>>, %arg6: memref<8x1x64xf32, #tpu.memory_space<vmem>>, %arg7: memref<8x32x256xbf16, #tpu.memory_space<vmem>>, %arg8: memref<8x1x256xf32, #tpu.memory_space<vmem>>, %arg9: memref<8x32x32xbf16, #tpu.memory_space<vmem>>, %arg10: memref<8x1x32xf32, #tpu.memory_space<vmem>>, %arg11: memref<256x512xbf16, #tpu.memory_space<vmem>>, %arg12: memref<1x512xf32, #tpu.memory_space<vmem>>, %arg13: memref<512x8xbf16, #tpu.memory_space<vmem>>, %arg14: memref<1x8xf32, #tpu.memory_space<vmem>>, %arg15: memref<32x8xf32, #tpu.memory_space<vmem>>) attributes {dimension_semantics = [#tpu.dimension_semantics<parallel>], iteration_bounds = array<i64: 1>, scalar_prefetch = 0 : i64, scratch_operands = 0 : i64, tpu.core_type = #tpu.core_type<tc>, window_params = [{transform_indices = @transform_0, window_bounds = array<i64: 1, 416, 4>}, {pipeline_mode = #tpu.pipeline_mode<synchronous>, transform_indices = @transform_1, window_bounds = array<i64: 128, 128>}, {pipeline_mode = #tpu.pipeline_mode<synchronous>, transform_indices = @transform_2, window_bounds = array<i64: 4, 32>}, {pipeline_mode = #tpu.pipeline_mode<synchronous>, transform_indices = @transform_3, window_bounds = array<i64: 1, 32>}, {pipeline_mode = #tpu.pipeline_mode<synchronous>, transform_indices = @transform_4, window_bounds = array<i64: 8, 64, 64>}, {pipeline_mode = #tpu.pipeline_mode<synchronous>, transform_indices = @transform_5, window_bounds = array<i64: 8, 1, 64>}, {pipeline_mode = #tpu.pipeline_mode<synchronous>, transform_indices = @transform_6, window_bounds = array<i64: 8, 32, 256>}, {pipeline_mode = #tpu.pipeline_mode<synchronous>, transform_indices = @transform_7, window_bounds = array<i64: 8, 1, 256>}, {pipeline_mode = #tpu.pipeline_mode<synchronous>, transform_indices = @transform_8, window_bounds = array<i64: 8, 32, 32>}, {pipeline_mode = #tpu.pipeline_mode<synchronous>, transform_indices = @transform_9, window_bounds = array<i64: 8, 1, 32>}, {pipeline_mode = #tpu.pipeline_mode<synchronous>, transform_indices = @transform_10, window_bounds = array<i64: 256, 512>}, {pipeline_mode = #tpu.pipeline_mode<synchronous>, transform_indices = @transform_11, window_bounds = array<i64: 1, 512>}, {pipeline_mode = #tpu.pipeline_mode<synchronous>, transform_indices = @transform_12, window_bounds = array<i64: 512, 8>}, {pipeline_mode = #tpu.pipeline_mode<synchronous>, transform_indices = @transform_13, window_bounds = array<i64: 1, 8>}, {transform_indices = @transform_14, window_bounds = array<i64: 32, 8>}]} {
    %c0 = arith.constant 0 : index
    %c0_0 = arith.constant 0 : index
    %0 = vector.load %arg2[%c0, %c0_0] : memref<128x128xbf16, #tpu.memory_space<vmem>>, vector<128x128xbf16>
    %c0_1 = arith.constant 0 : index
    %c0_2 = arith.constant 0 : index
    %c0_3 = arith.constant 0 : index
    %1 = vector.load %arg1[%c0_1, %c0_2, %c0_3] : memref<1x416x4xf32, #tpu.memory_space<vmem>>, vector<1x416x4xf32>
    %2 = vector.shape_cast %1 : vector<1x416x4xf32> to vector<416x4xf32>
    %3 = arith.truncf %2 : vector<416x4xf32> to vector<416x4xbf16>
    %c0_4 = arith.constant 0 : index
    %c0_5 = arith.constant 0 : index
    %4 = vector.load %arg3[%c0_4, %c0_5] : memref<4x32xbf16, #tpu.memory_space<vmem>>, vector<4x32xbf16>
    %cst = arith.constant dense<0.000000e+00> : vector<416x32xf32>
    %5 = tpu.matmul %3, %4, %cst {dimension_numbers = #tpu.dot_dimension_numbers<[1], [0], [0], [1], [0, 0, 1, 1], [], []>} : vector<416x4xbf16>, vector<4x32xbf16>, vector<416x32xf32> -> vector<416x32xf32>
    %c0_6 = arith.constant 0 : index
    %c0_7 = arith.constant 0 : index
    %6 = vector.load %arg4[%c0_6, %c0_7] : memref<1x32xf32, #tpu.memory_space<vmem>>, vector<1x32xf32>
    %7 = vector.broadcast %6 : vector<1x32xf32> to vector<416x32xf32>
    %8 = arith.addf %5, %7 : vector<416x32xf32>
    %cst_8 = arith.constant 0.000000e+00 : f32
    %9 = vector.broadcast %cst_8 : f32 to vector<32x256xf32>
    %10 = vector.extract_strided_slice %8 {offsets = [384, 0], sizes = [32, 32], strides = [1, 1]} : vector<416x32xf32> to vector<32x32xf32>
    %11 = arith.truncf %10 : vector<32x32xf32> to vector<32x32xbf16>
    %c0_9 = arith.constant 0 : index
    %c0_10 = arith.constant 0 : index
    %c0_11 = arith.constant 0 : index
    %12 = vector.load %arg7[%c0_9, %c0_10, %c0_11] : memref<8x32x256xbf16, #tpu.memory_space<vmem>>, vector<1x32x256xbf16>
    %13 = vector.shape_cast %12 : vector<1x32x256xbf16> to vector<32x256xbf16>
    %cst_12 = arith.constant dense<0.000000e+00> : vector<32x256xf32>
    %14 = tpu.matmul %11, %13, %cst_12 {dimension_numbers = #tpu.dot_dimension_numbers<[1], [0], [0], [1], [0, 0, 1, 1], [], []>} : vector<32x32xbf16>, vector<32x256xbf16>, vector<32x256xf32> -> vector<32x256xf32>
    %15 = arith.addf %9, %14 : vector<32x256xf32>
    %c0_13 = arith.constant 0 : index
    %c0_14 = arith.constant 0 : index
    %c0_15 = arith.constant 0 : index
    %16 = vector.load %arg8[%c0_13, %c0_14, %c0_15] : memref<8x1x256xf32, #tpu.memory_space<vmem>>, vector<1x1x256xf32>
    %17 = vector.shape_cast %16 : vector<1x1x256xf32> to vector<1x256xf32>
    %18 = vector.broadcast %17 : vector<1x256xf32> to vector<32x256xf32>
    %19 = arith.addf %15, %18 : vector<32x256xf32>
    %20 = vector.extract_strided_slice %8 {offsets = [0, 0], sizes = [384, 32], strides = [1, 1]} : vector<416x32xf32> to vector<384x32xf32>
    %21 = vector.extract_strided_slice %8 {offsets = [32, 0], sizes = [384, 32], strides = [1, 1]} : vector<416x32xf32> to vector<384x32xf32>
    %22 = tpu.concatenate %20, %21 in 1 : vector<384x32xf32>, vector<384x32xf32> -> vector<384x64xf32>
    %23 = arith.truncf %22 : vector<384x64xf32> to vector<384x64xbf16>
    %c0_16 = arith.constant 0 : index
    %c0_17 = arith.constant 0 : index
    %c0_18 = arith.constant 0 : index
    %24 = vector.load %arg5[%c0_16, %c0_17, %c0_18] : memref<8x64x64xbf16, #tpu.memory_space<vmem>>, vector<1x64x64xbf16>
    %25 = vector.shape_cast %24 : vector<1x64x64xbf16> to vector<64x64xbf16>
    %cst_19 = arith.constant dense<0.000000e+00> : vector<384x64xf32>
    %26 = tpu.matmul %23, %25, %cst_19 {dimension_numbers = #tpu.dot_dimension_numbers<[1], [0], [0], [1], [0, 0, 1, 1], [], []>} : vector<384x64xbf16>, vector<64x64xbf16>, vector<384x64xf32> -> vector<384x64xf32>
    %c0_20 = arith.constant 0 : index
    %c0_21 = arith.constant 0 : index
    %c0_22 = arith.constant 0 : index
    %27 = vector.load %arg6[%c0_20, %c0_21, %c0_22] : memref<8x1x64xf32, #tpu.memory_space<vmem>>, vector<1x1x64xf32>
    %28 = vector.shape_cast %27 : vector<1x1x64xf32> to vector<1x64xf32>
    %29 = vector.broadcast %28 : vector<1x64xf32> to vector<384x64xf32>
    %30 = arith.addf %26, %29 : vector<384x64xf32>
    %31 = vector.extract_strided_slice %30 {offsets = [0, 0], sizes = [384, 32], strides = [1, 1]} : vector<384x64xf32> to vector<384x32xf32>
    %32 = math.tanh %31 : vector<384x32xf32>
    %33 = vector.extract_strided_slice %30 {offsets = [0, 32], sizes = [384, 32], strides = [1, 1]} : vector<384x64xf32> to vector<384x32xf32>
    %34 = arith.negf %33 : vector<384x32xf32>
    %35 = math.exp %34 : vector<384x32xf32>
    %cst_23 = arith.constant 1.000000e+00 : f32
    %36 = vector.broadcast %cst_23 : f32 to vector<384x32xf32>
    %37 = arith.addf %36, %35 : vector<384x32xf32>
    %38 = arith.divf %36, %37 : vector<384x32xf32>
    %39 = arith.mulf %32, %38 : vector<384x32xf32>
    %40 = arith.truncf %39 : vector<384x32xf32> to vector<384x32xbf16>
    %41 = vector.extract_strided_slice %40 {offsets = [0, 0], sizes = [128, 32], strides = [1, 1]} : vector<384x32xbf16> to vector<128x32xbf16>
    %cst_24 = arith.constant dense<0.000000e+00> : vector<128x32xf32>
    %42 = tpu.matmul %0, %41, %cst_24 {dimension_numbers = #tpu.dot_dimension_numbers<[1], [0], [0], [1], [0, 0, 1, 1], [], []>} : vector<128x128xbf16>, vector<128x32xbf16>, vector<128x32xf32> -> vector<128x32xf32>
    %43 = vector.extract_strided_slice %40 {offsets = [128, 0], sizes = [128, 32], strides = [1, 1]} : vector<384x32xbf16> to vector<128x32xbf16>
    %cst_25 = arith.constant dense<0.000000e+00> : vector<128x32xf32>
    %44 = tpu.matmul %0, %43, %cst_25 {dimension_numbers = #tpu.dot_dimension_numbers<[1], [0], [0], [1], [0, 0, 1, 1], [], []>} : vector<128x128xbf16>, vector<128x32xbf16>, vector<128x32xf32> -> vector<128x32xf32>
    %45 = vector.extract_strided_slice %40 {offsets = [256, 0], sizes = [128, 32], strides = [1, 1]} : vector<384x32xbf16> to vector<128x32xbf16>
    %cst_26 = arith.constant dense<0.000000e+00> : vector<128x32xf32>
    %46 = tpu.matmul %0, %45, %cst_26 {dimension_numbers = #tpu.dot_dimension_numbers<[1], [0], [0], [1], [0, 0, 1, 1], [], []>} : vector<128x128xbf16>, vector<128x32xbf16>, vector<128x32xf32> -> vector<128x32xf32>
    %47 = tpu.concatenate %42, %44, %46 in 0 : vector<128x32xf32>, vector<128x32xf32>, vector<128x32xf32> -> vector<384x32xf32>
    %48 = arith.truncf %47 : vector<384x32xf32> to vector<384x32xbf16>
    %c0_27 = arith.constant 0 : index
    %c0_28 = arith.constant 0 : index
    %c0_29 = arith.constant 0 : index
    %49 = vector.load %arg9[%c0_27, %c0_28, %c0_29] : memref<8x32x32xbf16, #tpu.memory_space<vmem>>, vector<1x32x32xbf16>
    %50 = vector.shape_cast %49 : vector<1x32x32xbf16> to vector<32x32xbf16>
    %cst_30 = arith.constant dense<0.000000e+00> : vector<384x32xf32>
    %51 = tpu.matmul %48, %50, %cst_30 {dimension_numbers = #tpu.dot_dimension_numbers<[1], [0], [0], [1], [0, 0, 1, 1], [], []>} : vector<384x32xbf16>, vector<32x32xbf16>, vector<384x32xf32> -> vector<384x32xf32>
    %c0_31 = arith.constant 0 : index
    %c0_32 = arith.constant 0 : index
    %c0_33 = arith.constant 0 : index
    %52 = vector.load %arg10[%c0_31, %c0_32, %c0_33] : memref<8x1x32xf32, #tpu.memory_space<vmem>>, vector<1x1x32xf32>
    %53 = vector.shape_cast %52 : vector<1x1x32xf32> to vector<1x32xf32>
    %54 = vector.broadcast %53 : vector<1x32xf32> to vector<384x32xf32>
    %55 = arith.addf %51, %54 : vector<384x32xf32>
    %56 = vector.extract_strided_slice %8 {offsets = [32, 0], sizes = [384, 32], strides = [1, 1]} : vector<416x32xf32> to vector<384x32xf32>
    %57 = arith.addf %55, %56 : vector<384x32xf32>
    %58 = vector.extract_strided_slice %57 {offsets = [352, 0], sizes = [32, 32], strides = [1, 1]} : vector<384x32xf32> to vector<32x32xf32>
    %59 = arith.truncf %58 : vector<32x32xf32> to vector<32x32xbf16>
    %c1 = arith.constant 1 : index
    %c0_34 = arith.constant 0 : index
    %c0_35 = arith.constant 0 : index
    %60 = vector.load %arg7[%c1, %c0_34, %c0_35] : memref<8x32x256xbf16, #tpu.memory_space<vmem>>, vector<1x32x256xbf16>
    %61 = vector.shape_cast %60 : vector<1x32x256xbf16> to vector<32x256xbf16>
    %cst_36 = arith.constant dense<0.000000e+00> : vector<32x256xf32>
    %62 = tpu.matmul %59, %61, %cst_36 {dimension_numbers = #tpu.dot_dimension_numbers<[1], [0], [0], [1], [0, 0, 1, 1], [], []>} : vector<32x32xbf16>, vector<32x256xbf16>, vector<32x256xf32> -> vector<32x256xf32>
    %63 = arith.addf %19, %62 : vector<32x256xf32>
    %c1_37 = arith.constant 1 : index
    %c0_38 = arith.constant 0 : index
    %c0_39 = arith.constant 0 : index
    %64 = vector.load %arg8[%c1_37, %c0_38, %c0_39] : memref<8x1x256xf32, #tpu.memory_space<vmem>>, vector<1x1x256xf32>
    %65 = vector.shape_cast %64 : vector<1x1x256xf32> to vector<1x256xf32>
    %66 = vector.broadcast %65 : vector<1x256xf32> to vector<32x256xf32>
    %67 = arith.addf %63, %66 : vector<32x256xf32>
    %68 = vector.extract_strided_slice %57 {offsets = [0, 0], sizes = [320, 32], strides = [1, 1]} : vector<384x32xf32> to vector<320x32xf32>
    %69 = vector.extract_strided_slice %57 {offsets = [64, 0], sizes = [320, 32], strides = [1, 1]} : vector<384x32xf32> to vector<320x32xf32>
    %70 = tpu.concatenate %68, %69 in 1 : vector<320x32xf32>, vector<320x32xf32> -> vector<320x64xf32>
    %71 = arith.truncf %70 : vector<320x64xf32> to vector<320x64xbf16>
    %c1_40 = arith.constant 1 : index
    %c0_41 = arith.constant 0 : index
    %c0_42 = arith.constant 0 : index
    %72 = vector.load %arg5[%c1_40, %c0_41, %c0_42] : memref<8x64x64xbf16, #tpu.memory_space<vmem>>, vector<1x64x64xbf16>
    %73 = vector.shape_cast %72 : vector<1x64x64xbf16> to vector<64x64xbf16>
    %cst_43 = arith.constant dense<0.000000e+00> : vector<320x64xf32>
    %74 = tpu.matmul %71, %73, %cst_43 {dimension_numbers = #tpu.dot_dimension_numbers<[1], [0], [0], [1], [0, 0, 1, 1], [], []>} : vector<320x64xbf16>, vector<64x64xbf16>, vector<320x64xf32> -> vector<320x64xf32>
    %c1_44 = arith.constant 1 : index
    %c0_45 = arith.constant 0 : index
    %c0_46 = arith.constant 0 : index
    %75 = vector.load %arg6[%c1_44, %c0_45, %c0_46] : memref<8x1x64xf32, #tpu.memory_space<vmem>>, vector<1x1x64xf32>
    %76 = vector.shape_cast %75 : vector<1x1x64xf32> to vector<1x64xf32>
    %77 = vector.broadcast %76 : vector<1x64xf32> to vector<320x64xf32>
    %78 = arith.addf %74, %77 : vector<320x64xf32>
    %79 = vector.extract_strided_slice %78 {offsets = [0, 0], sizes = [320, 32], strides = [1, 1]} : vector<320x64xf32> to vector<320x32xf32>
    %80 = math.tanh %79 : vector<320x32xf32>
    %81 = vector.extract_strided_slice %78 {offsets = [0, 32], sizes = [320, 32], strides = [1, 1]} : vector<320x64xf32> to vector<320x32xf32>
    %82 = arith.negf %81 : vector<320x32xf32>
    %83 = math.exp %82 : vector<320x32xf32>
    %cst_47 = arith.constant 1.000000e+00 : f32
    %84 = vector.broadcast %cst_47 : f32 to vector<320x32xf32>
    %85 = arith.addf %84, %83 : vector<320x32xf32>
    %86 = arith.divf %84, %85 : vector<320x32xf32>
    %87 = arith.mulf %80, %86 : vector<320x32xf32>
    %88 = arith.truncf %87 : vector<320x32xf32> to vector<320x32xbf16>
    %89 = vector.extract_strided_slice %88 {offsets = [0, 0], sizes = [128, 32], strides = [1, 1]} : vector<320x32xbf16> to vector<128x32xbf16>
    %cst_48 = arith.constant dense<0.000000e+00> : vector<128x32xf32>
    %90 = tpu.matmul %0, %89, %cst_48 {dimension_numbers = #tpu.dot_dimension_numbers<[1], [0], [0], [1], [0, 0, 1, 1], [], []>} : vector<128x128xbf16>, vector<128x32xbf16>, vector<128x32xf32> -> vector<128x32xf32>
    %91 = vector.extract_strided_slice %88 {offsets = [128, 0], sizes = [128, 32], strides = [1, 1]} : vector<320x32xbf16> to vector<128x32xbf16>
    %cst_49 = arith.constant dense<0.000000e+00> : vector<128x32xf32>
    %92 = tpu.matmul %0, %91, %cst_49 {dimension_numbers = #tpu.dot_dimension_numbers<[1], [0], [0], [1], [0, 0, 1, 1], [], []>} : vector<128x128xbf16>, vector<128x32xbf16>, vector<128x32xf32> -> vector<128x32xf32>
    %93 = vector.extract_strided_slice %0 {offsets = [0, 0], sizes = [64, 64], strides = [1, 1]} : vector<128x128xbf16> to vector<64x64xbf16>
    %94 = vector.extract_strided_slice %88 {offsets = [256, 0], sizes = [64, 32], strides = [1, 1]} : vector<320x32xbf16> to vector<64x32xbf16>
    %cst_50 = arith.constant dense<0.000000e+00> : vector<64x32xf32>
    %95 = tpu.matmul %93, %94, %cst_50 {dimension_numbers = #tpu.dot_dimension_numbers<[1], [0], [0], [1], [0, 0, 1, 1], [], []>} : vector<64x64xbf16>, vector<64x32xbf16>, vector<64x32xf32> -> vector<64x32xf32>
    %96 = tpu.concatenate %90, %92, %95 in 0 : vector<128x32xf32>, vector<128x32xf32>, vector<64x32xf32> -> vector<320x32xf32>
    %97 = arith.truncf %96 : vector<320x32xf32> to vector<320x32xbf16>
    %c1_51 = arith.constant 1 : index
    %c0_52 = arith.constant 0 : index
    %c0_53 = arith.constant 0 : index
    %98 = vector.load %arg9[%c1_51, %c0_52, %c0_53] : memref<8x32x32xbf16, #tpu.memory_space<vmem>>, vector<1x32x32xbf16>
    %99 = vector.shape_cast %98 : vector<1x32x32xbf16> to vector<32x32xbf16>
    %cst_54 = arith.constant dense<0.000000e+00> : vector<320x32xf32>
    %100 = tpu.matmul %97, %99, %cst_54 {dimension_numbers = #tpu.dot_dimension_numbers<[1], [0], [0], [1], [0, 0, 1, 1], [], []>} : vector<320x32xbf16>, vector<32x32xbf16>, vector<320x32xf32> -> vector<320x32xf32>
    %c1_55 = arith.constant 1 : index
    %c0_56 = arith.constant 0 : index
    %c0_57 = arith.constant 0 : index
    %101 = vector.load %arg10[%c1_55, %c0_56, %c0_57] : memref<8x1x32xf32, #tpu.memory_space<vmem>>, vector<1x1x32xf32>
    %102 = vector.shape_cast %101 : vector<1x1x32xf32> to vector<1x32xf32>
    %103 = vector.broadcast %102 : vector<1x32xf32> to vector<320x32xf32>
    %104 = arith.addf %100, %103 : vector<320x32xf32>
    %105 = vector.extract_strided_slice %57 {offsets = [64, 0], sizes = [320, 32], strides = [1, 1]} : vector<384x32xf32> to vector<320x32xf32>
    %106 = arith.addf %104, %105 : vector<320x32xf32>
    %107 = vector.extract_strided_slice %106 {offsets = [288, 0], sizes = [32, 32], strides = [1, 1]} : vector<320x32xf32> to vector<32x32xf32>
    %108 = arith.truncf %107 : vector<32x32xf32> to vector<32x32xbf16>
    %c2 = arith.constant 2 : index
    %c0_58 = arith.constant 0 : index
    %c0_59 = arith.constant 0 : index
    %109 = vector.load %arg7[%c2, %c0_58, %c0_59] : memref<8x32x256xbf16, #tpu.memory_space<vmem>>, vector<1x32x256xbf16>
    %110 = vector.shape_cast %109 : vector<1x32x256xbf16> to vector<32x256xbf16>
    %cst_60 = arith.constant dense<0.000000e+00> : vector<32x256xf32>
    %111 = tpu.matmul %108, %110, %cst_60 {dimension_numbers = #tpu.dot_dimension_numbers<[1], [0], [0], [1], [0, 0, 1, 1], [], []>} : vector<32x32xbf16>, vector<32x256xbf16>, vector<32x256xf32> -> vector<32x256xf32>
    %112 = arith.addf %67, %111 : vector<32x256xf32>
    %c2_61 = arith.constant 2 : index
    %c0_62 = arith.constant 0 : index
    %c0_63 = arith.constant 0 : index
    %113 = vector.load %arg8[%c2_61, %c0_62, %c0_63] : memref<8x1x256xf32, #tpu.memory_space<vmem>>, vector<1x1x256xf32>
    %114 = vector.shape_cast %113 : vector<1x1x256xf32> to vector<1x256xf32>
    %115 = vector.broadcast %114 : vector<1x256xf32> to vector<32x256xf32>
    %116 = arith.addf %112, %115 : vector<32x256xf32>
    %117 = vector.extract_strided_slice %106 {offsets = [0, 0], sizes = [288, 32], strides = [1, 1]} : vector<320x32xf32> to vector<288x32xf32>
    %118 = vector.extract_strided_slice %106 {offsets = [32, 0], sizes = [288, 32], strides = [1, 1]} : vector<320x32xf32> to vector<288x32xf32>
    %119 = tpu.concatenate %117, %118 in 1 : vector<288x32xf32>, vector<288x32xf32> -> vector<288x64xf32>
    %120 = arith.truncf %119 : vector<288x64xf32> to vector<288x64xbf16>
    %c2_64 = arith.constant 2 : index
    %c0_65 = arith.constant 0 : index
    %c0_66 = arith.constant 0 : index
    %121 = vector.load %arg5[%c2_64, %c0_65, %c0_66] : memref<8x64x64xbf16, #tpu.memory_space<vmem>>, vector<1x64x64xbf16>
    %122 = vector.shape_cast %121 : vector<1x64x64xbf16> to vector<64x64xbf16>
    %cst_67 = arith.constant dense<0.000000e+00> : vector<288x64xf32>
    %123 = tpu.matmul %120, %122, %cst_67 {dimension_numbers = #tpu.dot_dimension_numbers<[1], [0], [0], [1], [0, 0, 1, 1], [], []>} : vector<288x64xbf16>, vector<64x64xbf16>, vector<288x64xf32> -> vector<288x64xf32>
    %c2_68 = arith.constant 2 : index
    %c0_69 = arith.constant 0 : index
    %c0_70 = arith.constant 0 : index
    %124 = vector.load %arg6[%c2_68, %c0_69, %c0_70] : memref<8x1x64xf32, #tpu.memory_space<vmem>>, vector<1x1x64xf32>
    %125 = vector.shape_cast %124 : vector<1x1x64xf32> to vector<1x64xf32>
    %126 = vector.broadcast %125 : vector<1x64xf32> to vector<288x64xf32>
    %127 = arith.addf %123, %126 : vector<288x64xf32>
    %128 = vector.extract_strided_slice %127 {offsets = [0, 0], sizes = [288, 32], strides = [1, 1]} : vector<288x64xf32> to vector<288x32xf32>
    %129 = math.tanh %128 : vector<288x32xf32>
    %130 = vector.extract_strided_slice %127 {offsets = [0, 32], sizes = [288, 32], strides = [1, 1]} : vector<288x64xf32> to vector<288x32xf32>
    %131 = arith.negf %130 : vector<288x32xf32>
    %132 = math.exp %131 : vector<288x32xf32>
    %cst_71 = arith.constant 1.000000e+00 : f32
    %133 = vector.broadcast %cst_71 : f32 to vector<288x32xf32>
    %134 = arith.addf %133, %132 : vector<288x32xf32>
    %135 = arith.divf %133, %134 : vector<288x32xf32>
    %136 = arith.mulf %129, %135 : vector<288x32xf32>
    %137 = arith.truncf %136 : vector<288x32xf32> to vector<288x32xbf16>
    %138 = vector.extract_strided_slice %137 {offsets = [0, 0], sizes = [128, 32], strides = [1, 1]} : vector<288x32xbf16> to vector<128x32xbf16>
    %cst_72 = arith.constant dense<0.000000e+00> : vector<128x32xf32>
    %139 = tpu.matmul %0, %138, %cst_72 {dimension_numbers = #tpu.dot_dimension_numbers<[1], [0], [0], [1], [0, 0, 1, 1], [], []>} : vector<128x128xbf16>, vector<128x32xbf16>, vector<128x32xf32> -> vector<128x32xf32>
    %140 = vector.extract_strided_slice %137 {offsets = [128, 0], sizes = [128, 32], strides = [1, 1]} : vector<288x32xbf16> to vector<128x32xbf16>
    %cst_73 = arith.constant dense<0.000000e+00> : vector<128x32xf32>
    %141 = tpu.matmul %0, %140, %cst_73 {dimension_numbers = #tpu.dot_dimension_numbers<[1], [0], [0], [1], [0, 0, 1, 1], [], []>} : vector<128x128xbf16>, vector<128x32xbf16>, vector<128x32xf32> -> vector<128x32xf32>
    %142 = vector.extract_strided_slice %0 {offsets = [0, 0], sizes = [32, 32], strides = [1, 1]} : vector<128x128xbf16> to vector<32x32xbf16>
    %143 = vector.extract_strided_slice %137 {offsets = [256, 0], sizes = [32, 32], strides = [1, 1]} : vector<288x32xbf16> to vector<32x32xbf16>
    %cst_74 = arith.constant dense<0.000000e+00> : vector<32x32xf32>
    %144 = tpu.matmul %142, %143, %cst_74 {dimension_numbers = #tpu.dot_dimension_numbers<[1], [0], [0], [1], [0, 0, 1, 1], [], []>} : vector<32x32xbf16>, vector<32x32xbf16>, vector<32x32xf32> -> vector<32x32xf32>
    %145 = tpu.concatenate %139, %141, %144 in 0 : vector<128x32xf32>, vector<128x32xf32>, vector<32x32xf32> -> vector<288x32xf32>
    %146 = arith.truncf %145 : vector<288x32xf32> to vector<288x32xbf16>
    %c2_75 = arith.constant 2 : index
    %c0_76 = arith.constant 0 : index
    %c0_77 = arith.constant 0 : index
    %147 = vector.load %arg9[%c2_75, %c0_76, %c0_77] : memref<8x32x32xbf16, #tpu.memory_space<vmem>>, vector<1x32x32xbf16>
    %148 = vector.shape_cast %147 : vector<1x32x32xbf16> to vector<32x32xbf16>
    %cst_78 = arith.constant dense<0.000000e+00> : vector<288x32xf32>
    %149 = tpu.matmul %146, %148, %cst_78 {dimension_numbers = #tpu.dot_dimension_numbers<[1], [0], [0], [1], [0, 0, 1, 1], [], []>} : vector<288x32xbf16>, vector<32x32xbf16>, vector<288x32xf32> -> vector<288x32xf32>
    %c2_79 = arith.constant 2 : index
    %c0_80 = arith.constant 0 : index
    %c0_81 = arith.constant 0 : index
    %150 = vector.load %arg10[%c2_79, %c0_80, %c0_81] : memref<8x1x32xf32, #tpu.memory_space<vmem>>, vector<1x1x32xf32>
    %151 = vector.shape_cast %150 : vector<1x1x32xf32> to vector<1x32xf32>
    %152 = vector.broadcast %151 : vector<1x32xf32> to vector<288x32xf32>
    %153 = arith.addf %149, %152 : vector<288x32xf32>
    %154 = vector.extract_strided_slice %106 {offsets = [32, 0], sizes = [288, 32], strides = [1, 1]} : vector<320x32xf32> to vector<288x32xf32>
    %155 = arith.addf %153, %154 : vector<288x32xf32>
    %156 = vector.extract_strided_slice %155 {offsets = [256, 0], sizes = [32, 32], strides = [1, 1]} : vector<288x32xf32> to vector<32x32xf32>
    %157 = arith.truncf %156 : vector<32x32xf32> to vector<32x32xbf16>
    %c3 = arith.constant 3 : index
    %c0_82 = arith.constant 0 : index
    %c0_83 = arith.constant 0 : index
    %158 = vector.load %arg7[%c3, %c0_82, %c0_83] : memref<8x32x256xbf16, #tpu.memory_space<vmem>>, vector<1x32x256xbf16>
    %159 = vector.shape_cast %158 : vector<1x32x256xbf16> to vector<32x256xbf16>
    %cst_84 = arith.constant dense<0.000000e+00> : vector<32x256xf32>
    %160 = tpu.matmul %157, %159, %cst_84 {dimension_numbers = #tpu.dot_dimension_numbers<[1], [0], [0], [1], [0, 0, 1, 1], [], []>} : vector<32x32xbf16>, vector<32x256xbf16>, vector<32x256xf32> -> vector<32x256xf32>
    %161 = arith.addf %116, %160 : vector<32x256xf32>
    %c3_85 = arith.constant 3 : index
    %c0_86 = arith.constant 0 : index
    %c0_87 = arith.constant 0 : index
    %162 = vector.load %arg8[%c3_85, %c0_86, %c0_87] : memref<8x1x256xf32, #tpu.memory_space<vmem>>, vector<1x1x256xf32>
    %163 = vector.shape_cast %162 : vector<1x1x256xf32> to vector<1x256xf32>
    %164 = vector.broadcast %163 : vector<1x256xf32> to vector<32x256xf32>
    %165 = arith.addf %161, %164 : vector<32x256xf32>
    %166 = vector.extract_strided_slice %155 {offsets = [0, 0], sizes = [224, 32], strides = [1, 1]} : vector<288x32xf32> to vector<224x32xf32>
    %167 = vector.extract_strided_slice %155 {offsets = [64, 0], sizes = [224, 32], strides = [1, 1]} : vector<288x32xf32> to vector<224x32xf32>
    %168 = tpu.concatenate %166, %167 in 1 : vector<224x32xf32>, vector<224x32xf32> -> vector<224x64xf32>
    %169 = arith.truncf %168 : vector<224x64xf32> to vector<224x64xbf16>
    %c3_88 = arith.constant 3 : index
    %c0_89 = arith.constant 0 : index
    %c0_90 = arith.constant 0 : index
    %170 = vector.load %arg5[%c3_88, %c0_89, %c0_90] : memref<8x64x64xbf16, #tpu.memory_space<vmem>>, vector<1x64x64xbf16>
    %171 = vector.shape_cast %170 : vector<1x64x64xbf16> to vector<64x64xbf16>
    %cst_91 = arith.constant dense<0.000000e+00> : vector<224x64xf32>
    %172 = tpu.matmul %169, %171, %cst_91 {dimension_numbers = #tpu.dot_dimension_numbers<[1], [0], [0], [1], [0, 0, 1, 1], [], []>} : vector<224x64xbf16>, vector<64x64xbf16>, vector<224x64xf32> -> vector<224x64xf32>
    %c3_92 = arith.constant 3 : index
    %c0_93 = arith.constant 0 : index
    %c0_94 = arith.constant 0 : index
    %173 = vector.load %arg6[%c3_92, %c0_93, %c0_94] : memref<8x1x64xf32, #tpu.memory_space<vmem>>, vector<1x1x64xf32>
    %174 = vector.shape_cast %173 : vector<1x1x64xf32> to vector<1x64xf32>
    %175 = vector.broadcast %174 : vector<1x64xf32> to vector<224x64xf32>
    %176 = arith.addf %172, %175 : vector<224x64xf32>
    %177 = vector.extract_strided_slice %176 {offsets = [0, 0], sizes = [224, 32], strides = [1, 1]} : vector<224x64xf32> to vector<224x32xf32>
    %178 = math.tanh %177 : vector<224x32xf32>
    %179 = vector.extract_strided_slice %176 {offsets = [0, 32], sizes = [224, 32], strides = [1, 1]} : vector<224x64xf32> to vector<224x32xf32>
    %180 = arith.negf %179 : vector<224x32xf32>
    %181 = math.exp %180 : vector<224x32xf32>
    %cst_95 = arith.constant 1.000000e+00 : f32
    %182 = vector.broadcast %cst_95 : f32 to vector<224x32xf32>
    %183 = arith.addf %182, %181 : vector<224x32xf32>
    %184 = arith.divf %182, %183 : vector<224x32xf32>
    %185 = arith.mulf %178, %184 : vector<224x32xf32>
    %186 = arith.truncf %185 : vector<224x32xf32> to vector<224x32xbf16>
    %187 = vector.extract_strided_slice %186 {offsets = [0, 0], sizes = [128, 32], strides = [1, 1]} : vector<224x32xbf16> to vector<128x32xbf16>
    %cst_96 = arith.constant dense<0.000000e+00> : vector<128x32xf32>
    %188 = tpu.matmul %0, %187, %cst_96 {dimension_numbers = #tpu.dot_dimension_numbers<[1], [0], [0], [1], [0, 0, 1, 1], [], []>} : vector<128x128xbf16>, vector<128x32xbf16>, vector<128x32xf32> -> vector<128x32xf32>
    %189 = vector.extract_strided_slice %0 {offsets = [0, 0], sizes = [96, 96], strides = [1, 1]} : vector<128x128xbf16> to vector<96x96xbf16>
    %190 = vector.extract_strided_slice %186 {offsets = [128, 0], sizes = [96, 32], strides = [1, 1]} : vector<224x32xbf16> to vector<96x32xbf16>
    %cst_97 = arith.constant dense<0.000000e+00> : vector<96x32xf32>
    %191 = tpu.matmul %189, %190, %cst_97 {dimension_numbers = #tpu.dot_dimension_numbers<[1], [0], [0], [1], [0, 0, 1, 1], [], []>} : vector<96x96xbf16>, vector<96x32xbf16>, vector<96x32xf32> -> vector<96x32xf32>
    %192 = tpu.concatenate %188, %191 in 0 : vector<128x32xf32>, vector<96x32xf32> -> vector<224x32xf32>
    %193 = arith.truncf %192 : vector<224x32xf32> to vector<224x32xbf16>
    %c3_98 = arith.constant 3 : index
    %c0_99 = arith.constant 0 : index
    %c0_100 = arith.constant 0 : index
    %194 = vector.load %arg9[%c3_98, %c0_99, %c0_100] : memref<8x32x32xbf16, #tpu.memory_space<vmem>>, vector<1x32x32xbf16>
    %195 = vector.shape_cast %194 : vector<1x32x32xbf16> to vector<32x32xbf16>
    %cst_101 = arith.constant dense<0.000000e+00> : vector<224x32xf32>
    %196 = tpu.matmul %193, %195, %cst_101 {dimension_numbers = #tpu.dot_dimension_numbers<[1], [0], [0], [1], [0, 0, 1, 1], [], []>} : vector<224x32xbf16>, vector<32x32xbf16>, vector<224x32xf32> -> vector<224x32xf32>
    %c3_102 = arith.constant 3 : index
    %c0_103 = arith.constant 0 : index
    %c0_104 = arith.constant 0 : index
    %197 = vector.load %arg10[%c3_102, %c0_103, %c0_104] : memref<8x1x32xf32, #tpu.memory_space<vmem>>, vector<1x1x32xf32>
    %198 = vector.shape_cast %197 : vector<1x1x32xf32> to vector<1x32xf32>
    %199 = vector.broadcast %198 : vector<1x32xf32> to vector<224x32xf32>
    %200 = arith.addf %196, %199 : vector<224x32xf32>
    %201 = vector.extract_strided_slice %155 {offsets = [64, 0], sizes = [224, 32], strides = [1, 1]} : vector<288x32xf32> to vector<224x32xf32>
    %202 = arith.addf %200, %201 : vector<224x32xf32>
    %203 = vector.extract_strided_slice %202 {offsets = [192, 0], sizes = [32, 32], strides = [1, 1]} : vector<224x32xf32> to vector<32x32xf32>
    %204 = arith.truncf %203 : vector<32x32xf32> to vector<32x32xbf16>
    %c4 = arith.constant 4 : index
    %c0_105 = arith.constant 0 : index
    %c0_106 = arith.constant 0 : index
    %205 = vector.load %arg7[%c4, %c0_105, %c0_106] : memref<8x32x256xbf16, #tpu.memory_space<vmem>>, vector<1x32x256xbf16>
    %206 = vector.shape_cast %205 : vector<1x32x256xbf16> to vector<32x256xbf16>
    %cst_107 = arith.constant dense<0.000000e+00> : vector<32x256xf32>
    %207 = tpu.matmul %204, %206, %cst_107 {dimension_numbers = #tpu.dot_dimension_numbers<[1], [0], [0], [1], [0, 0, 1, 1], [], []>} : vector<32x32xbf16>, vector<32x256xbf16>, vector<32x256xf32> -> vector<32x256xf32>
    %208 = arith.addf %165, %207 : vector<32x256xf32>
    %c4_108 = arith.constant 4 : index
    %c0_109 = arith.constant 0 : index
    %c0_110 = arith.constant 0 : index
    %209 = vector.load %arg8[%c4_108, %c0_109, %c0_110] : memref<8x1x256xf32, #tpu.memory_space<vmem>>, vector<1x1x256xf32>
    %210 = vector.shape_cast %209 : vector<1x1x256xf32> to vector<1x256xf32>
    %211 = vector.broadcast %210 : vector<1x256xf32> to vector<32x256xf32>
    %212 = arith.addf %208, %211 : vector<32x256xf32>
    %213 = vector.extract_strided_slice %202 {offsets = [0, 0], sizes = [192, 32], strides = [1, 1]} : vector<224x32xf32> to vector<192x32xf32>
    %214 = vector.extract_strided_slice %202 {offsets = [32, 0], sizes = [192, 32], strides = [1, 1]} : vector<224x32xf32> to vector<192x32xf32>
    %215 = tpu.concatenate %213, %214 in 1 : vector<192x32xf32>, vector<192x32xf32> -> vector<192x64xf32>
    %216 = arith.truncf %215 : vector<192x64xf32> to vector<192x64xbf16>
    %c4_111 = arith.constant 4 : index
    %c0_112 = arith.constant 0 : index
    %c0_113 = arith.constant 0 : index
    %217 = vector.load %arg5[%c4_111, %c0_112, %c0_113] : memref<8x64x64xbf16, #tpu.memory_space<vmem>>, vector<1x64x64xbf16>
    %218 = vector.shape_cast %217 : vector<1x64x64xbf16> to vector<64x64xbf16>
    %cst_114 = arith.constant dense<0.000000e+00> : vector<192x64xf32>
    %219 = tpu.matmul %216, %218, %cst_114 {dimension_numbers = #tpu.dot_dimension_numbers<[1], [0], [0], [1], [0, 0, 1, 1], [], []>} : vector<192x64xbf16>, vector<64x64xbf16>, vector<192x64xf32> -> vector<192x64xf32>
    %c4_115 = arith.constant 4 : index
    %c0_116 = arith.constant 0 : index
    %c0_117 = arith.constant 0 : index
    %220 = vector.load %arg6[%c4_115, %c0_116, %c0_117] : memref<8x1x64xf32, #tpu.memory_space<vmem>>, vector<1x1x64xf32>
    %221 = vector.shape_cast %220 : vector<1x1x64xf32> to vector<1x64xf32>
    %222 = vector.broadcast %221 : vector<1x64xf32> to vector<192x64xf32>
    %223 = arith.addf %219, %222 : vector<192x64xf32>
    %224 = vector.extract_strided_slice %223 {offsets = [0, 0], sizes = [192, 32], strides = [1, 1]} : vector<192x64xf32> to vector<192x32xf32>
    %225 = math.tanh %224 : vector<192x32xf32>
    %226 = vector.extract_strided_slice %223 {offsets = [0, 32], sizes = [192, 32], strides = [1, 1]} : vector<192x64xf32> to vector<192x32xf32>
    %227 = arith.negf %226 : vector<192x32xf32>
    %228 = math.exp %227 : vector<192x32xf32>
    %cst_118 = arith.constant 1.000000e+00 : f32
    %229 = vector.broadcast %cst_118 : f32 to vector<192x32xf32>
    %230 = arith.addf %229, %228 : vector<192x32xf32>
    %231 = arith.divf %229, %230 : vector<192x32xf32>
    %232 = arith.mulf %225, %231 : vector<192x32xf32>
    %233 = arith.truncf %232 : vector<192x32xf32> to vector<192x32xbf16>
    %234 = vector.extract_strided_slice %233 {offsets = [0, 0], sizes = [128, 32], strides = [1, 1]} : vector<192x32xbf16> to vector<128x32xbf16>
    %cst_119 = arith.constant dense<0.000000e+00> : vector<128x32xf32>
    %235 = tpu.matmul %0, %234, %cst_119 {dimension_numbers = #tpu.dot_dimension_numbers<[1], [0], [0], [1], [0, 0, 1, 1], [], []>} : vector<128x128xbf16>, vector<128x32xbf16>, vector<128x32xf32> -> vector<128x32xf32>
    %236 = vector.extract_strided_slice %0 {offsets = [0, 0], sizes = [64, 64], strides = [1, 1]} : vector<128x128xbf16> to vector<64x64xbf16>
    %237 = vector.extract_strided_slice %233 {offsets = [128, 0], sizes = [64, 32], strides = [1, 1]} : vector<192x32xbf16> to vector<64x32xbf16>
    %cst_120 = arith.constant dense<0.000000e+00> : vector<64x32xf32>
    %238 = tpu.matmul %236, %237, %cst_120 {dimension_numbers = #tpu.dot_dimension_numbers<[1], [0], [0], [1], [0, 0, 1, 1], [], []>} : vector<64x64xbf16>, vector<64x32xbf16>, vector<64x32xf32> -> vector<64x32xf32>
    %239 = tpu.concatenate %235, %238 in 0 : vector<128x32xf32>, vector<64x32xf32> -> vector<192x32xf32>
    %240 = arith.truncf %239 : vector<192x32xf32> to vector<192x32xbf16>
    %c4_121 = arith.constant 4 : index
    %c0_122 = arith.constant 0 : index
    %c0_123 = arith.constant 0 : index
    %241 = vector.load %arg9[%c4_121, %c0_122, %c0_123] : memref<8x32x32xbf16, #tpu.memory_space<vmem>>, vector<1x32x32xbf16>
    %242 = vector.shape_cast %241 : vector<1x32x32xbf16> to vector<32x32xbf16>
    %cst_124 = arith.constant dense<0.000000e+00> : vector<192x32xf32>
    %243 = tpu.matmul %240, %242, %cst_124 {dimension_numbers = #tpu.dot_dimension_numbers<[1], [0], [0], [1], [0, 0, 1, 1], [], []>} : vector<192x32xbf16>, vector<32x32xbf16>, vector<192x32xf32> -> vector<192x32xf32>
    %c4_125 = arith.constant 4 : index
    %c0_126 = arith.constant 0 : index
    %c0_127 = arith.constant 0 : index
    %244 = vector.load %arg10[%c4_125, %c0_126, %c0_127] : memref<8x1x32xf32, #tpu.memory_space<vmem>>, vector<1x1x32xf32>
    %245 = vector.shape_cast %244 : vector<1x1x32xf32> to vector<1x32xf32>
    %246 = vector.broadcast %245 : vector<1x32xf32> to vector<192x32xf32>
    %247 = arith.addf %243, %246 : vector<192x32xf32>
    %248 = vector.extract_strided_slice %202 {offsets = [32, 0], sizes = [192, 32], strides = [1, 1]} : vector<224x32xf32> to vector<192x32xf32>
    %249 = arith.addf %247, %248 : vector<192x32xf32>
    %250 = vector.extract_strided_slice %249 {offsets = [160, 0], sizes = [32, 32], strides = [1, 1]} : vector<192x32xf32> to vector<32x32xf32>
    %251 = arith.truncf %250 : vector<32x32xf32> to vector<32x32xbf16>
    %c5 = arith.constant 5 : index
    %c0_128 = arith.constant 0 : index
    %c0_129 = arith.constant 0 : index
    %252 = vector.load %arg7[%c5, %c0_128, %c0_129] : memref<8x32x256xbf16, #tpu.memory_space<vmem>>, vector<1x32x256xbf16>
    %253 = vector.shape_cast %252 : vector<1x32x256xbf16> to vector<32x256xbf16>
    %cst_130 = arith.constant dense<0.000000e+00> : vector<32x256xf32>
    %254 = tpu.matmul %251, %253, %cst_130 {dimension_numbers = #tpu.dot_dimension_numbers<[1], [0], [0], [1], [0, 0, 1, 1], [], []>} : vector<32x32xbf16>, vector<32x256xbf16>, vector<32x256xf32> -> vector<32x256xf32>
    %255 = arith.addf %212, %254 : vector<32x256xf32>
    %c5_131 = arith.constant 5 : index
    %c0_132 = arith.constant 0 : index
    %c0_133 = arith.constant 0 : index
    %256 = vector.load %arg8[%c5_131, %c0_132, %c0_133] : memref<8x1x256xf32, #tpu.memory_space<vmem>>, vector<1x1x256xf32>
    %257 = vector.shape_cast %256 : vector<1x1x256xf32> to vector<1x256xf32>
    %258 = vector.broadcast %257 : vector<1x256xf32> to vector<32x256xf32>
    %259 = arith.addf %255, %258 : vector<32x256xf32>
    %260 = vector.extract_strided_slice %249 {offsets = [0, 0], sizes = [128, 32], strides = [1, 1]} : vector<192x32xf32> to vector<128x32xf32>
    %261 = vector.extract_strided_slice %249 {offsets = [64, 0], sizes = [128, 32], strides = [1, 1]} : vector<192x32xf32> to vector<128x32xf32>
    %262 = tpu.concatenate %260, %261 in 1 : vector<128x32xf32>, vector<128x32xf32> -> vector<128x64xf32>
    %263 = arith.truncf %262 : vector<128x64xf32> to vector<128x64xbf16>
    %c5_134 = arith.constant 5 : index
    %c0_135 = arith.constant 0 : index
    %c0_136 = arith.constant 0 : index
    %264 = vector.load %arg5[%c5_134, %c0_135, %c0_136] : memref<8x64x64xbf16, #tpu.memory_space<vmem>>, vector<1x64x64xbf16>
    %265 = vector.shape_cast %264 : vector<1x64x64xbf16> to vector<64x64xbf16>
    %cst_137 = arith.constant dense<0.000000e+00> : vector<128x64xf32>
    %266 = tpu.matmul %263, %265, %cst_137 {dimension_numbers = #tpu.dot_dimension_numbers<[1], [0], [0], [1], [0, 0, 1, 1], [], []>} : vector<128x64xbf16>, vector<64x64xbf16>, vector<128x64xf32> -> vector<128x64xf32>
    %c5_138 = arith.constant 5 : index
    %c0_139 = arith.constant 0 : index
    %c0_140 = arith.constant 0 : index
    %267 = vector.load %arg6[%c5_138, %c0_139, %c0_140] : memref<8x1x64xf32, #tpu.memory_space<vmem>>, vector<1x1x64xf32>
    %268 = vector.shape_cast %267 : vector<1x1x64xf32> to vector<1x64xf32>
    %269 = vector.broadcast %268 : vector<1x64xf32> to vector<128x64xf32>
    %270 = arith.addf %266, %269 : vector<128x64xf32>
    %271 = vector.extract_strided_slice %270 {offsets = [0, 0], sizes = [128, 32], strides = [1, 1]} : vector<128x64xf32> to vector<128x32xf32>
    %272 = math.tanh %271 : vector<128x32xf32>
    %273 = vector.extract_strided_slice %270 {offsets = [0, 32], sizes = [128, 32], strides = [1, 1]} : vector<128x64xf32> to vector<128x32xf32>
    %274 = arith.negf %273 : vector<128x32xf32>
    %275 = math.exp %274 : vector<128x32xf32>
    %cst_141 = arith.constant 1.000000e+00 : f32
    %276 = vector.broadcast %cst_141 : f32 to vector<128x32xf32>
    %277 = arith.addf %276, %275 : vector<128x32xf32>
    %278 = arith.divf %276, %277 : vector<128x32xf32>
    %279 = arith.mulf %272, %278 : vector<128x32xf32>
    %280 = arith.truncf %279 : vector<128x32xf32> to vector<128x32xbf16>
    %cst_142 = arith.constant dense<0.000000e+00> : vector<128x32xf32>
    %281 = tpu.matmul %0, %280, %cst_142 {dimension_numbers = #tpu.dot_dimension_numbers<[1], [0], [0], [1], [0, 0, 1, 1], [], []>} : vector<128x128xbf16>, vector<128x32xbf16>, vector<128x32xf32> -> vector<128x32xf32>
    %282 = arith.truncf %281 : vector<128x32xf32> to vector<128x32xbf16>
    %c5_143 = arith.constant 5 : index
    %c0_144 = arith.constant 0 : index
    %c0_145 = arith.constant 0 : index
    %283 = vector.load %arg9[%c5_143, %c0_144, %c0_145] : memref<8x32x32xbf16, #tpu.memory_space<vmem>>, vector<1x32x32xbf16>
    %284 = vector.shape_cast %283 : vector<1x32x32xbf16> to vector<32x32xbf16>
    %cst_146 = arith.constant dense<0.000000e+00> : vector<128x32xf32>
    %285 = tpu.matmul %282, %284, %cst_146 {dimension_numbers = #tpu.dot_dimension_numbers<[1], [0], [0], [1], [0, 0, 1, 1], [], []>} : vector<128x32xbf16>, vector<32x32xbf16>, vector<128x32xf32> -> vector<128x32xf32>
    %c5_147 = arith.constant 5 : index
    %c0_148 = arith.constant 0 : index
    %c0_149 = arith.constant 0 : index
    %286 = vector.load %arg10[%c5_147, %c0_148, %c0_149] : memref<8x1x32xf32, #tpu.memory_space<vmem>>, vector<1x1x32xf32>
    %287 = vector.shape_cast %286 : vector<1x1x32xf32> to vector<1x32xf32>
    %288 = vector.broadcast %287 : vector<1x32xf32> to vector<128x32xf32>
    %289 = arith.addf %285, %288 : vector<128x32xf32>
    %290 = vector.extract_strided_slice %249 {offsets = [64, 0], sizes = [128, 32], strides = [1, 1]} : vector<192x32xf32> to vector<128x32xf32>
    %291 = arith.addf %289, %290 : vector<128x32xf32>
    %292 = vector.extract_strided_slice %291 {offsets = [96, 0], sizes = [32, 32], strides = [1, 1]} : vector<128x32xf32> to vector<32x32xf32>
    %293 = arith.truncf %292 : vector<32x32xf32> to vector<32x32xbf16>
    %c6 = arith.constant 6 : index
    %c0_150 = arith.constant 0 : index
    %c0_151 = arith.constant 0 : index
    %294 = vector.load %arg7[%c6, %c0_150, %c0_151] : memref<8x32x256xbf16, #tpu.memory_space<vmem>>, vector<1x32x256xbf16>
    %295 = vector.shape_cast %294 : vector<1x32x256xbf16> to vector<32x256xbf16>
    %cst_152 = arith.constant dense<0.000000e+00> : vector<32x256xf32>
    %296 = tpu.matmul %293, %295, %cst_152 {dimension_numbers = #tpu.dot_dimension_numbers<[1], [0], [0], [1], [0, 0, 1, 1], [], []>} : vector<32x32xbf16>, vector<32x256xbf16>, vector<32x256xf32> -> vector<32x256xf32>
    %297 = arith.addf %259, %296 : vector<32x256xf32>
    %c6_153 = arith.constant 6 : index
    %c0_154 = arith.constant 0 : index
    %c0_155 = arith.constant 0 : index
    %298 = vector.load %arg8[%c6_153, %c0_154, %c0_155] : memref<8x1x256xf32, #tpu.memory_space<vmem>>, vector<1x1x256xf32>
    %299 = vector.shape_cast %298 : vector<1x1x256xf32> to vector<1x256xf32>
    %300 = vector.broadcast %299 : vector<1x256xf32> to vector<32x256xf32>
    %301 = arith.addf %297, %300 : vector<32x256xf32>
    %302 = vector.extract_strided_slice %291 {offsets = [0, 0], sizes = [96, 32], strides = [1, 1]} : vector<128x32xf32> to vector<96x32xf32>
    %303 = vector.extract_strided_slice %291 {offsets = [32, 0], sizes = [96, 32], strides = [1, 1]} : vector<128x32xf32> to vector<96x32xf32>
    %304 = tpu.concatenate %302, %303 in 1 : vector<96x32xf32>, vector<96x32xf32> -> vector<96x64xf32>
    %305 = arith.truncf %304 : vector<96x64xf32> to vector<96x64xbf16>
    %c6_156 = arith.constant 6 : index
    %c0_157 = arith.constant 0 : index
    %c0_158 = arith.constant 0 : index
    %306 = vector.load %arg5[%c6_156, %c0_157, %c0_158] : memref<8x64x64xbf16, #tpu.memory_space<vmem>>, vector<1x64x64xbf16>
    %307 = vector.shape_cast %306 : vector<1x64x64xbf16> to vector<64x64xbf16>
    %cst_159 = arith.constant dense<0.000000e+00> : vector<96x64xf32>
    %308 = tpu.matmul %305, %307, %cst_159 {dimension_numbers = #tpu.dot_dimension_numbers<[1], [0], [0], [1], [0, 0, 1, 1], [], []>} : vector<96x64xbf16>, vector<64x64xbf16>, vector<96x64xf32> -> vector<96x64xf32>
    %c6_160 = arith.constant 6 : index
    %c0_161 = arith.constant 0 : index
    %c0_162 = arith.constant 0 : index
    %309 = vector.load %arg6[%c6_160, %c0_161, %c0_162] : memref<8x1x64xf32, #tpu.memory_space<vmem>>, vector<1x1x64xf32>
    %310 = vector.shape_cast %309 : vector<1x1x64xf32> to vector<1x64xf32>
    %311 = vector.broadcast %310 : vector<1x64xf32> to vector<96x64xf32>
    %312 = arith.addf %308, %311 : vector<96x64xf32>
    %313 = vector.extract_strided_slice %312 {offsets = [0, 0], sizes = [96, 32], strides = [1, 1]} : vector<96x64xf32> to vector<96x32xf32>
    %314 = math.tanh %313 : vector<96x32xf32>
    %315 = vector.extract_strided_slice %312 {offsets = [0, 32], sizes = [96, 32], strides = [1, 1]} : vector<96x64xf32> to vector<96x32xf32>
    %316 = arith.negf %315 : vector<96x32xf32>
    %317 = math.exp %316 : vector<96x32xf32>
    %cst_163 = arith.constant 1.000000e+00 : f32
    %318 = vector.broadcast %cst_163 : f32 to vector<96x32xf32>
    %319 = arith.addf %318, %317 : vector<96x32xf32>
    %320 = arith.divf %318, %319 : vector<96x32xf32>
    %321 = arith.mulf %314, %320 : vector<96x32xf32>
    %322 = arith.truncf %321 : vector<96x32xf32> to vector<96x32xbf16>
    %323 = vector.extract_strided_slice %0 {offsets = [0, 0], sizes = [96, 96], strides = [1, 1]} : vector<128x128xbf16> to vector<96x96xbf16>
    %cst_164 = arith.constant dense<0.000000e+00> : vector<96x32xf32>
    %324 = tpu.matmul %323, %322, %cst_164 {dimension_numbers = #tpu.dot_dimension_numbers<[1], [0], [0], [1], [0, 0, 1, 1], [], []>} : vector<96x96xbf16>, vector<96x32xbf16>, vector<96x32xf32> -> vector<96x32xf32>
    %325 = arith.truncf %324 : vector<96x32xf32> to vector<96x32xbf16>
    %c6_165 = arith.constant 6 : index
    %c0_166 = arith.constant 0 : index
    %c0_167 = arith.constant 0 : index
    %326 = vector.load %arg9[%c6_165, %c0_166, %c0_167] : memref<8x32x32xbf16, #tpu.memory_space<vmem>>, vector<1x32x32xbf16>
    %327 = vector.shape_cast %326 : vector<1x32x32xbf16> to vector<32x32xbf16>
    %cst_168 = arith.constant dense<0.000000e+00> : vector<96x32xf32>
    %328 = tpu.matmul %325, %327, %cst_168 {dimension_numbers = #tpu.dot_dimension_numbers<[1], [0], [0], [1], [0, 0, 1, 1], [], []>} : vector<96x32xbf16>, vector<32x32xbf16>, vector<96x32xf32> -> vector<96x32xf32>
    %c6_169 = arith.constant 6 : index
    %c0_170 = arith.constant 0 : index
    %c0_171 = arith.constant 0 : index
    %329 = vector.load %arg10[%c6_169, %c0_170, %c0_171] : memref<8x1x32xf32, #tpu.memory_space<vmem>>, vector<1x1x32xf32>
    %330 = vector.shape_cast %329 : vector<1x1x32xf32> to vector<1x32xf32>
    %331 = vector.broadcast %330 : vector<1x32xf32> to vector<96x32xf32>
    %332 = arith.addf %328, %331 : vector<96x32xf32>
    %333 = vector.extract_strided_slice %291 {offsets = [32, 0], sizes = [96, 32], strides = [1, 1]} : vector<128x32xf32> to vector<96x32xf32>
    %334 = arith.addf %332, %333 : vector<96x32xf32>
    %335 = vector.extract_strided_slice %334 {offsets = [64, 0], sizes = [32, 32], strides = [1, 1]} : vector<96x32xf32> to vector<32x32xf32>
    %336 = arith.truncf %335 : vector<32x32xf32> to vector<32x32xbf16>
    %c7 = arith.constant 7 : index
    %c0_172 = arith.constant 0 : index
    %c0_173 = arith.constant 0 : index
    %337 = vector.load %arg7[%c7, %c0_172, %c0_173] : memref<8x32x256xbf16, #tpu.memory_space<vmem>>, vector<1x32x256xbf16>
    %338 = vector.shape_cast %337 : vector<1x32x256xbf16> to vector<32x256xbf16>
    %cst_174 = arith.constant dense<0.000000e+00> : vector<32x256xf32>
    %339 = tpu.matmul %336, %338, %cst_174 {dimension_numbers = #tpu.dot_dimension_numbers<[1], [0], [0], [1], [0, 0, 1, 1], [], []>} : vector<32x32xbf16>, vector<32x256xbf16>, vector<32x256xf32> -> vector<32x256xf32>
    %340 = arith.addf %301, %339 : vector<32x256xf32>
    %c7_175 = arith.constant 7 : index
    %c0_176 = arith.constant 0 : index
    %c0_177 = arith.constant 0 : index
    %341 = vector.load %arg8[%c7_175, %c0_176, %c0_177] : memref<8x1x256xf32, #tpu.memory_space<vmem>>, vector<1x1x256xf32>
    %342 = vector.shape_cast %341 : vector<1x1x256xf32> to vector<1x256xf32>
    %343 = vector.broadcast %342 : vector<1x256xf32> to vector<32x256xf32>
    %344 = arith.addf %340, %343 : vector<32x256xf32>
    %cst_178 = arith.constant 0.000000e+00 : f32
    %345 = vector.broadcast %cst_178 : f32 to vector<32x256xf32>
    %346 = arith.maximumf %344, %345 : vector<32x256xf32>
    %347 = arith.truncf %346 : vector<32x256xf32> to vector<32x256xbf16>
    %c0_179 = arith.constant 0 : index
    %c0_180 = arith.constant 0 : index
    %348 = vector.load %arg11[%c0_179, %c0_180] : memref<256x512xbf16, #tpu.memory_space<vmem>>, vector<256x512xbf16>
    %cst_181 = arith.constant dense<0.000000e+00> : vector<32x512xf32>
    %349 = tpu.matmul %347, %348, %cst_181 {dimension_numbers = #tpu.dot_dimension_numbers<[1], [0], [0], [1], [0, 0, 1, 1], [], []>} : vector<32x256xbf16>, vector<256x512xbf16>, vector<32x512xf32> -> vector<32x512xf32>
    %c0_182 = arith.constant 0 : index
    %c0_183 = arith.constant 0 : index
    %350 = vector.load %arg12[%c0_182, %c0_183] : memref<1x512xf32, #tpu.memory_space<vmem>>, vector<1x512xf32>
    %351 = vector.broadcast %350 : vector<1x512xf32> to vector<32x512xf32>
    %352 = arith.addf %349, %351 : vector<32x512xf32>
    %cst_184 = arith.constant 0.000000e+00 : f32
    %353 = vector.broadcast %cst_184 : f32 to vector<32x512xf32>
    %354 = arith.maximumf %352, %353 : vector<32x512xf32>
    %355 = arith.truncf %354 : vector<32x512xf32> to vector<32x512xbf16>
    %c0_185 = arith.constant 0 : index
    %c0_186 = arith.constant 0 : index
    %356 = vector.load %arg13[%c0_185, %c0_186] : memref<512x8xbf16, #tpu.memory_space<vmem>>, vector<512x8xbf16>
    %cst_187 = arith.constant dense<0.000000e+00> : vector<32x8xf32>
    %357 = tpu.matmul %355, %356, %cst_187 {dimension_numbers = #tpu.dot_dimension_numbers<[1], [0], [0], [1], [0, 0, 1, 1], [], []>} : vector<32x512xbf16>, vector<512x8xbf16>, vector<32x8xf32> -> vector<32x8xf32>
    %c0_188 = arith.constant 0 : index
    %c0_189 = arith.constant 0 : index
    %358 = vector.load %arg14[%c0_188, %c0_189] : memref<1x8xf32, #tpu.memory_space<vmem>>, vector<1x8xf32>
    %359 = vector.broadcast %358 : vector<1x8xf32> to vector<32x8xf32>
    %360 = arith.addf %357, %359 : vector<32x8xf32>
    %c0_190 = arith.constant 0 : index
    %c0_191 = arith.constant 0 : index
    %361 = vector.load %arg15[%c0_190, %c0_191] : memref<32x8xf32, #tpu.memory_space<vmem>>, vector<32x8xf32>
    tpu.vector_store %arg15[%c0_190, %c0_191], %360 {strides = array<i32>} : memref<32x8xf32, #tpu.memory_space<vmem>>, vector<32x8xf32>,
    return
  }
  func.func @transform_0(%arg0: i32) -> (i32, i32, i32) {
    %c0_i32 = arith.constant 0 : i32
    %c0_i32_0 = arith.constant 0 : i32
    %c0_i32_1 = arith.constant 0 : i32
    return %arg0, %c0_i32, %c0_i32_0 : i32, i32, i32
  }
  func.func @transform_1(%arg0: i32) -> (i32, i32) {
    %c0_i32 = arith.constant 0 : i32
    %c0_i32_0 = arith.constant 0 : i32
    %c0_i32_1 = arith.constant 0 : i32
    return %c0_i32, %c0_i32_0 : i32, i32
  }
  func.func @transform_2(%arg0: i32) -> (i32, i32) {
    %c0_i32 = arith.constant 0 : i32
    %c0_i32_0 = arith.constant 0 : i32
    %c0_i32_1 = arith.constant 0 : i32
    return %c0_i32, %c0_i32_0 : i32, i32
  }
  func.func @transform_3(%arg0: i32) -> (i32, i32) {
    %c0_i32 = arith.constant 0 : i32
    %c0_i32_0 = arith.constant 0 : i32
    %c0_i32_1 = arith.constant 0 : i32
    return %c0_i32, %c0_i32_0 : i32, i32
  }
  func.func @transform_4(%arg0: i32) -> (i32, i32, i32) {
    %c0_i32 = arith.constant 0 : i32
    %c0_i32_0 = arith.constant 0 : i32
    %c0_i32_1 = arith.constant 0 : i32
    %c0_i32_2 = arith.constant 0 : i32
    return %c0_i32, %c0_i32_0, %c0_i32_1 : i32, i32, i32
  }
  func.func @transform_5(%arg0: i32) -> (i32, i32, i32) {
    %c0_i32 = arith.constant 0 : i32
    %c0_i32_0 = arith.constant 0 : i32
    %c0_i32_1 = arith.constant 0 : i32
    %c0_i32_2 = arith.constant 0 : i32
    return %c0_i32, %c0_i32_0, %c0_i32_1 : i32, i32, i32
  }
  func.func @transform_6(%arg0: i32) -> (i32, i32, i32) {
    %c0_i32 = arith.constant 0 : i32
    %c0_i32_0 = arith.constant 0 : i32
    %c0_i32_1 = arith.constant 0 : i32
    %c0_i32_2 = arith.constant 0 : i32
    return %c0_i32, %c0_i32_0, %c0_i32_1 : i32, i32, i32
  }
  func.func @transform_7(%arg0: i32) -> (i32, i32, i32) {
    %c0_i32 = arith.constant 0 : i32
    %c0_i32_0 = arith.constant 0 : i32
    %c0_i32_1 = arith.constant 0 : i32
    %c0_i32_2 = arith.constant 0 : i32
    return %c0_i32, %c0_i32_0, %c0_i32_1 : i32, i32, i32
  }
  func.func @transform_8(%arg0: i32) -> (i32, i32, i32) {
    %c0_i32 = arith.constant 0 : i32
    %c0_i32_0 = arith.constant 0 : i32
    %c0_i32_1 = arith.constant 0 : i32
    %c0_i32_2 = arith.constant 0 : i32
    return %c0_i32, %c0_i32_0, %c0_i32_1 : i32, i32, i32
  }
  func.func @transform_9(%arg0: i32) -> (i32, i32, i32) {
    %c0_i32 = arith.constant 0 : i32
    %c0_i32_0 = arith.constant 0 : i32
    %c0_i32_1 = arith.constant 0 : i32
    %c0_i32_2 = arith.constant 0 : i32
    return %c0_i32, %c0_i32_0, %c0_i32_1 : i32, i32, i32
  }
  func.func @transform_10(%arg0: i32) -> (i32, i32) {
    %c0_i32 = arith.constant 0 : i32
    %c0_i32_0 = arith.constant 0 : i32
    %c0_i32_1 = arith.constant 0 : i32
    return %c0_i32, %c0_i32_0 : i32, i32
  }
  func.func @transform_11(%arg0: i32) -> (i32, i32) {
    %c0_i32 = arith.constant 0 : i32
    %c0_i32_0 = arith.constant 0 : i32
    %c0_i32_1 = arith.constant 0 : i32
    return %c0_i32, %c0_i32_0 : i32, i32
  }
  func.func @transform_12(%arg0: i32) -> (i32, i32) {
    %c0_i32 = arith.constant 0 : i32
    %c0_i32_0 = arith.constant 0 : i32
    %c0_i32_1 = arith.constant 0 : i32
    return %c0_i32, %c0_i32_0 : i32, i32
  }
  func.func @transform_13(%arg0: i32) -> (i32, i32) {
    %c0_i32 = arith.constant 0 : i32
    %c0_i32_0 = arith.constant 0 : i32
    %c0_i32_1 = arith.constant 0 : i32
    return %c0_i32, %c0_i32_0 : i32, i32
  }
  func.func @transform_14(%arg0: i32) -> (i32, i32) {
    %c0_i32 = arith.constant 0 : i32
    %c0_i32_0 = arith.constant 0 : i32
    return %arg0, %c0_i32 : i32, i32
  }
}

</mosaic_0001>

<bundles_post_ra>
// kernel: tpu_custom_call.1
= control target key start
LH: loop header
LB: loop body
LE: loop exit
PB: predicated region body
PF: predicated region fallthrough
CT: control target
= control target key end

     0   :  { %19 = vsyncpa [#allocation3], 0  ;;  %s19601_s0 = inlined_call_operand.vmem [shape: f32[1,416,4], index: 0, kind: input, shape index: {}]   ;;  %s19602_s1 = inlined_call_operand.vmem [shape: bf16[128,128], index: 1, kind: input, shape index: {}]   ;;  %s19603_s2 = inlined_call_operand.hbm [shape: bf16[4,32], index: 2, kind: input, shape index: {}]   ;;  %s19604_s3 = inlined_call_operand.vmem [shape: f32[1,32], index: 3, kind: input, shape index: {}]   ;;  %s19605_s4 = inlined_call_operand.hbm [shape: bf16[8,64,64], index: 4, kind: input, shape index: {}]   ;;  %s19606_s5 = inlined_call_operand.vmem [shape: f32[8,1,64], index: 5, kind: input, shape index: {}]   ;;  %s19607_s6 = inlined_call_operand.hbm [shape: bf16[8,32,256], index: 6, kind: input, shape index: {}]   ;;  %s19608_s7 = inlined_call_operand.vmem [shape: f32[8,1,256], index: 7, kind: input, shape index: {}]   ;;  %s19609_s8 = inlined_call_operand.vmem [shape: bf16[8,32,32], index: 8, kind: input, shape index: {}]   ;;  %s19610_s9 = inlined_call_operand.hbm [shape: f32[8,1,32], index: 9, kind: input, shape index: {}]   ;;  %s19611_s10 = inlined_call_operand.vmem [shape: bf16[256,512], index: 10, kind: input, shape index: {}]   ;;  %s19612_s11 = inlined_call_operand.hbm [shape: f32[1,512], index: 11, kind: input, shape index: {}]   ;;  %s19613_s12 = inlined_call_operand.vmem [shape: bf16[512,8], index: 12, kind: input, shape index: {}]   ;;  %s19614_s13 = inlined_call_operand.vmem [shape: f32[1,8], index: 13, kind: input, shape index: {}]   ;;  %s19615_s14 = inlined_call_operand.vmem [shape: f32[32,8], index: 14, kind: output, shape index: {}]  }
   0x1   :  { %20 = vsyncpa [#allocation5], 0 }
   0x2   :  { %21 = vsyncpa [#allocation8], 0  ;;  %s15313_s29 = smov [#allocation4]   ;;  %s15197_s17 = scalar_lea.hbm %s19605_s4, 4096 }
   0x3   :  { %s43_s30 = sshll.u32 %s15313_s29, 4  ;;  %p15198_p0 = scmp.ne.s32.totalorder %s19605_s4, %s15197_s17  ;;  %s44_s30 = int_to_ptr.vmem [resolvable:$true] %s43_s30 }
   0x4   :  { %p15201_p1 = scmp.lt.u32.totalorder %s15197_s17, %s19605_s4 }
   0x6   :  { %p15203_p2 = pnand %p15201_p1, %p15198_p0 }
   0x8   :  { %15206 = shalt.err (!%p15203_p2)
}
   0x9   :  { %s15207_s22 = scalar_lea.vmem %s44_s30, 4096  ;;  %p15212_p4 = scmp.lt.s32.totalorder %s44_s30, %s44_s30 }
   0xa   :  { %p15208_p3 = scmp.ne.s32.totalorder %s44_s30, %s15207_s22  ;;  %p15213_p5 = scmp.lt.s32.totalorder %s15207_s22, %s15207_s22 }
   0xc   :  { %p15214_p6 = por %p15213_p5, %p15212_p4 }
   0xe   :  { %p15215_p7 = pnand %p15214_p6, %p15208_p3 }
  0x10   :  { %15218 = shalt.err (!%p15215_p7)
}
  0x11   :  { %s15314_s23 = smov 64   ;;  %s15315_s24 = smov 4  }
  0x12   :  { %49 = dma.hbm_to_vmem [thread:$0]  %s19605_s4, 4096, %s44_s30, [#allocation5], %s15314_s23, %s15314_s23, %s15315_s24  }
  0x13   :  { %s15316_s27 = smov [#allocation7]   ;;  %s15219_s16 = scalar_lea.hbm %s19610_s9, 128 }
  0x14   :  { %s73_s28 = sshll.u32 %s15316_s27, 4  ;;  %p15220_p8 = scmp.ne.s32.totalorder %s19610_s9, %s15219_s16  ;;  %s74_s28 = int_to_ptr.vmem [resolvable:$true] %s73_s28 }
  0x15   :  { %p15223_p9 = scmp.lt.u32.totalorder %s15219_s16, %s19610_s9 }
  0x17   :  { %p15225_p10 = pnand %p15223_p9, %p15220_p8 }
  0x19   :  { %15228 = shalt.err (!%p15225_p10)
}
  0x1a   :  { %s15229_s21 = scalar_lea.vmem %s74_s28, 128  ;;  %p15234_p12 = scmp.lt.s32.totalorder %s74_s28, %s74_s28 }
  0x1b   :  { %p15230_p11 = scmp.ne.s32.totalorder %s74_s28, %s15229_s21  ;;  %p15235_p13 = scmp.lt.s32.totalorder %s15229_s21, %s15229_s21 }
  0x1d   :  { %p15236_p0 = por %p15235_p13, %p15234_p12 }
  0x1f   :  { %p15237_p1 = pnand %p15236_p0, %p15230_p11 }
  0x21   :  { %15240 = shalt.err (!%p15237_p1)
}
  0x22   :  { %s15317_s4 = smov 16   ;;  %s15318_s30 = smov 1  }
  0x23   :  { %79 = dma.hbm_to_vmem [thread:$0]  %s19610_s9, 128, %s74_s28, [#allocation8], %s15317_s4, %s15317_s4, %s15318_s30  }
  0x24   :  { %s15319_s24 = smov [#allocation2]   ;;  %s15320_s26 = smov [#allocation6]  }
  0x25   :  { %s32_s25 = sshll.u32 %s15319_s24, 4  ;;  %s57_s27 = sshll.u32 %s15320_s26, 4  ;;  %s33_s25 = int_to_ptr.vmem [resolvable:$true] %s32_s25  ;;  %s15426_s27 = int_to_ptr.vmem [resolvable:$true] %s57_s27 }
  0x26   :  { %s15241_s16 = scalar_lea.hbm %s19603_s2, 32 }
  0x27   :  { %p15242_p2 = scmp.ne.s32.totalorder %s19603_s2, %s15241_s16  ;;  %p15245_p3 = scmp.lt.u32.totalorder %s15241_s16, %s19603_s2 }
  0x29   :  { %p15247_p4 = pnand %p15245_p3, %p15242_p2 }
  0x2b   :  { %15250 = shalt.err (!%p15247_p4)
}
  0x2c   :  { %s15251_s9 = scalar_lea.vmem %s33_s25, 32  ;;  %p15256_p6 = scmp.lt.s32.totalorder %s33_s25, %s33_s25 }
  0x2d   :  { %p15252_p5 = scmp.ne.s32.totalorder %s33_s25, %s15251_s9  ;;  %p15257_p7 = scmp.lt.s32.totalorder %s15251_s9, %s15251_s9 }
  0x2f   :  { %p15258_p8 = por %p15257_p7, %p15256_p6 }
  0x31   :  { %p15259_p9 = pnand %p15258_p8, %p15252_p5 }
  0x33   :  { %15262 = shalt.err (!%p15259_p9)
}
  0x34   :  { %35 = dma.hbm_to_vmem [thread:$0]  %s19603_s2, 32, %s33_s25, [#allocation3]  }
  0x35   :  { %s15263_s22 = scalar_lea.hbm %s19607_s6, 4096 }
  0x36   :  { %p15264_p10 = scmp.ne.s32.totalorder %s19607_s6, %s15263_s22  ;;  %p15267_p11 = scmp.lt.u32.totalorder %s15263_s22, %s19607_s6 }
  0x38   :  { %p15269_p12 = pnand %p15267_p11, %p15264_p10 }
  0x3a   :  { %15272 = shalt.err (!%p15269_p12)
}
  0x3b   :  { %s15273_s15 = scalar_lea.vmem %s15426_s27, 4096  ;;  %p15278_p0 = scmp.lt.s32.totalorder %s15426_s27, %s15426_s27 }
  0x3c   :  { %p15274_p13 = scmp.ne.s32.totalorder %s15426_s27, %s15273_s15  ;;  %p15279_p1 = scmp.lt.s32.totalorder %s15273_s15, %s15273_s15 }
  0x3e   :  { %p15280_p2 = por %p15279_p1, %p15278_p0 }
  0x40   :  { %p15281_p3 = pnand %p15280_p2, %p15274_p13 }
  0x42   :  { %15284 = shalt.err (!%p15281_p3)
}
  0x43   :  { %s15321_s2 = smov 128   ;;  %s15322_s25 = smov 8  }
  0x44   :  { %63 = dma.hbm_to_vmem [thread:$0]  %s19607_s6, 4096, %s15426_s27, [#allocation5], %s15321_s2, %s15321_s2, %s15322_s25  }
  0x45   :  { %s15323_s18 = smov [#allocation9]   ;;  %s15285_s28 = scalar_lea.hbm %s19612_s11, 64 }
  0x46   :  { %s88_s19 = sshll.u32 %s15323_s18, 4  ;;  %p15286_p4 = scmp.ne.s32.totalorder %s19612_s11, %s15285_s28  ;;  %s89_s19 = int_to_ptr.vmem [resolvable:$true] %s88_s19 }
  0x47   :  { %p15289_p5 = scmp.lt.u32.totalorder %s15285_s28, %s19612_s11 }
  0x49   :  { %p15291_p6 = pnand %p15289_p5, %p15286_p4 }
  0x4b   :  { %15294 = shalt.err (!%p15291_p6)
}
  0x4c   :  { %s15295_s23 = scalar_lea.vmem %s89_s19, 64  ;;  %p15300_p8 = scmp.lt.s32.totalorder %s89_s19, %s89_s19 }
  0x4d   :  { %p15296_p7 = scmp.ne.s32.totalorder %s89_s19, %s15295_s23  ;;  %p15301_p9 = scmp.lt.s32.totalorder %s15295_s23, %s15295_s23 }
  0x4f   :  { %p15302_p10 = por %p15301_p9, %p15300_p8 }
  0x51   :  { %p15303_p11 = pnand %p15302_p10, %p15296_p7 }
  0x53   :  { %15306 = shalt.err (!%p15303_p11)
}
  0x54   :  { %91 = dma.hbm_to_vmem [thread:$0]  %s19612_s11, 64, %s89_s19, [#allocation8]  }
  0x55   :  { %15307 = dma.done.wait [#allocation3], 32  }
  0x56   :  { %15308 = vsyncadd [#allocation3], 4294967264 }
  0x57   :  { %15309 = dma.done.wait [#allocation5], 8192  }
  0x58   :  { %15310 = vsyncadd [#allocation5], 4294959104 }
  0x59   :  { %15311 = dma.done.wait [#allocation8], 192  }
  0x5a   :  { %15312 = vsyncadd [#allocation8], 4294967104  ;;  %vm293_vm0 = vcmask 1041408   ;;  %v206_v0 = vld [vmem:[#allocation2] sm:$0x3]  ;;  %v129_v2 = vld [vmem:[%s19601_s0 + $0x8] sm:$0xff] }
  0x5b   :  { %v128_v1 = vld [vmem:[%s19601_s0] sm:$0xff]  ;;  %vm214_vm1 = vcmask 31744   ;;  %13183 = vmatprep.subr.msk.bf16.mxu0 %vm293_vm0, %v206_v0  ;;  %v295_v3 = vsel %vm293_vm0, %v206_v0, 0  ;;  %v130_v5 = vld [vmem:[%s19601_s0 + $0x10] sm:$0xff]  ;;  %v131_v6 = vld [vmem:[%s19601_s0 + $0x18] sm:$0xff]  ;;  %13184 = vmatprep.subr.msk.bf16.mxu1 %vm293_vm0, %v206_v0  ;;  %vm576_vm2 = vcmask 261120  }
  0x5c   :  { %v180_v4 = vpack.c.bf16 %v129_v2, %v128_v1  ;;  %v132_v7 = vld [vmem:[%s19601_s0 + $0x20] sm:$0xff]  ;;  %12116 = vmatpush3.bf16.msra.mxu0 %v295_v3  ;;  %v181_v8 = vpack.c.bf16 %v131_v6, %v130_v5  ;;  %v133_v9 = vld [vmem:[%s19601_s0 + $0x28] sm:$0xff]  ;;  %13070 = vmatpush3.bf16.msra.mxu1 %v295_v3  ;;  %v134_v11 = vld [vmem:[%s19601_s0 + $0x30] sm:$0xff]  ;;  %vm939_vm3 = vcmask 523264   ;;  %s15326_s29 = smov 96   ;;  %vm6842_vm4 = vcmask 785408  }
  0x5d   :  { %v182_v10 = vpack.c.bf16 %v133_v9, %v132_v7  ;;  %v135_v12 = vld [vmem:[%s19601_s0 + $0x38] sm:$0xff]  ;;  %v136_v13 = vld [vmem:[%s19601_s0 + $0x40] sm:$0xff]  ;;  %v137_v14 = vld [vmem:[%s19601_s0 + $0x48] sm:$0xff]  ;;  %vm10867_vm5 = vcmask 64512  }
  0x5e   :  { %12117 = vmatprep.mubr.msk.bf16.mxu0 %vm214_vm1, %v180_v4  ;;  %v183_v15 = vpack.c.bf16 %v135_v12, %v134_v11  ;;  %v184_v16 = vpack.c.bf16 %v137_v14, %v136_v13  ;;  %v138_v17 = vld [vmem:[%s19601_s0 + $0x50] sm:$0xff]  ;;  %v139_v18 = vld [vmem:[%s19601_s0 + $0x58] sm:$0xff]  ;;  %v140_v19 = vld [vmem:[%s19601_s0 + $0x60] sm:$0xff] }
  0x5f   :  { %12118 = vmatmul.mubr.msk.bf16.vlgmr.msra.gmra.mrb[0].mxu0 %vm214_vm1, %v181_v8  ;;  %v141_v20 = vld [vmem:[%s19601_s0 + $0x68] sm:$0xff]  ;;  %v176_v21 = vld [vmem:[%s19601_s0 + $0x180] sm:$0xff]  ;;  %v185_v23 = vpack.c.bf16 %v139_v18, %v138_v17  ;;  %v178_v25 = vld [vmem:[%s19601_s0 + $0x190] sm:$0xff] }
  0x60   :  { %12121 = vmatprep.mubr.msk.bf16.mxu0 %vm214_vm1, %v182_v10  ;;  %v177_v22 = vld [vmem:[%s19601_s0 + $0x188] sm:$0xff]  ;;  %v179_v26 = vld [vmem:[%s19601_s0 + $0x198] sm:$0xff]  ;;  %v186_v27 = vpack.c.bf16 %v141_v20, %v140_v19  ;;  %v142_v29 = vld [vmem:[%s19601_s0 + $0x70] sm:$0xff]  ;;  %v19616_v20 = vmov 0  }
  0x61   :  { %v204_v24 = vpack.c.bf16 %v177_v22, %v176_v21  ;;  %v205_v28 = vpack.c.bf16 %v179_v26, %v178_v25  ;;  %v143_v30 = vld [vmem:[%s19601_s0 + $0x78] sm:$0xff]  ;;  %v144_v31 = vld [vmem:[%s19601_s0 + $0x80] sm:$0xff]  ;;  %v145_v32 = vld [vmem:[%s19601_s0 + $0x88] sm:$0xff] }
  0x62   :  { %v187_v33 = vpack.c.bf16 %v143_v30, %v142_v29  ;;  %v188_v34 = vpack.c.bf16 %v145_v32, %v144_v31  ;;  %v146_v35 = vld [vmem:[%s19601_s0 + $0x90] sm:$0xff]  ;;  %v147_v36 = vld [vmem:[%s19601_s0 + $0x98] sm:$0xff]  ;;  %v148_v37 = vld [vmem:[%s19601_s0 + $0xa0] sm:$0xff] }
  0x63   :  { %12165 = vmatprep.mubr.msk.bf16.mxu1 %vm214_vm1, %v204_v24  ;;  %v149_v38 = vld [vmem:[%s19601_s0 + $0xa8] sm:$0xff]  ;;  %v189_v39 = vpack.c.bf16 %v147_v36, %v146_v35  ;;  %v150_v41 = vld [vmem:[%s19601_s0 + $0xb0] sm:$0xff]  ;;  %v151_v42 = vld [vmem:[%s19601_s0 + $0xb8] sm:$0xff] }
  0x64   :  { %12166 = vmatmul.mubr.msk.bf16.vlgmr.msra.gmra.mrb[0].mxu1 %vm214_vm1, %v205_v28  ;;  %v190_v40 = vpack.c.bf16 %v149_v38, %v148_v37  ;;  %v152_v43 = vld [vmem:[%s19601_s0 + $0xc0] sm:$0xff]  ;;  %v153_v44 = vld [vmem:[%s19601_s0 + $0xc8] sm:$0xff]  ;;  %v191_v45 = vpack.c.bf16 %v151_v42, %v150_v41  ;;  %v154_v47 = vld [vmem:[%s19601_s0 + $0xd0] sm:$0xff] }
  0x65   :  { %v192_v46 = vpack.c.bf16 %v153_v44, %v152_v43  ;;  %v155_v48 = vld [vmem:[%s19601_s0 + $0xd8] sm:$0xff]  ;;  %v156_v49 = vld [vmem:[%s19601_s0 + $0xe0] sm:$0xff]  ;;  %v157_v50 = vld [vmem:[%s19601_s0 + $0xe8] sm:$0xff]  ;;  %615 = vmatprep.mubr.bf16.mxu1 %v19616_v20 }
  0x66   :  { %v193_v51 = vpack.c.bf16 %v155_v48, %v154_v47  ;;  %v194_v52 = vpack.c.bf16 %v157_v50, %v156_v49  ;;  %v158_v53 = vld [vmem:[%s19601_s0 + $0xf0] sm:$0xff]  ;;  %v159_v54 = vld [vmem:[%s19601_s0 + $0xf8] sm:$0xff]  ;;  %v160_v55 = vld [vmem:[%s19601_s0 + $0x100] sm:$0xff] }
  0x67   :  { %12122 = vmatmul.mubr.msk.bf16.gmra.mrb[4].mxu0 %vm214_vm1, %v183_v15  ;;  %v161_v56 = vld [vmem:[%s19601_s0 + $0x108] sm:$0xff]  ;;  %v195_v57 = vpack.c.bf16 %v159_v54, %v158_v53  ;;  %v162_v59 = vld [vmem:[%s19601_s0 + $0x110] sm:$0xff]  ;;  %v163_v60 = vld [vmem:[%s19601_s0 + $0x118] sm:$0xff] }
  0x68   :  { %12125 = vmatprep.mubr.msk.bf16.mxu0 %vm214_vm1, %v184_v16  ;;  %v196_v58 = vpack.c.bf16 %v161_v56, %v160_v55  ;;  %v164_v61 = vld [vmem:[%s19601_s0 + $0x120] sm:$0xff]  ;;  %v165_v62 = vld [vmem:[%s19601_s0 + $0x128] sm:$0xff]  ;;  %v197_v63 = vpack.c.bf16 %v163_v60, %v162_v59  ;;  %v166_v1 = vld [vmem:[%s19601_s0 + $0x130] sm:$0xff] }
  0x69   :  { %v198_v0 = vpack.c.bf16 %v165_v62, %v164_v61  ;;  %v167_v2 = vld [vmem:[%s19601_s0 + $0x138] sm:$0xff]  ;;  %v168_v3 = vld [vmem:[%s19601_s0 + $0x140] sm:$0xff]  ;;  %v169_v4 = vld [vmem:[%s19601_s0 + $0x148] sm:$0xff] }
  0x6a   :  { %v199_v5 = vpack.c.bf16 %v167_v2, %v166_v1  ;;  %v200_v6 = vpack.c.bf16 %v169_v4, %v168_v3  ;;  %v170_v7 = vld [vmem:[%s19601_s0 + $0x150] sm:$0xff]  ;;  %v171_v8 = vld [vmem:[%s19601_s0 + $0x158] sm:$0xff]  ;;  %v172_v9 = vld [vmem:[%s19601_s0 + $0x160] sm:$0xff] }
  0x6b   :  { %v173_v10 = vld [vmem:[%s19601_s0 + $0x168] sm:$0xff]  ;;  %v201_v11 = vpack.c.bf16 %v171_v8, %v170_v7  ;;  %v174_v13 = vld [vmem:[%s19601_s0 + $0x170] sm:$0xff]  ;;  %v175_v14 = vld [vmem:[%s19601_s0 + $0x178] sm:$0xff] }
  0x6c   :  { %v202_v12 = vpack.c.bf16 %v173_v10, %v172_v9  ;;  %v203_v15 = vpack.c.bf16 %v175_v14, %v174_v13  ;;  %v13711_v16 = vld [vmem:[#allocation6 + $0x4] ss:$8 sps:$4 sm:$0xff]   ;;  %v13709_v17 = vld [vmem:[#allocation6] ss:$8 sps:$4 sm:$0xff]   ;;  %v13714_v18 = vld [vmem:[#allocation6 + $0x14] ss:$8 sps:$4 sm:$0xff]  }
  0x6d   :  { %583 = vmatprep.subr.bf16.mxu1 %v13711_v16  ;;  %v13712_v19 = vld [vmem:[#allocation6 + $0x10] ss:$8 sps:$4 sm:$0xff]   ;;  %v13715_v21 = vld [vmem:[#allocation4] sm:$0xff]   ;;  %v15663_v29 = vld [vmem:[%s19604_s3] ss:$0 sm:$0xff]  ;;  %s15325_s3 = smov 32  }
  0x6e   :  { %584 = vmatpush1.bf16.msra.mxu1 %v13709_v17  ;;  %v13717_v62 = vld [vmem:[#allocation4 + $0x10] sm:$0xff]  }
  0x6f   :  { %12126 = vmatmul.mubr.msk.bf16.gmra.mrb[8].mxu0 %vm214_vm1, %v185_v23  ;;  %585 = vmatprep.subr.bf16.mxu1 %v13714_v18 }
  0x70   :  { %12129 = vmatprep.mubr.msk.bf16.mxu0 %vm214_vm1, %v186_v27 }
  0x72   :  { %586 = vmatpush1.bf16.msra.mxu1 %v13712_v19 }
  0x73   :  { %12169 = vmatprep.subr.bf16.mxu1 %v13715_v21 }
  0x77   :  { %12130 = vmatmul.mubr.msk.bf16.gmra.mrb[12].mxu0 %vm214_vm1, %v187_v33 }
  0x78   :  { %12133 = vmatprep.mubr.msk.bf16.mxu0 %vm214_vm1, %v188_v34 }
  0x7f   :  { %12134 = vmatmul.mubr.msk.bf16.gmra.mrb[16].mxu0 %vm214_vm1, %v189_v39 }
  0x80   :  { %12137 = vmatprep.mubr.msk.bf16.mxu0 %vm214_vm1, %v190_v40 }
  0x87   :  { %12138 = vmatmul.mubr.msk.bf16.gmra.mrb[20].mxu0 %vm214_vm1, %v191_v45 }
  0x88   :  { %12141 = vmatprep.mubr.msk.bf16.mxu0 %vm214_vm1, %v192_v46 }
  0x8f   :  { %12142 = vmatmul.mubr.msk.bf16.gmra.mrb[24].mxu0 %vm214_vm1, %v193_v51 }
  0x90   :  { %12145 = vmatprep.mubr.msk.bf16.mxu0 %vm214_vm1, %v194_v52  ;;  %v13716_v52 = vld [vmem:[#allocation4 + $0x8] sm:$0xff]  }
  0x97   :  { %12146 = vmatmul.mubr.msk.bf16.gmra.mrb[28].mxu0 %vm214_vm1, %v195_v57 }
  0x98   :  { %12149 = vmatprep.mubr.msk.bf16.mxu0 %vm214_vm1, %v196_v58 }
  0x9f   :  { %12150 = vmatmul.mubr.msk.bf16.gmra.mrb[32].mxu0 %vm214_vm1, %v197_v63 }
  0xa0   :  { %12153 = vmatprep.mubr.msk.bf16.mxu0 %vm214_vm1, %v198_v0 }
  0xa7   :  { %12154 = vmatmul.mubr.msk.bf16.gmra.mrb[36].mxu0 %vm214_vm1, %v199_v5  ;;  %v13718_v5 = vld [vmem:[#allocation4 + $0x18] sm:$0xff]  }
  0xa8   :  { %12157 = vmatprep.mubr.msk.bf16.mxu0 %vm214_vm1, %v200_v6 }
  0xaf   :  { %12158 = vmatmul.mubr.msk.bf16.gmra.mrb[40].mxu0 %vm214_vm1, %v201_v11 }
  0xb0   :  { %12161 = vmatprep.mubr.msk.bf16.mxu0 %vm214_vm1, %v202_v12 }
  0xb7   :  { %12162 = vmatmul.mubr.msk.bf16.gmra.mrb[44].mxu0 %vm214_vm1, %v203_v15 }
 0x132   :  { %v15652_v22 = vpop.f32.mrb[0].mxu0 }
 0x133   :  { %v15654_v23 = vpop.f32.mrb[1].mxu0 }
 0x134   :  { %v15656_v24 = vpop.f32.mrb[2].mxu0 }
 0x135   :  { %v15658_v25 = vpop.f32.mrb[3].mxu0 }
 0x137   :  { %v12167_v35 = vpop.f32.mrb[0].mxu1 }
 0x138   :  { %v523_v38 = vpop.f32.mrb[1].mxu1  ;;  %v15712_v57 = vadd.f32 %v12167_v35, %v15663_v29 }
 0x139   :  { %v15681_v40 = vadd.f32 %v15663_v29, %v523_v38  ;;  %v12168_v41 = vpop.f32.mrb[2].mxu1 }
 0x13a   :  { %v12123_v26 = vpop.f32.mrb[4].mxu0  ;;  %v526_v44 = vpop.f32.mrb[3].mxu1  ;;  %19741 = vst [vmem:[#allocation24_spill] sm:$0xff] %v15712_v57  ;;  %v15715_v58 = vadd.f32 %v12168_v41, %v15663_v29 }
 0x13b   :  { %v347_v27 = vpop.f32.mrb[5].mxu0  ;;  %v15677_v36 = vadd.f32 %v12123_v26, %v15663_v29  ;;  %19734 = vst [vmem:[#allocation17_spill] sm:$0xff] %v15681_v40  ;;  %v15686_v46 = vadd.f32 %v15663_v29, %v526_v44 }
 0x13c   :  { %v12124_v28 = vpop.f32.mrb[6].mxu0  ;;  %v15666_v31 = vadd.f32 %v15663_v29, %v347_v27  ;;  %19742 = vst [vmem:[#allocation25_spill] sm:$0xff] %v15715_v58  ;;  %v539_v1 = vpack.c.bf16 %v15715_v58, %v15712_v57 }
 0x13d   :  { %v350_v30 = vpop.f32.mrb[7].mxu0  ;;  %v15672_v33 = vadd.f32 %v12124_v28, %v15663_v29  ;;  %19733 = vst [vmem:[#allocation16_spill] sm:$0xff] %v15677_v36  ;;  %19735 = vst [vmem:[#allocation18_spill] sm:$0xff] %v15686_v46  ;;  %v538_v49 = vpack.c.bf16 %v15686_v46, %v15681_v40 }
 0x13e   :  { %19730 = vst [vmem:[#allocation13_spill] sm:$0xff] %v15666_v31  ;;  %v15669_v32 = vadd.f32 %v15663_v29, %v350_v30 }
 0x13f   :  { %19732 = vst [vmem:[#allocation15_spill] sm:$0xff] %v15672_v33  ;;  %v13204_v43 = vpack.i.bf16 %v15672_v33, %v15677_v36  ;;  %10910 = vmatmul.mubr.msk.bf16.vlgmr.msra.gmra.mrb[4].mxu1 %vm576_vm2, %v538_v49 }
 0x140   :  { %19731 = vst [vmem:[#allocation14_spill] sm:$0xff] %v15669_v32  ;;  %v13199_v34 = vpack.i.bf16 %v15669_v32, %v15666_v31  ;;  %625 = vmatprep.mubr.bf16.mxu1 %v19616_v20  ;;  %12170 = vmatpush3.bf16.msra.mxu1 %v13715_v21 }
 0x141   :  { %12171 = vmatprep.subr.bf16.mxu1 %v13716_v52 }
 0x142   :  { %v12127_v37 = vpop.f32.mrb[8].mxu0  ;;  %13200 = vrot.lane.b32.xlu0 %v13199_v34, %s15325_s3 }
 0x143   :  { %v363_v39 = vpop.f32.mrb[9].mxu0  ;;  %v15704_v53 = vadd.f32 %v12127_v37, %v15663_v29 }
 0x144   :  { %v12128_v42 = vpop.f32.mrb[10].mxu0  ;;  %v15689_v47 = vadd.f32 %v15663_v29, %v363_v39  ;;  %12172 = vmatpush3.bf16.msra.mxu1 %v13716_v52 }
 0x145   :  { %v366_v45 = vpop.f32.mrb[11].mxu0  ;;  %v15698_v50 = vadd.f32 %v12128_v42, %v15663_v29  ;;  %19739 = vst [vmem:[#allocation22_spill] sm:$0xff] %v15704_v53  ;;  %12173 = vmatprep.subr.bf16.mxu1 %v13717_v62 }
 0x146   :  { %19736 = vst [vmem:[#allocation19_spill] sm:$0xff] %v15689_v47  ;;  %v15692_v48 = vadd.f32 %v15663_v29, %v366_v45  ;;  %13205 = vrot.lane.b32.xlu0 %v13204_v43, %s15325_s3 }
 0x147   :  { %19738 = vst [vmem:[#allocation21_spill] sm:$0xff] %v15698_v50  ;;  %v13214_v61 = vpack.i.bf16 %v15698_v50, %v15704_v53  ;;  %10911 = vmatmul.mubr.msk.bf16.gmra.mrb[8].mxu1 %vm576_vm2, %v539_v1 }
 0x148   :  { %19737 = vst [vmem:[#allocation20_spill] sm:$0xff] %v15692_v48  ;;  %v13209_v51 = vpack.i.bf16 %v15692_v48, %v15689_v47  ;;  %12174 = vmatpush3.bf16.msra.mxu1 %v13717_v62 }
 0x149   :  { %12175 = vmatprep.subr.bf16.mxu1 %v13718_v5 }
 0x14a   :  { %v12131_v54 = vpop.f32.mrb[12].mxu0  ;;  %13210 = vrot.lane.b32.xlu1 %v13209_v51, %s15325_s3 }
 0x14b   :  { %v15709_v55 = vadd.f32 %v12131_v54, %v15663_v29  ;;  %v379_v56 = vpop.f32.mrb[13].mxu0 }
 0x14c   :  { %v15718_v59 = vadd.f32 %v15663_v29, %v379_v56  ;;  %v12132_v60 = vpop.f32.mrb[14].mxu0  ;;  %12176 = vmatpush3.bf16.msra.mxu1 %v13718_v5 }
 0x14d   :  { %19740 = vst [vmem:[#allocation23_spill] sm:$0xff] %v15709_v55  ;;  %v15723_v63 = vadd.f32 %v12132_v60, %v15663_v29  ;;  %v382_v0 = vpop.f32.mrb[15].mxu0 }
 0x14e   :  { %19743 = vst [vmem:[#allocation26_spill] sm:$0xff] %v15718_v59  ;;  %v15728_v2 = vadd.f32 %v15663_v29, %v382_v0  ;;  %13215 = vrot.lane.b32.xlu1 %v13214_v61, %s15325_s3 }
 0x14f   :  { %19744 = vst [vmem:[#allocation27_spill] sm:$0xff] %v15723_v63  ;;  %v13224_v3 = vpack.i.bf16 %v15723_v63, %v15709_v55 }
 0x150   :  { %19745 = vst [vmem:[#allocation28_spill] sm:$0xff] %v15728_v2  ;;  %v13219_v4 = vpack.i.bf16 %v15728_v2, %v15718_v59 }
 0x152   :  { %v12135_v6 = vpop.f32.mrb[16].mxu0  ;;  %13225 = vrot.lane.b32.xlu1 %v13224_v3, %s15325_s3  ;;  %13220 = vrot.lane.b32.xlu0 %v13219_v4, %s15325_s3 }
 0x153   :  { %v15739_v7 = vadd.f32 %v12135_v6, %v15663_v29  ;;  %v395_v8 = vpop.f32.mrb[17].mxu0 }
 0x154   :  { %v15742_v9 = vadd.f32 %v15663_v29, %v395_v8  ;;  %v12136_v10 = vpop.f32.mrb[18].mxu0 }
 0x155   :  { %19746 = vst [vmem:[#allocation29_spill] sm:$0xff] %v15739_v7  ;;  %v15745_v11 = vadd.f32 %v12136_v10, %v15663_v29  ;;  %v398_v12 = vpop.f32.mrb[19].mxu0 }
 0x156   :  { %19747 = vst [vmem:[#allocation30_spill] sm:$0xff] %v15742_v9  ;;  %v15748_v13 = vadd.f32 %v15663_v29, %v398_v12 }
 0x157   :  { %19748 = vst [vmem:[#allocation31_spill] sm:$0xff] %v15745_v11  ;;  %v13234_v14 = vpack.i.bf16 %v15745_v11, %v15739_v7 }
 0x158   :  { %19749 = vst [vmem:[#allocation32_spill] sm:$0xff] %v15748_v13  ;;  %v13229_v15 = vpack.i.bf16 %v15748_v13, %v15742_v9 }
 0x159   :  { %13235 = vrot.lane.b32.xlu1 %v13234_v14, %s15325_s3 }
 0x15a   :  { %v12139_v16 = vpop.f32.mrb[20].mxu0  ;;  %13230 = vrot.lane.b32.xlu0 %v13229_v15, %s15325_s3 }
 0x15b   :  { %v15757_v17 = vadd.f32 %v12139_v16, %v15663_v29  ;;  %v411_v18 = vpop.f32.mrb[21].mxu0 }
 0x15c   :  { %v15760_v19 = vadd.f32 %v15663_v29, %v411_v18  ;;  %v12140_v21 = vpop.f32.mrb[22].mxu0 }
 0x15d   :  { %19750 = vst [vmem:[#allocation33_spill] sm:$0xff] %v15757_v17  ;;  %v15763_v26 = vadd.f32 %v12140_v21, %v15663_v29  ;;  %v414_v27 = vpop.f32.mrb[23].mxu0 }
 0x15e   :  { %19751 = vst [vmem:[#allocation34_spill] sm:$0xff] %v15760_v19  ;;  %v15766_v28 = vadd.f32 %v15663_v29, %v414_v27 }
 0x15f   :  { %19752 = vst [vmem:[#allocation35_spill] sm:$0xff] %v15763_v26  ;;  %v13244_v30 = vpack.i.bf16 %v15763_v26, %v15757_v17 }
 0x160   :  { %19753 = vst [vmem:[#allocation36_spill] sm:$0xff] %v15766_v28  ;;  %v13239_v34 = vpack.i.bf16 %v15766_v28, %v15760_v19 }
 0x161   :  { %13245 = vrot.lane.b32.xlu1 %v13244_v30, %s15325_s3 }
 0x162   :  { %v12143_v35 = vpop.f32.mrb[24].mxu0  ;;  %13240 = vrot.lane.b32.xlu0 %v13239_v34, %s15325_s3 }
 0x163   :  { %v15775_v37 = vadd.f32 %v12143_v35, %v15663_v29  ;;  %v427_v38 = vpop.f32.mrb[25].mxu0 }
 0x164   :  { %v15778_v39 = vadd.f32 %v15663_v29, %v427_v38  ;;  %v12144_v41 = vpop.f32.mrb[26].mxu0 }
 0x165   :  { %19754 = vst [vmem:[#allocation37_spill] sm:$0xff] %v15775_v37  ;;  %v15781_v42 = vadd.f32 %v12144_v41, %v15663_v29  ;;  %v430_v43 = vpop.f32.mrb[27].mxu0 }
 0x166   :  { %19755 = vst [vmem:[#allocation38_spill] sm:$0xff] %v15778_v39  ;;  %v15784_v44 = vadd.f32 %v15663_v29, %v430_v43 }
 0x167   :  { %19756 = vst [vmem:[#allocation39_spill] sm:$0xff] %v15781_v42  ;;  %v13254_v45 = vpack.i.bf16 %v15781_v42, %v15775_v37 }
 0x168   :  { %19757 = vst [vmem:[#allocation40_spill] sm:$0xff] %v15784_v44  ;;  %v13249_v49 = vpack.i.bf16 %v15784_v44, %v15778_v39 }
 0x169   :  { %13255 = vrot.lane.b32.xlu1 %v13254_v45, %s15325_s3 }
 0x16a   :  { %v12147_v51 = vpop.f32.mrb[28].mxu0  ;;  %13250 = vrot.lane.b32.xlu0 %v13249_v49, %s15325_s3 }
 0x16b   :  { %v15793_v52 = vadd.f32 %v12147_v51, %v15663_v29  ;;  %v443_v54 = vpop.f32.mrb[29].mxu0 }
 0x16c   :  { %v15796_v56 = vadd.f32 %v15663_v29, %v443_v54  ;;  %v12148_v60 = vpop.f32.mrb[30].mxu0 }
 0x16d   :  { %19758 = vst [vmem:[#allocation41_spill] sm:$0xff] %v15793_v52  ;;  %v15799_v61 = vadd.f32 %v12148_v60, %v15663_v29  ;;  %v446_v62 = vpop.f32.mrb[31].mxu0 }
 0x16e   :  { %19759 = vst [vmem:[#allocation42_spill] sm:$0xff] %v15796_v56  ;;  %v15802_v0 = vadd.f32 %v15663_v29, %v446_v62 }
 0x16f   :  { %19760 = vst [vmem:[#allocation43_spill] sm:$0xff] %v15799_v61  ;;  %v13264_v1 = vpack.i.bf16 %v15799_v61, %v15793_v52 }
 0x170   :  { %19761 = vst [vmem:[#allocation44_spill] sm:$0xff] %v15802_v0  ;;  %v13259_v3 = vpack.i.bf16 %v15802_v0, %v15796_v56 }
 0x171   :  { %13265 = vrot.lane.b32.xlu1 %v13264_v1, %s15325_s3 }
 0x172   :  { %v12151_v4 = vpop.f32.mrb[32].mxu0  ;;  %13260 = vrot.lane.b32.xlu0 %v13259_v3, %s15325_s3 }
 0x173   :  { %v15811_v5 = vadd.f32 %v12151_v4, %v15663_v29  ;;  %v459_v6 = vpop.f32.mrb[33].mxu0 }
 0x174   :  { %v15814_v8 = vadd.f32 %v15663_v29, %v459_v6  ;;  %v12152_v10 = vpop.f32.mrb[34].mxu0 }
 0x175   :  { %19762 = vst [vmem:[#allocation45_spill] sm:$0xff] %v15811_v5  ;;  %v15817_v12 = vadd.f32 %v12152_v10, %v15663_v29  ;;  %v462_v14 = vpop.f32.mrb[35].mxu0 }
 0x176   :  { %19763 = vst [vmem:[#allocation46_spill] sm:$0xff] %v15814_v8  ;;  %v15820_v15 = vadd.f32 %v15663_v29, %v462_v14 }
 0x177   :  { %19764 = vst [vmem:[#allocation47_spill] sm:$0xff] %v15817_v12  ;;  %v13274_v16 = vpack.i.bf16 %v15817_v12, %v15811_v5 }
 0x178   :  { %19765 = vst [vmem:[#allocation48_spill] sm:$0xff] %v15820_v15  ;;  %v13269_v18 = vpack.i.bf16 %v15820_v15, %v15814_v8 }
 0x179   :  { %13275 = vrot.lane.b32.xlu1 %v13274_v16, %s15325_s3 }
 0x17a   :  { %v12155_v21 = vpop.f32.mrb[36].mxu0  ;;  %13270 = vrot.lane.b32.xlu0 %v13269_v18, %s15325_s3 }
 0x17b   :  { %v15829_v27 = vadd.f32 %v12155_v21, %v15663_v29  ;;  %v475_v30 = vpop.f32.mrb[37].mxu0 }
 0x17c   :  { %v15832_v34 = vadd.f32 %v15663_v29, %v475_v30  ;;  %v12156_v35 = vpop.f32.mrb[38].mxu0 }
 0x17d   :  { %19766 = vst [vmem:[#allocation49_spill] sm:$0xff] %v15829_v27  ;;  %v15835_v38 = vadd.f32 %v12156_v35, %v15663_v29  ;;  %v478_v41 = vpop.f32.mrb[39].mxu0 }
 0x17e   :  { %19767 = vst [vmem:[#allocation50_spill] sm:$0xff] %v15832_v34  ;;  %v15838_v43 = vadd.f32 %v15663_v29, %v478_v41 }
 0x17f   :  { %19768 = vst [vmem:[#allocation51_spill] sm:$0xff] %v15835_v38  ;;  %v13284_v45 = vpack.i.bf16 %v15835_v38, %v15829_v27 }
 0x180   :  { %19769 = vst [vmem:[#allocation52_spill] sm:$0xff] %v15838_v43  ;;  %v13279_v49 = vpack.i.bf16 %v15838_v43, %v15832_v34 }
 0x181   :  { %13285 = vrot.lane.b32.xlu1 %v13284_v45, %s15325_s3 }
 0x182   :  { %v12159_v51 = vpop.f32.mrb[40].mxu0  ;;  %13280 = vrot.lane.b32.xlu0 %v13279_v49, %s15325_s3 }
 0x183   :  { %v15847_v54 = vadd.f32 %v12159_v51, %v15663_v29  ;;  %v491_v60 = vpop.f32.mrb[41].mxu0 }
 0x184   :  { %v15850_v62 = vadd.f32 %v15663_v29, %v491_v60  ;;  %v12160_v1 = vpop.f32.mrb[42].mxu0 }
 0x185   :  { %19770 = vst [vmem:[#allocation53_spill] sm:$0xff] %v15847_v54  ;;  %v15853_v3 = vadd.f32 %v12160_v1, %v15663_v29  ;;  %v494_v4 = vpop.f32.mrb[43].mxu0  ;;  %v13314_v1 = vpack.i.bf16 %v15715_v58, %v15712_v57 }
 0x186   :  { %19771 = vst [vmem:[#allocation54_spill] sm:$0xff] %v15850_v62  ;;  %v15856_v6 = vadd.f32 %v15663_v29, %v494_v4  ;;  %v13309_v4 = vpack.i.bf16 %v15686_v46, %v15681_v40 }
 0x187   :  { %19772 = vst [vmem:[#allocation55_spill] sm:$0xff] %v15853_v3  ;;  %v13294_v10 = vpack.i.bf16 %v15853_v3, %v15847_v54 }
 0x188   :  { %19773 = vst [vmem:[#allocation56_spill] sm:$0xff] %v15856_v6  ;;  %v13289_v14 = vpack.i.bf16 %v15856_v6, %v15850_v62 }
 0x189   :  { %13295 = vrot.lane.b32.xlu1 %v13294_v10, %s15325_s3 }
 0x18a   :  { %v12163_v16 = vpop.f32.mrb[44].mxu0  ;;  %13290 = vrot.lane.b32.xlu0 %v13289_v14, %s15325_s3  ;;  %v332_v14 = vadd.f32 %v15663_v29, %v15654_v23 }
 0x18b   :  { %v15865_v18 = vadd.f32 %v12163_v16, %v15663_v29  ;;  %v507_v21 = vpop.f32.mrb[45].mxu0  ;;  %v335_v16 = vadd.f32 %v15663_v29, %v15658_v25 }
 0x18c   :  { %v15868_v30 = vadd.f32 %v15663_v29, %v507_v21  ;;  %v12164_v35 = vpop.f32.mrb[46].mxu0 }
 0x18d   :  { %19774 = vst [vmem:[#allocation57_spill] sm:$0xff] %v15865_v18  ;;  %v15871_v41 = vadd.f32 %v12164_v35, %v15663_v29  ;;  %v510_v45 = vpop.f32.mrb[47].mxu0 }
 0x18e   :  { %19775 = vst [vmem:[#allocation58_spill] sm:$0xff] %v15868_v30  ;;  %v15874_v49 = vadd.f32 %v15663_v29, %v510_v45 }
 0x18f   :  { %19776 = vst [vmem:[#allocation59_spill] sm:$0xff] %v15871_v41  ;;  %v13304_v51 = vpack.i.bf16 %v15871_v41, %v15865_v18 }
 0x190   :  { %19777 = vst [vmem:[#allocation60_spill] sm:$0xff] %v15874_v49  ;;  %v13299_v60 = vpack.i.bf16 %v15874_v49, %v15868_v30 }
 0x191   :  { %13305 = vrot.lane.b32.xlu1 %v13304_v51, %s15325_s3 }
 0x192   :  { %13300 = vrot.lane.b32.xlu0 %v13299_v60, %s15325_s3 }
 0x195   :  { %13315 = vrot.lane.b32.xlu1 %v13314_v1, %s15325_s3  ;;  %v340_v1 = vadd.f32 %v15652_v22, %v15663_v29 }
 0x196   :  { %13310 = vrot.lane.b32.xlu0 %v13309_v4, %s15325_s3  ;;  %v343_v4 = vadd.f32 %v15656_v24, %v15663_v29 }
 0x1b4   :  { %v13201_v10 = vpop.permute.xlu0 %13200 }
 0x1b5   :  { %v13203_v21 = vunpack.i.h.bf16 %v13201_v10  ;;  %v13202_v35 = vunpack.i.l.bf16 %v13201_v10 }
 0x1b7   :  { %v828_v45 = vsel %vm576_vm2, %v332_v14, %v13202_v35  ;;  %v829_v51 = vsel %vm576_vm2, %v335_v16, %v13203_v21 }
 0x1b8   :  { %v13206_v60 = vpop.permute.xlu0 %13205  ;;  %v876_v20 = vpack.c.bf16 %v829_v51, %v828_v45 }
 0x1b9   :  { %v13208_v46 = vunpack.i.h.bf16 %v13206_v60  ;;  %v13207_v23 = vunpack.i.l.bf16 %v13206_v60 }
 0x1ba   :  { %12177 = vmatprep.mubr.msk.bf16.mxu1 %vm939_vm3, %v876_v20 }
 0x1bb   :  { %v831_v25 = vsel %vm576_vm2, %v343_v4, %v13208_v46  ;;  %v830_v10 = vsel %vm576_vm2, %v340_v1, %v13207_v23 }
 0x1bc   :  { %v877_v14 = vpack.c.bf16 %v831_v25, %v830_v10  ;;  %v13211_v35 = vpop.permute.xlu1 %13210 }
 0x1bd   :  { %v13213_v16 = vunpack.i.h.bf16 %v13211_v35  ;;  %v13212_v21 = vunpack.i.l.bf16 %v13211_v35 }
 0x1be   :  { %12178 = vmatmul.mubr.msk.bf16.vlgmr.msra.gmra.mrb[12].mxu1 %vm939_vm3, %v877_v14 }
 0x1bf   :  { %v832_v22 = vsel %vm576_vm2, %v15666_v31, %v13212_v21  ;;  %v833_v24 = vsel %vm576_vm2, %v15669_v32, %v13213_v16 }
 0x1c0   :  { %v13216_v29 = vpop.permute.xlu1 %13215  ;;  %v878_v45 = vpack.c.bf16 %v833_v24, %v832_v22 }
 0x1c1   :  { %v13218_v51 = vunpack.i.h.bf16 %v13216_v29  ;;  %v13217_v20 = vunpack.i.l.bf16 %v13216_v29 }
 0x1c2   :  { %12181 = vmatprep.mubr.msk.bf16.mxu1 %vm939_vm3, %v878_v45 }
 0x1c3   :  { %v835_v46 = vsel %vm576_vm2, %v15672_v33, %v13218_v51  ;;  %v834_v60 = vsel %vm576_vm2, %v15677_v36, %v13217_v20 }
 0x1c4   :  { %v13226_v1 = vpop.permute.xlu1 %13225  ;;  %v13221_v4 = vpop.permute.xlu0 %13220  ;;  %v879_v23 = vpack.c.bf16 %v835_v46, %v834_v60 }
 0x1c5   :  { %v13228_v25 = vunpack.i.h.bf16 %v13226_v1  ;;  %v13227_v10 = vunpack.i.l.bf16 %v13226_v1  ;;  %v13223_v14 = vunpack.i.h.bf16 %v13221_v4  ;;  %v13222_v35 = vunpack.i.l.bf16 %v13221_v4 }
 0x1c6   :  { %12182 = vmatmul.mubr.msk.bf16.gmra.mrb[16].mxu1 %vm939_vm3, %v879_v23 }
 0x1c7   :  { %v837_v16 = vsel %vm576_vm2, %v15692_v48, %v13223_v14  ;;  %v836_v21 = vsel %vm576_vm2, %v15689_v47, %v13222_v35  ;;  %v839_v24 = vsel %vm576_vm2, %v15698_v50, %v13228_v25  ;;  %v838_v29 = vsel %vm576_vm2, %v15704_v53, %v13227_v10 }
 0x1c8   :  { %v880_v22 = vpack.c.bf16 %v837_v16, %v836_v21  ;;  %v881_v20 = vpack.c.bf16 %v839_v24, %v838_v29 }
 0x1ca   :  { %12185 = vmatprep.mubr.msk.bf16.mxu1 %vm939_vm3, %v880_v22 }
 0x1cb   :  { %v13236_v45 = vpop.permute.xlu1 %13235 }
 0x1cc   :  { %v13231_v51 = vpop.permute.xlu0 %13230  ;;  %v13238_v46 = vunpack.i.h.bf16 %v13236_v45  ;;  %v13237_v60 = vunpack.i.l.bf16 %v13236_v45 }
 0x1cd   :  { %v13233_v1 = vunpack.i.h.bf16 %v13231_v51  ;;  %v13232_v4 = vunpack.i.l.bf16 %v13231_v51 }
 0x1ce   :  { %12186 = vmatmul.mubr.msk.bf16.gmra.mrb[20].mxu1 %vm939_vm3, %v881_v20  ;;  %v843_v10 = vsel %vm576_vm2, %v15723_v63, %v13238_v46  ;;  %v842_v35 = vsel %vm576_vm2, %v15709_v55, %v13237_v60 }
 0x1cf   :  { %v841_v23 = vsel %vm576_vm2, %v15728_v2, %v13233_v1  ;;  %v840_v25 = vsel %vm576_vm2, %v15718_v59, %v13232_v4  ;;  %v883_v22 = vpack.c.bf16 %v843_v10, %v842_v35 }
 0x1d0   :  { %v882_v14 = vpack.c.bf16 %v841_v23, %v840_v25 }
 0x1d2   :  { %12189 = vmatprep.mubr.msk.bf16.mxu1 %vm939_vm3, %v882_v14 }
 0x1d3   :  { %v13246_v16 = vpop.permute.xlu1 %13245 }
 0x1d4   :  { %v13241_v21 = vpop.permute.xlu0 %13240  ;;  %v13248_v24 = vunpack.i.h.bf16 %v13246_v16  ;;  %v13247_v29 = vunpack.i.l.bf16 %v13246_v16 }
 0x1d5   :  { %v13243_v45 = vunpack.i.h.bf16 %v13241_v21  ;;  %v13242_v51 = vunpack.i.l.bf16 %v13241_v21 }
 0x1d6   :  { %12190 = vmatmul.mubr.msk.bf16.gmra.mrb[24].mxu1 %vm939_vm3, %v883_v22  ;;  %v847_v60 = vsel %vm576_vm2, %v15745_v11, %v13248_v24  ;;  %v846_v4 = vsel %vm576_vm2, %v15739_v7, %v13247_v29 }
 0x1d7   :  { %v845_v20 = vsel %vm576_vm2, %v15748_v13, %v13243_v45  ;;  %v844_v46 = vsel %vm576_vm2, %v15742_v9, %v13242_v51  ;;  %v885_v14 = vpack.c.bf16 %v847_v60, %v846_v4 }
 0x1d8   :  { %v884_v1 = vpack.c.bf16 %v845_v20, %v844_v46 }
 0x1da   :  { %12193 = vmatprep.mubr.msk.bf16.mxu1 %vm939_vm3, %v884_v1 }
 0x1db   :  { %v13256_v23 = vpop.permute.xlu1 %13255 }
 0x1dc   :  { %v13251_v25 = vpop.permute.xlu0 %13250  ;;  %v13258_v10 = vunpack.i.h.bf16 %v13256_v23  ;;  %v13257_v35 = vunpack.i.l.bf16 %v13256_v23 }
 0x1dd   :  { %v13253_v16 = vunpack.i.h.bf16 %v13251_v25  ;;  %v13252_v21 = vunpack.i.l.bf16 %v13251_v25 }
 0x1de   :  { %12194 = vmatmul.mubr.msk.bf16.gmra.mrb[28].mxu1 %vm939_vm3, %v885_v14  ;;  %v851_v29 = vsel %vm576_vm2, %v15763_v26, %v13258_v10  ;;  %v850_v51 = vsel %vm576_vm2, %v15757_v17, %v13257_v35 }
 0x1df   :  { %v849_v22 = vsel %vm576_vm2, %v15766_v28, %v13253_v16  ;;  %v848_v24 = vsel %vm576_vm2, %v15760_v19, %v13252_v21  ;;  %v887_v1 = vpack.c.bf16 %v851_v29, %v850_v51 }
 0x1e0   :  { %v886_v45 = vpack.c.bf16 %v849_v22, %v848_v24 }
 0x1e2   :  { %12197 = vmatprep.mubr.msk.bf16.mxu1 %vm939_vm3, %v886_v45 }
 0x1e3   :  { %v13266_v20 = vpop.permute.xlu1 %13265 }
 0x1e4   :  { %v13261_v46 = vpop.permute.xlu0 %13260  ;;  %v13268_v60 = vunpack.i.h.bf16 %v13266_v20  ;;  %v13267_v4 = vunpack.i.l.bf16 %v13266_v20 }
 0x1e5   :  { %v13263_v23 = vunpack.i.h.bf16 %v13261_v46  ;;  %v13262_v25 = vunpack.i.l.bf16 %v13261_v46 }
 0x1e6   :  { %12198 = vmatmul.mubr.msk.bf16.gmra.mrb[32].mxu1 %vm939_vm3, %v887_v1  ;;  %v855_v35 = vsel %vm576_vm2, %v15781_v42, %v13268_v60  ;;  %v854_v21 = vsel %vm576_vm2, %v15775_v37, %v13267_v4 }
 0x1e7   :  { %v853_v14 = vsel %vm576_vm2, %v15784_v44, %v13263_v23  ;;  %v852_v10 = vsel %vm576_vm2, %v15778_v39, %v13262_v25  ;;  %v889_v45 = vpack.c.bf16 %v855_v35, %v854_v21 }
 0x1e8   :  { %v888_v16 = vpack.c.bf16 %v853_v14, %v852_v10 }
 0x1ea   :  { %12201 = vmatprep.mubr.msk.bf16.mxu1 %vm939_vm3, %v888_v16 }
 0x1eb   :  { %v13276_v22 = vpop.permute.xlu1 %13275 }
 0x1ec   :  { %v13271_v24 = vpop.permute.xlu0 %13270  ;;  %v13278_v29 = vunpack.i.h.bf16 %v13276_v22  ;;  %v13277_v51 = vunpack.i.l.bf16 %v13276_v22 }
 0x1ed   :  { %v13273_v20 = vunpack.i.h.bf16 %v13271_v24  ;;  %v13272_v46 = vunpack.i.l.bf16 %v13271_v24 }
 0x1ee   :  { %12202 = vmatmul.mubr.msk.bf16.gmra.mrb[36].mxu1 %vm939_vm3, %v889_v45  ;;  %v859_v4 = vsel %vm576_vm2, %v15799_v61, %v13278_v29  ;;  %v858_v25 = vsel %vm576_vm2, %v15793_v52, %v13277_v51 }
 0x1ef   :  { %v857_v1 = vsel %vm576_vm2, %v15802_v0, %v13273_v20  ;;  %v856_v60 = vsel %vm576_vm2, %v15796_v56, %v13272_v46  ;;  %v891_v16 = vpack.c.bf16 %v859_v4, %v858_v25 }
 0x1f0   :  { %v890_v23 = vpack.c.bf16 %v857_v1, %v856_v60 }
 0x1f2   :  { %12205 = vmatprep.mubr.msk.bf16.mxu1 %vm939_vm3, %v890_v23 }
 0x1f3   :  { %v13286_v14 = vpop.permute.xlu1 %13285 }
 0x1f4   :  { %v13281_v10 = vpop.permute.xlu0 %13280  ;;  %v13288_v35 = vunpack.i.h.bf16 %v13286_v14  ;;  %v13287_v21 = vunpack.i.l.bf16 %v13286_v14 }
 0x1f5   :  { %v13283_v22 = vunpack.i.h.bf16 %v13281_v10  ;;  %v13282_v24 = vunpack.i.l.bf16 %v13281_v10 }
 0x1f6   :  { %12206 = vmatmul.mubr.msk.bf16.gmra.mrb[40].mxu1 %vm939_vm3, %v891_v16  ;;  %v863_v51 = vsel %vm576_vm2, %v15817_v12, %v13288_v35  ;;  %v862_v46 = vsel %vm576_vm2, %v15811_v5, %v13287_v21 }
 0x1f7   :  { %v861_v45 = vsel %vm576_vm2, %v15820_v15, %v13283_v22  ;;  %v860_v29 = vsel %vm576_vm2, %v15814_v8, %v13282_v24  ;;  %v893_v23 = vpack.c.bf16 %v863_v51, %v862_v46 }
 0x1f8   :  { %v892_v20 = vpack.c.bf16 %v861_v45, %v860_v29 }
 0x1fa   :  { %12209 = vmatprep.mubr.msk.bf16.mxu1 %vm939_vm3, %v892_v20 }
 0x1fb   :  { %v13296_v1 = vpop.permute.xlu1 %13295 }
 0x1fc   :  { %v13291_v60 = vpop.permute.xlu0 %13290  ;;  %v13298_v4 = vunpack.i.h.bf16 %v13296_v1  ;;  %v13297_v25 = vunpack.i.l.bf16 %v13296_v1 }
 0x1fd   :  { %v13293_v14 = vunpack.i.h.bf16 %v13291_v60  ;;  %v13292_v10 = vunpack.i.l.bf16 %v13291_v60 }
 0x1fe   :  { %12210 = vmatmul.mubr.msk.bf16.gmra.mrb[44].mxu1 %vm939_vm3, %v893_v23  ;;  %v867_v21 = vsel %vm576_vm2, %v15835_v38, %v13298_v4  ;;  %v866_v24 = vsel %vm576_vm2, %v15829_v27, %v13297_v25 }
 0x1ff   :  { %v865_v16 = vsel %vm576_vm2, %v15838_v43, %v13293_v14  ;;  %v864_v35 = vsel %vm576_vm2, %v15832_v34, %v13292_v10  ;;  %v895_v20 = vpack.c.bf16 %v867_v21, %v866_v24 }
 0x200   :  { %v894_v22 = vpack.c.bf16 %v865_v16, %v864_v35 }
 0x202   :  { %12213 = vmatprep.mubr.msk.bf16.mxu1 %vm939_vm3, %v894_v22 }
 0x203   :  { %v13306_v45 = vpop.permute.xlu1 %13305 }
 0x204   :  { %v13301_v29 = vpop.permute.xlu0 %13300  ;;  %v13308_v51 = vunpack.i.h.bf16 %v13306_v45  ;;  %v13307_v46 = vunpack.i.l.bf16 %v13306_v45 }
 0x205   :  { %v13303_v1 = vunpack.i.h.bf16 %v13301_v29  ;;  %v13302_v60 = vunpack.i.l.bf16 %v13301_v29 }
 0x206   :  { %12214 = vmatmul.mubr.msk.bf16.gmra.mrb[48].mxu1 %vm939_vm3, %v895_v20  ;;  %v871_v25 = vsel %vm576_vm2, %v15853_v3, %v13308_v51  ;;  %v870_v16 = vsel %vm576_vm2, %v15847_v54, %v13307_v46 }
 0x207   :  { %v869_v23 = vsel %vm576_vm2, %v15856_v6, %v13303_v1  ;;  %v868_v4 = vsel %vm576_vm2, %v15850_v62, %v13302_v60  ;;  %v13316_v21 = vpop.permute.xlu1 %13315  ;;  %v897_v29 = vpack.c.bf16 %v871_v25, %v870_v16 }
 0x208   :  { %v13311_v14 = vpop.permute.xlu0 %13310  ;;  %v896_v10 = vpack.c.bf16 %v869_v23, %v868_v4  ;;  %v13318_v1 = vunpack.i.h.bf16 %v13316_v21  ;;  %v13317_v60 = vunpack.i.l.bf16 %v13316_v21  ;;  %v16015_v4 = vld [vmem:[%s19606_s5] ss:$0 sm:$0xff] }
 0x209   :  { %v13313_v35 = vunpack.i.h.bf16 %v13311_v14  ;;  %v13312_v22 = vunpack.i.l.bf16 %v13311_v14 }
 0x20a   :  { %12217 = vmatprep.mubr.msk.bf16.mxu1 %vm939_vm3, %v896_v10  ;;  %v875_v51 = vsel %vm576_vm2, %v15871_v41, %v13318_v1  ;;  %v874_v46 = vsel %vm576_vm2, %v15865_v18, %v13317_v60 }
 0x20b   :  { %v873_v24 = vsel %vm576_vm2, %v15874_v49, %v13313_v35  ;;  %v872_v45 = vsel %vm576_vm2, %v15868_v30, %v13312_v22  ;;  %v899_v23 = vpack.c.bf16 %v875_v51, %v874_v46 }
 0x20c   :  { %v898_v20 = vpack.c.bf16 %v873_v24, %v872_v45 }
 0x20e   :  { %12218 = vmatmul.mubr.msk.bf16.gmra.mrb[52].mxu1 %vm939_vm3, %v897_v29 }
 0x20f   :  { %12221 = vmatprep.mubr.msk.bf16.mxu1 %vm939_vm3, %v898_v20 }
 0x216   :  { %12222 = vmatmul.mubr.msk.bf16.gmra.mrb[56].mxu1 %vm939_vm3, %v899_v23 }
 0x291   :  { %v12179_v14 = vpop.f32.mrb[12].mxu1 }
 0x292   :  { %v16018_v10 = vadd.f32 %v12179_v14, %v16015_v4  ;;  %v1046_v25 = vpop.f32.mrb[13].mxu1 }
 0x293   :  { %v16021_v16 = vadd.f32 %v16015_v4, %v1046_v25  ;;  %v12180_v35 = vpop.f32.mrb[14].mxu1 }
 0x294   :  { %v10943_v22 = vmul.f32 -1.442695, %v16018_v10  ;;  %v16025_v21 = vadd.f32 %v12180_v35, %v16015_v4  ;;  %v1049_v24 = vpop.f32.mrb[15].mxu1 }
 0x295   :  { %v10941_v45 = vmul.f32 -1.442695, %v16021_v16  ;;  %v16029_v29 = vadd.f32 %v16015_v4, %v1049_v24 }
 0x296   :  { %13935 = vpow2.f32 %v10943_v22  ;;  %v10944_v20 = vmul.f32 -1.442695, %v16025_v21 }
 0x297   :  { %13937 = vpow2.f32 %v10941_v45  ;;  %v10942_v1 = vmul.f32 -1.442695, %v16029_v29 }
 0x298   :  { %13939 = vpow2.f32 %v10944_v20 }
 0x299   :  { %v12183_v60 = vpop.f32.mrb[16].mxu1  ;;  %13941 = vpow2.f32 %v10942_v1 }
 0x29a   :  { %v16034_v51 = vadd.f32 %v12183_v60, %v16015_v4  ;;  %v1062_v46 = vpop.f32.mrb[17].mxu1 }
 0x29b   :  { %v16037_v23 = vadd.f32 %v16015_v4, %v1062_v46  ;;  %v12184_v14 = vpop.f32.mrb[18].mxu1 }
 0x29c   :  { %v10947_v25 = vmul.f32 -1.442695, %v16034_v51  ;;  %v16041_v35 = vadd.f32 %v12184_v14, %v16015_v4  ;;  %v1065_v22 = vpop.f32.mrb[19].mxu1 }
 0x29d   :  { %v10945_v24 = vmul.f32 -1.442695, %v16037_v23  ;;  %v16045_v45 = vadd.f32 %v16015_v4, %v1065_v22 }
 0x29e   :  { %13943 = vpow2.f32 %v10947_v25  ;;  %v10948_v20 = vmul.f32 -1.442695, %v16041_v35 }
 0x29f   :  { %13945 = vpow2.f32 %v10945_v24  ;;  %v10946_v46 = vmul.f32 -1.442695, %v16045_v45 }
 0x2a0   :  { %v13936_v1 = vpop.eup %13935  ;;  %13947 = vpow2.f32 %v10948_v20 }
 0x2a1   :  { %v13938_v60 = vpop.eup %13937  ;;  %v12187_v48 = vpop.f32.mrb[20].mxu1  ;;  %v1431_v14 = vadd.f32 1.0, %v13936_v1 }
 0x2a2   :  { %v1429_v47 = vadd.f32 1.0, %v13938_v60  ;;  %v1078_v50 = vpop.f32.mrb[21].mxu1  ;;  %v13940_v53 = vpop.eup %13939  ;;  %v16050_v32 = vadd.f32 %v12187_v48, %v16015_v4 }
 0x2a3   :  { %v12188_v31 = vpop.f32.mrb[22].mxu1  ;;  %v13942_v25 = vpop.eup %13941  ;;  %v16053_v24 = vadd.f32 %v16015_v4, %v1078_v50  ;;  %v1432_v33 = vadd.f32 1.0, %v13940_v53 }
 0x2a4   :  { %13949 = vrcp.f32 %v1429_v47  ;;  %v1081_v22 = vpop.f32.mrb[23].mxu1  ;;  %v1430_v36 = vadd.f32 1.0, %v13942_v25  ;;  %v10951_v60 = vmul.f32 -1.442695, %v16050_v32  ;;  %v16058_v48 = vadd.f32 %v12188_v31, %v16015_v4 }
 0x2a5   :  { %13951 = vpow2.f32 %v10946_v46  ;;  %v10949_v20 = vmul.f32 -1.442695, %v16053_v24  ;;  %v16061_v50 = vadd.f32 %v16015_v4, %v1081_v22 }
 0x2a6   :  { %13953 = vrcp.f32 %v1431_v14 }
 0x2a7   :  { %13955 = vrcp.f32 %v1430_v36  ;;  %v10952_v36 = vmul.f32 -1.442695, %v16058_v48  ;;  %v10950_v31 = vmul.f32 -1.442695, %v16061_v50 }
 0x2a8   :  { %v13944_v40 = vpop.eup %13943  ;;  %13957 = vrcp.f32 %v1432_v33 }
 0x2a9   :  { %v13946_v1 = vpop.eup %13945  ;;  %v12191_v47 = vpop.f32.mrb[24].mxu1  ;;  %13959 = vpow2.f32 %v10951_v60  ;;  %v1435_v14 = vadd.f32 1.0, %v13944_v40 }
 0x2aa   :  { %v1433_v58 = vadd.f32 1.0, %v13946_v1  ;;  %v1094_v46 = vpop.f32.mrb[25].mxu1  ;;  %v13948_v57 = vpop.eup %13947  ;;  %v16066_v33 = vadd.f32 %v12191_v47, %v16015_v4 }
 0x2ab   :  { %v12192_v53 = vpop.f32.mrb[26].mxu1  ;;  %v16070_v40 = vadd.f32 %v16015_v4, %v1094_v46 }
 0x2ac   :  { %13961 = vrcp.f32 %v1433_v58  ;;  %v1097_v25 = vpop.f32.mrb[27].mxu1  ;;  %v10955_v18 = vmul.f32 -1.442695, %v16066_v33 }
 0x2ad   :  { %13963 = vpow2.f32 %v10949_v20  ;;  %v1436_v20 = vadd.f32 1.0, %v13948_v57  ;;  %v16080_v57 = vadd.f32 %v16015_v4, %v1097_v25 }
 0x2ae   :  { %v13950_v49 = vpop.eup %13949  ;;  %13965 = vrcp.f32 %v1435_v14 }
 0x2af   :  { %v13952_v30 = vpop.eup %13951  ;;  %1621 = vrot.lane.b32.xlu0 %v13950_v49, %s15326_s29  ;;  %13967 = vpow2.f32 %v10952_v36  ;;  %v16077_v36 = vadd.f32 %v12192_v53, %v16015_v4  ;;  %v10954_v53 = vmul.f32 -1.442695, %v16080_v57 }
 0x2b0   :  { %v1434_v22 = vadd.f32 1.0, %v13952_v30  ;;  %v13954_v58 = vpop.eup %13953  ;;  %v10953_v30 = vmul.f32 -1.442695, %v16070_v40 }
 0x2b1   :  { %v12195_v60 = vpop.f32.mrb[28].mxu1  ;;  %v13956_v1 = vpop.eup %13955 }
 0x2b2   :  { %13969 = vrcp.f32 %v1434_v22  ;;  %v1110_v41 = vpop.f32.mrb[29].mxu1  ;;  %1623 = vrot.lane.b32.xlu1 %v13956_v1, %s15326_s29  ;;  %v13958_v49 = vpop.eup %13957  ;;  %v10956_v1 = vmul.f32 -1.442695, %v16077_v36  ;;  %v16087_v25 = vadd.f32 %v12195_v60, %v16015_v4 }
 0x2b3   :  { %13971 = vpow2.f32 %v10950_v31  ;;  %v12196_v47 = vpop.f32.mrb[30].mxu1  ;;  %1625 = vrot.lane.b32.xlu0 %v13954_v58, %s15326_s29  ;;  %v13960_v14 = vpop.eup %13959 }
 0x2b4   :  { %v1113_v46 = vpop.f32.mrb[31].mxu1  ;;  %13973 = vrcp.f32 %v1436_v20  ;;  %v1439_v22 = vadd.f32 1.0, %v13960_v14  ;;  %v10959_v43 = vmul.f32 -1.442695, %v16087_v25 }
 0x2b5   :  { %13975 = vpow2.f32 %v10955_v18 }
 0x2b6   :  { %v13962_v6 = vpop.eup %13961  ;;  %1627 = vrot.lane.b32.xlu1 %v13958_v49, %s15326_s29  ;;  %13977 = vpow2.f32 %v10953_v30 }
 0x2b7   :  { %v13964_v31 = vpop.eup %13963  ;;  %1629 = vrot.lane.b32.xlu0 %v13962_v6, %s15326_s29  ;;  %v16091_v6 = vadd.f32 %v16015_v4, %v1110_v41 }
 0x2b8   :  { %v1437_v58 = vadd.f32 1.0, %v13964_v31  ;;  %v13966_v3 = vpop.eup %13965 }
 0x2b9   :  { %v12199_v62 = vpop.f32.mrb[32].mxu1  ;;  %v13968_v54 = vpop.eup %13967  ;;  %v10957_v34 = vmul.f32 -1.442695, %v16091_v6 }
 0x2ba   :  { %13979 = vrcp.f32 %v1437_v58  ;;  %v1126_v20 = vpop.f32.mrb[33].mxu1  ;;  %v1440_v31 = vadd.f32 1.0, %v13968_v54  ;;  %v16111_v15 = vadd.f32 %v12199_v62, %v16015_v4 }
 0x2bb   :  { %v12200_v18 = vpop.f32.mrb[34].mxu1  ;;  %1633 = vrot.lane.b32.xlu0 %v13966_v3, %s15326_s29  ;;  %13981 = vrcp.f32 %v1439_v22  ;;  %v16097_v22 = vadd.f32 %v12196_v47, %v16015_v4 }
 0x2bc   :  { %v13970_v49 = vpop.eup %13969  ;;  %v1129_v30 = vpop.f32.mrb[35].mxu1  ;;  %13983 = vpow2.f32 %v10956_v1  ;;  %v16101_v1 = vadd.f32 %v16015_v4, %v1113_v46  ;;  %v10963_v62 = vmul.f32 -1.442695, %v16111_v15  ;;  %v16129_v12 = vadd.f32 %v12200_v18, %v16015_v4 }
 0x2bd   :  { %v13972_v14 = vpop.eup %13971  ;;  %1631 = vrot.lane.b32.xlu1 %v13970_v49, %s15326_s29  ;;  %13985 = vpow2.f32 %v10954_v53  ;;  %v10960_v47 = vmul.f32 -1.442695, %v16097_v22 }
 0x2be   :  { %v1438_v58 = vadd.f32 1.0, %v13972_v14  ;;  %v13974_v60 = vpop.eup %13973  ;;  %v10964_v0 = vmul.f32 -1.442695, %v16129_v12 }
 0x2bf   :  { %v13976_v3 = vpop.eup %13975 }
 0x2c0   :  { %13987 = vrcp.f32 %v1438_v58  ;;  %v13978_v38 = vpop.eup %13977  ;;  %v1443_v58 = vadd.f32 1.0, %v13976_v3 }
 0x2c1   :  { %1635 = vrot.lane.b32.xlu1 %v13974_v60, %s15326_s29  ;;  %v12203_v41 = vpop.f32.mrb[36].mxu1  ;;  %13989 = vrcp.f32 %v1440_v31  ;;  %v1441_v53 = vadd.f32 1.0, %v13978_v38  ;;  %v10958_v31 = vmul.f32 -1.442695, %v16101_v1 }
 0x2c2   :  { %v1142_v54 = vpop.f32.mrb[37].mxu1  ;;  %13991 = vpow2.f32 %v10959_v43  ;;  %v16114_v43 = vadd.f32 %v16015_v4, %v1126_v20 }
 0x2c3   :  { %v16103_v49 = vpop.f32.mrb[38].mxu1  ;;  %13993 = vpow2.f32 %v10957_v34 }
 0x2c4   :  { %v13980_v14 = vpop.eup %13979  ;;  %v16105_v27 = vpop.f32.mrb[39].mxu1  ;;  %13995 = vrcp.f32 %v1441_v53 }
 0x2c5   :  { %1637 = vrot.lane.b32.xlu0 %v13980_v14, %s15326_s29  ;;  %v13982_v60 = vpop.eup %13981  ;;  %13997 = vrcp.f32 %v1443_v58 }
 0x2c6   :  { %v13984_v46 = vpop.eup %13983  ;;  %13999 = vpow2.f32 %v10960_v47 }
 0x2c7   :  { %v13986_v38 = vpop.eup %13985  ;;  %v1444_v14 = vadd.f32 1.0, %v13984_v46  ;;  %14001 = vpow2.f32 %v10958_v31  ;;  %v16132_v31 = vadd.f32 %v16015_v4, %v1129_v30 }
 0x2c8   :  { %v1442_v34 = vadd.f32 1.0, %v13986_v38  ;;  %v10961_v38 = vmul.f32 -1.442695, %v16114_v43 }
 0x2c9   :  { %1641 = vrot.lane.b32.xlu0 %v13982_v60, %s15326_s29  ;;  %v16117_v3 = vpop.f32.mrb[40].mxu1 }
 0x2ca   :  { %v13988_v53 = vpop.eup %13987  ;;  %v16119_v8 = vpop.f32.mrb[41].mxu1  ;;  %14003 = vrcp.f32 %v1442_v34  ;;  %v16185_v37 = vadd.f32 %v16117_v3, %v16015_v4 }
 0x2cb   :  { %1639 = vrot.lane.b32.xlu1 %v13988_v53, %s15326_s29  ;;  %v16123_v58 = vpop.f32.mrb[42].mxu1  ;;  %v13990_v20 = vpop.eup %13989  ;;  %14005 = vrcp.f32 %v1444_v14  ;;  %v10962_v14 = vmul.f32 -1.442695, %v16132_v31 }
 0x2cc   :  { %v16126_v47 = vpop.f32.mrb[43].mxu1  ;;  %v13992_v60 = vpop.eup %13991  ;;  %14007 = vpow2.f32 %v10963_v62  ;;  %v10971_v3 = vmul.f32 -1.442695, %v16185_v37 }
 0x2cd   :  { %v13994_v46 = vpop.eup %13993  ;;  %v1447_v53 = vadd.f32 1.0, %v13992_v60  ;;  %14009 = vpow2.f32 %v10961_v38  ;;  %v16148_v38 = vadd.f32 %v16015_v4, %v1142_v54  ;;  %v16158_v54 = vadd.f32 %v16103_v49, %v16015_v4  ;;  %v16174_v49 = vld [vmem:[%s19602_s1] sm:$0xff]  }
 0x2ce   :  { %v13996_v34 = vpop.eup %13995  ;;  %v1445_v5 = vadd.f32 1.0, %v13994_v46  ;;  %v16143_v46 = vadd.f32 %v12203_v41, %v16015_v4  ;;  %12241 = vmatprep.mubr.bf16.mxu0 %v16174_v49  ;;  %12273 = vmatprep.mubr.bf16.mxu1 %v16174_v49 }
 0x2cf   :  { %1643 = vrot.lane.b32.xlu1 %v13990_v20, %s15326_s29  ;;  %1645 = vrot.lane.b32.xlu0 %v13996_v34, %s15326_s29  ;;  %v13998_v18 = vpop.eup %13997 }
 0x2d0   :  { %14011 = vrcp.f32 %v1445_v5  ;;  %v14000_v30 = vpop.eup %13999  ;;  %v10967_v41 = vmul.f32 -1.442695, %v16143_v46 }
 0x2d1   :  { %v16137_v56 = vpop.f32.mrb[44].mxu1  ;;  %v14002_v20 = vpop.eup %14001  ;;  %14013 = vrcp.f32 %v1447_v53  ;;  %v1448_v52 = vadd.f32 1.0, %v14000_v30  ;;  %v10965_v53 = vmul.f32 -1.442695, %v16148_v38 }
 0x2d2   :  { %v16140_v61 = vpop.f32.mrb[45].mxu1  ;;  %v1446_v34 = vadd.f32 1.0, %v14002_v20  ;;  %14015 = vpow2.f32 %v10964_v0  ;;  %v16164_v0 = vadd.f32 %v16015_v4, %v16105_v27 }
 0x2d3   :  { %v16145_v62 = vpop.f32.mrb[46].mxu1  ;;  %1649 = vrot.lane.b32.xlu0 %v13998_v18, %s15326_s29  ;;  %14017 = vpow2.f32 %v10962_v14 }
 0x2d4   :  { %v16151_v5 = vpop.f32.mrb[47].mxu1  ;;  %v14004_v60 = vpop.eup %14003  ;;  %14019 = vrcp.f32 %v1446_v34  ;;  %v10966_v27 = vmul.f32 -1.442695, %v16164_v0 }
 0x2d5   :  { %1647 = vrot.lane.b32.xlu1 %v14004_v60, %s15326_s29  ;;  %v14006_v44 = vpop.eup %14005  ;;  %14021 = vrcp.f32 %v1448_v52 }
 0x2d6   :  { %v14008_v39 = vpop.eup %14007  ;;  %14023 = vpow2.f32 %v10967_v41 }
 0x2d7   :  { %v14010_v42 = vpop.eup %14009  ;;  %v1451_v34 = vadd.f32 1.0, %v14008_v39  ;;  %14025 = vpow2.f32 %v10965_v53  ;;  %v16189_v53 = vadd.f32 %v16015_v4, %v16119_v8 }
 0x2d8   :  { %v1449_v20 = vadd.f32 1.0, %v14010_v42 }
 0x2d9   :  { %v16160_v18 = vpop.f32.mrb[48].mxu1  ;;  %1651 = vrot.lane.b32.xlu1 %v14006_v44, %s15326_s29  ;;  %v10968_v44 = vmul.f32 -1.442695, %v16158_v54  ;;  %v10969_v17 = vmul.f32 -1.442695, %v16189_v53 }
 0x2da   :  { %v16167_v14 = vpop.f32.mrb[49].mxu1  ;;  %v14012_v30 = vpop.eup %14011  ;;  %14027 = vrcp.f32 %v1449_v20 }
 0x2db   :  { %v16169_v60 = vpop.f32.mrb[50].mxu1  ;;  %1653 = vrot.lane.b32.xlu0 %v14012_v30, %s15326_s29  ;;  %v14014_v42 = vpop.eup %14013  ;;  %14029 = vrcp.f32 %v1451_v34 }
 0x2dc   :  { %v16177_v52 = vpop.f32.mrb[51].mxu1  ;;  %v14016_v41 = vpop.eup %14015  ;;  %14031 = vpow2.f32 %v10968_v44  ;;  %v16205_v44 = vadd.f32 %v16123_v58, %v16015_v4 }
 0x2dd   :  { %v14018_v39 = vpop.eup %14017  ;;  %v1452_v19 = vadd.f32 1.0, %v14016_v41  ;;  %14033 = vpow2.f32 %v10966_v27  ;;  %v16209_v41 = vadd.f32 %v16015_v4, %v16126_v47 }
 0x2de   :  { %v14020_v30 = vpop.eup %14019  ;;  %v1450_v20 = vadd.f32 1.0, %v14018_v39  ;;  %v10972_v9 = vmul.f32 -1.442695, %v16205_v44 }
 0x2df   :  { %1657 = vrot.lane.b32.xlu0 %v14014_v42, %s15326_s29  ;;  %1655 = vrot.lane.b32.xlu1 %v14020_v30, %s15326_s29  ;;  %v14022_v8 = vpop.eup %14021 }
 0x2e0   :  { %14035 = vrcp.f32 %v1450_v20  ;;  %v14024_v39 = vpop.eup %14023 }
 0x2e1   :  { %v16192_v28 = vpop.f32.mrb[52].mxu1  ;;  %v14026_v27 = vpop.eup %14025  ;;  %14037 = vrcp.f32 %v1452_v19  ;;  %v1455_v13 = vadd.f32 1.0, %v14024_v39  ;;  %v10970_v19 = vmul.f32 -1.442695, %v16209_v41  ;;  %v16227_v39 = vadd.f32 %v16015_v4, %v16140_v61 }
 0x2e2   :  { %v16195_v26 = vpop.f32.mrb[53].mxu1  ;;  %v1453_v20 = vadd.f32 1.0, %v14026_v27  ;;  %14039 = vpow2.f32 %v10971_v3  ;;  %v16237_v61 = vadd.f32 %v16145_v62, %v16015_v4 }
 0x2e3   :  { %v16198_v34 = vpop.f32.mrb[54].mxu1  ;;  %1659 = vrot.lane.b32.xlu1 %v14022_v8, %s15326_s29  ;;  %14041 = vpow2.f32 %v10969_v17  ;;  %v16221_v8 = vadd.f32 %v16137_v56, %v16015_v4 }
 0x2e4   :  { %v16201_v42 = vpop.f32.mrb[55].mxu1  ;;  %v14028_v30 = vpop.eup %14027  ;;  %14043 = vrcp.f32 %v1453_v20 }
 0x2e5   :  { %1661 = vrot.lane.b32.xlu0 %v14028_v30, %s15326_s29  ;;  %v14030_v11 = vpop.eup %14029  ;;  %14045 = vrcp.f32 %v1455_v13  ;;  %v10975_v56 = vmul.f32 -1.442695, %v16221_v8  ;;  %v10973_v13 = vmul.f32 -1.442695, %v16227_v39 }
 0x2e6   :  { %v14032_v47 = vpop.eup %14031  ;;  %14047 = vpow2.f32 %v10972_v9  ;;  %v16241_v9 = vadd.f32 %v16015_v4, %v16151_v5  ;;  %v16249_v5 = vadd.f32 %v16160_v18, %v16015_v4 }
 0x2e7   :  { %v14034_v17 = vpop.eup %14033  ;;  %v1456_v2 = vadd.f32 1.0, %v14032_v47  ;;  %14049 = vpow2.f32 %v10970_v19 }
 0x2e8   :  { %v1454_v20 = vadd.f32 1.0, %v14034_v17 }
 0x2e9   :  { %v16214_v58 = vpop.f32.mrb[56].mxu1  ;;  %1665 = vrot.lane.b32.xlu0 %v14030_v11, %s15326_s29 }
 0x2ea   :  { %v16217_v7 = vpop.f32.mrb[57].mxu1  ;;  %v14036_v30 = vpop.eup %14035  ;;  %14051 = vrcp.f32 %v1454_v20  ;;  %v10974_v20 = vmul.f32 -1.442695, %v16241_v9 }
 0x2eb   :  { %v16223_v3 = vpop.f32.mrb[58].mxu1  ;;  %1663 = vrot.lane.b32.xlu1 %v14036_v30, %s15326_s29  ;;  %v14038_v59 = vpop.eup %14037  ;;  %14053 = vrcp.f32 %v1456_v2  ;;  %v10976_v30 = vmul.f32 -1.442695, %v16237_v61 }
 0x2ec   :  { %v16230_v27 = vpop.f32.mrb[59].mxu1  ;;  %v14040_v63 = vpop.eup %14039  ;;  %14055 = vpow2.f32 %v10975_v56 }
 0x2ed   :  { %v14042_v11 = vpop.eup %14041  ;;  %v1459_v17 = vadd.f32 1.0, %v14040_v63  ;;  %14057 = vpow2.f32 %v10973_v13 }
 0x2ee   :  { %v14044_v19 = vpop.eup %14043  ;;  %v1457_v47 = vadd.f32 1.0, %v14042_v11  ;;  %v10979_v11 = vmul.f32 -1.442695, %v16249_v5 }
 0x2ef   :  { %1667 = vrot.lane.b32.xlu1 %v14038_v59, %s15326_s29  ;;  %1669 = vrot.lane.b32.xlu0 %v14044_v19, %s15326_s29  ;;  %v14046_v62 = vpop.eup %14045  ;;  %v16253_v59 = vadd.f32 %v16015_v4, %v16167_v14  ;;  %v16261_v14 = vadd.f32 %v16169_v60, %v16015_v4 }
 0x2f0   :  { %14059 = vrcp.f32 %v1457_v47  ;;  %v14048_v2 = vpop.eup %14047 }
 0x2f1   :  { %v14050_v55 = vpop.eup %14049  ;;  %14061 = vrcp.f32 %v1459_v17  ;;  %v1460_v13 = vadd.f32 1.0, %v14048_v2  ;;  %v10977_v19 = vmul.f32 -1.442695, %v16253_v59  ;;  %v10980_v2 = vmul.f32 -1.442695, %v16261_v14 }
 0x2f2   :  { %v1458_v56 = vadd.f32 1.0, %v14050_v55  ;;  %14063 = vpow2.f32 %v10976_v30  ;;  %v16265_v55 = vadd.f32 %v16015_v4, %v16177_v52  ;;  %v16273_v52 = vadd.f32 %v16192_v28, %v16015_v4 }
 0x2f3   :  { %1673 = vrot.lane.b32.xlu0 %v14046_v62, %s15326_s29  ;;  %14065 = vpow2.f32 %v10974_v20 }
 0x2f4   :  { %v14052_v63 = vpop.eup %14051  ;;  %14067 = vrcp.f32 %v1458_v56 }
 0x2f5   :  { %1671 = vrot.lane.b32.xlu1 %v14052_v63, %s15326_s29  ;;  %v14054_v18 = vpop.eup %14053  ;;  %14069 = vrcp.f32 %v1460_v13  ;;  %v10978_v63 = vmul.f32 -1.442695, %v16265_v55 }
 0x2f6   :  { %v14056_v47 = vpop.eup %14055  ;;  %14071 = vpow2.f32 %v10979_v11  ;;  %v16277_v11 = vadd.f32 %v16015_v4, %v16195_v26  ;;  %v16285_v26 = vadd.f32 %v16198_v34, %v16015_v4 }
 0x2f7   :  { %v14058_v17 = vpop.eup %14057  ;;  %v1463_v20 = vadd.f32 1.0, %v14056_v47  ;;  %14073 = vpow2.f32 %v10977_v19 }
 0x2f8   :  { %v1461_v62 = vadd.f32 1.0, %v14058_v17  ;;  %v10983_v17 = vmul.f32 -1.442695, %v16273_v52 }
 0x2f9   :  { %1675 = vrot.lane.b32.xlu1 %v14054_v18, %s15326_s29 }
 0x2fa   :  { %v14060_v30 = vpop.eup %14059  ;;  %14075 = vrcp.f32 %v1461_v62 }
 0x2fb   :  { %1677 = vrot.lane.b32.xlu0 %v14060_v30, %s15326_s29  ;;  %v14062_v60 = vpop.eup %14061  ;;  %14077 = vrcp.f32 %v1463_v20  ;;  %v10981_v30 = vmul.f32 -1.442695, %v16277_v11 }
 0x2fc   :  { %v14064_v56 = vpop.eup %14063  ;;  %14079 = vpow2.f32 %v10980_v2  ;;  %v16289_v2 = vadd.f32 %v16015_v4, %v16201_v42  ;;  %v16297_v42 = vadd.f32 %v16214_v58, %v16015_v4 }
 0x2fd   :  { %v14066_v13 = vpop.eup %14065  ;;  %v1464_v47 = vadd.f32 1.0, %v14064_v56  ;;  %14081 = vpow2.f32 %v10978_v63 }
 0x2fe   :  { %v14068_v18 = vpop.eup %14067  ;;  %v1462_v19 = vadd.f32 1.0, %v14066_v13  ;;  %v10984_v13 = vmul.f32 -1.442695, %v16285_v26 }
 0x2ff   :  { %1681 = vrot.lane.b32.xlu0 %v14062_v60, %s15326_s29  ;;  %1679 = vrot.lane.b32.xlu1 %v14068_v18, %s15326_s29  ;;  %v14070_v28 = vpop.eup %14069  ;;  %v10982_v18 = vmul.f32 -1.442695, %v16289_v2 }
 0x300   :  { %14083 = vrcp.f32 %v1462_v19  ;;  %v14072_v62 = vpop.eup %14071 }
 0x301   :  { %v14074_v20 = vpop.eup %14073  ;;  %14085 = vrcp.f32 %v1464_v47  ;;  %v1467_v56 = vadd.f32 1.0, %v14072_v62 }
 0x302   :  { %v1465_v63 = vadd.f32 1.0, %v14074_v20  ;;  %14087 = vpow2.f32 %v10983_v17  ;;  %v16301_v17 = vadd.f32 %v16015_v4, %v16217_v7  ;;  %v10987_v20 = vmul.f32 -1.442695, %v16297_v42 }
 0x303   :  { %1683 = vrot.lane.b32.xlu1 %v14070_v28, %s15326_s29  ;;  %14089 = vpow2.f32 %v10981_v30  ;;  %v16311_v7 = vadd.f32 %v16223_v3, %v16015_v4 }
 0x304   :  { %v14076_v60 = vpop.eup %14075  ;;  %14091 = vrcp.f32 %v1465_v63 }
 0x305   :  { %1685 = vrot.lane.b32.xlu0 %v14076_v60, %s15326_s29  ;;  %v14078_v34 = vpop.eup %14077  ;;  %14093 = vrcp.f32 %v1467_v56  ;;  %v10985_v60 = vmul.f32 -1.442695, %v16301_v17 }
 0x306   :  { %v14080_v19 = vpop.eup %14079  ;;  %14095 = vpow2.f32 %v10984_v13  ;;  %v16315_v13 = vadd.f32 %v16015_v4, %v16230_v27 }
 0x307   :  { %v14082_v47 = vpop.eup %14081  ;;  %v1468_v62 = vadd.f32 1.0, %v14080_v19  ;;  %14097 = vpow2.f32 %v10982_v18 }
 0x308   :  { %v1466_v30 = vadd.f32 1.0, %v14082_v47  ;;  %v10986_v19 = vmul.f32 -1.442695, %v16315_v13 }
 0x309   :  { %1689 = vrot.lane.b32.xlu0 %v14078_v34, %s15326_s29 }
 0x30a   :  { %v14084_v28 = vpop.eup %14083  ;;  %14099 = vrcp.f32 %v1466_v30 }
 0x30b   :  { %1687 = vrot.lane.b32.xlu1 %v14084_v28, %s15326_s29  ;;  %v14086_v58 = vpop.eup %14085  ;;  %14101 = vtanh.f32 %v16018_v10 }
 0x30c   :  { %v14088_v63 = vpop.eup %14087  ;;  %14103 = vtanh.f32 %v16021_v16  ;;  %v10988_v16 = vmul.f32 -1.442695, %v16311_v7 }
 0x30d   :  { %v14090_v56 = vpop.eup %14089  ;;  %14105 = vrcp.f32 %v1468_v62  ;;  %v1471_v10 = vadd.f32 1.0, %v14088_v63 }
 0x30e   :  { %v14092_v34 = vpop.eup %14091  ;;  %v1469_v18 = vadd.f32 1.0, %v14090_v56  ;;  %14107 = vpow2.f32 %v10987_v20 }
 0x30f   :  { %1691 = vrot.lane.b32.xlu1 %v14086_v58, %s15326_s29  ;;  %14109 = vpow2.f32 %v10985_v60  ;;  %1693 = vrot.lane.b32.xlu0 %v14092_v34, %s15326_s29  ;;  %v14094_v3 = vpop.eup %14093 }
 0x310   :  { %14111 = vrcp.f32 %v1469_v18  ;;  %v14096_v47 = vpop.eup %14095 }
 0x311   :  { %14113 = vtanh.f32 %v16025_v21  ;;  %v14098_v4 = vpop.eup %14097  ;;  %v1472_v20 = vadd.f32 1.0, %v14096_v47 }
 0x312   :  { %14115 = vtanh.f32 %v16029_v29  ;;  %v1470_v28 = vadd.f32 1.0, %v14098_v4 }
 0x313   :  { %14117 = vrcp.f32 %v1471_v10  ;;  %1697 = vrot.lane.b32.xlu0 %v14094_v3, %s15326_s29 }
 0x314   :  { %v14100_v27 = vpop.eup %14099  ;;  %14119 = vpow2.f32 %v10988_v16 }
 0x315   :  { %v14102_v30 = vpop.eup %14101  ;;  %14121 = vpow2.f32 %v10986_v19  ;;  %1695 = vrot.lane.b32.xlu1 %v14100_v27, %s15326_s29 }
 0x316   :  { %v14104_v62 = vpop.eup %14103  ;;  %14123 = vrcp.f32 %v1470_v28 }
 0x317   :  { %v14106_v21 = vpop.eup %14105  ;;  %14125 = vtanh.f32 %v16037_v23 }
 0x318   :  { %v14108_v58 = vpop.eup %14107  ;;  %14127 = vrcp.f32 %v1472_v20 }
 0x319   :  { %v14110_v63 = vpop.eup %14109  ;;  %1699 = vrot.lane.b32.xlu1 %v14106_v21, %s15326_s29  ;;  %14129 = vtanh.f32 %v16045_v45  ;;  %v1475_v10 = vadd.f32 1.0, %v14108_v58 }
 0x31a   :  { %v14112_v29 = vpop.eup %14111  ;;  %v1473_v56 = vadd.f32 1.0, %v14110_v63 }
 0x31b   :  { %v14114_v34 = vpop.eup %14113  ;;  %1701 = vrot.lane.b32.xlu0 %v14112_v29, %s15326_s29 }
 0x31c   :  { %v14116_v18 = vpop.eup %14115  ;;  %14131 = vrcp.f32 %v1473_v56 }
 0x31d   :  { %v14118_v19 = vpop.eup %14117  ;;  %14133 = vtanh.f32 %v16034_v51 }
 0x31e   :  { %v14120_v27 = vpop.eup %14119  ;;  %14135 = vtanh.f32 %v16041_v35 }
 0x31f   :  { %v14122_v23 = vpop.eup %14121  ;;  %1705 = vrot.lane.b32.xlu0 %v14118_v19, %s15326_s29  ;;  %14137 = vrcp.f32 %v1475_v10 }
 0x320   :  { %v14124_v45 = vpop.eup %14123  ;;  %v1474_v20 = vadd.f32 1.0, %v14122_v23 }
 0x321   :  { %v1622_v60 = vpop.permute.xlu0 %1621  ;;  %1703 = vrot.lane.b32.xlu1 %v14124_v45, %s15326_s29  ;;  %v14126_v51 = vpop.eup %14125 }
 0x322   :  { %v1765_v47 = vmul.f32 %v14104_v62, %v1622_v60  ;;  %v1476_v62 = vadd.f32 1.0, %v14120_v27  ;;  %14139 = vrcp.f32 %v1474_v20  ;;  %v14128_v56 = vpop.eup %14127 }
 0x323   :  { %v14130_v35 = vpop.eup %14129 }
 0x324   :  { %v1624_v16 = vpop.permute.xlu1 %1623  ;;  %14141 = vrcp.f32 %v1476_v62 }
 0x325   :  { %v1626_v3 = vpop.permute.xlu0 %1625  ;;  %v1766_v4 = vmul.f32 %v14116_v18, %v1624_v16  ;;  %1707 = vrot.lane.b32.xlu1 %v14128_v56, %s15326_s29  ;;  %14143 = vtanh.f32 %v16053_v24 }
 0x326   :  { %v1767_v58 = vmul.f32 %v14102_v30, %v1626_v3  ;;  %v14132_v18 = vpop.eup %14131  ;;  %14145 = vtanh.f32 %v16061_v50 }
 0x327   :  { %v1813_v28 = vpack.c.bf16 %v1766_v4, %v1765_v47  ;;  %1709 = vrot.lane.b32.xlu0 %v14132_v18, %s15326_s29  ;;  %v14134_v16 = vpop.eup %14133  ;;  %14147 = vtanh.f32 %v16050_v32 }
 0x328   :  { %v1628_v21 = vpop.permute.xlu1 %1627  ;;  %v14136_v19 = vpop.eup %14135  ;;  %14149 = vtanh.f32 %v16058_v48 }
 0x329   :  { %v1768_v63 = vmul.f32 %v14114_v34, %v1628_v21  ;;  %12225 = vmatprep.subr.bf16.mxu0 %v1813_v28  ;;  %v1630_v60 = vpop.permute.xlu0 %1629  ;;  %v14138_v4 = vpop.eup %14137  ;;  %14151 = vtanh.f32 %v16070_v40 }
 0x32a   :  { %12226 = vmatpush3.bf16.msra.mxu0 %v1813_v28  ;;  %v1769_v30 = vmul.f32 %v14126_v51, %v1630_v60  ;;  %14153 = vtanh.f32 %v16080_v57 }
 0x32b   :  { %v1814_v29 = vpack.c.bf16 %v1768_v63, %v1767_v58  ;;  %1713 = vrot.lane.b32.xlu0 %v14138_v4, %s15326_s29  ;;  %14155 = vtanh.f32 %v16066_v33 }
 0x32c   :  { %v14140_v45 = vpop.eup %14139  ;;  %14157 = vtanh.f32 %v16077_v36 }
 0x32d   :  { %12227 = vmatprep.subr.bf16.mxu0 %v1814_v29  ;;  %v1634_v3 = vpop.permute.xlu0 %1633  ;;  %1711 = vrot.lane.b32.xlu1 %v14140_v45, %s15326_s29  ;;  %14159 = vtanh.f32 %v16091_v6  ;;  %v16353_v6 = vld [vmem:[%s19602_s1 + $0x8] sm:$0xff]  }
 0x32e   :  { %12228 = vmatpush3.bf16.msra.mxu0 %v1814_v29  ;;  %v1771_v23 = vmul.f32 %v14134_v16, %v1634_v3  ;;  %v14142_v21 = vpop.eup %14141  ;;  %14161 = vtanh.f32 %v16101_v1  ;;  %v16358_v1 = vld [vmem:[%s19602_s1 + $0x10] sm:$0xff]  }
 0x32f   :  { %v1632_v10 = vpop.permute.xlu1 %1631  ;;  %v14144_v50 = vpop.eup %14143  ;;  %14163 = vtanh.f32 %v16087_v25 }
 0x330   :  { %v1770_v34 = vmul.f32 %v14130_v35, %v1632_v10  ;;  %v14146_v58 = vpop.eup %14145  ;;  %14165 = vtanh.f32 %v16097_v22 }
 0x331   :  { %1715 = vrot.lane.b32.xlu1 %v14142_v21, %s15326_s29  ;;  %v14148_v51 = vpop.eup %14147  ;;  %14167 = vtanh.f32 %v16114_v43  ;;  %v16368_v43 = vld [vmem:[%s19602_s1 + $0x18] sm:$0xff]  }
 0x332   :  { %v1815_v47 = vpack.c.bf16 %v1770_v34, %v1769_v30  ;;  %v14150_v56 = vpop.eup %14149  ;;  %14169 = vtanh.f32 %v16132_v31  ;;  %v16374_v31 = vld [vmem:[%s19602_s1 + $0x20] sm:$0xff]  }
 0x333   :  { %v1636_v27 = vpop.permute.xlu1 %1635  ;;  %v14152_v30 = vpop.eup %14151  ;;  %14171 = vtanh.f32 %v16111_v15 }
 0x334   :  { %v1772_v28 = vmul.f32 %v14136_v19, %v1636_v27  ;;  %12229 = vmatprep.subr.bf16.mxu0 %v1815_v47  ;;  %v14154_v57 = vpop.eup %14153  ;;  %14173 = vtanh.f32 %v16129_v12 }
 0x335   :  { %12230 = vmatpush3.bf16.msra.mxu0 %v1815_v47  ;;  %v14156_v19 = vpop.eup %14155  ;;  %14175 = vtanh.f32 %v16148_v38 }
 0x336   :  { %v1816_v20 = vpack.c.bf16 %v1772_v28, %v1771_v23  ;;  %v14158_v47 = vpop.eup %14157  ;;  %14177 = vtanh.f32 %v16164_v0 }
 0x337   :  { %v1638_v24 = vpop.permute.xlu0 %1637  ;;  %v14160_v25 = vpop.eup %14159  ;;  %14179 = vtanh.f32 %v16143_v46 }
 0x338   :  { %12231 = vmatprep.subr.bf16.mxu0 %v1816_v20  ;;  %v1773_v62 = vmul.f32 %v14144_v50, %v1638_v24  ;;  %14181 = vtanh.f32 %v16158_v54 }
 0x339   :  { %12232 = vmatpush3.bf16.msra.mxu0 %v1816_v20  ;;  %v14162_v20 = vpop.eup %14161  ;;  %14183 = vtanh.f32 %v16189_v53 }
 0x33a   :  { %14185 = vtanh.f32 %v16209_v41 }
 0x33b   :  { %v1642_v60 = vpop.permute.xlu0 %1641  ;;  %14187 = vtanh.f32 %v16185_v37 }
 0x33c   :  { %v1775_v35 = vmul.f32 %v14148_v51, %v1642_v60  ;;  %14189 = vtanh.f32 %v16205_v44 }
 0x33d   :  { %v1640_v63 = vpop.permute.xlu1 %1639  ;;  %14191 = vtanh.f32 %v16227_v39  ;;  %v13727_v39 = vld [vmem:[%s19609_s8] sm:$0xff]  }
 0x33e   :  { %v1774_v32 = vmul.f32 %v14146_v58, %v1640_v63  ;;  %v14164_v58 = vpop.eup %14163  ;;  %14193 = vtanh.f32 %v16241_v9 }
 0x33f   :  { %14195 = vtanh.f32 %v16221_v8 }
 0x340   :  { %v1817_v29 = vpack.c.bf16 %v1774_v32, %v1773_v62  ;;  %v14166_v62 = vpop.eup %14165  ;;  %14197 = vtanh.f32 %v16237_v61 }
 0x341   :  { %v1644_v48 = vpop.permute.xlu1 %1643  ;;  %v1646_v40 = vpop.permute.xlu0 %1645 }
 0x342   :  { %v1776_v18 = vmul.f32 %v14150_v56, %v1644_v48  ;;  %12233 = vmatprep.subr.bf16.mxu0 %v1817_v29  ;;  %v1777_v16 = vmul.f32 %v14152_v30, %v1646_v40  ;;  %v14168_v15 = vpop.eup %14167  ;;  %v16388_v30 = vld [vmem:[%s19602_s1 + $0x30] sm:$0xff]   ;;  %14199 = vtanh.f32 %v16253_v59 }
 0x343   :  { %12234 = vmatpush3.bf16.msra.mxu0 %v1817_v29  ;;  %v14170_v48 = vpop.eup %14169  ;;  %14201 = vtanh.f32 %v16265_v55 }
 0x344   :  { %v1818_v10 = vpack.c.bf16 %v1776_v18, %v1775_v35 }
 0x345   :  { %v1650_v33 = vpop.permute.xlu0 %1649 }
 0x346   :  { %12235 = vmatprep.subr.bf16.mxu0 %v1818_v10  ;;  %v1779_v27 = vmul.f32 %v14156_v19, %v1650_v33 }
 0x347   :  { %12236 = vmatpush3.bf16.msra.mxu0 %v1818_v10  ;;  %v1648_v34 = vpop.permute.xlu1 %1647  ;;  %v16382_v10 = vld [vmem:[%s19602_s1 + $0x28] sm:$0xff]  }
 0x348   :  { %v1778_v3 = vmul.f32 %v14154_v57, %v1648_v34  ;;  %v14172_v57 = vpop.eup %14171  ;;  %14203 = vtanh.f32 %v16249_v5 }
 0x34a   :  { %v1819_v36 = vpack.c.bf16 %v1778_v3, %v1777_v16  ;;  %v14174_v16 = vpop.eup %14173  ;;  %14205 = vtanh.f32 %v16261_v14 }
 0x34b   :  { %v1652_v4 = vpop.permute.xlu1 %1651  ;;  %v14176_v46 = vpop.eup %14175  ;;  %14207 = vtanh.f32 %v16277_v11 }
 0x34c   :  { %v1780_v23 = vmul.f32 %v14158_v47, %v1652_v4  ;;  %12237 = vmatprep.subr.bf16.mxu0 %v1819_v36  ;;  %v14178_v47 = vpop.eup %14177  ;;  %14209 = vtanh.f32 %v16289_v2 }
 0x34d   :  { %12238 = vmatpush3.bf16.msra.mxu0 %v1819_v36  ;;  %v1654_v45 = vpop.permute.xlu0 %1653  ;;  %v16397_v36 = vld [vmem:[%s19602_s1 + $0x38] sm:$0xff]  }
 0x34e   :  { %v1820_v28 = vpack.c.bf16 %v1780_v23, %v1779_v27  ;;  %v1781_v22 = vmul.f32 %v14160_v25, %v1654_v45 }
 0x350   :  { %12239 = vmatprep.subr.bf16.mxu0 %v1820_v28 }
 0x351   :  { %12240 = vmatpush3.bf16.msra.mxu0 %v1820_v28  ;;  %v1656_v24 = vpop.permute.xlu1 %1655  ;;  %v1658_v50 = vpop.permute.xlu0 %1657 }
 0x352   :  { %v1782_v21 = vmul.f32 %v14162_v20, %v1656_v24  ;;  %v1783_v60 = vmul.f32 %v14164_v58, %v1658_v50  ;;  %v14180_v28 = vpop.eup %14179  ;;  %14211 = vtanh.f32 %v16273_v52 }
 0x353   :  { %v14182_v25 = vpop.eup %14181  ;;  %14213 = vtanh.f32 %v16285_v26 }
 0x354   :  { %12242 = vmatmul.mubr.bf16.vlgmr.msra.gmra.mrb[48].mxu0 %v16353_v6  ;;  %v1821_v63 = vpack.c.bf16 %v1782_v21, %v1781_v22  ;;  %v14184_v41 = vpop.eup %14183  ;;  %14215 = vtanh.f32 %v16301_v17 }
 0x355   :  { %12245 = vmatprep.mubr.bf16.mxu0 %v16358_v1  ;;  %v1660_v32 = vpop.permute.xlu1 %1659  ;;  %v14186_v50 = vpop.eup %14185  ;;  %14217 = vtanh.f32 %v16315_v13 }
 0x356   :  { %v1784_v51 = vmul.f32 %v14166_v62, %v1660_v32  ;;  %12257 = vmatprep.subr.bf16.mxu1 %v1821_v63  ;;  %v14188_v62 = vpop.eup %14187  ;;  %14219 = vtanh.f32 %v16297_v42 }
 0x357   :  { %12258 = vmatpush3.bf16.msra.mxu1 %v1821_v63  ;;  %v1662_v56 = vpop.permute.xlu0 %1661 }
 0x358   :  { %v1822_v29 = vpack.c.bf16 %v1784_v51, %v1783_v60  ;;  %v1785_v12 = vmul.f32 %v14168_v15, %v1662_v56  ;;  %v14190_v60 = vpop.eup %14189  ;;  %14221 = vtanh.f32 %v16311_v7 }
 0x359   :  { %v14192_v9 = vpop.eup %14191 }
 0x35a   :  { %12259 = vmatprep.subr.bf16.mxu1 %v1822_v29 }
 0x35b   :  { %12260 = vmatpush3.bf16.msra.mxu1 %v1822_v29  ;;  %v1666_v40 = vpop.permute.xlu0 %1665 }
 0x35c   :  { %12246 = vmatmul.mubr.bf16.gmra.mrb[52].mxu0 %v16368_v43  ;;  %v1787_v38 = vmul.f32 %v14172_v57, %v1666_v40 }
 0x35d   :  { %12249 = vmatprep.mubr.bf16.mxu0 %v16374_v31  ;;  %v1664_v35 = vpop.permute.xlu1 %1663 }
 0x35e   :  { %v1786_v18 = vmul.f32 %v14170_v48, %v1664_v35  ;;  %v14194_v48 = vpop.eup %14193 }
 0x360   :  { %v1823_v34 = vpack.c.bf16 %v1786_v18, %v1785_v12  ;;  %v14196_v18 = vpop.eup %14195 }
 0x361   :  { %v1668_v3 = vpop.permute.xlu1 %1667  ;;  %v1670_v19 = vpop.permute.xlu0 %1669 }
 0x362   :  { %v1788_v33 = vmul.f32 %v14174_v16, %v1668_v3  ;;  %12261 = vmatprep.subr.bf16.mxu1 %v1823_v34  ;;  %v1789_v27 = vmul.f32 %v14176_v46, %v1670_v19  ;;  %v14198_v57 = vpop.eup %14197 }
 0x363   :  { %12262 = vmatpush3.bf16.msra.mxu1 %v1823_v34  ;;  %v14200_v55 = vpop.eup %14199 }
 0x364   :  { %12250 = vmatmul.mubr.bf16.gmra.mrb[56].mxu0 %v16382_v10  ;;  %v1824_v0 = vpack.c.bf16 %v1788_v33, %v1787_v38  ;;  %v14202_v33 = vpop.eup %14201 }
 0x365   :  { %12253 = vmatprep.mubr.bf16.mxu0 %v16388_v30  ;;  %v1674_v54 = vpop.permute.xlu0 %1673  ;;  %v14204_v14 = vpop.eup %14203 }
 0x366   :  { %12263 = vmatprep.subr.bf16.mxu1 %v1824_v0  ;;  %v1791_v24 = vmul.f32 %v14180_v28, %v1674_v54 }
 0x367   :  { %12264 = vmatpush3.bf16.msra.mxu1 %v1824_v0  ;;  %v1672_v4 = vpop.permute.xlu1 %1671 }
 0x368   :  { %v1790_v23 = vmul.f32 %v14178_v47, %v1672_v4  ;;  %v14206_v4 = vpop.eup %14205 }
 0x369   :  { %v14208_v2 = vpop.eup %14207 }
 0x36a   :  { %v1825_v45 = vpack.c.bf16 %v1790_v23, %v1789_v27 }
 0x36b   :  { %v1676_v20 = vpop.permute.xlu1 %1675 }
 0x36c   :  { %12254 = vmatmul.mubr.bf16.gmra.mrb[60].mxu0 %v16397_v36  ;;  %v1792_v22 = vmul.f32 %v14182_v25, %v1676_v20  ;;  %12265 = vmatprep.subr.bf16.mxu1 %v1825_v45 }
 0x36d   :  { %12305 = vmatprep.mubr.bf16.mxu0 %v16174_v49  ;;  %12266 = vmatpush3.bf16.msra.mxu1 %v1825_v45  ;;  %v1678_v21 = vpop.permute.xlu0 %1677  ;;  %v14210_v45 = vpop.eup %14209 }
 0x36e   :  { %v1826_v53 = vpack.c.bf16 %v1792_v22, %v1791_v24  ;;  %v1793_v49 = vmul.f32 %v14184_v41, %v1678_v21  ;;  %v14212_v26 = vpop.eup %14211 }
 0x370   :  { %12267 = vmatprep.subr.bf16.mxu1 %v1826_v53 }
 0x371   :  { %12268 = vmatpush3.bf16.msra.mxu1 %v1826_v53  ;;  %v1680_v58 = vpop.permute.xlu1 %1679  ;;  %v1682_v37 = vpop.permute.xlu0 %1681 }
 0x372   :  { %v1794_v63 = vmul.f32 %v14186_v50, %v1680_v58  ;;  %v1795_v44 = vmul.f32 %v14188_v62, %v1682_v37  ;;  %v14214_v53 = vpop.eup %14213 }
 0x374   :  { %v1827_v32 = vpack.c.bf16 %v1794_v63, %v1793_v49  ;;  %v14216_v49 = vpop.eup %14215 }
 0x375   :  { %v1684_v51 = vpop.permute.xlu1 %1683  ;;  %v14218_v63 = vpop.eup %14217 }
 0x376   :  { %v1796_v29 = vmul.f32 %v14190_v60, %v1684_v51  ;;  %12269 = vmatprep.subr.bf16.mxu1 %v1827_v32  ;;  %v14220_v60 = vpop.eup %14219 }
 0x377   :  { %12270 = vmatpush3.bf16.msra.mxu1 %v1827_v32  ;;  %v1686_v15 = vpop.permute.xlu0 %1685 }
 0x378   :  { %v1828_v56 = vpack.c.bf16 %v1796_v29, %v1795_v44  ;;  %v1797_v8 = vmul.f32 %v14192_v9, %v1686_v15  ;;  %v14222_v44 = vpop.eup %14221  ;;  %v13728_v29 = vld [vmem:[%s19609_s8 + $0x8] sm:$0xff]  }
 0x37a   :  { %12271 = vmatprep.subr.bf16.mxu1 %v1828_v56 }
 0x37b   :  { %12272 = vmatpush3.bf16.msra.mxu1 %v1828_v56  ;;  %v1690_v61 = vpop.permute.xlu0 %1689 }
 0x37c   :  { %12321 = vmatprep.subr.bf16.mxu1 %v13727_v39  ;;  %v1799_v16 = vmul.f32 %v14196_v18, %v1690_v61 }
 0x37d   :  { %v1688_v35 = vpop.permute.xlu1 %1687 }
 0x37e   :  { %v1798_v12 = vmul.f32 %v14194_v48, %v1688_v35  ;;  %12274 = vmatmul.mubr.bf16.vlgmr.msra.gmra.mrb[60].mxu1 %v16353_v6 }
 0x37f   :  { %12277 = vmatprep.mubr.bf16.mxu1 %v16358_v1  ;;  %12322 = vmatpush3.bf16.msra.mxu1 %v13727_v39 }
 0x380   :  { %v1829_v40 = vpack.c.bf16 %v1798_v12, %v1797_v8  ;;  %12323 = vmatprep.subr.bf16.mxu1 %v13728_v29 }
 0x381   :  { %v1692_v34 = vpop.permute.xlu1 %1691  ;;  %v1694_v38 = vpop.permute.xlu0 %1693 }
 0x382   :  { %v1800_v3 = vmul.f32 %v14198_v57, %v1692_v34  ;;  %12289 = vmatprep.subr.bf16.mxu0 %v1829_v40  ;;  %v1801_v5 = vmul.f32 %v14200_v55, %v1694_v38 }
 0x383   :  { %12290 = vmatpush3.bf16.msra.mxu0 %v1829_v40  ;;  %12324 = vmatpush3.bf16.msra.mxu1 %v13728_v29 }
 0x384   :  { %v1830_v59 = vpack.c.bf16 %v1800_v3, %v1799_v16 }
 0x385   :  { %v1698_v46 = vpop.permute.xlu0 %1697 }
 0x386   :  { %12291 = vmatprep.subr.bf16.mxu0 %v1830_v59  ;;  %12278 = vmatmul.mubr.bf16.gmra.mrb[64].mxu1 %v16368_v43  ;;  %v1803_v23 = vmul.f32 %v14204_v14, %v1698_v46 }
 0x387   :  { %12292 = vmatpush3.bf16.msra.mxu0 %v1830_v59  ;;  %12281 = vmatprep.mubr.bf16.mxu1 %v16374_v31  ;;  %v1696_v0 = vpop.permute.xlu1 %1695 }
 0x388   :  { %v1802_v19 = vmul.f32 %v14202_v33, %v1696_v0 }
 0x38a   :  { %v1831_v47 = vpack.c.bf16 %v1802_v19, %v1801_v5 }
 0x38b   :  { %v1700_v27 = vpop.permute.xlu1 %1699 }
 0x38c   :  { %v1804_v54 = vmul.f32 %v14206_v4, %v1700_v27  ;;  %12293 = vmatprep.subr.bf16.mxu0 %v1831_v47 }
 0x38d   :  { %12294 = vmatpush3.bf16.msra.mxu0 %v1831_v47  ;;  %v1702_v28 = vpop.permute.xlu0 %1701 }
 0x38e   :  { %12282 = vmatmul.mubr.bf16.gmra.mrb[68].mxu1 %v16382_v10  ;;  %v1832_v11 = vpack.c.bf16 %v1804_v54, %v1803_v23  ;;  %v1805_v52 = vmul.f32 %v14208_v2, %v1702_v28 }
 0x38f   :  { %12285 = vmatprep.mubr.bf16.mxu1 %v16388_v30 }
 0x390   :  { %12295 = vmatprep.subr.bf16.mxu0 %v1832_v11 }
 0x391   :  { %12296 = vmatpush3.bf16.msra.mxu0 %v1832_v11  ;;  %v1706_v24 = vpop.permute.xlu0 %1705 }
 0x392   :  { %v1807_v41 = vmul.f32 %v14212_v26, %v1706_v24 }
 0x393   :  { %v1704_v25 = vpop.permute.xlu1 %1703 }
 0x394   :  { %v1806_v20 = vmul.f32 %v14210_v45, %v1704_v25 }
 0x396   :  { %12286 = vmatmul.mubr.bf16.gmra.mrb[72].mxu1 %v16397_v36  ;;  %v1833_v22 = vpack.c.bf16 %v1806_v20, %v1805_v52 }
 0x397   :  { %v1708_v21 = vpop.permute.xlu1 %1707 }
 0x398   :  { %v1808_v50 = vmul.f32 %v14214_v53, %v1708_v21  ;;  %12297 = vmatprep.subr.bf16.mxu0 %v1833_v22 }
 0x399   :  { %12298 = vmatpush3.bf16.msra.mxu0 %v1833_v22  ;;  %v1710_v58 = vpop.permute.xlu0 %1709 }
 0x39a   :  { %v1834_v17 = vpack.c.bf16 %v1808_v50, %v1807_v41  ;;  %v1809_v37 = vmul.f32 %v14216_v49, %v1710_v58 }
 0x39c   :  { %12299 = vmatprep.subr.bf16.mxu0 %v1834_v17 }
 0x39d   :  { %12300 = vmatpush3.bf16.msra.mxu0 %v1834_v17  ;;  %v1714_v32 = vpop.permute.xlu0 %1713 }
 0x39e   :  { %v1811_v7 = vmul.f32 %v14220_v60, %v1714_v32 }
 0x39f   :  { %v1712_v13 = vpop.permute.xlu1 %1711 }
 0x3a0   :  { %v1810_v62 = vmul.f32 %v14218_v63, %v1712_v13 }
 0x3a2   :  { %v1835_v51 = vpack.c.bf16 %v1810_v62, %v1809_v37 }
 0x3a3   :  { %v1716_v42 = vpop.permute.xlu1 %1715 }
 0x3a4   :  { %v1812_v56 = vmul.f32 %v14222_v44, %v1716_v42  ;;  %12301 = vmatprep.subr.bf16.mxu0 %v1835_v51 }
 0x3a5   :  { %12302 = vmatpush3.bf16.msra.mxu0 %v1835_v51 }
 0x3a6   :  { %v1836_v39 = vpack.c.bf16 %v1812_v56, %v1811_v7 }
 0x3a8   :  { %12303 = vmatprep.subr.bf16.mxu0 %v1836_v39 }
 0x3a9   :  { %12304 = vmatpush3.bf16.msra.mxu0 %v1836_v39 }
 0x3ac   :  { %12306 = vmatmul.mubr.bf16.vlgmr.msra.gmra.mrb[64].mxu0 %v16353_v6 }
 0x3ad   :  { %12309 = vmatprep.mubr.bf16.mxu0 %v16358_v1 }
 0x3b4   :  { %12310 = vmatmul.mubr.bf16.gmra.mrb[68].mxu0 %v16368_v43 }
 0x3b5   :  { %12313 = vmatprep.mubr.bf16.mxu0 %v16374_v31 }
 0x3bc   :  { %12314 = vmatmul.mubr.bf16.gmra.mrb[72].mxu0 %v16382_v10 }
 0x3bd   :  { %12317 = vmatprep.mubr.bf16.mxu0 %v16388_v30 }
 0x3c4   :  { %12318 = vmatmul.mubr.bf16.gmra.mrb[76].mxu0 %v16397_v36 }
 0x427   :  { %v12243_v15 = vpop.f32.mrb[48].mxu0 }
 0x428   :  { %v1919_v9 = vpop.f32.mrb[49].mxu0 }
 0x429   :  { %v12244_v48 = vpop.f32.mrb[50].mxu0 }
 0x42a   :  { %v2177_v35 = vpack.c.bf16 %v12244_v48, %v12243_v15  ;;  %v1922_v8 = vpop.f32.mrb[51].mxu0 }
 0x42b   :  { %v2176_v12 = vpack.c.bf16 %v1922_v8, %v1919_v9 }
 0x42d   :  { %12325 = vmatprep.mubr.msk.bf16.mxu1 %vm576_vm2, %v2176_v12 }
 0x42e   :  { %12326 = vmatmul.mubr.msk.bf16.vlgmr.msra.gmra.mrb[76].mxu1 %vm576_vm2, %v2177_v35 }
 0x42f   :  { %v12247_v6 = vpop.f32.mrb[52].mxu0 }
 0x430   :  { %v1935_v1 = vpop.f32.mrb[53].mxu0 }
 0x431   :  { %v12248_v43 = vpop.f32.mrb[54].mxu0 }
 0x432   :  { %v2179_v31 = vpack.c.bf16 %v12248_v43, %v12247_v6  ;;  %v1938_v61 = vpop.f32.mrb[55].mxu0  ;;  %v19778_v43 = vmov 0  }
 0x433   :  { %v2178_v10 = vpack.c.bf16 %v1938_v61, %v1935_v1  ;;  %v13729_v61 = vld [vmem:[#allocation6 + $0x20] ss:$8 sps:$4 sm:$0xff]  }
 0x435   :  { %12329 = vmatprep.mubr.msk.bf16.mxu1 %vm576_vm2, %v2178_v10  ;;  %v13734_v10 = vld [vmem:[#allocation6 + $0x34] ss:$8 sps:$4 sm:$0xff]  }
 0x436   :  { %12330 = vmatmul.mubr.msk.bf16.gmra.mrb[80].mxu1 %vm576_vm2, %v2179_v31  ;;  %v13731_v31 = vld [vmem:[#allocation6 + $0x24] ss:$8 sps:$4 sm:$0xff]  }
 0x437   :  { %v12251_v30 = vpop.f32.mrb[56].mxu0  ;;  %2601 = vmatprep.subr.bf16.mxu1 %v13731_v31  ;;  %v19792_v31 = vld [vmem:[#allocation35_spill] sm:$0xff] }
 0x438   :  { %v1951_v36 = vpop.f32.mrb[57].mxu0  ;;  %2602 = vmatpush1.bf16.msra.mxu1 %v13729_v61 }
 0x439   :  { %v12252_v18 = vpop.f32.mrb[58].mxu0  ;;  %2603 = vmatprep.subr.bf16.mxu1 %v13734_v10  ;;  %v19793_v10 = vld [vmem:[#allocation34_spill] sm:$0xff] }
 0x43a   :  { %v2181_v40 = vpack.c.bf16 %v12252_v18, %v12251_v30  ;;  %v1954_v57 = vpop.f32.mrb[59].mxu0  ;;  %v13732_v30 = vld [vmem:[#allocation6 + $0x30] ss:$8 sps:$4 sm:$0xff]  }
 0x43b   :  { %v2180_v34 = vpack.c.bf16 %v1954_v57, %v1951_v36 }
 0x43c   :  { %2604 = vmatpush1.bf16.msra.mxu1 %v13732_v30 }
 0x43d   :  { %12333 = vmatprep.mubr.msk.bf16.mxu1 %vm576_vm2, %v2180_v34 }
 0x43e   :  { %12334 = vmatmul.mubr.msk.bf16.gmra.mrb[84].mxu1 %vm576_vm2, %v2181_v40 }
 0x43f   :  { %v12255_v16 = vpop.f32.mrb[60].mxu0 }
 0x440   :  { %v1967_v3 = vpop.f32.mrb[61].mxu0 }
 0x441   :  { %v12256_v59 = vpop.f32.mrb[62].mxu0 }
 0x442   :  { %v2183_v38 = vpack.c.bf16 %v12256_v59, %v12255_v16  ;;  %v1970_v55 = vpop.f32.mrb[63].mxu0  ;;  %v13735_v59 = vld [vmem:[#allocation4 + $0x20] sm:$0xff]  }
 0x443   :  { %v2182_v33 = vpack.c.bf16 %v1970_v55, %v1967_v3  ;;  %12373 = vmatprep.subr.bf16.mxu0 %v13735_v59 }
 0x444   :  { %12374 = vmatpush3.bf16.msra.mxu0 %v13735_v59  ;;  %v19794_v59 = vld [vmem:[#allocation36_spill] sm:$0xff] }
 0x445   :  { %12337 = vmatprep.mubr.msk.bf16.mxu1 %vm576_vm2, %v2182_v33  ;;  %v13737_v33 = vld [vmem:[#allocation4 + $0x30] sm:$0xff]  }
 0x446   :  { %12338 = vmatmul.mubr.msk.bf16.gmra.mrb[88].mxu1 %vm576_vm2, %v2183_v38  ;;  %v13736_v38 = vld [vmem:[#allocation4 + $0x28] sm:$0xff]  }
 0x447   :  { %12375 = vmatprep.subr.bf16.mxu0 %v13736_v38 }
 0x448   :  { %12376 = vmatpush3.bf16.msra.mxu0 %v13736_v38 }
 0x449   :  { %12377 = vmatprep.subr.bf16.mxu0 %v13737_v33 }
 0x44c   :  { %12378 = vmatpush3.bf16.msra.mxu0 %v13737_v33 }
 0x451   :  { %v12275_v0 = vpop.f32.mrb[60].mxu1 }
 0x452   :  { %v2016_v5 = vpop.f32.mrb[61].mxu1 }
 0x453   :  { %v12276_v19 = vpop.f32.mrb[62].mxu1 }
 0x454   :  { %v2185_v46 = vpack.c.bf16 %v12276_v19, %v12275_v0  ;;  %v2019_v14 = vpop.f32.mrb[63].mxu1  ;;  %v16482_v0 = vld [vmem:[#allocation7] ss:$0 sm:$0xff] }
 0x455   :  { %v2184_v47 = vpack.c.bf16 %v2019_v14, %v2016_v5 }
 0x457   :  { %12341 = vmatprep.mubr.msk.bf16.mxu1 %vm576_vm2, %v2184_v47 }
 0x458   :  { %12342 = vmatmul.mubr.msk.bf16.gmra.mrb[92].mxu1 %vm576_vm2, %v2185_v46 }
 0x459   :  { %v12279_v4 = vpop.f32.mrb[64].mxu1 }
 0x45a   :  { %v2032_v27 = vpop.f32.mrb[65].mxu1 }
 0x45b   :  { %v12280_v23 = vpop.f32.mrb[66].mxu1 }
 0x45c   :  { %v2187_v54 = vpack.c.bf16 %v12280_v23, %v12279_v4  ;;  %v2035_v11 = vpop.f32.mrb[67].mxu1  ;;  %v13738_v4 = vld [vmem:[#allocation4 + $0x38] sm:$0xff]  }
 0x45d   :  { %v2186_v28 = vpack.c.bf16 %v2035_v11, %v2032_v27  ;;  %v19779_v11 = vld [vmem:[#allocation23_spill] sm:$0xff]  ;;  %12379 = vmatprep.subr.bf16.mxu0 %v13738_v4 }
 0x45e   :  { %12380 = vmatpush3.bf16.msra.mxu0 %v13738_v4 }
 0x45f   :  { %12345 = vmatprep.mubr.msk.bf16.mxu1 %vm576_vm2, %v2186_v28 }
 0x460   :  { %12346 = vmatmul.mubr.msk.bf16.gmra.mrb[96].mxu1 %vm576_vm2, %v2187_v54 }
 0x461   :  { %v12283_v2 = vpop.f32.mrb[68].mxu1 }
 0x462   :  { %v2048_v45 = vpop.f32.mrb[69].mxu1 }
 0x463   :  { %v12284_v25 = vpop.f32.mrb[70].mxu1 }
 0x464   :  { %v2189_v52 = vpack.c.bf16 %v12284_v25, %v12283_v2  ;;  %v2051_v20 = vpop.f32.mrb[71].mxu1  ;;  %v19781_v2 = vld [vmem:[#allocation27_spill] sm:$0xff]  ;;  %v19783_v25 = vld [vmem:[#allocation26_spill] sm:$0xff] }
 0x465   :  { %v2188_v24 = vpack.c.bf16 %v2051_v20, %v2048_v45  ;;  %v19785_v20 = vld [vmem:[#allocation28_spill] sm:$0xff] }
 0x467   :  { %12349 = vmatprep.mubr.msk.bf16.mxu1 %vm576_vm2, %v2188_v24 }
 0x468   :  { %12350 = vmatmul.mubr.msk.bf16.gmra.mrb[100].mxu1 %vm576_vm2, %v2189_v52 }
 0x469   :  { %v12287_v26 = vpop.f32.mrb[72].mxu1 }
 0x46a   :  { %v2064_v22 = vpop.f32.mrb[73].mxu1 }
 0x46b   :  { %v12288_v53 = vpop.f32.mrb[74].mxu1 }
 0x46c   :  { %v2191_v21 = vpack.c.bf16 %v12288_v53, %v12287_v26  ;;  %v2067_v41 = vpop.f32.mrb[75].mxu1 }
 0x46d   :  { %v2190_v50 = vpack.c.bf16 %v2067_v41, %v2064_v22 }
 0x46f   :  { %12353 = vmatprep.mubr.msk.bf16.mxu1 %vm576_vm2, %v2190_v50 }
 0x470   :  { %12354 = vmatmul.mubr.msk.bf16.gmra.mrb[104].mxu1 %vm576_vm2, %v2191_v21 }
 0x47f   :  { %v12307_v17 = vpop.f32.mrb[64].mxu0 }
 0x480   :  { %v2113_v58 = vpop.f32.mrb[65].mxu0 }
 0x481   :  { %v12308_v49 = vpop.f32.mrb[66].mxu0 }
 0x482   :  { %v2193_v63 = vpack.c.bf16 %v12308_v49, %v12307_v17  ;;  %v2116_v13 = vpop.f32.mrb[67].mxu0 }
 0x483   :  { %v2192_v37 = vpack.c.bf16 %v2116_v13, %v2113_v58  ;;  %v19787_v13 = vld [vmem:[#allocation29_spill] sm:$0xff] }
 0x485   :  { %12357 = vmatprep.mubr.msk.bf16.mxu1 %vm576_vm2, %v2192_v37 }
 0x486   :  { %12358 = vmatmul.mubr.msk.bf16.gmra.mrb[108].mxu1 %vm576_vm2, %v2193_v63 }
 0x487   :  { %v12311_v62 = vpop.f32.mrb[68].mxu0 }
 0x488   :  { %v2129_v32 = vpop.f32.mrb[69].mxu0 }
 0x489   :  { %v12312_v60 = vpop.f32.mrb[70].mxu0 }
 0x48a   :  { %v2195_v51 = vpack.c.bf16 %v12312_v60, %v12311_v62  ;;  %v2132_v44 = vpop.f32.mrb[71].mxu0  ;;  %v19788_v62 = vld [vmem:[#allocation31_spill] sm:$0xff]  ;;  %v19789_v60 = vld [vmem:[#allocation30_spill] sm:$0xff] }
 0x48b   :  { %v2194_v42 = vpack.c.bf16 %v2132_v44, %v2129_v32  ;;  %v19790_v44 = vld [vmem:[#allocation32_spill] sm:$0xff] }
 0x48d   :  { %12361 = vmatprep.mubr.msk.bf16.mxu1 %vm576_vm2, %v2194_v42 }
 0x48e   :  { %12362 = vmatmul.mubr.msk.bf16.gmra.mrb[112].mxu1 %vm576_vm2, %v2195_v51 }
 0x48f   :  { %v12315_v29 = vpop.f32.mrb[72].mxu0 }
 0x490   :  { %v2145_v7 = vpop.f32.mrb[73].mxu0 }
 0x491   :  { %v12316_v56 = vpop.f32.mrb[74].mxu0 }
 0x492   :  { %v2197_v39 = vpack.c.bf16 %v12316_v56, %v12315_v29  ;;  %v2148_v15 = vpop.f32.mrb[75].mxu0 }
 0x493   :  { %v2196_v9 = vpack.c.bf16 %v2148_v15, %v2145_v7 }
 0x495   :  { %12365 = vmatprep.mubr.msk.bf16.mxu1 %vm576_vm2, %v2196_v9 }
 0x496   :  { %12366 = vmatmul.mubr.msk.bf16.gmra.mrb[116].mxu1 %vm576_vm2, %v2197_v39 }
 0x497   :  { %v12319_v48 = vpop.f32.mrb[76].mxu0 }
 0x498   :  { %v2161_v35 = vpop.f32.mrb[77].mxu0 }
 0x499   :  { %v12320_v8 = vpop.f32.mrb[78].mxu0 }
 0x49a   :  { %v2199_v12 = vpack.c.bf16 %v12320_v8, %v12319_v48  ;;  %v2164_v6 = vpop.f32.mrb[79].mxu0 }
 0x49b   :  { %v2198_v1 = vpack.c.bf16 %v2164_v6, %v2161_v35  ;;  %v19791_v6 = vld [vmem:[#allocation33_spill] sm:$0xff] }
 0x49d   :  { %12369 = vmatprep.mubr.msk.bf16.mxu1 %vm576_vm2, %v2198_v1 }
 0x49e   :  { %12370 = vmatmul.mubr.msk.bf16.gmra.mrb[120].mxu1 %vm576_vm2, %v2199_v12 }
 0x49f   :  { %2633 = vmatprep.mubr.bf16.mxu1 %v19778_v43 }
 0x501   :  { %v16466_v36 = vpop.f32.mrb[76].mxu1 }
 0x502   :  { %v16468_v18 = vpop.f32.mrb[77].mxu1 }
 0x503   :  { %v16470_v40 = vpop.f32.mrb[78].mxu1 }
 0x504   :  { %v16472_v57 = vpop.f32.mrb[79].mxu1 }
 0x509   :  { %v16474_v34 = vpop.f32.mrb[80].mxu1 }
 0x50a   :  { %v16476_v16 = vpop.f32.mrb[81].mxu1 }
 0x50b   :  { %v16478_v3 = vpop.f32.mrb[82].mxu1 }
 0x50c   :  { %v16480_v55 = vpop.f32.mrb[83].mxu1 }
 0x511   :  { %v12335_v5 = vpop.f32.mrb[84].mxu1 }
 0x512   :  { %v2370_v19 = vadd.f32 %v12335_v5, %v16482_v0  ;;  %v2361_v46 = vpop.f32.mrb[85].mxu1 }
 0x513   :  { %v2362_v14 = vadd.f32 %v16482_v0, %v2361_v46  ;;  %v12336_v47 = vpop.f32.mrb[86].mxu1 }
 0x514   :  { %v2373_v27 = vadd.f32 %v12336_v47, %v16482_v0  ;;  %v2364_v23 = vpop.f32.mrb[87].mxu1  ;;  %v16489_v28 = vadd.f32 %v2370_v19, %v19779_v11  ;;  %v19795_v11 = vld [vmem:[#allocation37_spill] sm:$0xff] }
 0x515   :  { %v2365_v54 = vadd.f32 %v16482_v0, %v2364_v23  ;;  %v16495_v52 = vadd.f32 %v2362_v14, %v19783_v25  ;;  %v19797_v25 = vld [vmem:[#allocation39_spill] sm:$0xff] }
 0x516   :  { %19780 = vst [vmem:[#allocation23_spill] sm:$0xff] %v16489_v28  ;;  %v16492_v45 = vadd.f32 %v2373_v27, %v19781_v2 }
 0x517   :  { %19784 = vst [vmem:[#allocation26_spill] sm:$0xff] %v16495_v52  ;;  %v16498_v24 = vadd.f32 %v2365_v54, %v19785_v20 }
 0x518   :  { %19782 = vst [vmem:[#allocation27_spill] sm:$0xff] %v16492_v45  ;;  %v13324_v26 = vpack.i.bf16 %v16492_v45, %v16489_v28 }
 0x519   :  { %19786 = vst [vmem:[#allocation28_spill] sm:$0xff] %v16498_v24  ;;  %v12339_v22 = vpop.f32.mrb[88].mxu1  ;;  %v13319_v53 = vpack.i.bf16 %v16498_v24, %v16495_v52 }
 0x51a   :  { %v2386_v21 = vadd.f32 %v12339_v22, %v16482_v0  ;;  %13325 = vrot.lane.b32.xlu1 %v13324_v26, %s15325_s3  ;;  %v2377_v41 = vpop.f32.mrb[89].mxu1  ;;  %v19799_v26 = vld [vmem:[#allocation38_spill] sm:$0xff] }
 0x51b   :  { %v2378_v50 = vadd.f32 %v16482_v0, %v2377_v41  ;;  %13320 = vrot.lane.b32.xlu0 %v13319_v53, %s15325_s3  ;;  %v12340_v17 = vpop.f32.mrb[90].mxu1  ;;  %v19801_v53 = vld [vmem:[#allocation40_spill] sm:$0xff] }
 0x51c   :  { %v2389_v58 = vadd.f32 %v12340_v17, %v16482_v0  ;;  %v2380_v49 = vpop.f32.mrb[91].mxu1  ;;  %v16511_v37 = vadd.f32 %v2386_v21, %v19787_v13 }
 0x51d   :  { %v2381_v63 = vadd.f32 %v16482_v0, %v2380_v49  ;;  %v16517_v51 = vadd.f32 %v2378_v50, %v19789_v60 }
 0x51e   :  { %v16514_v32 = vadd.f32 %v2389_v58, %v19788_v62 }
 0x51f   :  { %v16520_v42 = vadd.f32 %v2381_v63, %v19790_v44 }
 0x520   :  { %v13334_v29 = vpack.i.bf16 %v16514_v32, %v16511_v37 }
 0x521   :  { %v13329_v7 = vpack.i.bf16 %v16520_v42, %v16517_v51 }
 0x522   :  { %13335 = vrot.lane.b32.xlu1 %v13334_v29, %s15325_s3  ;;  %v19803_v29 = vld [vmem:[#allocation41_spill] sm:$0xff] }
 0x523   :  { %13330 = vrot.lane.b32.xlu0 %v13329_v7, %s15325_s3 }
 0x52b   :  { %v12343_v56 = vpop.f32.mrb[92].mxu1 }
 0x52c   :  { %v2402_v39 = vadd.f32 %v12343_v56, %v16482_v0  ;;  %v2393_v15 = vpop.f32.mrb[93].mxu1  ;;  %v19805_v56 = vld [vmem:[#allocation43_spill] sm:$0xff] }
 0x52d   :  { %v2394_v9 = vadd.f32 %v16482_v0, %v2393_v15  ;;  %v12344_v48 = vpop.f32.mrb[94].mxu1  ;;  %v19807_v15 = vld [vmem:[#allocation42_spill] sm:$0xff] }
 0x52e   :  { %v2405_v35 = vadd.f32 %v12344_v48, %v16482_v0  ;;  %v2396_v8 = vpop.f32.mrb[95].mxu1  ;;  %v16533_v1 = vadd.f32 %v2402_v39, %v19791_v6  ;;  %v19809_v48 = vld [vmem:[#allocation44_spill] sm:$0xff] }
 0x52f   :  { %v2397_v12 = vadd.f32 %v16482_v0, %v2396_v8  ;;  %v16539_v30 = vadd.f32 %v2394_v9, %v19793_v10 }
 0x530   :  { %v16536_v61 = vadd.f32 %v2405_v35, %v19792_v31 }
 0x531   :  { %v16542_v38 = vadd.f32 %v2397_v12, %v19794_v59 }
 0x532   :  { %v13344_v33 = vpack.i.bf16 %v16536_v61, %v16533_v1 }
 0x533   :  { %v12347_v5 = vpop.f32.mrb[96].mxu1  ;;  %v13339_v19 = vpack.i.bf16 %v16542_v38, %v16539_v30 }
 0x534   :  { %v2418_v46 = vadd.f32 %v12347_v5, %v16482_v0  ;;  %13345 = vrot.lane.b32.xlu1 %v13344_v33, %s15325_s3  ;;  %v2409_v14 = vpop.f32.mrb[97].mxu1 }
 0x535   :  { %v2410_v47 = vadd.f32 %v16482_v0, %v2409_v14  ;;  %v12348_v4 = vpop.f32.mrb[98].mxu1  ;;  %13340 = vrot.lane.b32.xlu0 %v13339_v19, %s15325_s3  ;;  %v19811_v14 = vld [vmem:[#allocation45_spill] sm:$0xff] }
 0x536   :  { %v2421_v27 = vadd.f32 %v12348_v4, %v16482_v0  ;;  %v2412_v23 = vpop.f32.mrb[99].mxu1  ;;  %v16555_v2 = vadd.f32 %v2418_v46, %v19795_v11  ;;  %v19813_v4 = vld [vmem:[#allocation47_spill] sm:$0xff]  ;;  %v19817_v11 = vld [vmem:[#allocation48_spill] sm:$0xff] }
 0x537   :  { %v2413_v54 = vadd.f32 %v16482_v0, %v2412_v23  ;;  %v16561_v22 = vadd.f32 %v2410_v47, %v19799_v26  ;;  %v19815_v23 = vld [vmem:[#allocation46_spill] sm:$0xff] }
 0x538   :  { %19796 = vst [vmem:[#allocation29_spill] sm:$0xff] %v16555_v2  ;;  %v16558_v20 = vadd.f32 %v2421_v27, %v19797_v25 }
 0x539   :  { %19800 = vst [vmem:[#allocation30_spill] sm:$0xff] %v16561_v22  ;;  %v16564_v21 = vadd.f32 %v2413_v54, %v19801_v53 }
 0x53a   :  { %19798 = vst [vmem:[#allocation31_spill] sm:$0xff] %v16558_v20  ;;  %v13354_v41 = vpack.i.bf16 %v16558_v20, %v16555_v2 }
 0x53b   :  { %19802 = vst [vmem:[#allocation32_spill] sm:$0xff] %v16564_v21  ;;  %v12351_v50 = vpop.f32.mrb[100].mxu1  ;;  %v13349_v17 = vpack.i.bf16 %v16564_v21, %v16561_v22 }
 0x53c   :  { %v2434_v58 = vadd.f32 %v12351_v50, %v16482_v0  ;;  %13355 = vrot.lane.b32.xlu1 %v13354_v41, %s15325_s3  ;;  %v2425_v49 = vpop.f32.mrb[101].mxu1 }
 0x53d   :  { %v2426_v63 = vadd.f32 %v16482_v0, %v2425_v49  ;;  %v12352_v13 = vpop.f32.mrb[102].mxu1  ;;  %13350 = vrot.lane.b32.xlu0 %v13349_v17, %s15325_s3 }
 0x53e   :  { %v2437_v62 = vadd.f32 %v12352_v13, %v16482_v0  ;;  %v2428_v60 = vpop.f32.mrb[103].mxu1  ;;  %v16577_v7 = vadd.f32 %v2434_v58, %v19803_v29  ;;  %v19821_v29 = vld [vmem:[#allocation51_spill] sm:$0xff] }
 0x53f   :  { %v2429_v44 = vadd.f32 %v16482_v0, %v2428_v60  ;;  %v16583_v9 = vadd.f32 %v2426_v63, %v19807_v15  ;;  %v19819_v60 = vld [vmem:[#allocation49_spill] sm:$0xff]  ;;  %v19823_v15 = vld [vmem:[#allocation50_spill] sm:$0xff] }
 0x540   :  { %19804 = vst [vmem:[#allocation33_spill] sm:$0xff] %v16577_v7  ;;  %v16580_v39 = vadd.f32 %v2437_v62, %v19805_v56 }
 0x541   :  { %19808 = vst [vmem:[#allocation34_spill] sm:$0xff] %v16583_v9  ;;  %v16586_v35 = vadd.f32 %v2429_v44, %v19809_v48 }
 0x542   :  { %19806 = vst [vmem:[#allocation35_spill] sm:$0xff] %v16580_v39  ;;  %v13364_v8 = vpack.i.bf16 %v16580_v39, %v16577_v7 }
 0x543   :  { %19810 = vst [vmem:[#allocation36_spill] sm:$0xff] %v16586_v35  ;;  %v12355_v12 = vpop.f32.mrb[104].mxu1  ;;  %v13359_v6 = vpack.i.bf16 %v16586_v35, %v16583_v9 }
 0x544   :  { %v2450_v31 = vadd.f32 %v12355_v12, %v16482_v0  ;;  %13365 = vrot.lane.b32.xlu1 %v13364_v8, %s15325_s3  ;;  %v2441_v10 = vpop.f32.mrb[105].mxu1  ;;  %v19825_v8 = vld [vmem:[#allocation52_spill] sm:$0xff] }
 0x545   :  { %v2442_v59 = vadd.f32 %v16482_v0, %v2441_v10  ;;  %v12356_v33 = vpop.f32.mrb[106].mxu1  ;;  %13360 = vrot.lane.b32.xlu0 %v13359_v6, %s15325_s3 }
 0x546   :  { %v2453_v5 = vadd.f32 %v12356_v33, %v16482_v0  ;;  %v2444_v19 = vpop.f32.mrb[107].mxu1  ;;  %v16599_v47 = vadd.f32 %v2450_v31, %v19811_v14 }
 0x547   :  { %v2445_v46 = vadd.f32 %v16482_v0, %v2444_v19  ;;  %v16605_v54 = vadd.f32 %v2442_v59, %v19815_v23  ;;  %v19827_v23 = vld [vmem:[#allocation53_spill] sm:$0xff] }
 0x548   :  { %19812 = vst [vmem:[#allocation37_spill] sm:$0xff] %v16599_v47  ;;  %v16602_v27 = vadd.f32 %v2453_v5, %v19813_v4 }
 0x549   :  { %19816 = vst [vmem:[#allocation38_spill] sm:$0xff] %v16605_v54  ;;  %v16608_v25 = vadd.f32 %v2445_v46, %v19817_v11 }
 0x54a   :  { %19814 = vst [vmem:[#allocation39_spill] sm:$0xff] %v16602_v27  ;;  %v13374_v26 = vpack.i.bf16 %v16602_v27, %v16599_v47 }
 0x54b   :  { %19818 = vst [vmem:[#allocation40_spill] sm:$0xff] %v16608_v25  ;;  %v13369_v53 = vpack.i.bf16 %v16608_v25, %v16605_v54 }
 0x54c   :  { %13375 = vrot.lane.b32.xlu1 %v13374_v26, %s15325_s3  ;;  %v19829_v26 = vld [vmem:[#allocation55_spill] sm:$0xff] }
 0x54d   :  { %13370 = vrot.lane.b32.xlu0 %v13369_v53, %s15325_s3 }
 0x559   :  { %v12359_v41 = vpop.f32.mrb[108].mxu1 }
 0x55a   :  { %v2466_v50 = vadd.f32 %v12359_v41, %v16482_v0  ;;  %v2457_v17 = vpop.f32.mrb[109].mxu1  ;;  %v19831_v41 = vld [vmem:[#allocation54_spill] sm:$0xff] }
 0x55b   :  { %v2458_v58 = vadd.f32 %v16482_v0, %v2457_v17  ;;  %v12360_v49 = vpop.f32.mrb[110].mxu1  ;;  %v19833_v17 = vld [vmem:[#allocation56_spill] sm:$0xff] }
 0x55c   :  { %v2469_v63 = vadd.f32 %v12360_v49, %v16482_v0  ;;  %v2460_v13 = vpop.f32.mrb[111].mxu1  ;;  %v16621_v44 = vadd.f32 %v2466_v50, %v19819_v60 }
 0x55d   :  { %v2461_v62 = vadd.f32 %v16482_v0, %v2460_v13  ;;  %v16627_v48 = vadd.f32 %v2458_v58, %v19823_v15 }
 0x55e   :  { %19820 = vst [vmem:[#allocation41_spill] sm:$0xff] %v16621_v44  ;;  %v16624_v56 = vadd.f32 %v2469_v63, %v19821_v29 }
 0x55f   :  { %19824 = vst [vmem:[#allocation42_spill] sm:$0xff] %v16627_v48  ;;  %v16630_v12 = vadd.f32 %v2461_v62, %v19825_v8 }
 0x560   :  { %19822 = vst [vmem:[#allocation43_spill] sm:$0xff] %v16624_v56  ;;  %v13384_v6 = vpack.i.bf16 %v16624_v56, %v16621_v44 }
 0x561   :  { %19826 = vst [vmem:[#allocation44_spill] sm:$0xff] %v16630_v12  ;;  %v12363_v31 = vpop.f32.mrb[112].mxu1  ;;  %v13379_v10 = vpack.i.bf16 %v16630_v12, %v16627_v48 }
 0x562   :  { %v2482_v59 = vadd.f32 %v12363_v31, %v16482_v0  ;;  %13385 = vrot.lane.b32.xlu1 %v13384_v6, %s15325_s3  ;;  %v2473_v33 = vpop.f32.mrb[113].mxu1 }
 0x563   :  { %v2474_v5 = vadd.f32 %v16482_v0, %v2473_v33  ;;  %13380 = vrot.lane.b32.xlu0 %v13379_v10, %s15325_s3  ;;  %v12364_v19 = vpop.f32.mrb[114].mxu1  ;;  %v19835_v10 = vld [vmem:[#allocation57_spill] sm:$0xff]  ;;  %v19837_v33 = vld [vmem:[#allocation59_spill] sm:$0xff] }
 0x564   :  { %v2485_v46 = vadd.f32 %v12364_v19, %v16482_v0  ;;  %v2476_v14 = vpop.f32.mrb[115].mxu1  ;;  %v16643_v11 = vadd.f32 %v2482_v59, %v19827_v23  ;;  %v19839_v19 = vld [vmem:[#allocation58_spill] sm:$0xff] }
 0x565   :  { %v2477_v4 = vadd.f32 %v16482_v0, %v2476_v14  ;;  %v16649_v50 = vadd.f32 %v2474_v5, %v19831_v41  ;;  %v19841_v14 = vld [vmem:[#allocation60_spill] sm:$0xff] }
 0x566   :  { %19828 = vst [vmem:[#allocation45_spill] sm:$0xff] %v16643_v11  ;;  %v16646_v53 = vadd.f32 %v2485_v46, %v19829_v26 }
 0x567   :  { %19832 = vst [vmem:[#allocation46_spill] sm:$0xff] %v16649_v50  ;;  %v16652_v58 = vadd.f32 %v2477_v4, %v19833_v17 }
 0x568   :  { %19830 = vst [vmem:[#allocation47_spill] sm:$0xff] %v16646_v53  ;;  %v13394_v49 = vpack.i.bf16 %v16646_v53, %v16643_v11 }
 0x569   :  { %19834 = vst [vmem:[#allocation48_spill] sm:$0xff] %v16652_v58  ;;  %v12367_v63 = vpop.f32.mrb[116].mxu1  ;;  %v13389_v13 = vpack.i.bf16 %v16652_v58, %v16649_v50 }
 0x56a   :  { %v2498_v62 = vadd.f32 %v12367_v63, %v16482_v0  ;;  %13395 = vrot.lane.b32.xlu1 %v13394_v49, %s15325_s3  ;;  %v2489_v60 = vpop.f32.mrb[117].mxu1 }
 0x56b   :  { %v2490_v29 = vadd.f32 %v16482_v0, %v2489_v60  ;;  %13390 = vrot.lane.b32.xlu0 %v13389_v13, %s15325_s3  ;;  %v12368_v15 = vpop.f32.mrb[118].mxu1 }
 0x56c   :  { %v2501_v8 = vadd.f32 %v12368_v15, %v16482_v0  ;;  %v2492_v6 = vpop.f32.mrb[119].mxu1  ;;  %v16665_v59 = vadd.f32 %v2498_v62, %v19835_v10  ;;  %v19843_v15 = vld [vmem:[#allocation24_spill] sm:$0xff]  ;;  %v19847_v10 = vld [vmem:[#allocation17_spill] sm:$0xff] }
 0x56d   :  { %v2493_v31 = vadd.f32 %v16482_v0, %v2492_v6  ;;  %v16671_v46 = vadd.f32 %v2490_v29, %v19839_v19  ;;  %v19845_v6 = vld [vmem:[#allocation25_spill] sm:$0xff]  ;;  %v19849_v19 = vld [vmem:[#allocation18_spill] sm:$0xff] }
 0x56e   :  { %19836 = vst [vmem:[#allocation49_spill] sm:$0xff] %v16665_v59  ;;  %v16668_v5 = vadd.f32 %v2501_v8, %v19837_v33 }
 0x56f   :  { %19840 = vst [vmem:[#allocation50_spill] sm:$0xff] %v16671_v46  ;;  %v16674_v4 = vadd.f32 %v2493_v31, %v19841_v14 }
 0x570   :  { %19838 = vst [vmem:[#allocation51_spill] sm:$0xff] %v16668_v5  ;;  %v13404_v23 = vpack.i.bf16 %v16668_v5, %v16665_v59 }
 0x571   :  { %19842 = vst [vmem:[#allocation52_spill] sm:$0xff] %v16674_v4  ;;  %v12371_v26 = vpop.f32.mrb[120].mxu1  ;;  %v13399_v41 = vpack.i.bf16 %v16674_v4, %v16671_v46 }
 0x572   :  { %v2514_v17 = vadd.f32 %v12371_v26, %v16482_v0  ;;  %13405 = vrot.lane.b32.xlu1 %v13404_v23, %s15325_s3  ;;  %v2505_v49 = vpop.f32.mrb[121].mxu1 }
 0x573   :  { %v2506_v63 = vadd.f32 %v16482_v0, %v2505_v49  ;;  %13400 = vrot.lane.b32.xlu0 %v13399_v41, %s15325_s3  ;;  %v12372_v13 = vpop.f32.mrb[122].mxu1  ;;  %v2341_v49 = vadd.f32 %v16470_v40, %v16482_v0 }
 0x574   :  { %v2517_v62 = vadd.f32 %v12372_v13, %v16482_v0  ;;  %v2508_v60 = vpop.f32.mrb[123].mxu1  ;;  %v16687_v8 = vadd.f32 %v2514_v17, %v19843_v15  ;;  %v2338_v17 = vadd.f32 %v16466_v36, %v16482_v0  ;;  %v2330_v13 = vadd.f32 %v16482_v0, %v16468_v18  ;;  %v19851_v36 = vld [vmem:[#allocation16_spill] sm:$0xff]  ;;  %v19852_v15 = vld [vmem:[#allocation15_spill] sm:$0xff] }
 0x575   :  { %v2509_v29 = vadd.f32 %v16482_v0, %v2508_v60  ;;  %v16693_v33 = vadd.f32 %v2506_v63, %v19847_v10 }
 0x576   :  { %19844 = vst [vmem:[#allocation53_spill] sm:$0xff] %v16687_v8  ;;  %v16690_v31 = vadd.f32 %v2517_v62, %v19845_v6  ;;  %v2333_v62 = vadd.f32 %v16482_v0, %v16472_v57  ;;  %v2522_v40 = vadd.f32 %v2338_v17, %v19851_v36  ;;  %v2523_v6 = vadd.f32 %v2341_v49, %v19852_v15  ;;  %v19854_v57 = vld [vmem:[#allocation14_spill] sm:$0xff] }
 0x577   :  { %19848 = vst [vmem:[#allocation54_spill] sm:$0xff] %v16693_v33  ;;  %v16696_v14 = vadd.f32 %v2509_v29, %v19849_v19  ;;  %v16722_v29 = vld [vmem:[%s19602_s1] sm:$0xff]   ;;  %v2354_v49 = vadd.f32 %v16474_v34, %v16482_v0  ;;  %v2349_v36 = vadd.f32 %v16482_v0, %v16480_v55 }
 0x578   :  { %19846 = vst [vmem:[#allocation55_spill] sm:$0xff] %v16690_v31  ;;  %v13414_v23 = vpack.i.bf16 %v16690_v31, %v16687_v8  ;;  %v2569_v63 = vpack.c.bf16 %v16690_v31, %v16687_v8 }
 0x579   :  { %19850 = vst [vmem:[#allocation56_spill] sm:$0xff] %v16696_v14  ;;  %v2568_v26 = vpack.c.bf16 %v16696_v14, %v16693_v33  ;;  %v13409_v41 = vpack.i.bf16 %v16696_v14, %v16693_v33 }
 0x57a   :  { %13415 = vrot.lane.b32.xlu1 %v13414_v23, %s15325_s3  ;;  %v19853_v23 = vld [vmem:[#allocation13_spill] sm:$0xff] }
 0x57b   :  { %13410 = vrot.lane.b32.xlu0 %v13409_v41, %s15325_s3  ;;  %11028 = vmatmul.mubr.msk.bf16.vlgmr.msra.gmra.mrb[4].mxu1 %vm576_vm2, %v2568_v26  ;;  %v2520_v26 = vadd.f32 %v2330_v13, %v19853_v23  ;;  %v2521_v41 = vadd.f32 %v2333_v62, %v19854_v57  ;;  %v2346_v62 = vadd.f32 %v16482_v0, %v16476_v16 }
 0x57c   :  { %2643 = vmatprep.mubr.bf16.mxu1 %v19778_v43 }
 0x583   :  { %11029 = vmatmul.mubr.msk.bf16.gmra.mrb[8].mxu1 %vm576_vm2, %v2569_v63 }
 0x584   :  { %12469 = vmatprep.mubr.bf16.mxu1 %v16722_v29 }
 0x58c   :  { %v13326_v60 = vpop.permute.xlu1 %13325 }
 0x58d   :  { %v13328_v10 = vunpack.i.h.bf16 %v13326_v60  ;;  %v13327_v19 = vunpack.i.l.bf16 %v13326_v60  ;;  %v13321_v18 = vpop.permute.xlu0 %13320  ;;  %v2357_v60 = vadd.f32 %v16478_v3, %v16482_v0  ;;  %v19857_v3 = vld [vmem:[#allocation19_spill] sm:$0xff] }
 0x58e   :  { %v13323_v63 = vunpack.i.h.bf16 %v13321_v18  ;;  %v13322_v14 = vunpack.i.l.bf16 %v13321_v18 }
 0x58f   :  { %v2846_v33 = vsel %vm576_vm2, %v2523_v6, %v13328_v10  ;;  %v2845_v31 = vsel %vm576_vm2, %v2522_v40, %v13327_v19  ;;  %v19856_v40 = vld [vmem:[#allocation21_spill] sm:$0xff]  ;;  %v19858_v19 = vld [vmem:[#allocation20_spill] sm:$0xff] }
 0x590   :  { %v2884_v8 = vpack.c.bf16 %v2846_v33, %v2845_v31  ;;  %v2844_v4 = vsel %vm576_vm2, %v2521_v41, %v13323_v63  ;;  %v2843_v17 = vsel %vm576_vm2, %v2520_v26, %v13322_v14  ;;  %v19855_v33 = vld [vmem:[#allocation22_spill] sm:$0xff]  ;;  %v2527_v15 = vadd.f32 %v2357_v60, %v19856_v40 }
 0x591   :  { %v2883_v13 = vpack.c.bf16 %v2844_v4, %v2843_v17  ;;  %v2526_v14 = vadd.f32 %v2354_v49, %v19855_v33  ;;  %v2524_v4 = vadd.f32 %v2346_v62, %v19857_v3  ;;  %v2525_v18 = vadd.f32 %v2349_v36, %v19858_v19 }
 0x593   :  { %12381 = vmatprep.mubr.msk.bf16.mxu0 %vm939_vm3, %v2883_v13 }
 0x594   :  { %12382 = vmatmul.mubr.msk.bf16.vlgmr.msra.gmra.mrb[80].mxu0 %vm939_vm3, %v2884_v8  ;;  %v13336_v31 = vpop.permute.xlu1 %13335 }
 0x595   :  { %v13338_v34 = vunpack.i.h.bf16 %v13336_v31  ;;  %v13337_v6 = vunpack.i.l.bf16 %v13336_v31  ;;  %v13331_v10 = vpop.permute.xlu0 %13330 }
 0x596   :  { %v13333_v16 = vunpack.i.h.bf16 %v13331_v10  ;;  %v13332_v23 = vunpack.i.l.bf16 %v13331_v10 }
 0x597   :  { %v2850_v55 = vsel %vm576_vm2, %v2527_v15, %v13338_v34  ;;  %v2849_v0 = vsel %vm576_vm2, %v2526_v14, %v13337_v6 }
 0x598   :  { %v2848_v8 = vsel %vm576_vm2, %v2525_v18, %v13333_v16  ;;  %v2847_v26 = vsel %vm576_vm2, %v2524_v4, %v13332_v23  ;;  %v2886_v57 = vpack.c.bf16 %v2850_v55, %v2849_v0 }
 0x599   :  { %v2885_v41 = vpack.c.bf16 %v2848_v8, %v2847_v26 }
 0x59b   :  { %12385 = vmatprep.mubr.msk.bf16.mxu0 %vm939_vm3, %v2885_v41 }
 0x59c   :  { %12386 = vmatmul.mubr.msk.bf16.gmra.mrb[84].mxu0 %vm939_vm3, %v2886_v57 }
 0x5a6   :  { %v13346_v63 = vpop.permute.xlu1 %13345 }
 0x5a7   :  { %v13348_v17 = vunpack.i.h.bf16 %v13346_v63  ;;  %v13347_v49 = vunpack.i.l.bf16 %v13346_v63  ;;  %v13341_v60 = vpop.permute.xlu0 %13340 }
 0x5a8   :  { %v13343_v13 = vunpack.i.h.bf16 %v13341_v60  ;;  %v13342_v62 = vunpack.i.l.bf16 %v13341_v60 }
 0x5a9   :  { %v2854_v36 = vsel %vm576_vm2, %v16492_v45, %v13348_v17  ;;  %v2853_v31 = vsel %vm576_vm2, %v16489_v28, %v13347_v49 }
 0x5aa   :  { %v2852_v33 = vsel %vm576_vm2, %v16498_v24, %v13343_v13  ;;  %v2851_v14 = vsel %vm576_vm2, %v16495_v52, %v13342_v62  ;;  %v2888_v15 = vpack.c.bf16 %v2854_v36, %v2853_v31 }
 0x5ab   :  { %v2887_v40 = vpack.c.bf16 %v2852_v33, %v2851_v14 }
 0x5ad   :  { %12389 = vmatprep.mubr.msk.bf16.mxu0 %vm939_vm3, %v2887_v40 }
 0x5ae   :  { %v13356_v34 = vpop.permute.xlu1 %13355  ;;  %12390 = vmatmul.mubr.msk.bf16.gmra.mrb[88].mxu0 %vm939_vm3, %v2888_v15 }
 0x5af   :  { %v13358_v6 = vunpack.i.h.bf16 %v13356_v34  ;;  %v13357_v10 = vunpack.i.l.bf16 %v13356_v34  ;;  %v13351_v3 = vpop.permute.xlu0 %13350 }
 0x5b0   :  { %v13353_v4 = vunpack.i.h.bf16 %v13351_v3  ;;  %v13352_v19 = vunpack.i.l.bf16 %v13351_v3 }
 0x5b1   :  { %v2858_v18 = vsel %vm576_vm2, %v16514_v32, %v13358_v6  ;;  %v2857_v16 = vsel %vm576_vm2, %v16511_v37, %v13357_v10 }
 0x5b2   :  { %v2856_v23 = vsel %vm576_vm2, %v16520_v42, %v13353_v4  ;;  %v2855_v55 = vsel %vm576_vm2, %v16517_v51, %v13352_v19  ;;  %v2890_v8 = vpack.c.bf16 %v2858_v18, %v2857_v16 }
 0x5b3   :  { %v2889_v0 = vpack.c.bf16 %v2856_v23, %v2855_v55 }
 0x5b5   :  { %12393 = vmatprep.mubr.msk.bf16.mxu0 %vm939_vm3, %v2889_v0 }
 0x5b6   :  { %v13366_v26 = vpop.permute.xlu1 %13365  ;;  %12394 = vmatmul.mubr.msk.bf16.gmra.mrb[92].mxu0 %vm939_vm3, %v2890_v8 }
 0x5b7   :  { %v13368_v57 = vunpack.i.h.bf16 %v13366_v26  ;;  %v13367_v41 = vunpack.i.l.bf16 %v13366_v26  ;;  %v13361_v63 = vpop.permute.xlu0 %13360 }
 0x5b8   :  { %v13363_v17 = vunpack.i.h.bf16 %v13361_v63  ;;  %v13362_v49 = vunpack.i.l.bf16 %v13361_v63 }
 0x5b9   :  { %v2862_v60 = vsel %vm576_vm2, %v16536_v61, %v13368_v57  ;;  %v2861_v13 = vsel %vm576_vm2, %v16533_v1, %v13367_v41 }
 0x5ba   :  { %v2860_v62 = vsel %vm576_vm2, %v16542_v38, %v13363_v17  ;;  %v2859_v36 = vsel %vm576_vm2, %v16539_v30, %v13362_v49  ;;  %v2892_v33 = vpack.c.bf16 %v2862_v60, %v2861_v13 }
 0x5bb   :  { %v2891_v31 = vpack.c.bf16 %v2860_v62, %v2859_v36 }
 0x5bd   :  { %12397 = vmatprep.mubr.msk.bf16.mxu0 %vm939_vm3, %v2891_v31 }
 0x5be   :  { %v13376_v14 = vpop.permute.xlu1 %13375  ;;  %12398 = vmatmul.mubr.msk.bf16.gmra.mrb[96].mxu0 %vm939_vm3, %v2892_v33 }
 0x5bf   :  { %v13378_v40 = vunpack.i.h.bf16 %v13376_v14  ;;  %v13377_v15 = vunpack.i.l.bf16 %v13376_v14  ;;  %v13371_v34 = vpop.permute.xlu0 %13370 }
 0x5c0   :  { %v13373_v6 = vunpack.i.h.bf16 %v13371_v34  ;;  %v13372_v10 = vunpack.i.l.bf16 %v13371_v34 }
 0x5c1   :  { %v2866_v3 = vsel %vm576_vm2, %v16558_v20, %v13378_v40  ;;  %v2865_v4 = vsel %vm576_vm2, %v16555_v2, %v13377_v15 }
 0x5c2   :  { %v2864_v19 = vsel %vm576_vm2, %v16564_v21, %v13373_v6  ;;  %v2863_v18 = vsel %vm576_vm2, %v16561_v22, %v13372_v10  ;;  %v2894_v23 = vpack.c.bf16 %v2866_v3, %v2865_v4 }
 0x5c3   :  { %v2893_v16 = vpack.c.bf16 %v2864_v19, %v2863_v18 }
 0x5c5   :  { %12401 = vmatprep.mubr.msk.bf16.mxu0 %vm939_vm3, %v2893_v16 }
 0x5c6   :  { %12402 = vmatmul.mubr.msk.bf16.gmra.mrb[100].mxu0 %vm939_vm3, %v2894_v23 }
 0x5d4   :  { %v13386_v55 = vpop.permute.xlu1 %13385 }
 0x5d5   :  { %v13388_v0 = vunpack.i.h.bf16 %v13386_v55  ;;  %v13387_v8 = vunpack.i.l.bf16 %v13386_v55  ;;  %v13381_v26 = vpop.permute.xlu0 %13380 }
 0x5d6   :  { %v13383_v57 = vunpack.i.h.bf16 %v13381_v26  ;;  %v13382_v41 = vunpack.i.l.bf16 %v13381_v26 }
 0x5d7   :  { %v2870_v63 = vsel %vm576_vm2, %v16580_v39, %v13388_v0  ;;  %v2869_v17 = vsel %vm576_vm2, %v16577_v7, %v13387_v8 }
 0x5d8   :  { %v2868_v49 = vsel %vm576_vm2, %v16586_v35, %v13383_v57  ;;  %v2867_v60 = vsel %vm576_vm2, %v16583_v9, %v13382_v41  ;;  %v2896_v62 = vpack.c.bf16 %v2870_v63, %v2869_v17 }
 0x5d9   :  { %v2895_v13 = vpack.c.bf16 %v2868_v49, %v2867_v60 }
 0x5db   :  { %12405 = vmatprep.mubr.msk.bf16.mxu0 %vm939_vm3, %v2895_v13 }
 0x5dc   :  { %12406 = vmatmul.mubr.msk.bf16.gmra.mrb[104].mxu0 %vm939_vm3, %v2896_v62  ;;  %v13396_v36 = vpop.permute.xlu1 %13395 }
 0x5dd   :  { %v13398_v31 = vunpack.i.h.bf16 %v13396_v36  ;;  %v13397_v33 = vunpack.i.l.bf16 %v13396_v36  ;;  %v13391_v14 = vpop.permute.xlu0 %13390 }
 0x5de   :  { %v13393_v40 = vunpack.i.h.bf16 %v13391_v14  ;;  %v13392_v15 = vunpack.i.l.bf16 %v13391_v14 }
 0x5df   :  { %v2874_v34 = vsel %vm576_vm2, %v16602_v27, %v13398_v31  ;;  %v2873_v6 = vsel %vm576_vm2, %v16599_v47, %v13397_v33 }
 0x5e0   :  { %v2872_v10 = vsel %vm576_vm2, %v16608_v25, %v13393_v40  ;;  %v2871_v3 = vsel %vm576_vm2, %v16605_v54, %v13392_v15  ;;  %v2898_v19 = vpack.c.bf16 %v2874_v34, %v2873_v6 }
 0x5e1   :  { %v2897_v4 = vpack.c.bf16 %v2872_v10, %v2871_v3  ;;  %v16837_v3 = vld [vmem:[%s19606_s5 + $0x1] ss:$0 sm:$0xff] }
 0x5e3   :  { %12409 = vmatprep.mubr.msk.bf16.mxu0 %vm939_vm3, %v2897_v4 }
 0x5e4   :  { %12410 = vmatmul.mubr.msk.bf16.gmra.mrb[108].mxu0 %vm939_vm3, %v2898_v19  ;;  %v13406_v18 = vpop.permute.xlu1 %13405 }
 0x5e5   :  { %v13408_v16 = vunpack.i.h.bf16 %v13406_v18  ;;  %v13407_v23 = vunpack.i.l.bf16 %v13406_v18  ;;  %v13401_v55 = vpop.permute.xlu0 %13400 }
 0x5e6   :  { %v13403_v0 = vunpack.i.h.bf16 %v13401_v55  ;;  %v13402_v8 = vunpack.i.l.bf16 %v13401_v55 }
 0x5e7   :  { %v2878_v26 = vsel %vm576_vm2, %v16624_v56, %v13408_v16  ;;  %v2877_v57 = vsel %vm576_vm2, %v16621_v44, %v13407_v23 }
 0x5e8   :  { %v2876_v41 = vsel %vm576_vm2, %v16630_v12, %v13403_v0  ;;  %v2875_v63 = vsel %vm576_vm2, %v16627_v48, %v13402_v8  ;;  %v2900_v49 = vpack.c.bf16 %v2878_v26, %v2877_v57 }
 0x5e9   :  { %v2899_v17 = vpack.c.bf16 %v2876_v41, %v2875_v63 }
 0x5eb   :  { %12413 = vmatprep.mubr.msk.bf16.mxu0 %vm939_vm3, %v2899_v17 }
 0x5ec   :  { %12414 = vmatmul.mubr.msk.bf16.gmra.mrb[112].mxu0 %vm939_vm3, %v2900_v49  ;;  %v13416_v60 = vpop.permute.xlu1 %13415 }
 0x5ed   :  { %v13418_v13 = vunpack.i.h.bf16 %v13416_v60  ;;  %v13417_v62 = vunpack.i.l.bf16 %v13416_v60  ;;  %v13411_v36 = vpop.permute.xlu0 %13410 }
 0x5ee   :  { %v13413_v31 = vunpack.i.h.bf16 %v13411_v36  ;;  %v13412_v33 = vunpack.i.l.bf16 %v13411_v36 }
 0x5ef   :  { %v2882_v14 = vsel %vm576_vm2, %v16646_v53, %v13418_v13  ;;  %v2881_v40 = vsel %vm576_vm2, %v16643_v11, %v13417_v62 }
 0x5f0   :  { %v2880_v15 = vsel %vm576_vm2, %v16652_v58, %v13413_v31  ;;  %v2879_v34 = vsel %vm576_vm2, %v16649_v50, %v13412_v33  ;;  %v2902_v10 = vpack.c.bf16 %v2882_v14, %v2881_v40 }
 0x5f1   :  { %v2901_v6 = vpack.c.bf16 %v2880_v15, %v2879_v34 }
 0x5f3   :  { %12417 = vmatprep.mubr.msk.bf16.mxu0 %vm939_vm3, %v2901_v6 }
 0x5f4   :  { %12418 = vmatmul.mubr.msk.bf16.gmra.mrb[116].mxu0 %vm939_vm3, %v2902_v10 }
 0x5f5   :  { %12437 = vmatprep.mubr.bf16.mxu0 %v16722_v29 }
 0x667   :  { %v12383_v4 = vpop.f32.mrb[80].mxu0 }
 0x668   :  { %v16840_v19 = vadd.f32 %v12383_v4, %v16837_v3  ;;  %v3038_v18 = vpop.f32.mrb[81].mxu0 }
 0x669   :  { %v16843_v16 = vadd.f32 %v16837_v3, %v3038_v18  ;;  %v12384_v23 = vpop.f32.mrb[82].mxu0 }
 0x66a   :  { %v11059_v55 = vmul.f32 -1.442695, %v16840_v19  ;;  %v16847_v0 = vadd.f32 %v12384_v23, %v16837_v3  ;;  %v3041_v29 = vpop.f32.mrb[83].mxu0 }
 0x66b   :  { %v11057_v8 = vmul.f32 -1.442695, %v16843_v16  ;;  %v16851_v26 = vadd.f32 %v16837_v3, %v3041_v29 }
 0x66c   :  { %14223 = vpow2.f32 %v11059_v55  ;;  %v11060_v57 = vmul.f32 -1.442695, %v16847_v0 }
 0x66d   :  { %14225 = vpow2.f32 %v11057_v8  ;;  %v11058_v41 = vmul.f32 -1.442695, %v16851_v26 }
 0x66e   :  { %14227 = vpow2.f32 %v11060_v57 }
 0x66f   :  { %v12387_v63 = vpop.f32.mrb[84].mxu0  ;;  %14229 = vpow2.f32 %v11058_v41 }
 0x670   :  { %v16856_v17 = vadd.f32 %v12387_v63, %v16837_v3  ;;  %v3054_v49 = vpop.f32.mrb[85].mxu0 }
 0x671   :  { %v16859_v60 = vadd.f32 %v16837_v3, %v3054_v49  ;;  %v12388_v13 = vpop.f32.mrb[86].mxu0 }
 0x672   :  { %v11063_v62 = vmul.f32 -1.442695, %v16856_v17  ;;  %v16863_v36 = vadd.f32 %v12388_v13, %v16837_v3  ;;  %v3057_v31 = vpop.f32.mrb[87].mxu0 }
 0x673   :  { %v11061_v33 = vmul.f32 -1.442695, %v16859_v60  ;;  %v16867_v14 = vadd.f32 %v16837_v3, %v3057_v31 }
 0x674   :  { %14231 = vpow2.f32 %v11063_v62  ;;  %v11064_v40 = vmul.f32 -1.442695, %v16863_v36 }
 0x675   :  { %14233 = vpow2.f32 %v11061_v33  ;;  %v11062_v6 = vmul.f32 -1.442695, %v16867_v14 }
 0x676   :  { %v14224_v15 = vpop.eup %14223  ;;  %14235 = vpow2.f32 %v11064_v40 }
 0x677   :  { %v14226_v34 = vpop.eup %14225  ;;  %v3359_v4 = vadd.f32 1.0, %v14224_v15 }
 0x678   :  { %v3357_v10 = vadd.f32 1.0, %v14226_v34  ;;  %v14228_v18 = vpop.eup %14227 }
 0x679   :  { %v14230_v23 = vpop.eup %14229  ;;  %v3360_v29 = vadd.f32 1.0, %v14228_v18 }
 0x67a   :  { %14237 = vrcp.f32 %v3357_v10  ;;  %v3358_v55 = vadd.f32 1.0, %v14230_v23 }
 0x67b   :  { %14239 = vpow2.f32 %v11062_v6 }
 0x67c   :  { %14241 = vrcp.f32 %v3359_v4 }
 0x67d   :  { %14243 = vrcp.f32 %v3358_v55 }
 0x67e   :  { %v14232_v8 = vpop.eup %14231  ;;  %14245 = vrcp.f32 %v3360_v29 }
 0x67f   :  { %v14234_v57 = vpop.eup %14233  ;;  %v3363_v63 = vadd.f32 1.0, %v14232_v8 }
 0x680   :  { %v3361_v41 = vadd.f32 1.0, %v14234_v57  ;;  %v14236_v49 = vpop.eup %14235 }
 0x681   :  { %v3364_v40 = vadd.f32 1.0, %v14236_v49  ;;  %v12391_v15 = vpop.f32.mrb[88].mxu0 }
 0x682   :  { %14247 = vrcp.f32 %v3361_v41  ;;  %v16873_v6 = vadd.f32 %v12391_v15, %v16837_v3  ;;  %v3070_v10 = vpop.f32.mrb[89].mxu0 }
 0x683   :  { %14249 = vrcp.f32 %v3363_v63  ;;  %v16876_v4 = vadd.f32 %v16837_v3, %v3070_v10  ;;  %v12392_v18 = vpop.f32.mrb[90].mxu0 }
 0x684   :  { %v14238_v13 = vpop.eup %14237  ;;  %v11067_v23 = vmul.f32 -1.442695, %v16873_v6  ;;  %v16882_v55 = vadd.f32 %v12392_v18, %v16837_v3  ;;  %v3073_v29 = vpop.f32.mrb[91].mxu0 }
 0x685   :  { %v14240_v62 = vpop.eup %14239  ;;  %3517 = vrot.lane.b32.xlu0 %v14238_v13, %s15326_s29  ;;  %v11065_v57 = vmul.f32 -1.442695, %v16876_v4  ;;  %v16886_v41 = vadd.f32 %v16837_v3, %v3073_v29 }
 0x686   :  { %v3362_v31 = vadd.f32 1.0, %v14240_v62  ;;  %v14242_v33 = vpop.eup %14241  ;;  %v11068_v49 = vmul.f32 -1.442695, %v16882_v55 }
 0x687   :  { %v14244_v34 = vpop.eup %14243  ;;  %v11066_v13 = vmul.f32 -1.442695, %v16886_v41 }
 0x688   :  { %14251 = vrcp.f32 %v3362_v31  ;;  %3519 = vrot.lane.b32.xlu1 %v14244_v34, %s15326_s29  ;;  %v14246_v8 = vpop.eup %14245 }
 0x689   :  { %3521 = vrot.lane.b32.xlu0 %v14242_v33, %s15326_s29  ;;  %14253 = vrcp.f32 %v3364_v40  ;;  %v12395_v62 = vpop.f32.mrb[92].mxu0 }
 0x68a   :  { %14255 = vpow2.f32 %v11067_v23  ;;  %v16893_v33 = vadd.f32 %v12395_v62, %v16837_v3  ;;  %v3086_v40 = vpop.f32.mrb[93].mxu0 }
 0x68b   :  { %14257 = vpow2.f32 %v11065_v57  ;;  %v16896_v15 = vadd.f32 %v16837_v3, %v3086_v40  ;;  %v12396_v34 = vpop.f32.mrb[94].mxu0 }
 0x68c   :  { %v14248_v63 = vpop.eup %14247  ;;  %3523 = vrot.lane.b32.xlu1 %v14246_v8, %s15326_s29  ;;  %14259 = vpow2.f32 %v11068_v49  ;;  %v11071_v18 = vmul.f32 -1.442695, %v16893_v33  ;;  %v16901_v23 = vadd.f32 %v12396_v34, %v16837_v3  ;;  %v3089_v29 = vpop.f32.mrb[95].mxu0 }
 0x68d   :  { %3525 = vrot.lane.b32.xlu0 %v14248_v63, %s15326_s29  ;;  %v14250_v31 = vpop.eup %14249  ;;  %14261 = vpow2.f32 %v11066_v13  ;;  %v11069_v8 = vmul.f32 -1.442695, %v16896_v15  ;;  %v16905_v57 = vadd.f32 %v16837_v3, %v3089_v29 }
 0x68e   :  { %14263 = vpow2.f32 %v11071_v18  ;;  %v11072_v49 = vmul.f32 -1.442695, %v16901_v23 }
 0x68f   :  { %14265 = vpow2.f32 %v11069_v8 }
 0x690   :  { %14267 = vpow2.f32 %v11072_v49 }
 0x691   :  { %3529 = vrot.lane.b32.xlu0 %v14250_v31, %s15326_s29  ;;  %v11070_v31 = vmul.f32 -1.442695, %v16905_v57  ;;  %v12399_v40 = vpop.f32.mrb[96].mxu0 }
 0x692   :  { %v14252_v10 = vpop.eup %14251  ;;  %v3102_v24 = vpop.f32.mrb[97].mxu0  ;;  %v16912_v29 = vadd.f32 %v12399_v40, %v16837_v3 }
 0x693   :  { %3527 = vrot.lane.b32.xlu1 %v14252_v10, %s15326_s29  ;;  %v14254_v63 = vpop.eup %14253  ;;  %v12400_v10 = vpop.f32.mrb[98].mxu0  ;;  %v16915_v28 = vadd.f32 %v16837_v3, %v3102_v24 }
 0x694   :  { %v14256_v13 = vpop.eup %14255  ;;  %v3105_v18 = vpop.f32.mrb[99].mxu0  ;;  %v16920_v40 = vadd.f32 %v12400_v10, %v16837_v3 }
 0x695   :  { %v14258_v62 = vpop.eup %14257  ;;  %v3367_v45 = vadd.f32 1.0, %v14256_v13  ;;  %v11073_v49 = vmul.f32 -1.442695, %v16915_v28  ;;  %v16923_v24 = vadd.f32 %v16837_v3, %v3105_v18 }
 0x696   :  { %v3365_v34 = vadd.f32 1.0, %v14258_v62  ;;  %v14260_v52 = vpop.eup %14259 }
 0x697   :  { %3531 = vrot.lane.b32.xlu1 %v14254_v63, %s15326_s29  ;;  %v14262_v8 = vpop.eup %14261  ;;  %v3368_v46 = vadd.f32 1.0, %v14260_v52  ;;  %v11075_v63 = vmul.f32 -1.442695, %v16912_v29 }
 0x698   :  { %14269 = vrcp.f32 %v3365_v34  ;;  %v3366_v5 = vadd.f32 1.0, %v14262_v8  ;;  %v14264_v62 = vpop.eup %14263 }
 0x699   :  { %14271 = vpow2.f32 %v11070_v31  ;;  %v14266_v13 = vpop.eup %14265  ;;  %v12403_v34 = vpop.f32.mrb[100].mxu0 }
 0x69a   :  { %14273 = vrcp.f32 %v3367_v45  ;;  %v3369_v59 = vadd.f32 1.0, %v14266_v13  ;;  %v3118_v31 = vpop.f32.mrb[101].mxu0  ;;  %v3371_v45 = vadd.f32 1.0, %v14264_v62  ;;  %v14268_v58 = vpop.eup %14267  ;;  %v16927_v10 = vadd.f32 %v12403_v34, %v16837_v3 }
 0x69b   :  { %14275 = vrcp.f32 %v3366_v5  ;;  %v12404_v52 = vpop.f32.mrb[102].mxu0  ;;  %v11076_v5 = vmul.f32 -1.442695, %v16920_v40  ;;  %v3372_v62 = vadd.f32 1.0, %v14268_v58 }
 0x69c   :  { %14277 = vrcp.f32 %v3368_v46  ;;  %v3121_v8 = vpop.f32.mrb[103].mxu0  ;;  %v11074_v46 = vmul.f32 -1.442695, %v16923_v24 }
 0x69d   :  { %14279 = vpow2.f32 %v11075_v63  ;;  %v16932_v63 = vadd.f32 %v16837_v3, %v3118_v31  ;;  %v16942_v58 = vadd.f32 %v16837_v3, %v3121_v8 }
 0x69e   :  { %14281 = vrcp.f32 %v3369_v59 }
 0x69f   :  { %14283 = vpow2.f32 %v11073_v49  ;;  %v11079_v49 = vmul.f32 -1.442695, %v16927_v10 }
 0x6a0   :  { %14285 = vrcp.f32 %v3371_v45 }
 0x6a1   :  { %14287 = vpow2.f32 %v11076_v5 }
 0x6a2   :  { %v14270_v50 = vpop.eup %14269 }
 0x6a3   :  { %v14272_v53 = vpop.eup %14271  ;;  %3533 = vrot.lane.b32.xlu0 %v14270_v50, %s15326_s29  ;;  %v11077_v50 = vmul.f32 -1.442695, %v16932_v63 }
 0x6a4   :  { %v3370_v18 = vadd.f32 1.0, %v14272_v53  ;;  %v14274_v59 = vpop.eup %14273  ;;  %v16939_v53 = vadd.f32 %v12404_v52, %v16837_v3  ;;  %v11078_v52 = vmul.f32 -1.442695, %v16942_v58 }
 0x6a5   :  { %v14276_v13 = vpop.eup %14275 }
 0x6a6   :  { %14289 = vrcp.f32 %v3370_v18  ;;  %3535 = vrot.lane.b32.xlu1 %v14276_v13, %s15326_s29  ;;  %v14278_v34 = vpop.eup %14277 }
 0x6a7   :  { %14291 = vpow2.f32 %v11074_v46  ;;  %3537 = vrot.lane.b32.xlu0 %v14274_v59, %s15326_s29  ;;  %v14280_v45 = vpop.eup %14279  ;;  %v11080_v59 = vmul.f32 -1.442695, %v16939_v53 }
 0x6a8   :  { %14293 = vrcp.f32 %v3372_v62  ;;  %v14282_v31 = vpop.eup %14281  ;;  %v3375_v46 = vadd.f32 1.0, %v14280_v45 }
 0x6a9   :  { %14295 = vpow2.f32 %v11079_v49  ;;  %v14284_v5 = vpop.eup %14283 }
 0x6aa   :  { %3539 = vrot.lane.b32.xlu1 %v14278_v34, %s15326_s29  ;;  %v3373_v18 = vadd.f32 1.0, %v14284_v5  ;;  %14297 = vpow2.f32 %v11077_v50  ;;  %v14286_v13 = vpop.eup %14285 }
 0x6ab   :  { %3541 = vrot.lane.b32.xlu0 %v14282_v31, %s15326_s29  ;;  %v14288_v62 = vpop.eup %14287 }
 0x6ac   :  { %14299 = vrcp.f32 %v3373_v18  ;;  %v3376_v50 = vadd.f32 1.0, %v14288_v62 }
 0x6ad   :  { %14301 = vrcp.f32 %v3375_v46 }
 0x6ae   :  { %14303 = vpow2.f32 %v11080_v59 }
 0x6af   :  { %3545 = vrot.lane.b32.xlu0 %v14286_v13, %s15326_s29  ;;  %14305 = vpow2.f32 %v11078_v52  ;;  %v12407_v5 = vpop.f32.mrb[104].mxu0 }
 0x6b0   :  { %v14290_v49 = vpop.eup %14289  ;;  %v16952_v11 = vadd.f32 %v12407_v5, %v16837_v3  ;;  %v3134_v13 = vpop.f32.mrb[105].mxu0 }
 0x6b1   :  { %v14292_v8 = vpop.eup %14291  ;;  %3543 = vrot.lane.b32.xlu1 %v14290_v49, %s15326_s29  ;;  %v16955_v59 = vadd.f32 %v16837_v3, %v3134_v13  ;;  %v12408_v49 = vpop.f32.mrb[106].mxu0 }
 0x6b2   :  { %v3374_v34 = vadd.f32 1.0, %v14292_v8  ;;  %v14294_v45 = vpop.eup %14293  ;;  %v11083_v52 = vmul.f32 -1.442695, %v16952_v11  ;;  %v16959_v62 = vadd.f32 %v12408_v49, %v16837_v3 }
 0x6b3   :  { %v14296_v31 = vpop.eup %14295 }
 0x6b4   :  { %14307 = vrcp.f32 %v3374_v34  ;;  %v14298_v18 = vpop.eup %14297  ;;  %v3379_v12 = vadd.f32 1.0, %v14296_v31  ;;  %v3137_v34 = vpop.f32.mrb[107].mxu0 }
 0x6b5   :  { %3547 = vrot.lane.b32.xlu1 %v14294_v45, %s15326_s29  ;;  %v3377_v46 = vadd.f32 1.0, %v14298_v18  ;;  %14309 = vrcp.f32 %v3376_v50  ;;  %v11081_v45 = vmul.f32 -1.442695, %v16955_v59  ;;  %v16964_v31 = vadd.f32 %v16837_v3, %v3137_v34 }
 0x6b6   :  { %v14300_v8 = vpop.eup %14299  ;;  %v11084_v50 = vmul.f32 -1.442695, %v16959_v62 }
 0x6b7   :  { %14311 = vrcp.f32 %v3377_v46  ;;  %3549 = vrot.lane.b32.xlu0 %v14300_v8, %s15326_s29  ;;  %v14302_v5 = vpop.eup %14301  ;;  %v12411_v49 = vpop.f32.mrb[108].mxu0  ;;  %v11082_v56 = vmul.f32 -1.442695, %v16964_v31 }
 0x6b8   :  { %v14304_v18 = vpop.eup %14303  ;;  %14313 = vrcp.f32 %v3379_v12  ;;  %v16970_v8 = vadd.f32 %v12411_v49, %v16837_v3  ;;  %v3150_v44 = vpop.f32.mrb[109].mxu0 }
 0x6b9   :  { %v14306_v13 = vpop.eup %14305  ;;  %14315 = vpow2.f32 %v11083_v52  ;;  %v3380_v34 = vadd.f32 1.0, %v14304_v18  ;;  %v16973_v12 = vadd.f32 %v16837_v3, %v3150_v44  ;;  %v12412_v52 = vpop.f32.mrb[110].mxu0 }
 0x6ba   :  { %v3378_v48 = vadd.f32 1.0, %v14306_v13  ;;  %14317 = vpow2.f32 %v11081_v45  ;;  %v3153_v45 = vpop.f32.mrb[111].mxu0  ;;  %v11087_v13 = vmul.f32 -1.442695, %v16970_v8  ;;  %v16979_v49 = vadd.f32 %v12412_v52, %v16837_v3 }
 0x6bb   :  { %3553 = vrot.lane.b32.xlu0 %v14302_v5, %s15326_s29  ;;  %v11085_v25 = vmul.f32 -1.442695, %v16973_v12  ;;  %v16983_v44 = vadd.f32 %v16837_v3, %v3153_v45 }
 0x6bc   :  { %14319 = vrcp.f32 %v3378_v48  ;;  %v11088_v27 = vmul.f32 -1.442695, %v16979_v49 }
 0x6bd   :  { %14321 = vpow2.f32 %v11084_v50  ;;  %v11086_v52 = vmul.f32 -1.442695, %v16983_v44 }
 0x6be   :  { %v14308_v46 = vpop.eup %14307  ;;  %14323 = vpow2.f32 %v11082_v56 }
 0x6bf   :  { %3551 = vrot.lane.b32.xlu1 %v14308_v46, %s15326_s29  ;;  %v14310_v5 = vpop.eup %14309  ;;  %14325 = vrcp.f32 %v3380_v34  ;;  %v12415_v18 = vpop.f32.mrb[112].mxu0 }
 0x6c0   :  { %14327 = vpow2.f32 %v11087_v13  ;;  %v3166_v56 = vpop.f32.mrb[113].mxu0 }
 0x6c1   :  { %v14312_v54 = vpop.eup %14311  ;;  %14329 = vpow2.f32 %v11085_v25  ;;  %v12416_v34 = vpop.f32.mrb[114].mxu0  ;;  %v16994_v13 = vadd.f32 %v16837_v3, %v3166_v56 }
 0x6c2   :  { %3557 = vrot.lane.b32.xlu0 %v14312_v54, %s15326_s29  ;;  %v14314_v48 = vpop.eup %14313  ;;  %v3169_v35 = vpop.f32.mrb[115].mxu0  ;;  %v16990_v54 = vadd.f32 %v12415_v18, %v16837_v3 }
 0x6c3   :  { %3555 = vrot.lane.b32.xlu1 %v14310_v5, %s15326_s29  ;;  %v14316_v50 = vpop.eup %14315 }
 0x6c4   :  { %v14318_v46 = vpop.eup %14317  ;;  %v3383_v9 = vadd.f32 1.0, %v14316_v50 }
 0x6c5   :  { %v3381_v47 = vadd.f32 1.0, %v14318_v46 }
 0x6c6   :  { %3561 = vrot.lane.b32.xlu0 %v14314_v48, %s15326_s29  ;;  %v14320_v45 = vpop.eup %14319  ;;  %v11091_v48 = vmul.f32 -1.442695, %v16990_v54 }
 0x6c7   :  { %v14322_v5 = vpop.eup %14321  ;;  %14331 = vrcp.f32 %v3381_v47  ;;  %3559 = vrot.lane.b32.xlu1 %v14320_v45, %s15326_s29  ;;  %v12419_v21 = vpop.f32.mrb[116].mxu0 }
 0x6c8   :  { %14333 = vpow2.f32 %v11088_v27  ;;  %v14324_v25 = vpop.eup %14323  ;;  %v3384_v39 = vadd.f32 1.0, %v14322_v5  ;;  %v3182_v50 = vpop.f32.mrb[117].mxu0  ;;  %v11089_v27 = vmul.f32 -1.442695, %v16994_v13  ;;  %v17009_v2 = vadd.f32 %v12419_v21, %v16837_v3 }
 0x6c9   :  { %14335 = vpow2.f32 %v11086_v52  ;;  %v14326_v46 = vpop.eup %14325  ;;  %v3382_v7 = vadd.f32 1.0, %v14324_v25  ;;  %v12420_v18 = vpop.f32.mrb[118].mxu0  ;;  %v17000_v52 = vadd.f32 %v12416_v34, %v16837_v3 }
 0x6ca   :  { %14337 = vrcp.f32 %v3383_v9  ;;  %v14328_v47 = vpop.eup %14327  ;;  %v3185_v56 = vpop.f32.mrb[119].mxu0  ;;  %v17003_v9 = vadd.f32 %v16837_v3, %v3169_v35  ;;  %v17012_v35 = vadd.f32 %v16837_v3, %v3182_v50 }
 0x6cb   :  { %3563 = vrot.lane.b32.xlu1 %v14326_v46, %s15326_s29  ;;  %14339 = vrcp.f32 %v3382_v7  ;;  %v14330_v45 = vpop.eup %14329  ;;  %v3387_v25 = vadd.f32 1.0, %v14328_v47  ;;  %v11092_v7 = vmul.f32 -1.442695, %v17000_v52 }
 0x6cc   :  { %14341 = vrcp.f32 %v3384_v39  ;;  %v3385_v5 = vadd.f32 1.0, %v14330_v45  ;;  %v11090_v34 = vmul.f32 -1.442695, %v17003_v9  ;;  %v11093_v21 = vmul.f32 -1.442695, %v17012_v35 }
 0x6cd   :  { %14343 = vpow2.f32 %v11091_v48 }
 0x6ce   :  { %14345 = vrcp.f32 %v3385_v5 }
 0x6cf   :  { %14347 = vpow2.f32 %v11089_v27 }
 0x6d0   :  { %14349 = vrcp.f32 %v3387_v25  ;;  %v17022_v25 = vadd.f32 %v16837_v3, %v3185_v56 }
 0x6d1   :  { %v14332_v22 = vpop.eup %14331  ;;  %14351 = vpow2.f32 %v11092_v7 }
 0x6d2   :  { %v14334_v46 = vpop.eup %14333  ;;  %3565 = vrot.lane.b32.xlu0 %v14332_v22, %s15326_s29  ;;  %v11095_v22 = vmul.f32 -1.442695, %v17009_v2 }
 0x6d3   :  { %v14336_v20 = vpop.eup %14335  ;;  %v3388_v45 = vadd.f32 1.0, %v14334_v46 }
 0x6d4   :  { %v3386_v39 = vadd.f32 1.0, %v14336_v20  ;;  %v14338_v48 = vpop.eup %14337  ;;  %v17019_v20 = vadd.f32 %v12420_v18, %v16837_v3  ;;  %v11094_v18 = vmul.f32 -1.442695, %v17022_v25 }
 0x6d5   :  { %v14340_v47 = vpop.eup %14339 }
 0x6d6   :  { %14353 = vrcp.f32 %v3386_v39  ;;  %3569 = vrot.lane.b32.xlu0 %v14338_v48, %s15326_s29  ;;  %3567 = vrot.lane.b32.xlu1 %v14340_v47, %s15326_s29  ;;  %v14342_v27 = vpop.eup %14341  ;;  %v11096_v39 = vmul.f32 -1.442695, %v17019_v20 }
 0x6d7   :  { %14355 = vpow2.f32 %v11090_v34  ;;  %v14344_v5 = vpop.eup %14343 }
 0x6d8   :  { %v14346_v50 = vpop.eup %14345  ;;  %14357 = vrcp.f32 %v3388_v45  ;;  %v3391_v46 = vadd.f32 1.0, %v14344_v5 }
 0x6d9   :  { %v14348_v7 = vpop.eup %14347  ;;  %14359 = vpow2.f32 %v11095_v22 }
 0x6da   :  { %3571 = vrot.lane.b32.xlu1 %v14342_v27, %s15326_s29  ;;  %3573 = vrot.lane.b32.xlu0 %v14346_v50, %s15326_s29  ;;  %v3389_v34 = vadd.f32 1.0, %v14348_v7  ;;  %14361 = vpow2.f32 %v11093_v21  ;;  %v14350_v48 = vpop.eup %14349 }
 0x6db   :  { %v14352_v47 = vpop.eup %14351 }
 0x6dc   :  { %14363 = vrcp.f32 %v3389_v34  ;;  %v3392_v27 = vadd.f32 1.0, %v14352_v47 }
 0x6dd   :  { %14365 = vrcp.f32 %v3391_v46 }
 0x6de   :  { %3577 = vrot.lane.b32.xlu0 %v14350_v48, %s15326_s29  ;;  %14367 = vpow2.f32 %v11096_v39 }
 0x6df   :  { %14369 = vpow2.f32 %v11094_v18 }
 0x6e0   :  { %v14354_v3 = vpop.eup %14353 }
 0x6e1   :  { %v14356_v56 = vpop.eup %14355  ;;  %3575 = vrot.lane.b32.xlu1 %v14354_v3, %s15326_s29 }
 0x6e2   :  { %v3390_v45 = vadd.f32 1.0, %v14356_v56  ;;  %v14358_v22 = vpop.eup %14357 }
 0x6e3   :  { %v14360_v21 = vpop.eup %14359 }
 0x6e4   :  { %14371 = vrcp.f32 %v3390_v45  ;;  %v14362_v5 = vpop.eup %14361  ;;  %v3395_v34 = vadd.f32 1.0, %v14360_v21 }
 0x6e5   :  { %3579 = vrot.lane.b32.xlu1 %v14358_v22, %s15326_s29  ;;  %v3393_v50 = vadd.f32 1.0, %v14362_v5  ;;  %14373 = vrcp.f32 %v3392_v27 }
 0x6e6   :  { %v14364_v7 = vpop.eup %14363 }
 0x6e7   :  { %14375 = vrcp.f32 %v3393_v50  ;;  %3581 = vrot.lane.b32.xlu0 %v14364_v7, %s15326_s29  ;;  %v14366_v46 = vpop.eup %14365 }
 0x6e8   :  { %v14368_v39 = vpop.eup %14367  ;;  %14377 = vtanh.f32 %v16843_v16 }
 0x6e9   :  { %v14370_v48 = vpop.eup %14369  ;;  %14379 = vtanh.f32 %v16851_v26  ;;  %v3396_v3 = vadd.f32 1.0, %v14368_v39 }
 0x6ea   :  { %14381 = vrcp.f32 %v3395_v34  ;;  %v3394_v18 = vadd.f32 1.0, %v14370_v48 }
 0x6eb   :  { %3585 = vrot.lane.b32.xlu0 %v14366_v46, %s15326_s29  ;;  %14383 = vtanh.f32 %v16840_v19 }
 0x6ec   :  { %14385 = vrcp.f32 %v3394_v18 }
 0x6ed   :  { %14387 = vtanh.f32 %v16847_v0 }
 0x6ee   :  { %v14372_v47 = vpop.eup %14371  ;;  %14389 = vrcp.f32 %v3396_v3 }
 0x6ef   :  { %3583 = vrot.lane.b32.xlu1 %v14372_v47, %s15326_s29  ;;  %v14374_v56 = vpop.eup %14373  ;;  %14391 = vtanh.f32 %v16859_v60 }
 0x6f0   :  { %14393 = vtanh.f32 %v16867_v14 }
 0x6f1   :  { %v14376_v22 = vpop.eup %14375  ;;  %14395 = vtanh.f32 %v16856_v17 }
 0x6f2   :  { %3589 = vrot.lane.b32.xlu0 %v14376_v22, %s15326_s29  ;;  %v14378_v16 = vpop.eup %14377  ;;  %14397 = vtanh.f32 %v16863_v36 }
 0x6f3   :  { %3587 = vrot.lane.b32.xlu1 %v14374_v56, %s15326_s29  ;;  %v14380_v26 = vpop.eup %14379  ;;  %14399 = vtanh.f32 %v16876_v4 }
 0x6f4   :  { %v14382_v21 = vpop.eup %14381  ;;  %14401 = vtanh.f32 %v16886_v41 }
 0x6f5   :  { %v14384_v0 = vpop.eup %14383  ;;  %14403 = vtanh.f32 %v16873_v6 }
 0x6f6   :  { %3593 = vrot.lane.b32.xlu0 %v14382_v21, %s15326_s29  ;;  %v14386_v7 = vpop.eup %14385  ;;  %14405 = vtanh.f32 %v16882_v55 }
 0x6f7   :  { %v3518_v45 = vpop.permute.xlu0 %3517  ;;  %v14388_v46 = vpop.eup %14387  ;;  %3591 = vrot.lane.b32.xlu1 %v14386_v7, %s15326_s29  ;;  %14407 = vtanh.f32 %v16896_v15 }
 0x6f8   :  { %v3637_v5 = vmul.f32 %v14378_v16, %v3518_v45  ;;  %v14390_v18 = vpop.eup %14389  ;;  %14409 = vtanh.f32 %v16905_v57 }
 0x6f9   :  { %v14392_v3 = vpop.eup %14391  ;;  %14411 = vtanh.f32 %v16893_v33 }
 0x6fa   :  { %v3520_v19 = vpop.permute.xlu1 %3519  ;;  %v14394_v56 = vpop.eup %14393  ;;  %14413 = vtanh.f32 %v16901_v23 }
 0x6fb   :  { %v3522_v27 = vpop.permute.xlu0 %3521  ;;  %v3638_v50 = vmul.f32 %v14380_v26, %v3520_v19  ;;  %3595 = vrot.lane.b32.xlu1 %v14390_v18, %s15326_s29  ;;  %v14396_v16 = vpop.eup %14395  ;;  %14415 = vtanh.f32 %v16915_v28  ;;  %v17062_v28 = vld [vmem:[%s19602_s1 + $0x8] sm:$0xff]  }
 0x6fc   :  { %v3639_v39 = vmul.f32 %v14384_v0, %v3522_v27  ;;  %v14398_v19 = vpop.eup %14397  ;;  %14417 = vtanh.f32 %v16923_v24 }
 0x6fd   :  { %v3677_v34 = vpack.c.bf16 %v3638_v50, %v3637_v5  ;;  %v14400_v7 = vpop.eup %14399  ;;  %14419 = vtanh.f32 %v16912_v29  ;;  %v17069_v29 = vld [vmem:[%s19602_s1 + $0x10] sm:$0xff]  }
 0x6fe   :  { %v3524_v60 = vpop.permute.xlu1 %3523  ;;  %14421 = vtanh.f32 %v16920_v40 }
 0x6ff   :  { %v3640_v14 = vmul.f32 %v14388_v46, %v3524_v60  ;;  %12421 = vmatprep.subr.bf16.mxu0 %v3677_v34  ;;  %v3526_v48 = vpop.permute.xlu0 %3525  ;;  %14423 = vtanh.f32 %v16932_v63 }
 0x700   :  { %12422 = vmatpush3.bf16.msra.mxu0 %v3677_v34  ;;  %v3641_v45 = vmul.f32 %v14392_v3, %v3526_v48  ;;  %v14402_v34 = vpop.eup %14401  ;;  %14425 = vtanh.f32 %v16942_v58  ;;  %v17078_v58 = vld [vmem:[%s19602_s1 + $0x18] sm:$0xff]  }
 0x701   :  { %v3678_v47 = vpack.c.bf16 %v3640_v14, %v3639_v39  ;;  %v14404_v48 = vpop.eup %14403  ;;  %14427 = vtanh.f32 %v16927_v10  ;;  %v17084_v10 = vld [vmem:[%s19602_s1 + $0x20] sm:$0xff]  }
 0x702   :  { %v14406_v41 = vpop.eup %14405  ;;  %14429 = vtanh.f32 %v16939_v53 }
 0x703   :  { %12423 = vmatprep.subr.bf16.mxu0 %v3678_v47  ;;  %v3530_v36 = vpop.permute.xlu0 %3529  ;;  %v14408_v3 = vpop.eup %14407  ;;  %14431 = vtanh.f32 %v16955_v59 }
 0x704   :  { %12424 = vmatpush3.bf16.msra.mxu0 %v3678_v47  ;;  %v3643_v21 = vmul.f32 %v14396_v16, %v3530_v36  ;;  %v14410_v57 = vpop.eup %14409  ;;  %14433 = vtanh.f32 %v16964_v31  ;;  %v17112_v31 = vld [vmem:[%s19602_s1] sm:$0xff]  }
 0x705   :  { %v3528_v17 = vpop.permute.xlu1 %3527  ;;  %v14412_v33 = vpop.eup %14411  ;;  %14435 = vtanh.f32 %v16952_v11 }
 0x706   :  { %v3642_v22 = vmul.f32 %v14394_v56, %v3528_v17  ;;  %v14414_v23 = vpop.eup %14413  ;;  %14437 = vtanh.f32 %v16959_v62 }
 0x707   :  { %14439 = vtanh.f32 %v16973_v12 }
 0x708   :  { %v3679_v26 = vpack.c.bf16 %v3642_v22, %v3641_v45  ;;  %14441 = vtanh.f32 %v16983_v44 }
 0x709   :  { %v3532_v27 = vpop.permute.xlu1 %3531  ;;  %14443 = vtanh.f32 %v16970_v8 }
 0x70a   :  { %v3644_v5 = vmul.f32 %v14398_v19, %v3532_v27  ;;  %12425 = vmatprep.subr.bf16.mxu0 %v3679_v26  ;;  %14445 = vtanh.f32 %v16979_v49 }
 0x70b   :  { %12426 = vmatpush3.bf16.msra.mxu0 %v3679_v26 }
 0x70c   :  { %v3680_v50 = vpack.c.bf16 %v3644_v5, %v3643_v21  ;;  %v14416_v5 = vpop.eup %14415  ;;  %14447 = vtanh.f32 %v16994_v13 }
 0x70d   :  { %v14418_v24 = vpop.eup %14417  ;;  %14449 = vtanh.f32 %v17003_v9 }
 0x70e   :  { %12427 = vmatprep.subr.bf16.mxu0 %v3680_v50 }
 0x70f   :  { %12428 = vmatpush3.bf16.msra.mxu0 %v3680_v50 }
 0x715   :  { %v3534_v0 = vpop.permute.xlu0 %3533 }
 0x716   :  { %v3645_v39 = vmul.f32 %v14400_v7, %v3534_v0 }
 0x718   :  { %v3536_v46 = vpop.permute.xlu1 %3535 }
 0x719   :  { %v3538_v60 = vpop.permute.xlu0 %3537  ;;  %v3646_v14 = vmul.f32 %v14402_v34, %v3536_v46  ;;  %v14420_v34 = vpop.eup %14419  ;;  %14451 = vtanh.f32 %v16990_v54 }
 0x71a   :  { %v3647_v55 = vmul.f32 %v14404_v48, %v3538_v60  ;;  %v14422_v60 = vpop.eup %14421  ;;  %14453 = vtanh.f32 %v17000_v52 }
 0x71b   :  { %v3681_v4 = vpack.c.bf16 %v3646_v14, %v3645_v39  ;;  %v14424_v53 = vpop.eup %14423  ;;  %14455 = vtanh.f32 %v17012_v35 }
 0x71c   :  { %v3540_v6 = vpop.permute.xlu1 %3539 }
 0x71d   :  { %v3648_v18 = vmul.f32 %v14406_v41, %v3540_v6  ;;  %12429 = vmatprep.subr.bf16.mxu0 %v3681_v4  ;;  %v3542_v15 = vpop.permute.xlu0 %3541  ;;  %v14426_v41 = vpop.eup %14425  ;;  %14457 = vtanh.f32 %v17022_v25 }
 0x71e   :  { %12430 = vmatpush3.bf16.msra.mxu0 %v3681_v4  ;;  %v3649_v17 = vmul.f32 %v14408_v3, %v3542_v15 }
 0x71f   :  { %v3682_v47 = vpack.c.bf16 %v3648_v18, %v3647_v55 }
 0x721   :  { %12431 = vmatprep.subr.bf16.mxu0 %v3682_v47  ;;  %v3546_v22 = vpop.permute.xlu0 %3545 }
 0x722   :  { %12432 = vmatpush3.bf16.msra.mxu0 %v3682_v47  ;;  %v3651_v26 = vmul.f32 %v14412_v33, %v3546_v22  ;;  %v14428_v47 = vpop.eup %14427  ;;  %v17097_v33 = vld [vmem:[%s19602_s1 + $0x30] sm:$0xff]   ;;  %14459 = vtanh.f32 %v17009_v2 }
 0x723   :  { %v3544_v56 = vpop.permute.xlu1 %3543 }
 0x724   :  { %v3650_v45 = vmul.f32 %v14410_v57, %v3544_v56  ;;  %v14430_v57 = vpop.eup %14429  ;;  %14461 = vtanh.f32 %v17019_v20 }
 0x725   :  { %v14432_v11 = vpop.eup %14431 }
 0x726   :  { %v3683_v36 = vpack.c.bf16 %v3650_v45, %v3649_v17  ;;  %v17090_v17 = vld [vmem:[%s19602_s1 + $0x28] sm:$0xff]   ;;  %v14434_v62 = vpop.eup %14433 }
 0x727   :  { %v3548_v16 = vpop.permute.xlu1 %3547 }
 0x728   :  { %v3652_v19 = vmul.f32 %v14414_v23, %v3548_v16  ;;  %12433 = vmatprep.subr.bf16.mxu0 %v3683_v36  ;;  %v17106_v23 = vld [vmem:[%s19602_s1 + $0x38] sm:$0xff]  }
 0x729   :  { %12434 = vmatpush3.bf16.msra.mxu0 %v3683_v36  ;;  %v3550_v21 = vpop.permute.xlu0 %3549 }
 0x72a   :  { %v3684_v27 = vpack.c.bf16 %v3652_v19, %v3651_v26  ;;  %v3653_v40 = vmul.f32 %v14416_v5, %v3550_v21  ;;  %v14436_v21 = vpop.eup %14435 }
 0x72c   :  { %12435 = vmatprep.subr.bf16.mxu0 %v3684_v27 }
 0x72d   :  { %12436 = vmatpush3.bf16.msra.mxu0 %v3684_v27  ;;  %v3554_v7 = vpop.permute.xlu0 %3553 }
 0x72e   :  { %v3655_v63 = vmul.f32 %v14420_v34, %v3554_v7 }
 0x730   :  { %12438 = vmatmul.mubr.bf16.vlgmr.msra.gmra.mrb[120].mxu0 %v17062_v28 }
 0x731   :  { %v3552_v50 = vpop.permute.xlu1 %3551  ;;  %12441 = vmatprep.mubr.bf16.mxu0 %v17069_v29 }
 0x732   :  { %v3654_v0 = vmul.f32 %v14418_v24, %v3552_v50  ;;  %v14438_v24 = vpop.eup %14437 }
 0x733   :  { %v14440_v34 = vpop.eup %14439 }
 0x734   :  { %v3685_v46 = vpack.c.bf16 %v3654_v0, %v3653_v40  ;;  %v3558_v4 = vpop.permute.xlu0 %3557  ;;  %v14442_v44 = vpop.eup %14441 }
 0x735   :  { %v3556_v39 = vpop.permute.xlu1 %3555  ;;  %v3657_v55 = vmul.f32 %v14424_v53, %v3558_v4  ;;  %v14444_v8 = vpop.eup %14443 }
 0x736   :  { %v3656_v14 = vmul.f32 %v14422_v60, %v3556_v39  ;;  %12453 = vmatprep.subr.bf16.mxu1 %v3685_v46  ;;  %v14446_v49 = vpop.eup %14445 }
 0x737   :  { %12454 = vmatpush3.bf16.msra.mxu1 %v3685_v46 }
 0x738   :  { %v3686_v48 = vpack.c.bf16 %v3656_v14, %v3655_v63  ;;  %12442 = vmatmul.mubr.bf16.gmra.mrb[124].mxu0 %v17078_v58  ;;  %v3562_v15 = vpop.permute.xlu0 %3561 }
 0x739   :  { %12445 = vmatprep.mubr.bf16.mxu0 %v17084_v10  ;;  %v3560_v6 = vpop.permute.xlu1 %3559  ;;  %v3659_v45 = vmul.f32 %v14428_v47, %v3562_v15 }
 0x73a   :  { %12455 = vmatprep.subr.bf16.mxu1 %v3686_v48  ;;  %v3658_v18 = vmul.f32 %v14426_v41, %v3560_v6 }
 0x73b   :  { %12456 = vmatpush3.bf16.msra.mxu1 %v3686_v48 }
 0x73c   :  { %v3687_v3 = vpack.c.bf16 %v3658_v18, %v3657_v55  ;;  %v14448_v55 = vpop.eup %14447 }
 0x73d   :  { %v3564_v56 = vpop.permute.xlu1 %3563  ;;  %v14450_v13 = vpop.eup %14449 }
 0x73e   :  { %v3660_v22 = vmul.f32 %v14430_v57, %v3564_v56  ;;  %12457 = vmatprep.subr.bf16.mxu1 %v3687_v3  ;;  %v14452_v47 = vpop.eup %14451 }
 0x73f   :  { %12458 = vmatpush3.bf16.msra.mxu1 %v3687_v3  ;;  %v14454_v52 = vpop.eup %14453 }
 0x740   :  { %12446 = vmatmul.mubr.bf16.gmra.mrb[128].mxu0 %v17090_v17  ;;  %v3688_v36 = vpack.c.bf16 %v3660_v22, %v3659_v45  ;;  %v14456_v25 = vpop.eup %14455 }
 0x741   :  { %12449 = vmatprep.mubr.bf16.mxu0 %v17097_v33 }
 0x742   :  { %12459 = vmatprep.subr.bf16.mxu1 %v3688_v36 }
 0x743   :  { %12460 = vmatpush3.bf16.msra.mxu1 %v3688_v36  ;;  %v14458_v36 = vpop.eup %14457 }
 0x744   :  { %v3566_v59 = vpop.permute.xlu0 %3565 }
 0x745   :  { %v3661_v19 = vmul.f32 %v14432_v11, %v3566_v59 }
 0x748   :  { %12450 = vmatmul.mubr.bf16.gmra.mrb[132].mxu0 %v17106_v23  ;;  %v3568_v16 = vpop.permute.xlu1 %3567  ;;  %v3570_v26 = vpop.permute.xlu0 %3569 }
 0x749   :  { %12493 = vmatprep.mubr.msk.bf16.mxu0 %vm939_vm3, %v17112_v31  ;;  %v3662_v27 = vmul.f32 %v14434_v62, %v3568_v16  ;;  %v3663_v40 = vmul.f32 %v14436_v21, %v3570_v26  ;;  %v14460_v16 = vpop.eup %14459 }
 0x74a   :  { %v14462_v26 = vpop.eup %14461 }
 0x74b   :  { %v3689_v5 = vpack.c.bf16 %v3662_v27, %v3661_v19 }
 0x74c   :  { %v3572_v50 = vpop.permute.xlu1 %3571  ;;  %v3574_v7 = vpop.permute.xlu0 %3573 }
 0x74d   :  { %v3664_v0 = vmul.f32 %v14438_v24, %v3572_v50  ;;  %12461 = vmatprep.subr.bf16.mxu1 %v3689_v5  ;;  %v3665_v60 = vmul.f32 %v14440_v34, %v3574_v7 }
 0x74e   :  { %12462 = vmatpush3.bf16.msra.mxu1 %v3689_v5  ;;  %v13739_v5 = vld [vmem:[%s19609_s8 + $0x10] sm:$0xff]  }
 0x74f   :  { %v3690_v12 = vpack.c.bf16 %v3664_v0, %v3663_v40 }
 0x750   :  { %v3578_v63 = vpop.permute.xlu0 %3577 }
 0x751   :  { %12463 = vmatprep.subr.bf16.mxu1 %v3690_v12  ;;  %v3667_v4 = vmul.f32 %v14444_v8, %v3578_v63 }
 0x752   :  { %12464 = vmatpush3.bf16.msra.mxu1 %v3690_v12 }
 0x753   :  { %v3576_v46 = vpop.permute.xlu1 %3575 }
 0x754   :  { %v3666_v39 = vmul.f32 %v14442_v44, %v3576_v46 }
 0x756   :  { %v3691_v14 = vpack.c.bf16 %v3666_v39, %v3665_v60 }
 0x757   :  { %v3580_v48 = vpop.permute.xlu1 %3579 }
 0x758   :  { %v3668_v53 = vmul.f32 %v14446_v49, %v3580_v48  ;;  %12465 = vmatprep.subr.bf16.mxu1 %v3691_v14 }
 0x759   :  { %12466 = vmatpush3.bf16.msra.mxu1 %v3691_v14  ;;  %v3582_v6 = vpop.permute.xlu0 %3581 }
 0x75a   :  { %v3692_v41 = vpack.c.bf16 %v3668_v53, %v3667_v4  ;;  %v3669_v18 = vmul.f32 %v14448_v55, %v3582_v6 }
 0x75c   :  { %12467 = vmatprep.subr.bf16.mxu1 %v3692_v41 }
 0x75d   :  { %12468 = vmatpush3.bf16.msra.mxu1 %v3692_v41  ;;  %v3586_v54 = vpop.permute.xlu0 %3585 }
 0x75e   :  { %v3671_v56 = vmul.f32 %v14452_v47, %v3586_v54 }
 0x760   :  { %12470 = vmatmul.mubr.bf16.vlgmr.msra.gmra.mrb[124].mxu1 %v17062_v28 }
 0x761   :  { %v3584_v9 = vpop.permute.xlu1 %3583  ;;  %12473 = vmatprep.mubr.bf16.mxu1 %v17069_v29 }
 0x762   :  { %v3670_v15 = vmul.f32 %v14450_v13, %v3584_v9 }
 0x764   :  { %v3693_v3 = vpack.c.bf16 %v3670_v15, %v3669_v18  ;;  %v3590_v22 = vpop.permute.xlu0 %3589 }
 0x765   :  { %v3588_v57 = vpop.permute.xlu1 %3587  ;;  %v3673_v11 = vmul.f32 %v14456_v25, %v3590_v22 }
 0x766   :  { %v3672_v45 = vmul.f32 %v14454_v52, %v3588_v57  ;;  %12485 = vmatprep.subr.bf16.mxu0 %v3693_v3 }
 0x767   :  { %12486 = vmatpush3.bf16.msra.mxu0 %v3693_v3 }
 0x768   :  { %v3694_v35 = vpack.c.bf16 %v3672_v45, %v3671_v56  ;;  %12474 = vmatmul.mubr.bf16.gmra.mrb[128].mxu1 %v17078_v58  ;;  %v3594_v62 = vpop.permute.xlu0 %3593 }
 0x769   :  { %12477 = vmatprep.mubr.bf16.mxu1 %v17084_v10  ;;  %v3592_v59 = vpop.permute.xlu1 %3591  ;;  %v3675_v27 = vmul.f32 %v14460_v16, %v3594_v62 }
 0x76a   :  { %12487 = vmatprep.subr.bf16.mxu0 %v3694_v35  ;;  %v3674_v2 = vmul.f32 %v14458_v36, %v3592_v59 }
 0x76b   :  { %12488 = vmatpush3.bf16.msra.mxu0 %v3694_v35 }
 0x76c   :  { %v3695_v20 = vpack.c.bf16 %v3674_v2, %v3673_v11 }
 0x76d   :  { %v3596_v19 = vpop.permute.xlu1 %3595 }
 0x76e   :  { %v3676_v21 = vmul.f32 %v14462_v26, %v3596_v19  ;;  %12489 = vmatprep.subr.bf16.mxu0 %v3695_v20 }
 0x76f   :  { %12490 = vmatpush3.bf16.msra.mxu0 %v3695_v20 }
 0x770   :  { %12478 = vmatmul.mubr.bf16.gmra.mrb[132].mxu1 %v17090_v17  ;;  %v3696_v10 = vpack.c.bf16 %v3676_v21, %v3675_v27  ;;  %v13740_v17 = vld [vmem:[%s19609_s8 + $0x18] sm:$0xff]  }
 0x771   :  { %12481 = vmatprep.mubr.bf16.mxu1 %v17097_v33 }
 0x772   :  { %12491 = vmatprep.subr.bf16.mxu0 %v3696_v10 }
 0x773   :  { %12492 = vmatpush3.bf16.msra.mxu0 %v3696_v10 }
 0x774   :  { %12501 = vmatprep.subr.bf16.mxu0 %v13739_v5 }
 0x776   :  { %12494 = vmatmul.mubr.msk.bf16.vlgmr.msra.gmra.mrb[136].mxu0 %vm939_vm3, %v17062_v28 }
 0x777   :  { %12497 = vmatprep.mubr.msk.bf16.mxu0 %vm939_vm3, %v17069_v29  ;;  %12502 = vmatpush3.bf16.msra.mxu0 %v13739_v5 }
 0x778   :  { %12482 = vmatmul.mubr.bf16.gmra.mrb[136].mxu1 %v17106_v23  ;;  %12503 = vmatprep.subr.bf16.mxu0 %v13740_v17 }
 0x779   :  { %4371 = vmatprep.mubr.bf16.mxu1 %v19778_v43 }
 0x77b   :  { %12504 = vmatpush3.bf16.msra.mxu0 %v13740_v17 }
 0x77e   :  { %12498 = vmatmul.mubr.msk.bf16.gmra.mrb[140].mxu0 %vm939_vm3, %v17078_v58 }
 0x803   :  { %v12439_v33 = vpop.f32.mrb[120].mxu0 }
 0x804   :  { %v3731_v23 = vpop.f32.mrb[121].mxu0 }
 0x805   :  { %v12440_v24 = vpop.f32.mrb[122].mxu0 }
 0x806   :  { %v3969_v50 = vpack.c.bf16 %v12440_v24, %v12439_v33  ;;  %v3734_v28 = vpop.f32.mrb[123].mxu0 }
 0x807   :  { %v3968_v40 = vpack.c.bf16 %v3734_v28, %v3731_v23 }
 0x809   :  { %12505 = vmatprep.mubr.msk.bf16.mxu0 %vm576_vm2, %v3968_v40 }
 0x80a   :  { %12506 = vmatmul.mubr.msk.bf16.vlgmr.msra.gmra.mrb[144].mxu0 %vm576_vm2, %v3969_v50 }
 0x80b   :  { %v12443_v29 = vpop.f32.mrb[124].mxu0 }
 0x80c   :  { %v3747_v0 = vpop.f32.mrb[125].mxu0 }
 0x80d   :  { %v12444_v7 = vpop.f32.mrb[126].mxu0 }
 0x80e   :  { %v3971_v58 = vpack.c.bf16 %v12444_v7, %v12443_v29  ;;  %v3750_v12 = vpop.f32.mrb[127].mxu0  ;;  %v13741_v29 = vld [vmem:[#allocation6 + $0x40] ss:$8 sps:$4 sm:$0xff]   ;;  %v13746_v7 = vld [vmem:[#allocation6 + $0x54] ss:$8 sps:$4 sm:$0xff]  }
 0x80f   :  { %v3970_v34 = vpack.c.bf16 %v3750_v12, %v3747_v0  ;;  %v13743_v0 = vld [vmem:[#allocation6 + $0x44] ss:$8 sps:$4 sm:$0xff]  }
 0x810   :  { %4339 = vmatprep.subr.bf16.mxu1 %v13743_v0  ;;  %v17169_v12 = vld [vmem:[#allocation4 + $0x40] sm:$0xff]  }
 0x811   :  { %12509 = vmatprep.mubr.msk.bf16.mxu0 %vm576_vm2, %v3970_v34  ;;  %4340 = vmatpush1.bf16.msra.mxu1 %v13741_v29 }
 0x812   :  { %12510 = vmatmul.mubr.msk.bf16.gmra.mrb[148].mxu0 %vm576_vm2, %v3971_v58  ;;  %v13744_v58 = vld [vmem:[#allocation6 + $0x50] ss:$8 sps:$4 sm:$0xff]   ;;  %4341 = vmatprep.subr.bf16.mxu1 %v13746_v7 }
 0x813   :  { %v12447_v44 = vpop.f32.mrb[128].mxu0  ;;  %v19871_v7 = vld [vmem:[#allocation33_spill] sm:$0xff] }
 0x814   :  { %v3763_v46 = vpop.f32.mrb[129].mxu0 }
 0x815   :  { %v12448_v60 = vpop.f32.mrb[130].mxu0  ;;  %4342 = vmatpush1.bf16.msra.mxu1 %v13744_v58 }
 0x816   :  { %v3973_v39 = vpack.c.bf16 %v12448_v60, %v12447_v44  ;;  %v3766_v63 = vpop.f32.mrb[131].mxu0  ;;  %12545 = vmatprep.subr.bf16.mxu1 %v17169_v12 }
 0x817   :  { %v3972_v8 = vpack.c.bf16 %v3766_v63, %v3763_v46 }
 0x819   :  { %12513 = vmatprep.mubr.msk.bf16.mxu0 %vm576_vm2, %v3972_v8 }
 0x81a   :  { %12514 = vmatmul.mubr.msk.bf16.gmra.mrb[152].mxu0 %vm576_vm2, %v3973_v39  ;;  %v17180_v39 = vld [vmem:[#allocation7 + $0x1] ss:$0 sm:$0xff] }
 0x81b   :  { %v12451_v14 = vpop.f32.mrb[132].mxu0 }
 0x81c   :  { %v3779_v49 = vpop.f32.mrb[133].mxu0 }
 0x81d   :  { %v12452_v48 = vpop.f32.mrb[134].mxu0 }
 0x81e   :  { %v3975_v4 = vpack.c.bf16 %v12452_v48, %v12451_v14  ;;  %v3782_v53 = vpop.f32.mrb[135].mxu0 }
 0x81f   :  { %v3974_v41 = vpack.c.bf16 %v3782_v53, %v3779_v49 }
 0x821   :  { %12517 = vmatprep.mubr.msk.bf16.mxu0 %vm576_vm2, %v3974_v41 }
 0x822   :  { %12518 = vmatmul.mubr.msk.bf16.gmra.mrb[156].mxu0 %vm576_vm2, %v3975_v4 }
 0x833   :  { %v12471_v6 = vpop.f32.mrb[124].mxu1 }
 0x834   :  { %v3828_v55 = vpop.f32.mrb[125].mxu1 }
 0x835   :  { %v12472_v13 = vpop.f32.mrb[126].mxu1 }
 0x836   :  { %v3977_v9 = vpack.c.bf16 %v12472_v13, %v12471_v6  ;;  %v3831_v18 = vpop.f32.mrb[127].mxu1 }
 0x837   :  { %v3976_v15 = vpack.c.bf16 %v3831_v18, %v3828_v55 }
 0x839   :  { %12521 = vmatprep.mubr.msk.bf16.mxu0 %vm576_vm2, %v3976_v15 }
 0x83a   :  { %12522 = vmatmul.mubr.msk.bf16.gmra.mrb[160].mxu0 %vm576_vm2, %v3977_v9 }
 0x83b   :  { %v12475_v54 = vpop.f32.mrb[128].mxu1 }
 0x83c   :  { %v3844_v47 = vpop.f32.mrb[129].mxu1 }
 0x83d   :  { %v12476_v3 = vpop.f32.mrb[130].mxu1 }
 0x83e   :  { %v3979_v52 = vpack.c.bf16 %v12476_v3, %v12475_v54  ;;  %v3847_v57 = vpop.f32.mrb[131].mxu1 }
 0x83f   :  { %v3978_v56 = vpack.c.bf16 %v3847_v57, %v3844_v47 }
 0x841   :  { %12525 = vmatprep.mubr.msk.bf16.mxu0 %vm576_vm2, %v3978_v56 }
 0x842   :  { %12526 = vmatmul.mubr.msk.bf16.gmra.mrb[164].mxu0 %vm576_vm2, %v3979_v52 }
 0x843   :  { %v12479_v45 = vpop.f32.mrb[132].mxu1 }
 0x844   :  { %v3860_v35 = vpop.f32.mrb[133].mxu1 }
 0x845   :  { %v12480_v22 = vpop.f32.mrb[134].mxu1 }
 0x846   :  { %v3981_v25 = vpack.c.bf16 %v12480_v22, %v12479_v45  ;;  %v3863_v36 = vpop.f32.mrb[135].mxu1 }
 0x847   :  { %v3980_v59 = vpack.c.bf16 %v3863_v36, %v3860_v35 }
 0x849   :  { %12529 = vmatprep.mubr.msk.bf16.mxu0 %vm576_vm2, %v3980_v59  ;;  %v12495_v62 = vpop.f32.mrb[136].mxu0 }
 0x84a   :  { %12530 = vmatmul.mubr.msk.bf16.gmra.mrb[168].mxu0 %vm576_vm2, %v3981_v25  ;;  %v3937_v20 = vpop.f32.mrb[137].mxu0 }
 0x84b   :  { %v12483_v11 = vpop.f32.mrb[136].mxu1  ;;  %v12496_v27 = vpop.f32.mrb[138].mxu0 }
 0x84c   :  { %v3876_v2 = vpop.f32.mrb[137].mxu1  ;;  %v3985_v10 = vpack.c.bf16 %v12496_v27, %v12495_v62  ;;  %v3940_v5 = vpop.f32.mrb[139].mxu0  ;;  %v19867_v62 = vld [vmem:[#allocation29_spill] sm:$0xff] }
 0x84d   :  { %v12484_v16 = vpop.f32.mrb[138].mxu1  ;;  %v3984_v17 = vpack.c.bf16 %v3940_v5, %v3937_v20  ;;  %v19868_v20 = vld [vmem:[#allocation31_spill] sm:$0xff] }
 0x84e   :  { %v3983_v26 = vpack.c.bf16 %v12484_v16, %v12483_v11  ;;  %v3879_v19 = vpop.f32.mrb[139].mxu1 }
 0x84f   :  { %v3982_v21 = vpack.c.bf16 %v3879_v19, %v3876_v2  ;;  %v19869_v19 = vld [vmem:[#allocation30_spill] sm:$0xff] }
 0x851   :  { %12533 = vmatprep.mubr.msk.bf16.mxu0 %vm576_vm2, %v3982_v21  ;;  %v12499_v33 = vpop.f32.mrb[140].mxu0  ;;  %v19870_v21 = vld [vmem:[#allocation32_spill] sm:$0xff] }
 0x852   :  { %12534 = vmatmul.mubr.msk.bf16.gmra.mrb[172].mxu0 %vm576_vm2, %v3983_v26  ;;  %v3953_v23 = vpop.f32.mrb[141].mxu0 }
 0x853   :  { %12537 = vmatprep.mubr.msk.bf16.mxu0 %vm576_vm2, %v3984_v17  ;;  %v12500_v24 = vpop.f32.mrb[142].mxu0 }
 0x854   :  { %v3987_v50 = vpack.c.bf16 %v12500_v24, %v12499_v33  ;;  %v3956_v28 = vpop.f32.mrb[143].mxu0 }
 0x855   :  { %v3986_v40 = vpack.c.bf16 %v3956_v28, %v3953_v23 }
 0x85a   :  { %12538 = vmatmul.mubr.msk.bf16.gmra.mrb[176].mxu0 %vm576_vm2, %v3985_v10 }
 0x85b   :  { %12541 = vmatprep.mubr.msk.bf16.mxu0 %vm576_vm2, %v3986_v40 }
 0x862   :  { %12542 = vmatmul.mubr.msk.bf16.gmra.mrb[180].mxu0 %vm576_vm2, %v3987_v50 }
 0x863   :  { %12605 = vmatprep.mubr.bf16.mxu0 %v17112_v31 }
 0x8dd   :  { %v17172_v34 = vpop.f32.mrb[144].mxu0 }
 0x8de   :  { %v17174_v44 = vpop.f32.mrb[145].mxu0 }
 0x8df   :  { %v17176_v46 = vpop.f32.mrb[146].mxu0 }
 0x8e0   :  { %v17178_v60 = vpop.f32.mrb[147].mxu0 }
 0x8e5   :  { %v12511_v63 = vpop.f32.mrb[148].mxu0 }
 0x8e6   :  { %v4132_v8 = vadd.f32 %v12511_v63, %v17180_v39  ;;  %v4123_v14 = vpop.f32.mrb[149].mxu0  ;;  %v19872_v63 = vld [vmem:[#allocation35_spill] sm:$0xff] }
 0x8e7   :  { %v4124_v49 = vadd.f32 %v17180_v39, %v4123_v14  ;;  %v12512_v48 = vpop.f32.mrb[150].mxu0  ;;  %v19873_v14 = vld [vmem:[#allocation34_spill] sm:$0xff] }
 0x8e8   :  { %v4135_v4 = vadd.f32 %v12512_v48, %v17180_v39  ;;  %v4126_v53 = vpop.f32.mrb[151].mxu0  ;;  %v17187_v6 = vadd.f32 %v4132_v8, %v16511_v37  ;;  %v19874_v48 = vld [vmem:[#allocation36_spill] sm:$0xff] }
 0x8e9   :  { %v4127_v41 = vadd.f32 %v17180_v39, %v4126_v53  ;;  %v17193_v13 = vadd.f32 %v4124_v49, %v16517_v51 }
 0x8ea   :  { %19859 = vst [vmem:[#allocation57_spill] sm:$0xff] %v17187_v6  ;;  %v17190_v55 = vadd.f32 %v4135_v4, %v16514_v32 }
 0x8eb   :  { %19861 = vst [vmem:[#allocation58_spill] sm:$0xff] %v17193_v13  ;;  %v17196_v9 = vadd.f32 %v4127_v41, %v16520_v42 }
 0x8ec   :  { %19860 = vst [vmem:[#allocation59_spill] sm:$0xff] %v17190_v55  ;;  %v13424_v18 = vpack.i.bf16 %v17190_v55, %v17187_v6 }
 0x8ed   :  { %19862 = vst [vmem:[#allocation60_spill] sm:$0xff] %v17196_v9  ;;  %v13419_v15 = vpack.i.bf16 %v17196_v9, %v17193_v13  ;;  %v12515_v54 = vpop.f32.mrb[152].mxu0 }
 0x8ee   :  { %v4148_v47 = vadd.f32 %v12515_v54, %v17180_v39  ;;  %13425 = vrot.lane.b32.xlu1 %v13424_v18, %s15325_s3  ;;  %v4139_v37 = vpop.f32.mrb[153].mxu0 }
 0x8ef   :  { %v4140_v32 = vadd.f32 %v17180_v39, %v4139_v37  ;;  %v12516_v3 = vpop.f32.mrb[154].mxu0  ;;  %13420 = vrot.lane.b32.xlu0 %v13419_v15, %s15325_s3 }
 0x8f0   :  { %v4151_v51 = vadd.f32 %v12516_v3, %v17180_v39  ;;  %v4142_v42 = vpop.f32.mrb[155].mxu0  ;;  %v17209_v57 = vadd.f32 %v4148_v47, %v16533_v1 }
 0x8f1   :  { %v4143_v52 = vadd.f32 %v17180_v39, %v4142_v42  ;;  %v17215_v45 = vadd.f32 %v4140_v32, %v16539_v30  ;;  %v19875_v42 = vld [vmem:[#allocation37_spill] sm:$0xff] }
 0x8f2   :  { %19863 = vst [vmem:[#allocation24_spill] sm:$0xff] %v17209_v57  ;;  %v17212_v56 = vadd.f32 %v4151_v51, %v16536_v61 }
 0x8f3   :  { %19865 = vst [vmem:[#allocation17_spill] sm:$0xff] %v17215_v45  ;;  %v17218_v35 = vadd.f32 %v4143_v52, %v16542_v38 }
 0x8f4   :  { %19864 = vst [vmem:[#allocation25_spill] sm:$0xff] %v17212_v56  ;;  %v13434_v22 = vpack.i.bf16 %v17212_v56, %v17209_v57 }
 0x8f5   :  { %19866 = vst [vmem:[#allocation18_spill] sm:$0xff] %v17218_v35  ;;  %v13429_v25 = vpack.i.bf16 %v17218_v35, %v17215_v45  ;;  %v12519_v36 = vpop.f32.mrb[156].mxu0 }
 0x8f6   :  { %v4164_v59 = vadd.f32 %v12519_v36, %v17180_v39  ;;  %13435 = vrot.lane.b32.xlu1 %v13434_v22, %s15325_s3  ;;  %v4155_v1 = vpop.f32.mrb[157].mxu0  ;;  %v19876_v22 = vld [vmem:[#allocation39_spill] sm:$0xff]  ;;  %v19877_v36 = vld [vmem:[#allocation38_spill] sm:$0xff] }
 0x8f7   :  { %v4156_v61 = vadd.f32 %v17180_v39, %v4155_v1  ;;  %v12520_v11 = vpop.f32.mrb[158].mxu0  ;;  %13430 = vrot.lane.b32.xlu0 %v13429_v25, %s15325_s3  ;;  %v19878_v1 = vld [vmem:[#allocation40_spill] sm:$0xff] }
 0x8f8   :  { %v4167_v30 = vadd.f32 %v12520_v11, %v17180_v39  ;;  %v4158_v38 = vpop.f32.mrb[159].mxu0  ;;  %v17231_v16 = vadd.f32 %v4164_v59, %v19867_v62 }
 0x8f9   :  { %v4159_v2 = vadd.f32 %v17180_v39, %v4158_v38  ;;  %v17237_v27 = vadd.f32 %v4156_v61, %v19869_v19 }
 0x8fa   :  { %v17234_v26 = vadd.f32 %v4167_v30, %v19868_v20 }
 0x8fb   :  { %v17240_v10 = vadd.f32 %v4159_v2, %v19870_v21 }
 0x8fc   :  { %v13444_v5 = vpack.i.bf16 %v17234_v26, %v17231_v16 }
 0x8fd   :  { %v13439_v17 = vpack.i.bf16 %v17240_v10, %v17237_v27 }
 0x8fe   :  { %13445 = vrot.lane.b32.xlu1 %v13444_v5, %s15325_s3 }
 0x8ff   :  { %13440 = vrot.lane.b32.xlu0 %v13439_v17, %s15325_s3 }
 0x90d   :  { %v12523_v33 = vpop.f32.mrb[160].mxu0 }
 0x90e   :  { %v4180_v23 = vadd.f32 %v12523_v33, %v17180_v39  ;;  %v4171_v24 = vpop.f32.mrb[161].mxu0  ;;  %v19879_v33 = vld [vmem:[#allocation41_spill] sm:$0xff] }
 0x90f   :  { %v4172_v50 = vadd.f32 %v17180_v39, %v4171_v24  ;;  %v12524_v28 = vpop.f32.mrb[162].mxu0  ;;  %v19881_v24 = vld [vmem:[#allocation43_spill] sm:$0xff] }
 0x910   :  { %v4183_v40 = vadd.f32 %v12524_v28, %v17180_v39  ;;  %v4174_v29 = vpop.f32.mrb[163].mxu0  ;;  %v17253_v58 = vadd.f32 %v4180_v23, %v19871_v7  ;;  %v19883_v28 = vld [vmem:[#allocation42_spill] sm:$0xff] }
 0x911   :  { %v4175_v0 = vadd.f32 %v17180_v39, %v4174_v29  ;;  %v17259_v49 = vadd.f32 %v4172_v50, %v19873_v14  ;;  %v19885_v29 = vld [vmem:[#allocation44_spill] sm:$0xff] }
 0x912   :  { %v17256_v8 = vadd.f32 %v4183_v40, %v19872_v63 }
 0x913   :  { %v17262_v4 = vadd.f32 %v4175_v0, %v19874_v48 }
 0x914   :  { %v13454_v53 = vpack.i.bf16 %v17256_v8, %v17253_v58 }
 0x915   :  { %v13449_v41 = vpack.i.bf16 %v17262_v4, %v17259_v49  ;;  %v12527_v18 = vpop.f32.mrb[164].mxu0 }
 0x916   :  { %v4196_v15 = vadd.f32 %v12527_v18, %v17180_v39  ;;  %13455 = vrot.lane.b32.xlu1 %v13454_v53, %s15325_s3  ;;  %v4187_v54 = vpop.f32.mrb[165].mxu0 }
 0x917   :  { %v4188_v47 = vadd.f32 %v17180_v39, %v4187_v54  ;;  %13450 = vrot.lane.b32.xlu0 %v13449_v41, %s15325_s3  ;;  %v12528_v37 = vpop.f32.mrb[166].mxu0 }
 0x918   :  { %v4199_v32 = vadd.f32 %v12528_v37, %v17180_v39  ;;  %v4190_v3 = vpop.f32.mrb[167].mxu0  ;;  %v17275_v52 = vadd.f32 %v4196_v15, %v19875_v42  ;;  %v19887_v37 = vld [vmem:[#allocation45_spill] sm:$0xff]  ;;  %v19891_v42 = vld [vmem:[#allocation46_spill] sm:$0xff] }
 0x919   :  { %v4191_v51 = vadd.f32 %v17180_v39, %v4190_v3  ;;  %v17281_v59 = vadd.f32 %v4188_v47, %v19877_v36  ;;  %v19889_v3 = vld [vmem:[#allocation47_spill] sm:$0xff]  ;;  %v19893_v36 = vld [vmem:[#allocation48_spill] sm:$0xff] }
 0x91a   :  { %v17278_v25 = vadd.f32 %v4199_v32, %v19876_v22 }
 0x91b   :  { %v17284_v61 = vadd.f32 %v4191_v51, %v19878_v1 }
 0x91c   :  { %v13464_v11 = vpack.i.bf16 %v17278_v25, %v17275_v52 }
 0x91d   :  { %v13459_v30 = vpack.i.bf16 %v17284_v61, %v17281_v59  ;;  %v12531_v38 = vpop.f32.mrb[168].mxu0 }
 0x91e   :  { %v4212_v2 = vadd.f32 %v12531_v38, %v17180_v39  ;;  %13465 = vrot.lane.b32.xlu1 %v13464_v11, %s15325_s3  ;;  %v4203_v62 = vpop.f32.mrb[169].mxu0 }
 0x91f   :  { %v4204_v20 = vadd.f32 %v17180_v39, %v4203_v62  ;;  %13460 = vrot.lane.b32.xlu0 %v13459_v30, %s15325_s3  ;;  %v12532_v19 = vpop.f32.mrb[170].mxu0 }
 0x920   :  { %v4215_v21 = vadd.f32 %v12532_v19, %v17180_v39  ;;  %v4206_v5 = vpop.f32.mrb[171].mxu0  ;;  %v17297_v23 = vadd.f32 %v4212_v2, %v19879_v33  ;;  %v19895_v33 = vld [vmem:[#allocation49_spill] sm:$0xff] }
 0x921   :  { %v4207_v17 = vadd.f32 %v17180_v39, %v4206_v5  ;;  %v17303_v40 = vadd.f32 %v4204_v20, %v19883_v28  ;;  %v19897_v28 = vld [vmem:[#allocation51_spill] sm:$0xff] }
 0x922   :  { %19880 = vst [vmem:[#allocation16_spill] sm:$0xff] %v17297_v23  ;;  %v17300_v50 = vadd.f32 %v4215_v21, %v19881_v24 }
 0x923   :  { %19884 = vst [vmem:[#allocation13_spill] sm:$0xff] %v17303_v40  ;;  %v17306_v0 = vadd.f32 %v4207_v17, %v19885_v29 }
 0x924   :  { %19882 = vst [vmem:[#allocation15_spill] sm:$0xff] %v17300_v50  ;;  %v13474_v7 = vpack.i.bf16 %v17300_v50, %v17297_v23 }
 0x925   :  { %19886 = vst [vmem:[#allocation14_spill] sm:$0xff] %v17306_v0  ;;  %v13469_v63 = vpack.i.bf16 %v17306_v0, %v17303_v40  ;;  %v12535_v14 = vpop.f32.mrb[172].mxu0 }
 0x926   :  { %v4228_v48 = vadd.f32 %v12535_v14, %v17180_v39  ;;  %13475 = vrot.lane.b32.xlu1 %v13474_v7, %s15325_s3  ;;  %v4219_v53 = vpop.f32.mrb[173].mxu0  ;;  %v19899_v7 = vld [vmem:[#allocation50_spill] sm:$0xff]  ;;  %v19901_v14 = vld [vmem:[#allocation52_spill] sm:$0xff] }
 0x927   :  { %v4220_v41 = vadd.f32 %v17180_v39, %v4219_v53  ;;  %13470 = vrot.lane.b32.xlu0 %v13469_v63, %s15325_s3  ;;  %v12536_v18 = vpop.f32.mrb[174].mxu0 }
 0x928   :  { %v4231_v15 = vadd.f32 %v12536_v18, %v17180_v39  ;;  %v4222_v54 = vpop.f32.mrb[175].mxu0  ;;  %v17319_v32 = vadd.f32 %v4228_v48, %v19887_v37 }
 0x929   :  { %v4223_v47 = vadd.f32 %v17180_v39, %v4222_v54  ;;  %v17325_v22 = vadd.f32 %v4220_v41, %v19891_v42 }
 0x92a   :  { %19888 = vst [vmem:[#allocation22_spill] sm:$0xff] %v17319_v32  ;;  %v17322_v51 = vadd.f32 %v4231_v15, %v19889_v3 }
 0x92b   :  { %19892 = vst [vmem:[#allocation19_spill] sm:$0xff] %v17325_v22  ;;  %v17328_v1 = vadd.f32 %v4223_v47, %v19893_v36 }
 0x92c   :  { %19890 = vst [vmem:[#allocation21_spill] sm:$0xff] %v17322_v51  ;;  %v13484_v11 = vpack.i.bf16 %v17322_v51, %v17319_v32 }
 0x92d   :  { %19894 = vst [vmem:[#allocation20_spill] sm:$0xff] %v17328_v1  ;;  %v13479_v30 = vpack.i.bf16 %v17328_v1, %v17325_v22  ;;  %v12539_v38 = vpop.f32.mrb[176].mxu0 }
 0x92e   :  { %v4244_v2 = vadd.f32 %v12539_v38, %v17180_v39  ;;  %13485 = vrot.lane.b32.xlu1 %v13484_v11, %s15325_s3  ;;  %v4235_v62 = vpop.f32.mrb[177].mxu0  ;;  %v19903_v11 = vld [vmem:[#allocation53_spill] sm:$0xff]  ;;  %v19905_v38 = vld [vmem:[#allocation55_spill] sm:$0xff] }
 0x92f   :  { %v4236_v20 = vadd.f32 %v17180_v39, %v4235_v62  ;;  %v12540_v19 = vpop.f32.mrb[178].mxu0  ;;  %13480 = vrot.lane.b32.xlu0 %v13479_v30, %s15325_s3  ;;  %v19907_v62 = vld [vmem:[#allocation54_spill] sm:$0xff] }
 0x930   :  { %v4247_v21 = vadd.f32 %v12540_v19, %v17180_v39  ;;  %v4238_v5 = vpop.f32.mrb[179].mxu0  ;;  %v17341_v24 = vadd.f32 %v4244_v2, %v19895_v33  ;;  %v19909_v19 = vld [vmem:[#allocation56_spill] sm:$0xff] }
 0x931   :  { %v4239_v17 = vadd.f32 %v17180_v39, %v4238_v5  ;;  %v17347_v63 = vadd.f32 %v4236_v20, %v19899_v7  ;;  %v13749_v7 = vld [vmem:[#allocation4 + $0x50] sm:$0xff]  }
 0x932   :  { %19896 = vst [vmem:[#allocation29_spill] sm:$0xff] %v17341_v24  ;;  %v17344_v29 = vadd.f32 %v4247_v21, %v19897_v28  ;;  %v13748_v28 = vld [vmem:[#allocation4 + $0x48] sm:$0xff]  }
 0x933   :  { %19900 = vst [vmem:[#allocation30_spill] sm:$0xff] %v17347_v63  ;;  %v17350_v48 = vadd.f32 %v4239_v17, %v19901_v14 }
 0x934   :  { %19898 = vst [vmem:[#allocation31_spill] sm:$0xff] %v17344_v29  ;;  %v13494_v53 = vpack.i.bf16 %v17344_v29, %v17341_v24 }
 0x935   :  { %19902 = vst [vmem:[#allocation32_spill] sm:$0xff] %v17350_v48  ;;  %v13489_v41 = vpack.i.bf16 %v17350_v48, %v17347_v63  ;;  %v12543_v18 = vpop.f32.mrb[180].mxu0 }
 0x936   :  { %v4260_v15 = vadd.f32 %v12543_v18, %v17180_v39  ;;  %13495 = vrot.lane.b32.xlu1 %v13494_v53, %s15325_s3  ;;  %v4251_v54 = vpop.f32.mrb[181].mxu0  ;;  %v13750_v53 = vld [vmem:[#allocation4 + $0x58] sm:$0xff]   ;;  %v4119_v18 = vadd.f32 %v17176_v46, %v17180_v39 }
 0x937   :  { %v4252_v47 = vadd.f32 %v17180_v39, %v4251_v54  ;;  %v12544_v37 = vpop.f32.mrb[182].mxu0  ;;  %13490 = vrot.lane.b32.xlu0 %v13489_v41, %s15325_s3  ;;  %v4116_v41 = vadd.f32 %v17172_v34, %v17180_v39  ;;  %v19914_v34 = vld [vmem:[#allocation28_spill] sm:$0xff] }
 0x938   :  { %v4263_v3 = vadd.f32 %v12544_v37, %v17180_v39  ;;  %v4254_v42 = vpop.f32.mrb[183].mxu0  ;;  %v17363_v30 = vadd.f32 %v4260_v15, %v19903_v11  ;;  %v4111_v15 = vadd.f32 %v17180_v39, %v17178_v60 }
 0x939   :  { %v4255_v36 = vadd.f32 %v17180_v39, %v4254_v42  ;;  %v17369_v20 = vadd.f32 %v4252_v47, %v19907_v62  ;;  %v19911_v47 = vld [vmem:[#allocation23_spill] sm:$0xff]  ;;  %v19913_v62 = vld [vmem:[#allocation26_spill] sm:$0xff] }
 0x93a   :  { %19904 = vst [vmem:[#allocation33_spill] sm:$0xff] %v17363_v30  ;;  %v17366_v2 = vadd.f32 %v4263_v3, %v19905_v38  ;;  %v4268_v37 = vadd.f32 %v4116_v41, %v19911_v47  ;;  %v19912_v3 = vld [vmem:[#allocation27_spill] sm:$0xff] }
 0x93b   :  { %19908 = vst [vmem:[#allocation34_spill] sm:$0xff] %v17369_v20  ;;  %v17372_v21 = vadd.f32 %v4255_v36, %v19909_v19  ;;  %v4269_v42 = vadd.f32 %v4119_v18, %v19912_v3 }
 0x93c   :  { %19906 = vst [vmem:[#allocation35_spill] sm:$0xff] %v17366_v2  ;;  %v13504_v5 = vpack.i.bf16 %v17366_v2, %v17363_v30  ;;  %v4307_v14 = vpack.c.bf16 %v17366_v2, %v17363_v30 }
 0x93d   :  { %19910 = vst [vmem:[#allocation36_spill] sm:$0xff] %v17372_v21  ;;  %v13499_v17 = vpack.i.bf16 %v17372_v21, %v17369_v20  ;;  %v4306_v33 = vpack.c.bf16 %v17372_v21, %v17369_v20 }
 0x93e   :  { %13505 = vrot.lane.b32.xlu1 %v13504_v5, %s15325_s3  ;;  %v4267_v5 = vadd.f32 %v4111_v15, %v19914_v34 }
 0x93f   :  { %11132 = vmatmul.mubr.msk.bf16.vlgmr.msra.gmra.mrb[4].mxu1 %vm576_vm2, %v4306_v33  ;;  %13500 = vrot.lane.b32.xlu0 %v13499_v17, %s15325_s3 }
 0x940   :  { %4381 = vmatprep.mubr.bf16.mxu1 %v19778_v43  ;;  %12546 = vmatpush3.bf16.msra.mxu1 %v17169_v12  ;;  %v4108_v12 = vadd.f32 %v17180_v39, %v17174_v44 }
 0x941   :  { %12547 = vmatprep.subr.bf16.mxu1 %v13748_v28 }
 0x942   :  { %v4266_v19 = vadd.f32 %v4108_v12, %v19913_v62 }
 0x944   :  { %12548 = vmatpush3.bf16.msra.mxu1 %v13748_v28 }
 0x945   :  { %12549 = vmatprep.subr.bf16.mxu1 %v13749_v7 }
 0x947   :  { %11133 = vmatmul.mubr.msk.bf16.gmra.mrb[8].mxu1 %vm576_vm2, %v4307_v14 }
 0x948   :  { %12550 = vmatpush3.bf16.msra.mxu1 %v13749_v7 }
 0x949   :  { %12551 = vmatprep.subr.bf16.mxu1 %v13750_v53 }
 0x94c   :  { %12552 = vmatpush3.bf16.msra.mxu1 %v13750_v53 }
 0x960   :  { %v13426_v54 = vpop.permute.xlu1 %13425 }
 0x961   :  { %v13428_v36 = vunpack.i.h.bf16 %v13426_v54  ;;  %v13427_v11 = vunpack.i.l.bf16 %v13426_v54  ;;  %v13421_v38 = vpop.permute.xlu0 %13420 }
 0x962   :  { %v13423_v17 = vunpack.i.h.bf16 %v13421_v38  ;;  %v13422_v46 = vunpack.i.l.bf16 %v13421_v38 }
 0x963   :  { %v4568_v33 = vsel %vm576_vm2, %v4269_v42, %v13428_v36  ;;  %v4567_v44 = vsel %vm576_vm2, %v4268_v37, %v13427_v11 }
 0x964   :  { %v4602_v28 = vpack.c.bf16 %v4568_v33, %v4567_v44  ;;  %v4565_v60 = vsel %vm576_vm2, %v4266_v19, %v13422_v46  ;;  %v4566_v39 = vsel %vm576_vm2, %v4267_v5, %v13423_v17 }
 0x965   :  { %v4601_v7 = vpack.c.bf16 %v4566_v39, %v4565_v60 }
 0x967   :  { %12553 = vmatprep.mubr.msk.bf16.mxu1 %vm939_vm3, %v4601_v7 }
 0x968   :  { %v13436_v14 = vpop.permute.xlu1 %13435  ;;  %12554 = vmatmul.mubr.msk.bf16.vlgmr.msra.gmra.mrb[140].mxu1 %vm939_vm3, %v4602_v28 }
 0x969   :  { %v13438_v53 = vunpack.i.h.bf16 %v13436_v14  ;;  %v13437_v41 = vunpack.i.l.bf16 %v13436_v14  ;;  %v13431_v18 = vpop.permute.xlu0 %13430 }
 0x96a   :  { %v13433_v12 = vunpack.i.h.bf16 %v13431_v18  ;;  %v13432_v15 = vunpack.i.l.bf16 %v13431_v18 }
 0x96b   :  { %v4572_v54 = vsel %vm576_vm2, %v17190_v55, %v13438_v53  ;;  %v4571_v47 = vsel %vm576_vm2, %v17187_v6, %v13437_v41 }
 0x96c   :  { %v4570_v37 = vsel %vm576_vm2, %v17196_v9, %v13433_v12  ;;  %v4569_v3 = vsel %vm576_vm2, %v17193_v13, %v13432_v15  ;;  %v4604_v36 = vpack.c.bf16 %v4572_v54, %v4571_v47 }
 0x96d   :  { %v4603_v42 = vpack.c.bf16 %v4570_v37, %v4569_v3 }
 0x96f   :  { %12557 = vmatprep.mubr.msk.bf16.mxu1 %vm939_vm3, %v4603_v42 }
 0x970   :  { %v13446_v11 = vpop.permute.xlu1 %13445  ;;  %12558 = vmatmul.mubr.msk.bf16.gmra.mrb[144].mxu1 %vm939_vm3, %v4604_v36 }
 0x971   :  { %v13448_v38 = vunpack.i.h.bf16 %v13446_v11  ;;  %v13447_v62 = vunpack.i.l.bf16 %v13446_v11  ;;  %v13441_v19 = vpop.permute.xlu0 %13440 }
 0x972   :  { %v13443_v34 = vunpack.i.h.bf16 %v13441_v19  ;;  %v13442_v5 = vunpack.i.l.bf16 %v13441_v19 }
 0x973   :  { %v4576_v17 = vsel %vm576_vm2, %v17212_v56, %v13448_v38  ;;  %v4575_v46 = vsel %vm576_vm2, %v17209_v57, %v13447_v62 }
 0x974   :  { %v4574_v33 = vsel %vm576_vm2, %v17218_v35, %v13443_v34  ;;  %v4573_v44 = vsel %vm576_vm2, %v17215_v45, %v13442_v5  ;;  %v4606_v60 = vpack.c.bf16 %v4576_v17, %v4575_v46 }
 0x975   :  { %v4605_v28 = vpack.c.bf16 %v4574_v33, %v4573_v44 }
 0x977   :  { %12561 = vmatprep.mubr.msk.bf16.mxu1 %vm939_vm3, %v4605_v28 }
 0x978   :  { %12562 = vmatmul.mubr.msk.bf16.gmra.mrb[148].mxu1 %vm939_vm3, %v4606_v60 }
 0x988   :  { %v13456_v39 = vpop.permute.xlu1 %13455 }
 0x989   :  { %v13458_v7 = vunpack.i.h.bf16 %v13456_v39  ;;  %v13457_v14 = vunpack.i.l.bf16 %v13456_v39  ;;  %v13451_v53 = vpop.permute.xlu0 %13450 }
 0x98a   :  { %v13453_v41 = vunpack.i.h.bf16 %v13451_v53  ;;  %v13452_v18 = vunpack.i.l.bf16 %v13451_v53 }
 0x98b   :  { %v4580_v12 = vsel %vm576_vm2, %v17234_v26, %v13458_v7  ;;  %v4579_v15 = vsel %vm576_vm2, %v17231_v16, %v13457_v14 }
 0x98c   :  { %v4578_v54 = vsel %vm576_vm2, %v17240_v10, %v13453_v41  ;;  %v4577_v47 = vsel %vm576_vm2, %v17237_v27, %v13452_v18  ;;  %v4608_v3 = vpack.c.bf16 %v4580_v12, %v4579_v15 }
 0x98d   :  { %v4607_v37 = vpack.c.bf16 %v4578_v54, %v4577_v47 }
 0x98f   :  { %12565 = vmatprep.mubr.msk.bf16.mxu1 %vm939_vm3, %v4607_v37 }
 0x990   :  { %v13466_v42 = vpop.permute.xlu1 %13465  ;;  %12566 = vmatmul.mubr.msk.bf16.gmra.mrb[152].mxu1 %vm939_vm3, %v4608_v3 }
 0x991   :  { %v13468_v36 = vunpack.i.h.bf16 %v13466_v42  ;;  %v13467_v11 = vunpack.i.l.bf16 %v13466_v42  ;;  %v13461_v38 = vpop.permute.xlu0 %13460 }
 0x992   :  { %v13463_v62 = vunpack.i.h.bf16 %v13461_v38  ;;  %v13462_v19 = vunpack.i.l.bf16 %v13461_v38 }
 0x993   :  { %v4584_v34 = vsel %vm576_vm2, %v17256_v8, %v13468_v36  ;;  %v4583_v5 = vsel %vm576_vm2, %v17253_v58, %v13467_v11 }
 0x994   :  { %v4582_v17 = vsel %vm576_vm2, %v17262_v4, %v13463_v62  ;;  %v4581_v46 = vsel %vm576_vm2, %v17259_v49, %v13462_v19  ;;  %v4610_v44 = vpack.c.bf16 %v4584_v34, %v4583_v5 }
 0x995   :  { %v4609_v33 = vpack.c.bf16 %v4582_v17, %v4581_v46 }
 0x997   :  { %12569 = vmatprep.mubr.msk.bf16.mxu1 %vm939_vm3, %v4609_v33 }
 0x998   :  { %v13476_v28 = vpop.permute.xlu1 %13475  ;;  %12570 = vmatmul.mubr.msk.bf16.gmra.mrb[156].mxu1 %vm939_vm3, %v4610_v44 }
 0x999   :  { %v13478_v60 = vunpack.i.h.bf16 %v13476_v28  ;;  %v13477_v39 = vunpack.i.l.bf16 %v13476_v28  ;;  %v13471_v7 = vpop.permute.xlu0 %13470 }
 0x99a   :  { %v13473_v14 = vunpack.i.h.bf16 %v13471_v7  ;;  %v13472_v53 = vunpack.i.l.bf16 %v13471_v7 }
 0x99b   :  { %v4588_v41 = vsel %vm576_vm2, %v17278_v25, %v13478_v60  ;;  %v4587_v18 = vsel %vm576_vm2, %v17275_v52, %v13477_v39 }
 0x99c   :  { %v4586_v12 = vsel %vm576_vm2, %v17284_v61, %v13473_v14  ;;  %v4585_v15 = vsel %vm576_vm2, %v17281_v59, %v13472_v53  ;;  %v4612_v47 = vpack.c.bf16 %v4588_v41, %v4587_v18 }
 0x99d   :  { %v4611_v54 = vpack.c.bf16 %v4586_v12, %v4585_v15 }
 0x99f   :  { %12573 = vmatprep.mubr.msk.bf16.mxu1 %vm939_vm3, %v4611_v54 }
 0x9a0   :  { %v13486_v37 = vpop.permute.xlu1 %13485  ;;  %12574 = vmatmul.mubr.msk.bf16.gmra.mrb[160].mxu1 %vm939_vm3, %v4612_v47 }
 0x9a1   :  { %v13488_v3 = vunpack.i.h.bf16 %v13486_v37  ;;  %v13487_v42 = vunpack.i.l.bf16 %v13486_v37  ;;  %v13481_v36 = vpop.permute.xlu0 %13480 }
 0x9a2   :  { %v13483_v11 = vunpack.i.h.bf16 %v13481_v36  ;;  %v13482_v38 = vunpack.i.l.bf16 %v13481_v36 }
 0x9a3   :  { %v4592_v62 = vsel %vm576_vm2, %v17300_v50, %v13488_v3  ;;  %v4591_v19 = vsel %vm576_vm2, %v17297_v23, %v13487_v42 }
 0x9a4   :  { %v4590_v34 = vsel %vm576_vm2, %v17306_v0, %v13483_v11  ;;  %v4589_v5 = vsel %vm576_vm2, %v17303_v40, %v13482_v38  ;;  %v4614_v46 = vpack.c.bf16 %v4592_v62, %v4591_v19 }
 0x9a5   :  { %v4613_v17 = vpack.c.bf16 %v4590_v34, %v4589_v5 }
 0x9a7   :  { %12577 = vmatprep.mubr.msk.bf16.mxu1 %vm939_vm3, %v4613_v17  ;;  %v17490_v17 = vld [vmem:[%s19606_s5 + $0x2] ss:$0 sm:$0xff] }
 0x9a8   :  { %v13496_v33 = vpop.permute.xlu1 %13495  ;;  %12578 = vmatmul.mubr.msk.bf16.gmra.mrb[164].mxu1 %vm939_vm3, %v4614_v46 }
 0x9a9   :  { %v13498_v44 = vunpack.i.h.bf16 %v13496_v33  ;;  %v13497_v28 = vunpack.i.l.bf16 %v13496_v33  ;;  %v13491_v60 = vpop.permute.xlu0 %13490 }
 0x9aa   :  { %v13493_v39 = vunpack.i.h.bf16 %v13491_v60  ;;  %v13492_v7 = vunpack.i.l.bf16 %v13491_v60 }
 0x9ab   :  { %v4596_v14 = vsel %vm576_vm2, %v17322_v51, %v13498_v44  ;;  %v4595_v53 = vsel %vm576_vm2, %v17319_v32, %v13497_v28 }
 0x9ac   :  { %v4594_v41 = vsel %vm576_vm2, %v17328_v1, %v13493_v39  ;;  %v4593_v18 = vsel %vm576_vm2, %v17325_v22, %v13492_v7  ;;  %v4616_v15 = vpack.c.bf16 %v4596_v14, %v4595_v53 }
 0x9ad   :  { %v4615_v12 = vpack.c.bf16 %v4594_v41, %v4593_v18 }
 0x9af   :  { %12581 = vmatprep.mubr.msk.bf16.mxu1 %vm939_vm3, %v4615_v12 }
 0x9b0   :  { %v13506_v54 = vpop.permute.xlu1 %13505  ;;  %12582 = vmatmul.mubr.msk.bf16.gmra.mrb[168].mxu1 %vm939_vm3, %v4616_v15 }
 0x9b1   :  { %v13508_v47 = vunpack.i.h.bf16 %v13506_v54  ;;  %v13507_v37 = vunpack.i.l.bf16 %v13506_v54  ;;  %v13501_v3 = vpop.permute.xlu0 %13500 }
 0x9b2   :  { %v13503_v42 = vunpack.i.h.bf16 %v13501_v3  ;;  %v13502_v36 = vunpack.i.l.bf16 %v13501_v3 }
 0x9b3   :  { %v4600_v11 = vsel %vm576_vm2, %v17344_v29, %v13508_v47  ;;  %v4599_v38 = vsel %vm576_vm2, %v17341_v24, %v13507_v37 }
 0x9b4   :  { %v4598_v62 = vsel %vm576_vm2, %v17350_v48, %v13503_v42  ;;  %v4597_v19 = vsel %vm576_vm2, %v17347_v63, %v13502_v36  ;;  %v4618_v5 = vpack.c.bf16 %v4600_v11, %v4599_v38 }
 0x9b5   :  { %v4617_v34 = vpack.c.bf16 %v4598_v62, %v4597_v19 }
 0x9b7   :  { %12585 = vmatprep.mubr.msk.bf16.mxu1 %vm939_vm3, %v4617_v34 }
 0x9b8   :  { %12586 = vmatmul.mubr.msk.bf16.gmra.mrb[172].mxu1 %vm939_vm3, %v4618_v5 }
 0x9b9   :  { %12637 = vmatprep.mubr.bf16.mxu1 %v17112_v31 }
 0xa3b   :  { %v12555_v46 = vpop.f32.mrb[140].mxu1 }
 0xa3c   :  { %v17493_v33 = vadd.f32 %v12555_v46, %v17490_v17  ;;  %v4748_v44 = vpop.f32.mrb[141].mxu1 }
 0xa3d   :  { %v17496_v28 = vadd.f32 %v17490_v17, %v4748_v44  ;;  %v12556_v60 = vpop.f32.mrb[142].mxu1 }
 0xa3e   :  { %v11161_v39 = vmul.f32 -1.442695, %v17493_v33  ;;  %v17500_v7 = vadd.f32 %v12556_v60, %v17490_v17  ;;  %v4751_v31 = vpop.f32.mrb[143].mxu1 }
 0xa3f   :  { %v11159_v14 = vmul.f32 -1.442695, %v17496_v28  ;;  %v17504_v53 = vadd.f32 %v17490_v17, %v4751_v31 }
 0xa40   :  { %14463 = vpow2.f32 %v11161_v39  ;;  %v11162_v41 = vmul.f32 -1.442695, %v17500_v7 }
 0xa41   :  { %14465 = vpow2.f32 %v11159_v14  ;;  %v11160_v18 = vmul.f32 -1.442695, %v17504_v53 }
 0xa42   :  { %14467 = vpow2.f32 %v11162_v41 }
 0xa43   :  { %v12559_v12 = vpop.f32.mrb[144].mxu1  ;;  %14469 = vpow2.f32 %v11160_v18 }
 0xa44   :  { %v17509_v15 = vadd.f32 %v12559_v12, %v17490_v17  ;;  %v4764_v54 = vpop.f32.mrb[145].mxu1 }
 0xa45   :  { %v17512_v47 = vadd.f32 %v17490_v17, %v4764_v54  ;;  %v12560_v37 = vpop.f32.mrb[146].mxu1 }
 0xa46   :  { %v11165_v3 = vmul.f32 -1.442695, %v17509_v15  ;;  %v17516_v42 = vadd.f32 %v12560_v37, %v17490_v17  ;;  %v4767_v36 = vpop.f32.mrb[147].mxu1 }
 0xa47   :  { %v11163_v11 = vmul.f32 -1.442695, %v17512_v47  ;;  %v17520_v38 = vadd.f32 %v17490_v17, %v4767_v36 }
 0xa48   :  { %14471 = vpow2.f32 %v11165_v3  ;;  %v11166_v62 = vmul.f32 -1.442695, %v17516_v42 }
 0xa49   :  { %14473 = vpow2.f32 %v11163_v11  ;;  %v11164_v5 = vmul.f32 -1.442695, %v17520_v38 }
 0xa4a   :  { %v14464_v19 = vpop.eup %14463  ;;  %14475 = vpow2.f32 %v11166_v62 }
 0xa4b   :  { %v14466_v34 = vpop.eup %14465  ;;  %v12563_v46 = vpop.f32.mrb[148].mxu1  ;;  %v5037_v31 = vadd.f32 1.0, %v14464_v19 }
 0xa4c   :  { %v5035_v44 = vadd.f32 1.0, %v14466_v34  ;;  %v4780_v60 = vpop.f32.mrb[149].mxu1  ;;  %v14468_v39 = vpop.eup %14467  ;;  %v17525_v14 = vadd.f32 %v12563_v46, %v17490_v17 }
 0xa4d   :  { %v12564_v41 = vpop.f32.mrb[150].mxu1  ;;  %v14470_v12 = vpop.eup %14469  ;;  %v17528_v54 = vadd.f32 %v17490_v17, %v4780_v60  ;;  %v5038_v37 = vadd.f32 1.0, %v14468_v39 }
 0xa4e   :  { %14477 = vrcp.f32 %v5035_v44  ;;  %v4783_v18 = vpop.f32.mrb[151].mxu1  ;;  %v5036_v3 = vadd.f32 1.0, %v14470_v12  ;;  %v11169_v36 = vmul.f32 -1.442695, %v17525_v14  ;;  %v17533_v34 = vadd.f32 %v12564_v41, %v17490_v17 }
 0xa4f   :  { %14479 = vpow2.f32 %v11164_v5  ;;  %v11167_v62 = vmul.f32 -1.442695, %v17528_v54  ;;  %v17536_v5 = vadd.f32 %v17490_v17, %v4783_v18 }
 0xa50   :  { %14481 = vrcp.f32 %v5037_v31  ;;  %v11170_v39 = vmul.f32 -1.442695, %v17533_v34 }
 0xa51   :  { %14483 = vrcp.f32 %v5036_v3  ;;  %v11168_v3 = vmul.f32 -1.442695, %v17536_v5 }
 0xa52   :  { %v14472_v11 = vpop.eup %14471  ;;  %14485 = vrcp.f32 %v5038_v37 }
 0xa53   :  { %v14474_v19 = vpop.eup %14473  ;;  %14487 = vpow2.f32 %v11169_v36  ;;  %v5041_v44 = vadd.f32 1.0, %v14472_v11 }
 0xa54   :  { %v5039_v46 = vadd.f32 1.0, %v14474_v19  ;;  %v14476_v60 = vpop.eup %14475 }
 0xa55   :  { %v5042_v19 = vadd.f32 1.0, %v14476_v60 }
 0xa56   :  { %14489 = vrcp.f32 %v5039_v46 }
 0xa57   :  { %14491 = vpow2.f32 %v11167_v62 }
 0xa58   :  { %v14478_v31 = vpop.eup %14477  ;;  %14493 = vrcp.f32 %v5041_v44 }
 0xa59   :  { %v14480_v12 = vpop.eup %14479  ;;  %5179 = vrot.lane.b32.xlu0 %v14478_v31, %s15326_s29  ;;  %14495 = vpow2.f32 %v11170_v39 }
 0xa5a   :  { %v5040_v41 = vadd.f32 1.0, %v14480_v12  ;;  %v14482_v37 = vpop.eup %14481 }
 0xa5b   :  { %v14484_v36 = vpop.eup %14483 }
 0xa5c   :  { %14497 = vrcp.f32 %v5040_v41  ;;  %5181 = vrot.lane.b32.xlu1 %v14484_v36, %s15326_s29  ;;  %v14486_v18 = vpop.eup %14485 }
 0xa5d   :  { %14499 = vpow2.f32 %v11168_v3  ;;  %5183 = vrot.lane.b32.xlu0 %v14482_v37, %s15326_s29  ;;  %v14488_v11 = vpop.eup %14487 }
 0xa5e   :  { %14501 = vrcp.f32 %v5042_v19  ;;  %v5045_v39 = vadd.f32 1.0, %v14488_v11 }
 0xa60   :  { %v14490_v62 = vpop.eup %14489  ;;  %5185 = vrot.lane.b32.xlu1 %v14486_v18, %s15326_s29 }
 0xa61   :  { %v14492_v46 = vpop.eup %14491  ;;  %5187 = vrot.lane.b32.xlu0 %v14490_v62, %s15326_s29 }
 0xa62   :  { %v5043_v44 = vadd.f32 1.0, %v14492_v46  ;;  %v14494_v31 = vpop.eup %14493 }
 0xa63   :  { %v14496_v60 = vpop.eup %14495  ;;  %v12567_v3 = vpop.f32.mrb[152].mxu1 }
 0xa64   :  { %14503 = vrcp.f32 %v5043_v44  ;;  %v17547_v37 = vadd.f32 %v12567_v3, %v17490_v17  ;;  %v4796_v36 = vpop.f32.mrb[153].mxu1  ;;  %v5046_v35 = vadd.f32 1.0, %v14496_v60 }
 0xa65   :  { %5191 = vrot.lane.b32.xlu0 %v14494_v31, %s15326_s29  ;;  %14505 = vrcp.f32 %v5045_v39  ;;  %v17551_v18 = vadd.f32 %v17490_v17, %v4796_v36  ;;  %v12568_v62 = vpop.f32.mrb[154].mxu1 }
 0xa66   :  { %v14498_v12 = vpop.eup %14497  ;;  %v11173_v11 = vmul.f32 -1.442695, %v17547_v37  ;;  %v17555_v46 = vadd.f32 %v12568_v62, %v17490_v17  ;;  %v4799_v44 = vpop.f32.mrb[155].mxu1 }
 0xa67   :  { %v14500_v41 = vpop.eup %14499  ;;  %5189 = vrot.lane.b32.xlu1 %v14498_v12, %s15326_s29  ;;  %v11171_v3 = vmul.f32 -1.442695, %v17551_v18  ;;  %v17559_v45 = vadd.f32 %v17490_v17, %v4799_v44 }
 0xa68   :  { %v5044_v19 = vadd.f32 1.0, %v14500_v41  ;;  %v14502_v31 = vpop.eup %14501  ;;  %v11174_v39 = vmul.f32 -1.442695, %v17555_v46 }
 0xa69   :  { %v11172_v12 = vmul.f32 -1.442695, %v17559_v45 }
 0xa6a   :  { %14507 = vrcp.f32 %v5044_v19 }
 0xa6b   :  { %5193 = vrot.lane.b32.xlu1 %v14502_v31, %s15326_s29  ;;  %14509 = vpow2.f32 %v11173_v11  ;;  %v12571_v36 = vpop.f32.mrb[156].mxu1 }
 0xa6c   :  { %14511 = vpow2.f32 %v11171_v3  ;;  %v17565_v60 = vadd.f32 %v12571_v36, %v17490_v17  ;;  %v4812_v19 = vpop.f32.mrb[157].mxu1 }
 0xa6d   :  { %14513 = vrcp.f32 %v5046_v35  ;;  %v17569_v62 = vadd.f32 %v17490_v17, %v4812_v19  ;;  %v12572_v44 = vpop.f32.mrb[158].mxu1 }
 0xa6e   :  { %v14504_v41 = vpop.eup %14503  ;;  %14515 = vpow2.f32 %v11174_v39  ;;  %v11177_v11 = vmul.f32 -1.442695, %v17565_v60  ;;  %v17573_v31 = vadd.f32 %v12572_v44, %v17490_v17  ;;  %v4815_v3 = vpop.f32.mrb[159].mxu1 }
 0xa6f   :  { %5195 = vrot.lane.b32.xlu0 %v14504_v41, %s15326_s29  ;;  %14517 = vpow2.f32 %v11172_v12  ;;  %v14506_v35 = vpop.eup %14505  ;;  %v11175_v39 = vmul.f32 -1.442695, %v17569_v62  ;;  %v17577_v36 = vadd.f32 %v17490_v17, %v4815_v3 }
 0xa70   :  { %14519 = vpow2.f32 %v11177_v11  ;;  %v11178_v19 = vmul.f32 -1.442695, %v17573_v31 }
 0xa71   :  { %14521 = vpow2.f32 %v11175_v39  ;;  %v11176_v57 = vmul.f32 -1.442695, %v17577_v36 }
 0xa72   :  { %14523 = vpow2.f32 %v11178_v19 }
 0xa73   :  { %5199 = vrot.lane.b32.xlu0 %v14506_v35, %s15326_s29  ;;  %v12575_v56 = vpop.f32.mrb[160].mxu1 }
 0xa74   :  { %v14508_v41 = vpop.eup %14507  ;;  %v4828_v9 = vpop.f32.mrb[161].mxu1  ;;  %v17584_v35 = vadd.f32 %v12575_v56, %v17490_v17 }
 0xa75   :  { %5197 = vrot.lane.b32.xlu1 %v14508_v41, %s15326_s29  ;;  %v14510_v12 = vpop.eup %14509  ;;  %v12576_v6 = vpop.f32.mrb[162].mxu1  ;;  %v17588_v41 = vadd.f32 %v17490_v17, %v4828_v9 }
 0xa76   :  { %v14512_v44 = vpop.eup %14511  ;;  %v5049_v21 = vadd.f32 1.0, %v14510_v12  ;;  %v4831_v11 = vpop.f32.mrb[163].mxu1  ;;  %v17593_v48 = vadd.f32 %v12576_v6, %v17490_v17 }
 0xa77   :  { %v14514_v13 = vpop.eup %14513  ;;  %v5047_v55 = vadd.f32 1.0, %v14512_v44  ;;  %v11181_v44 = vmul.f32 -1.442695, %v17584_v35  ;;  %v11179_v56 = vmul.f32 -1.442695, %v17588_v41  ;;  %v17596_v9 = vadd.f32 %v17490_v17, %v4831_v11 }
 0xa78   :  { %v14516_v3 = vpop.eup %14515 }
 0xa79   :  { %5201 = vrot.lane.b32.xlu1 %v14514_v13, %s15326_s29  ;;  %14525 = vrcp.f32 %v5047_v55  ;;  %v14518_v39 = vpop.eup %14517  ;;  %v5050_v20 = vadd.f32 1.0, %v14516_v3  ;;  %v11180_v6 = vmul.f32 -1.442695, %v17596_v9 }
 0xa7a   :  { %14527 = vpow2.f32 %v11176_v57  ;;  %v5048_v2 = vadd.f32 1.0, %v14518_v39  ;;  %v14520_v30 = vpop.eup %14519 }
 0xa7b   :  { %14529 = vrcp.f32 %v5049_v21  ;;  %v12579_v19 = vpop.f32.mrb[164].mxu1  ;;  %v14522_v12 = vpop.eup %14521  ;;  %v5053_v3 = vadd.f32 1.0, %v14520_v30 }
 0xa7c   :  { %14531 = vrcp.f32 %v5048_v2  ;;  %v4844_v55 = vpop.f32.mrb[165].mxu1  ;;  %v5051_v13 = vadd.f32 1.0, %v14522_v12  ;;  %v14524_v39 = vpop.eup %14523  ;;  %v11182_v2 = vmul.f32 -1.442695, %v17593_v48  ;;  %v17601_v24 = vadd.f32 %v12579_v19, %v17490_v17 }
 0xa7d   :  { %14533 = vrcp.f32 %v5050_v20  ;;  %v12580_v57 = vpop.f32.mrb[166].mxu1  ;;  %v17605_v11 = vadd.f32 %v17490_v17, %v4844_v55 }
 0xa7e   :  { %14535 = vpow2.f32 %v11181_v44  ;;  %v4847_v21 = vpop.f32.mrb[167].mxu1  ;;  %v11185_v22 = vmul.f32 -1.442695, %v17601_v24 }
 0xa7f   :  { %14537 = vrcp.f32 %v5051_v13  ;;  %v5054_v13 = vadd.f32 1.0, %v14524_v39  ;;  %v11183_v19 = vmul.f32 -1.442695, %v17605_v11  ;;  %v17615_v39 = vadd.f32 %v17490_v17, %v4847_v21 }
 0xa80   :  { %14539 = vpow2.f32 %v11179_v56 }
 0xa81   :  { %14541 = vrcp.f32 %v5053_v3  ;;  %v17612_v3 = vadd.f32 %v12580_v57, %v17490_v17 }
 0xa82   :  { %14543 = vpow2.f32 %v11182_v2 }
 0xa83   :  { %v14526_v63 = vpop.eup %14525  ;;  %v12583_v30 = vpop.f32.mrb[168].mxu1  ;;  %v11186_v51 = vmul.f32 -1.442695, %v17612_v3 }
 0xa84   :  { %v14528_v29 = vpop.eup %14527  ;;  %5203 = vrot.lane.b32.xlu0 %v14526_v63, %s15326_s29  ;;  %v4860_v12 = vpop.f32.mrb[169].mxu1  ;;  %v17622_v40 = vadd.f32 %v12583_v30, %v17490_v17 }
 0xa85   :  { %v5052_v20 = vadd.f32 1.0, %v14528_v29  ;;  %v14530_v44 = vpop.eup %14529  ;;  %v12584_v1 = vpop.f32.mrb[170].mxu1 }
 0xa86   :  { %v14532_v56 = vpop.eup %14531  ;;  %v4863_v63 = vpop.f32.mrb[171].mxu1  ;;  %v17632_v23 = vadd.f32 %v12584_v1, %v17490_v17 }
 0xa87   :  { %14545 = vrcp.f32 %v5052_v20  ;;  %5205 = vrot.lane.b32.xlu1 %v14532_v56, %s15326_s29  ;;  %v14534_v29 = vpop.eup %14533 }
 0xa88   :  { %14547 = vpow2.f32 %v11180_v6  ;;  %5207 = vrot.lane.b32.xlu0 %v14530_v44, %s15326_s29  ;;  %v14536_v55 = vpop.eup %14535 }
 0xa89   :  { %v14538_v2 = vpop.eup %14537  ;;  %14549 = vrcp.f32 %v5054_v13  ;;  %v5057_v20 = vadd.f32 1.0, %v14536_v55  ;;  %v11184_v13 = vmul.f32 -1.442695, %v17615_v39 }
 0xa8a   :  { %v14540_v6 = vpop.eup %14539  ;;  %14551 = vpow2.f32 %v11185_v22 }
 0xa8b   :  { %5209 = vrot.lane.b32.xlu1 %v14534_v29, %s15326_s29  ;;  %v5055_v44 = vadd.f32 1.0, %v14540_v6  ;;  %14553 = vpow2.f32 %v11183_v19  ;;  %v12587_v56 = vpop.f32.mrb[172].mxu1  ;;  %v14542_v57 = vpop.eup %14541  ;;  %v17626_v19 = vadd.f32 %v17490_v17, %v4860_v12 }
 0xa8c   :  { %5211 = vrot.lane.b32.xlu0 %v14538_v2, %s15326_s29  ;;  %v4876_v32 = vpop.f32.mrb[173].mxu1  ;;  %v14544_v21 = vpop.eup %14543 }
 0xa8d   :  { %14555 = vrcp.f32 %v5055_v44  ;;  %v12588_v0 = vpop.f32.mrb[174].mxu1  ;;  %v5058_v2 = vadd.f32 1.0, %v14544_v21  ;;  %v11189_v44 = vmul.f32 -1.442695, %v17622_v40  ;;  %v11187_v30 = vmul.f32 -1.442695, %v17626_v19 }
 0xa8e   :  { %v4879_v22 = vpop.f32.mrb[175].mxu1  ;;  %14557 = vrcp.f32 %v5057_v20 }
 0xa8f   :  { %14559 = vpow2.f32 %v11186_v51  ;;  %v17636_v51 = vadd.f32 %v17490_v17, %v4863_v63  ;;  %v17645_v63 = vadd.f32 %v17490_v17, %v4876_v32 }
 0xa90   :  { %5215 = vrot.lane.b32.xlu0 %v14542_v57, %s15326_s29  ;;  %14561 = vpow2.f32 %v11184_v13 }
 0xa91   :  { %v14546_v29 = vpop.eup %14545  ;;  %v11188_v1 = vmul.f32 -1.442695, %v17636_v51 }
 0xa92   :  { %v14548_v55 = vpop.eup %14547  ;;  %5213 = vrot.lane.b32.xlu1 %v14546_v29, %s15326_s29  ;;  %v11190_v29 = vmul.f32 -1.442695, %v17632_v23 }
 0xa93   :  { %v5056_v6 = vadd.f32 1.0, %v14548_v55  ;;  %v14550_v50 = vpop.eup %14549 }
 0xa94   :  { %v14552_v57 = vpop.eup %14551 }
 0xa95   :  { %14563 = vrcp.f32 %v5056_v6  ;;  %v14554_v12 = vpop.eup %14553  ;;  %v5061_v21 = vadd.f32 1.0, %v14552_v57 }
 0xa96   :  { %5217 = vrot.lane.b32.xlu1 %v14550_v50, %s15326_s29  ;;  %14565 = vrcp.f32 %v5058_v2  ;;  %v5059_v20 = vadd.f32 1.0, %v14554_v12  ;;  %v17642_v50 = vadd.f32 %v12587_v56, %v17490_v17  ;;  %v11191_v56 = vmul.f32 -1.442695, %v17645_v63 }
 0xa97   :  { %14567 = vpow2.f32 %v11189_v44  ;;  %v14556_v13 = vpop.eup %14555 }
 0xa98   :  { %14569 = vpow2.f32 %v11187_v30  ;;  %5219 = vrot.lane.b32.xlu0 %v14556_v13, %s15326_s29  ;;  %v14558_v55 = vpop.eup %14557  ;;  %v11193_v12 = vmul.f32 -1.442695, %v17642_v50 }
 0xa99   :  { %14571 = vrcp.f32 %v5059_v20  ;;  %v14560_v6 = vpop.eup %14559 }
 0xa9a   :  { %v14562_v2 = vpop.eup %14561  ;;  %14573 = vrcp.f32 %v5061_v21  ;;  %v5062_v57 = vadd.f32 1.0, %v14560_v6  ;;  %v17652_v21 = vadd.f32 %v12588_v0, %v17490_v17 }
 0xa9b   :  { %v5060_v44 = vadd.f32 1.0, %v14562_v2  ;;  %14575 = vpow2.f32 %v11190_v29  ;;  %v17655_v29 = vadd.f32 %v17490_v17, %v4879_v22 }
 0xa9c   :  { %5223 = vrot.lane.b32.xlu0 %v14558_v55, %s15326_s29  ;;  %14577 = vpow2.f32 %v11188_v1  ;;  %v11194_v2 = vmul.f32 -1.442695, %v17652_v21 }
 0xa9d   :  { %14579 = vrcp.f32 %v5060_v44  ;;  %v11192_v0 = vmul.f32 -1.442695, %v17655_v29 }
 0xa9e   :  { %14581 = vrcp.f32 %v5062_v57 }
 0xa9f   :  { %v14564_v30 = vpop.eup %14563  ;;  %14583 = vpow2.f32 %v11193_v12 }
 0xaa0   :  { %5221 = vrot.lane.b32.xlu1 %v14564_v30, %s15326_s29  ;;  %v14566_v20 = vpop.eup %14565  ;;  %14585 = vpow2.f32 %v11191_v56 }
 0xaa1   :  { %v14568_v13 = vpop.eup %14567 }
 0xaa2   :  { %v14570_v32 = vpop.eup %14569  ;;  %v5065_v1 = vadd.f32 1.0, %v14568_v13 }
 0xaa3   :  { %v14572_v55 = vpop.eup %14571  ;;  %v5063_v6 = vadd.f32 1.0, %v14570_v32 }
 0xaa4   :  { %5225 = vrot.lane.b32.xlu1 %v14566_v20, %s15326_s29  ;;  %5227 = vrot.lane.b32.xlu0 %v14572_v55, %s15326_s29  ;;  %v14574_v44 = vpop.eup %14573 }
 0xaa5   :  { %14587 = vrcp.f32 %v5063_v6  ;;  %v14576_v30 = vpop.eup %14575 }
 0xaa6   :  { %v14578_v57 = vpop.eup %14577  ;;  %14589 = vrcp.f32 %v5065_v1  ;;  %v5066_v12 = vadd.f32 1.0, %v14576_v30 }
 0xaa7   :  { %v14580_v17 = vpop.eup %14579  ;;  %v5064_v22 = vadd.f32 1.0, %v14578_v57  ;;  %14591 = vpow2.f32 %v11194_v2 }
 0xaa8   :  { %5231 = vrot.lane.b32.xlu0 %v14574_v44, %s15326_s29  ;;  %14593 = vpow2.f32 %v11192_v0  ;;  %5229 = vrot.lane.b32.xlu1 %v14580_v17, %s15326_s29  ;;  %v14582_v20 = vpop.eup %14581 }
 0xaa9   :  { %14595 = vrcp.f32 %v5064_v22  ;;  %v14584_v56 = vpop.eup %14583 }
 0xaaa   :  { %v14586_v13 = vpop.eup %14585  ;;  %14597 = vrcp.f32 %v5066_v12  ;;  %v5069_v6 = vadd.f32 1.0, %v14584_v56 }
 0xaab   :  { %v5067_v55 = vadd.f32 1.0, %v14586_v13 }
 0xaac   :  { %5233 = vrot.lane.b32.xlu1 %v14582_v20, %s15326_s29 }
 0xaad   :  { %14599 = vrcp.f32 %v5067_v55 }
 0xaae   :  { %14601 = vrcp.f32 %v5069_v6 }
 0xaaf   :  { %v14588_v32 = vpop.eup %14587 }
 0xab0   :  { %5235 = vrot.lane.b32.xlu0 %v14588_v32, %s15326_s29  ;;  %v14590_v1 = vpop.eup %14589 }
 0xab1   :  { %v14592_v44 = vpop.eup %14591 }
 0xab2   :  { %v14594_v2 = vpop.eup %14593  ;;  %v5070_v57 = vadd.f32 1.0, %v14592_v44 }
 0xab3   :  { %v14596_v0 = vpop.eup %14595  ;;  %v5068_v30 = vadd.f32 1.0, %v14594_v2 }
 0xab4   :  { %5239 = vrot.lane.b32.xlu0 %v14590_v1, %s15326_s29  ;;  %5237 = vrot.lane.b32.xlu1 %v14596_v0, %s15326_s29  ;;  %v14598_v17 = vpop.eup %14597 }
 0xab5   :  { %14603 = vrcp.f32 %v5068_v30 }
 0xab6   :  { %14605 = vrcp.f32 %v5070_v57 }
 0xab7   :  { %v14600_v22 = vpop.eup %14599  ;;  %14607 = vtanh.f32 %v17496_v28 }
 0xab8   :  { %5241 = vrot.lane.b32.xlu1 %v14598_v17, %s15326_s29  ;;  %5243 = vrot.lane.b32.xlu0 %v14600_v22, %s15326_s29  ;;  %v14602_v12 = vpop.eup %14601  ;;  %14609 = vtanh.f32 %v17504_v53 }
 0xab9   :  { %14611 = vtanh.f32 %v17493_v33 }
 0xaba   :  { %14613 = vtanh.f32 %v17500_v7 }
 0xabb   :  { %14615 = vtanh.f32 %v17512_v47 }
 0xabc   :  { %5247 = vrot.lane.b32.xlu0 %v14602_v12, %s15326_s29  ;;  %14617 = vtanh.f32 %v17520_v38 }
 0xabd   :  { %14619 = vtanh.f32 %v17509_v15 }
 0xabe   :  { %14621 = vtanh.f32 %v17516_v42 }
 0xabf   :  { %v14604_v20 = vpop.eup %14603  ;;  %14623 = vtanh.f32 %v17528_v54 }
 0xac0   :  { %5245 = vrot.lane.b32.xlu1 %v14604_v20, %s15326_s29  ;;  %v14606_v56 = vpop.eup %14605  ;;  %14625 = vtanh.f32 %v17536_v5 }
 0xac1   :  { %v14608_v32 = vpop.eup %14607  ;;  %14627 = vtanh.f32 %v17525_v14 }
 0xac2   :  { %v14610_v55 = vpop.eup %14609  ;;  %14629 = vtanh.f32 %v17533_v34 }
 0xac3   :  { %v14612_v2 = vpop.eup %14611  ;;  %14631 = vtanh.f32 %v17551_v18 }
 0xac4   :  { %5249 = vrot.lane.b32.xlu1 %v14606_v56, %s15326_s29  ;;  %v14614_v33 = vpop.eup %14613  ;;  %14633 = vtanh.f32 %v17559_v45 }
 0xac5   :  { %v14616_v17 = vpop.eup %14615  ;;  %14635 = vtanh.f32 %v17547_v37 }
 0xac6   :  { %v14618_v38 = vpop.eup %14617  ;;  %14637 = vtanh.f32 %v17555_v46 }
 0xac7   :  { %v14620_v15 = vpop.eup %14619  ;;  %14639 = vtanh.f32 %v17569_v62 }
 0xac8   :  { %v14622_v42 = vpop.eup %14621  ;;  %14641 = vtanh.f32 %v17577_v36 }
 0xac9   :  { %14643 = vtanh.f32 %v17565_v60 }
 0xaca   :  { %14645 = vtanh.f32 %v17573_v31  ;;  %v17696_v31 = vld [vmem:[%s19602_s1 + $0x8] sm:$0xff]  }
 0xacb   :  { %v5180_v13 = vpop.permute.xlu0 %5179  ;;  %14647 = vtanh.f32 %v17588_v41 }
 0xacc   :  { %v5287_v1 = vmul.f32 %v14608_v32, %v5180_v13  ;;  %14649 = vtanh.f32 %v17596_v9  ;;  %v17711_v9 = vld [vmem:[%s19602_s1 + $0x18] sm:$0xff]  }
 0xacd   :  { %14651 = vtanh.f32 %v17584_v35 }
 0xace   :  { %v5182_v6 = vpop.permute.xlu1 %5181  ;;  %14653 = vtanh.f32 %v17593_v48 }
 0xacf   :  { %v5184_v28 = vpop.permute.xlu0 %5183  ;;  %v5288_v44 = vmul.f32 %v14610_v55, %v5182_v6 }
 0xad0   :  { %v5289_v7 = vmul.f32 %v14612_v2, %v5184_v28 }
 0xad1   :  { %v5323_v53 = vpack.c.bf16 %v5288_v44, %v5287_v1  ;;  %v14624_v44 = vpop.eup %14623  ;;  %14655 = vtanh.f32 %v17605_v11  ;;  %v17727_v11 = vld [vmem:[%s19602_s1 + $0x28] sm:$0xff]  }
 0xad2   :  { %v5186_v0 = vpop.permute.xlu1 %5185  ;;  %v14626_v2 = vpop.eup %14625  ;;  %14657 = vtanh.f32 %v17615_v39  ;;  %v17733_v39 = vld [vmem:[%s19602_s1 + $0x30] sm:$0xff]  }
 0xad3   :  { %v5290_v30 = vmul.f32 %v14614_v33, %v5186_v0  ;;  %12589 = vmatprep.subr.bf16.mxu0 %v5323_v53  ;;  %v5188_v47 = vpop.permute.xlu0 %5187  ;;  %v14628_v5 = vpop.eup %14627  ;;  %14659 = vtanh.f32 %v17601_v24 }
 0xad4   :  { %12590 = vmatpush3.bf16.msra.mxu0 %v5323_v53  ;;  %v5291_v12 = vmul.f32 %v14616_v17, %v5188_v47 }
 0xad5   :  { %v5324_v57 = vpack.c.bf16 %v5290_v30, %v5289_v7  ;;  %v14630_v30 = vpop.eup %14629  ;;  %14661 = vtanh.f32 %v17612_v3 }
 0xad7   :  { %12591 = vmatprep.subr.bf16.mxu0 %v5324_v57  ;;  %v5192_v56 = vpop.permute.xlu0 %5191 }
 0xad8   :  { %12592 = vmatpush3.bf16.msra.mxu0 %v5324_v57  ;;  %v5293_v55 = vmul.f32 %v14620_v15, %v5192_v56 }
 0xad9   :  { %v5190_v22 = vpop.permute.xlu1 %5189 }
 0xada   :  { %v5292_v20 = vmul.f32 %v14618_v38, %v5190_v22  ;;  %v14632_v38 = vpop.eup %14631  ;;  %14663 = vtanh.f32 %v17626_v19 }
 0xadb   :  { %v14634_v22 = vpop.eup %14633  ;;  %14665 = vtanh.f32 %v17636_v51 }
 0xadc   :  { %v5325_v13 = vpack.c.bf16 %v5292_v20, %v5291_v12  ;;  %v14636_v18 = vpop.eup %14635  ;;  %14667 = vtanh.f32 %v17622_v40 }
 0xadd   :  { %v5194_v32 = vpop.permute.xlu1 %5193 }
 0xade   :  { %v5294_v6 = vmul.f32 %v14622_v42, %v5194_v32  ;;  %12593 = vmatprep.subr.bf16.mxu0 %v5325_v13 }
 0xadf   :  { %12594 = vmatpush3.bf16.msra.mxu0 %v5325_v13  ;;  %v14638_v13 = vpop.eup %14637  ;;  %14669 = vtanh.f32 %v17632_v23 }
 0xae0   :  { %v5326_v28 = vpack.c.bf16 %v5294_v6, %v5293_v55  ;;  %v14640_v55 = vpop.eup %14639  ;;  %14671 = vtanh.f32 %v17645_v63 }
 0xae1   :  { %v5196_v1 = vpop.permute.xlu0 %5195  ;;  %v14642_v36 = vpop.eup %14641  ;;  %14673 = vtanh.f32 %v17655_v29 }
 0xae2   :  { %12595 = vmatprep.subr.bf16.mxu0 %v5326_v28  ;;  %v5295_v53 = vmul.f32 %v14624_v44, %v5196_v1  ;;  %v14644_v60 = vpop.eup %14643  ;;  %14675 = vtanh.f32 %v17642_v50 }
 0xae3   :  { %12596 = vmatpush3.bf16.msra.mxu0 %v5326_v28 }
 0xae5   :  { %v5200_v0 = vpop.permute.xlu0 %5199 }
 0xae6   :  { %v5297_v57 = vmul.f32 %v14628_v5, %v5200_v0 }
 0xae7   :  { %v5198_v54 = vpop.permute.xlu1 %5197 }
 0xae8   :  { %v5296_v33 = vmul.f32 %v14626_v2, %v5198_v54  ;;  %v14646_v54 = vpop.eup %14645  ;;  %14677 = vtanh.f32 %v17652_v21 }
 0xae9   :  { %v14648_v35 = vpop.eup %14647 }
 0xaea   :  { %v5327_v7 = vpack.c.bf16 %v5296_v33, %v5295_v53  ;;  %v17703_v33 = vld [vmem:[%s19602_s1 + $0x10] sm:$0xff]  }
 0xaeb   :  { %v5202_v47 = vpop.permute.xlu1 %5201 }
 0xaec   :  { %v5298_v17 = vmul.f32 %v14630_v30, %v5202_v47  ;;  %12597 = vmatprep.subr.bf16.mxu0 %v5327_v7  ;;  %v17717_v30 = vld [vmem:[%s19602_s1 + $0x20] sm:$0xff]   ;;  %v14650_v47 = vpop.eup %14649 }
 0xaed   :  { %12598 = vmatpush3.bf16.msra.mxu0 %v5327_v7 }
 0xaee   :  { %v5328_v14 = vpack.c.bf16 %v5298_v17, %v5297_v57 }
 0xaf0   :  { %12599 = vmatprep.subr.bf16.mxu0 %v5328_v14 }
 0xaf1   :  { %12600 = vmatpush3.bf16.msra.mxu0 %v5328_v14 }
 0xaf6   :  { %v5204_v34 = vpop.permute.xlu0 %5203 }
 0xaf7   :  { %v5299_v56 = vmul.f32 %v14632_v38, %v5204_v34  ;;  %v14652_v34 = vpop.eup %14651 }
 0xaf9   :  { %v5206_v12 = vpop.permute.xlu1 %5205 }
 0xafa   :  { %v5208_v20 = vpop.permute.xlu0 %5207  ;;  %v5300_v15 = vmul.f32 %v14634_v22, %v5206_v12  ;;  %v14654_v22 = vpop.eup %14653 }
 0xafb   :  { %v5301_v46 = vmul.f32 %v14636_v18, %v5208_v20 }
 0xafc   :  { %v5329_v45 = vpack.c.bf16 %v5300_v15, %v5299_v56  ;;  %v14656_v15 = vpop.eup %14655 }
 0xafd   :  { %v5210_v37 = vpop.permute.xlu1 %5209  ;;  %v14658_v18 = vpop.eup %14657 }
 0xafe   :  { %v5302_v42 = vmul.f32 %v14638_v13, %v5210_v37  ;;  %12601 = vmatprep.subr.bf16.mxu0 %v5329_v45  ;;  %v5212_v62 = vpop.permute.xlu0 %5211 }
 0xaff   :  { %12602 = vmatpush3.bf16.msra.mxu0 %v5329_v45  ;;  %v5303_v28 = vmul.f32 %v14640_v55, %v5212_v62  ;;  %v14660_v62 = vpop.eup %14659  ;;  %v17747_v55 = vld [vmem:[%s19602_s1] sm:$0xff]  }
 0xb00   :  { %v5330_v32 = vpack.c.bf16 %v5302_v42, %v5301_v46  ;;  %v17741_v42 = vld [vmem:[%s19602_s1 + $0x38] sm:$0xff]   ;;  %v14662_v19 = vpop.eup %14661 }
 0xb02   :  { %12603 = vmatprep.subr.bf16.mxu0 %v5330_v32  ;;  %v5216_v44 = vpop.permute.xlu0 %5215 }
 0xb03   :  { %12604 = vmatpush3.bf16.msra.mxu0 %v5330_v32  ;;  %v5305_v41 = vmul.f32 %v14644_v60, %v5216_v44  ;;  %v14664_v44 = vpop.eup %14663 }
 0xb04   :  { %v5214_v6 = vpop.permute.xlu1 %5213  ;;  %v14666_v60 = vpop.eup %14665 }
 0xb05   :  { %v5304_v1 = vmul.f32 %v14642_v36, %v5214_v6 }
 0xb06   :  { %12606 = vmatmul.mubr.bf16.vlgmr.msra.gmra.mrb[184].mxu0 %v17696_v31 }
 0xb07   :  { %v5331_v2 = vpack.c.bf16 %v5304_v1, %v5303_v28  ;;  %12609 = vmatprep.mubr.bf16.mxu0 %v17703_v33 }
 0xb08   :  { %v5218_v53 = vpop.permute.xlu1 %5217 }
 0xb09   :  { %v5306_v0 = vmul.f32 %v14646_v54, %v5218_v53  ;;  %12621 = vmatprep.subr.bf16.mxu1 %v5331_v2 }
 0xb0a   :  { %12622 = vmatpush3.bf16.msra.mxu1 %v5331_v2  ;;  %v5220_v7 = vpop.permute.xlu0 %5219 }
 0xb0b   :  { %v5332_v5 = vpack.c.bf16 %v5306_v0, %v5305_v41  ;;  %v5307_v57 = vmul.f32 %v14648_v35, %v5220_v7  ;;  %v14668_v41 = vpop.eup %14667 }
 0xb0d   :  { %12623 = vmatprep.subr.bf16.mxu1 %v5332_v5 }
 0xb0e   :  { %12624 = vmatpush3.bf16.msra.mxu1 %v5332_v5  ;;  %12610 = vmatmul.mubr.bf16.gmra.mrb[188].mxu0 %v17711_v9  ;;  %v5224_v14 = vpop.permute.xlu0 %5223  ;;  %v14670_v5 = vpop.eup %14669 }
 0xb0f   :  { %12613 = vmatprep.mubr.bf16.mxu0 %v17717_v30  ;;  %v5309_v20 = vmul.f32 %v14652_v34, %v5224_v14  ;;  %v14672_v63 = vpop.eup %14671 }
 0xb12   :  { %v5222_v48 = vpop.permute.xlu1 %5221 }
 0xb13   :  { %v5308_v17 = vmul.f32 %v14650_v47, %v5222_v48 }
 0xb15   :  { %v5333_v38 = vpack.c.bf16 %v5308_v17, %v5307_v57  ;;  %v14674_v57 = vpop.eup %14673 }
 0xb16   :  { %v5226_v12 = vpop.permute.xlu1 %5225  ;;  %12614 = vmatmul.mubr.bf16.gmra.mrb[192].mxu0 %v17727_v11  ;;  %v5228_v3 = vpop.permute.xlu0 %5227 }
 0xb17   :  { %v5310_v56 = vmul.f32 %v14654_v22, %v5226_v12  ;;  %12625 = vmatprep.subr.bf16.mxu1 %v5333_v38  ;;  %12617 = vmatprep.mubr.bf16.mxu0 %v17733_v39  ;;  %v5311_v13 = vmul.f32 %v14656_v15, %v5228_v3  ;;  %v14676_v50 = vpop.eup %14675 }
 0xb18   :  { %12626 = vmatpush3.bf16.msra.mxu1 %v5333_v38  ;;  %v14678_v22 = vpop.eup %14677 }
 0xb19   :  { %v5334_v24 = vpack.c.bf16 %v5310_v56, %v5309_v20 }
 0xb1a   :  { %v5230_v45 = vpop.permute.xlu1 %5229  ;;  %v5232_v46 = vpop.permute.xlu0 %5231 }
 0xb1b   :  { %12627 = vmatprep.subr.bf16.mxu1 %v5334_v24  ;;  %v5312_v37 = vmul.f32 %v14658_v18, %v5230_v45  ;;  %v5313_v36 = vmul.f32 %v14660_v62, %v5232_v46 }
 0xb1c   :  { %12628 = vmatpush3.bf16.msra.mxu1 %v5334_v24  ;;  %v13751_v24 = vld [vmem:[%s19609_s8 + $0x20] sm:$0xff]  }
 0xb1d   :  { %v5335_v32 = vpack.c.bf16 %v5312_v37, %v5311_v13 }
 0xb1e   :  { %12618 = vmatmul.mubr.bf16.gmra.mrb[196].mxu0 %v17741_v42  ;;  %v5234_v51 = vpop.permute.xlu1 %5233 }
 0xb1f   :  { %12657 = vmatprep.mubr.msk.bf16.mxu0 %vm576_vm2, %v17747_v55  ;;  %v5314_v6 = vmul.f32 %v14662_v19, %v5234_v51  ;;  %12629 = vmatprep.subr.bf16.mxu1 %v5335_v32 }
 0xb20   :  { %12630 = vmatpush3.bf16.msra.mxu1 %v5335_v32 }
 0xb21   :  { %v5336_v28 = vpack.c.bf16 %v5314_v6, %v5313_v36 }
 0xb22   :  { %v5236_v1 = vpop.permute.xlu0 %5235 }
 0xb23   :  { %12631 = vmatprep.subr.bf16.mxu1 %v5336_v28  ;;  %v5315_v54 = vmul.f32 %v14664_v44, %v5236_v1 }
 0xb24   :  { %12632 = vmatpush3.bf16.msra.mxu1 %v5336_v28 }
 0xb26   :  { %v5238_v2 = vpop.permute.xlu1 %5237  ;;  %v5240_v40 = vpop.permute.xlu0 %5239 }
 0xb27   :  { %v5316_v53 = vmul.f32 %v14666_v60, %v5238_v2  ;;  %v5317_v23 = vmul.f32 %v14668_v41, %v5240_v40 }
 0xb29   :  { %v5337_v0 = vpack.c.bf16 %v5316_v53, %v5315_v54 }
 0xb2a   :  { %v5242_v7 = vpop.permute.xlu1 %5241  ;;  %v5244_v48 = vpop.permute.xlu0 %5243 }
 0xb2b   :  { %v5318_v35 = vmul.f32 %v14670_v5, %v5242_v7  ;;  %12633 = vmatprep.subr.bf16.mxu1 %v5337_v0  ;;  %v5319_v17 = vmul.f32 %v14672_v63, %v5244_v48 }
 0xb2c   :  { %12634 = vmatpush3.bf16.msra.mxu1 %v5337_v0 }
 0xb2d   :  { %v5338_v47 = vpack.c.bf16 %v5318_v35, %v5317_v23 }
 0xb2e   :  { %v5248_v34 = vpop.permute.xlu0 %5247 }
 0xb2f   :  { %12635 = vmatprep.subr.bf16.mxu1 %v5338_v47  ;;  %v5321_v21 = vmul.f32 %v14676_v50, %v5248_v34 }
 0xb30   :  { %12636 = vmatpush3.bf16.msra.mxu1 %v5338_v47 }
 0xb32   :  { %v5246_v29 = vpop.permute.xlu1 %5245 }
 0xb33   :  { %v5320_v14 = vmul.f32 %v14674_v57, %v5246_v29  ;;  %12638 = vmatmul.mubr.bf16.vlgmr.msra.gmra.mrb[176].mxu1 %v17696_v31 }
 0xb34   :  { %12641 = vmatprep.mubr.bf16.mxu1 %v17703_v33  ;;  %v13752_v33 = vld [vmem:[%s19609_s8 + $0x28] sm:$0xff]  }
 0xb35   :  { %v5339_v38 = vpack.c.bf16 %v5320_v14, %v5319_v17 }
 0xb36   :  { %v5250_v12 = vpop.permute.xlu1 %5249 }
 0xb37   :  { %v5322_v20 = vmul.f32 %v14678_v22, %v5250_v12  ;;  %12653 = vmatprep.subr.bf16.mxu0 %v5339_v38 }
 0xb38   :  { %12654 = vmatpush3.bf16.msra.mxu0 %v5339_v38 }
 0xb39   :  { %v5340_v56 = vpack.c.bf16 %v5322_v20, %v5321_v21 }
 0xb3b   :  { %12655 = vmatprep.subr.bf16.mxu0 %v5340_v56  ;;  %12642 = vmatmul.mubr.bf16.gmra.mrb[180].mxu1 %v17711_v9 }
 0xb3c   :  { %12656 = vmatpush3.bf16.msra.mxu0 %v5340_v56  ;;  %12645 = vmatprep.mubr.bf16.mxu1 %v17717_v30 }
 0xb3d   :  { %12661 = vmatprep.subr.bf16.mxu0 %v13751_v24 }
 0xb3f   :  { %12658 = vmatmul.mubr.msk.bf16.vlgmr.msra.gmra.mrb[200].mxu0 %vm576_vm2, %v17696_v31 }
 0xb40   :  { %12662 = vmatpush3.bf16.msra.mxu0 %v13751_v24 }
 0xb41   :  { %12663 = vmatprep.subr.bf16.mxu0 %v13752_v33 }
 0xb43   :  { %12646 = vmatmul.mubr.bf16.gmra.mrb[184].mxu1 %v17727_v11 }
 0xb44   :  { %12649 = vmatprep.mubr.bf16.mxu1 %v17733_v39  ;;  %12664 = vmatpush3.bf16.msra.mxu0 %v13752_v33 }
 0xb4b   :  { %12650 = vmatmul.mubr.bf16.gmra.mrb[188].mxu1 %v17741_v42 }
 0xb4c   :  { %5963 = vmatprep.mubr.bf16.mxu1 %v19778_v43 }
 0xbd9   :  { %v12607_v9 = vpop.f32.mrb[184].mxu0 }
 0xbda   :  { %v5375_v30 = vpop.f32.mrb[185].mxu0 }
 0xbdb   :  { %v12608_v3 = vpop.f32.mrb[186].mxu0 }
 0xbdc   :  { %v5589_v15 = vpack.c.bf16 %v12608_v3, %v12607_v9  ;;  %v5378_v31 = vpop.f32.mrb[187].mxu0 }
 0xbdd   :  { %v5588_v18 = vpack.c.bf16 %v5378_v31, %v5375_v30  ;;  %v13755_v31 = vld [vmem:[#allocation6 + $0x64] ss:$8 sps:$4 sm:$0xff]  }
 0xbde   :  { %5931 = vmatprep.subr.bf16.mxu1 %v13755_v31 }
 0xbdf   :  { %12665 = vmatprep.mubr.msk.bf16.mxu0 %vm576_vm2, %v5588_v18  ;;  %v13753_v18 = vld [vmem:[#allocation6 + $0x60] ss:$8 sps:$4 sm:$0xff]  }
 0xbe0   :  { %12666 = vmatmul.mubr.msk.bf16.vlgmr.msra.gmra.mrb[204].mxu0 %vm576_vm2, %v5589_v15  ;;  %5932 = vmatpush1.bf16.msra.mxu1 %v13753_v18  ;;  %v19919_v18 = vld [vmem:[#allocation16_spill] sm:$0xff] }
 0xbe1   :  { %v12611_v11 = vpop.f32.mrb[188].mxu0 }
 0xbe2   :  { %v5391_v39 = vpop.f32.mrb[189].mxu0 }
 0xbe3   :  { %v12612_v45 = vpop.f32.mrb[190].mxu0 }
 0xbe4   :  { %v5591_v13 = vpack.c.bf16 %v12612_v45, %v12611_v11  ;;  %v5394_v37 = vpop.f32.mrb[191].mxu0  ;;  %v13756_v11 = vld [vmem:[#allocation6 + $0x70] ss:$8 sps:$4 sm:$0xff]   ;;  %v17792_v45 = vld [vmem:[#allocation4 + $0x60] sm:$0xff]  }
 0xbe5   :  { %v5590_v46 = vpack.c.bf16 %v5394_v37, %v5391_v39  ;;  %v13758_v39 = vld [vmem:[#allocation6 + $0x74] ss:$8 sps:$4 sm:$0xff]  }
 0xbe6   :  { %5933 = vmatprep.subr.bf16.mxu1 %v13758_v39  ;;  %v19920_v39 = vld [vmem:[#allocation15_spill] sm:$0xff] }
 0xbe7   :  { %12669 = vmatprep.mubr.msk.bf16.mxu0 %vm576_vm2, %v5590_v46  ;;  %5934 = vmatpush1.bf16.msra.mxu1 %v13756_v11 }
 0xbe8   :  { %12670 = vmatmul.mubr.msk.bf16.gmra.mrb[208].mxu0 %vm576_vm2, %v5591_v13  ;;  %12701 = vmatprep.subr.bf16.mxu1 %v17792_v45 }
 0xbe9   :  { %v12615_v42 = vpop.f32.mrb[192].mxu0 }
 0xbea   :  { %v5407_v62 = vpop.f32.mrb[193].mxu0 }
 0xbeb   :  { %v12616_v32 = vpop.f32.mrb[194].mxu0 }
 0xbec   :  { %v5593_v19 = vpack.c.bf16 %v12616_v32, %v12615_v42  ;;  %v5410_v51 = vpop.f32.mrb[195].mxu0 }
 0xbed   :  { %v5592_v36 = vpack.c.bf16 %v5410_v51, %v5407_v62  ;;  %v17811_v51 = vld [vmem:[#allocation7 + $0x2] ss:$0 sm:$0xff] }
 0xbef   :  { %12673 = vmatprep.mubr.msk.bf16.mxu0 %vm576_vm2, %v5592_v36 }
 0xbf0   :  { %12674 = vmatmul.mubr.msk.bf16.gmra.mrb[212].mxu0 %vm576_vm2, %v5593_v19 }
 0xbf1   :  { %v12619_v6 = vpop.f32.mrb[196].mxu0 }
 0xbf2   :  { %v5423_v28 = vpop.f32.mrb[197].mxu0 }
 0xbf3   :  { %v12620_v1 = vpop.f32.mrb[198].mxu0 }
 0xbf4   :  { %v5595_v44 = vpack.c.bf16 %v12620_v1, %v12619_v6  ;;  %v5426_v60 = vpop.f32.mrb[199].mxu0 }
 0xbf5   :  { %v5594_v2 = vpack.c.bf16 %v5426_v60, %v5423_v28 }
 0xbf7   :  { %12677 = vmatprep.mubr.msk.bf16.mxu0 %vm576_vm2, %v5594_v2 }
 0xbf8   :  { %12678 = vmatmul.mubr.msk.bf16.gmra.mrb[216].mxu0 %vm576_vm2, %v5595_v44 }
 0xc06   :  { %v12639_v54 = vpop.f32.mrb[176].mxu1 }
 0xc07   :  { %v5472_v53 = vpop.f32.mrb[177].mxu1 }
 0xc08   :  { %v12640_v40 = vpop.f32.mrb[178].mxu1 }
 0xc09   :  { %v5597_v41 = vpack.c.bf16 %v12640_v40, %v12639_v54  ;;  %v5475_v0 = vpop.f32.mrb[179].mxu1 }
 0xc0a   :  { %v5596_v5 = vpack.c.bf16 %v5475_v0, %v5472_v53 }
 0xc0c   :  { %12681 = vmatprep.mubr.msk.bf16.mxu0 %vm576_vm2, %v5596_v5 }
 0xc0d   :  { %12682 = vmatmul.mubr.msk.bf16.gmra.mrb[220].mxu0 %vm576_vm2, %v5597_v41 }
 0xc0e   :  { %v12643_v7 = vpop.f32.mrb[180].mxu1 }
 0xc0f   :  { %v5488_v23 = vpop.f32.mrb[181].mxu1 }
 0xc10   :  { %v12644_v35 = vpop.f32.mrb[182].mxu1 }
 0xc11   :  { %v5599_v47 = vpack.c.bf16 %v12644_v35, %v12643_v7  ;;  %v5491_v48 = vpop.f32.mrb[183].mxu1 }
 0xc12   :  { %v5598_v63 = vpack.c.bf16 %v5491_v48, %v5488_v23  ;;  %v12659_v57 = vpop.f32.mrb[200].mxu0 }
 0xc13   :  { %v5573_v29 = vpop.f32.mrb[201].mxu0 }
 0xc14   :  { %12685 = vmatprep.mubr.msk.bf16.mxu0 %vm576_vm2, %v5598_v63  ;;  %v12660_v17 = vpop.f32.mrb[202].mxu0 }
 0xc15   :  { %12686 = vmatmul.mubr.msk.bf16.gmra.mrb[224].mxu0 %vm576_vm2, %v5599_v47  ;;  %v5605_v14 = vpack.c.bf16 %v12660_v17, %v12659_v57  ;;  %v5576_v34 = vpop.f32.mrb[203].mxu0 }
 0xc16   :  { %v12647_v50 = vpop.f32.mrb[184].mxu1  ;;  %v5604_v38 = vpack.c.bf16 %v5576_v34, %v5573_v29 }
 0xc17   :  { %v5504_v22 = vpop.f32.mrb[185].mxu1 }
 0xc18   :  { %v12648_v12 = vpop.f32.mrb[186].mxu1 }
 0xc19   :  { %v5601_v21 = vpack.c.bf16 %v12648_v12, %v12647_v50  ;;  %v5507_v20 = vpop.f32.mrb[187].mxu1 }
 0xc1a   :  { %v5600_v56 = vpack.c.bf16 %v5507_v20, %v5504_v22 }
 0xc1c   :  { %12689 = vmatprep.mubr.msk.bf16.mxu0 %vm576_vm2, %v5600_v56 }
 0xc1d   :  { %12690 = vmatmul.mubr.msk.bf16.gmra.mrb[228].mxu0 %vm576_vm2, %v5601_v21 }
 0xc1e   :  { %v12651_v24 = vpop.f32.mrb[188].mxu1 }
 0xc1f   :  { %v5520_v33 = vpop.f32.mrb[189].mxu1 }
 0xc20   :  { %v12652_v9 = vpop.f32.mrb[190].mxu1 }
 0xc21   :  { %v5603_v30 = vpack.c.bf16 %v12652_v9, %v12651_v24  ;;  %v5523_v3 = vpop.f32.mrb[191].mxu1 }
 0xc22   :  { %v5602_v15 = vpack.c.bf16 %v5523_v3, %v5520_v33 }
 0xc24   :  { %12693 = vmatprep.mubr.msk.bf16.mxu0 %vm576_vm2, %v5602_v15 }
 0xc25   :  { %12694 = vmatmul.mubr.msk.bf16.gmra.mrb[232].mxu0 %vm576_vm2, %v5603_v30 }
 0xc26   :  { %12697 = vmatprep.mubr.msk.bf16.mxu0 %vm576_vm2, %v5604_v38 }
 0xc2d   :  { %12698 = vmatmul.mubr.msk.bf16.gmra.mrb[236].mxu0 %vm576_vm2, %v5605_v14 }
 0xc2e   :  { %12753 = vmatprep.mubr.bf16.mxu0 %v17747_v55 }
 0xcb3   :  { %v17795_v13 = vpop.f32.mrb[204].mxu0 }
 0xcb4   :  { %v17797_v37 = vpop.f32.mrb[205].mxu0 }
 0xcb5   :  { %v17799_v46 = vpop.f32.mrb[206].mxu0 }
 0xcb6   :  { %v17801_v42 = vpop.f32.mrb[207].mxu0 }
 0xcbb   :  { %v17803_v55 = vpop.f32.mrb[208].mxu0 }
 0xcbc   :  { %v17805_v62 = vpop.f32.mrb[209].mxu0 }
 0xcbd   :  { %v17807_v32 = vpop.f32.mrb[210].mxu0 }
 0xcbe   :  { %v17809_v19 = vpop.f32.mrb[211].mxu0 }
 0xcc3   :  { %v12675_v36 = vpop.f32.mrb[212].mxu0 }
 0xcc4   :  { %v5760_v6 = vadd.f32 %v12675_v36, %v17811_v51  ;;  %v5751_v28 = vpop.f32.mrb[213].mxu0 }
 0xcc5   :  { %v5752_v1 = vadd.f32 %v17811_v51, %v5751_v28  ;;  %v12676_v44 = vpop.f32.mrb[214].mxu0 }
 0xcc6   :  { %v5763_v60 = vadd.f32 %v12676_v44, %v17811_v51  ;;  %v5754_v2 = vpop.f32.mrb[215].mxu0  ;;  %v17818_v53 = vadd.f32 %v5760_v6, %v17231_v16  ;;  %v19921_v6 = vld [vmem:[#allocation13_spill] sm:$0xff] }
 0xcc7   :  { %v5755_v54 = vadd.f32 %v17811_v51, %v5754_v2  ;;  %v17824_v41 = vadd.f32 %v5752_v1, %v17237_v27  ;;  %v19922_v1 = vld [vmem:[#allocation14_spill] sm:$0xff] }
 0xcc8   :  { %19915 = vst [vmem:[#allocation37_spill] sm:$0xff] %v17818_v53  ;;  %v17821_v40 = vadd.f32 %v5763_v60, %v17234_v26 }
 0xcc9   :  { %19917 = vst [vmem:[#allocation38_spill] sm:$0xff] %v17824_v41  ;;  %v17827_v0 = vadd.f32 %v5755_v54, %v17240_v10 }
 0xcca   :  { %19916 = vst [vmem:[#allocation39_spill] sm:$0xff] %v17821_v40  ;;  %v13514_v5 = vpack.i.bf16 %v17821_v40, %v17818_v53 }
 0xccb   :  { %19918 = vst [vmem:[#allocation40_spill] sm:$0xff] %v17827_v0  ;;  %v13509_v7 = vpack.i.bf16 %v17827_v0, %v17824_v41  ;;  %v12679_v23 = vpop.f32.mrb[216].mxu0 }
 0xccc   :  { %v5776_v35 = vadd.f32 %v12679_v23, %v17811_v51  ;;  %13515 = vrot.lane.b32.xlu1 %v13514_v5, %s15325_s3  ;;  %v5767_v16 = vpop.f32.mrb[217].mxu0 }
 0xccd   :  { %v5768_v26 = vadd.f32 %v17811_v51, %v5767_v16  ;;  %v12680_v47 = vpop.f32.mrb[218].mxu0  ;;  %13510 = vrot.lane.b32.xlu0 %v13509_v7, %s15325_s3 }
 0xcce   :  { %v5779_v27 = vadd.f32 %v12680_v47, %v17811_v51  ;;  %v5770_v10 = vpop.f32.mrb[219].mxu0  ;;  %v17840_v63 = vadd.f32 %v5776_v35, %v17253_v58 }
 0xccf   :  { %v5771_v48 = vadd.f32 %v17811_v51, %v5770_v10  ;;  %v17846_v29 = vadd.f32 %v5768_v26, %v17259_v49 }
 0xcd0   :  { %v17843_v57 = vadd.f32 %v5779_v27, %v17256_v8  ;;  %v19923_v27 = vld [vmem:[#allocation22_spill] sm:$0xff] }
 0xcd1   :  { %v17849_v17 = vadd.f32 %v5771_v48, %v17262_v4  ;;  %v19924_v48 = vld [vmem:[#allocation21_spill] sm:$0xff] }
 0xcd2   :  { %v13524_v14 = vpack.i.bf16 %v17843_v57, %v17840_v63 }
 0xcd3   :  { %v13519_v34 = vpack.i.bf16 %v17849_v17, %v17846_v29 }
 0xcd4   :  { %13525 = vrot.lane.b32.xlu1 %v13524_v14, %s15325_s3 }
 0xcd5   :  { %13520 = vrot.lane.b32.xlu0 %v13519_v34, %s15325_s3  ;;  %v19925_v34 = vld [vmem:[#allocation19_spill] sm:$0xff] }
 0xce0   :  { %v12683_v58 = vpop.f32.mrb[220].mxu0 }
 0xce1   :  { %v5792_v8 = vadd.f32 %v12683_v58, %v17811_v51  ;;  %v5783_v50 = vpop.f32.mrb[221].mxu0 }
 0xce2   :  { %v5784_v49 = vadd.f32 %v17811_v51, %v5783_v50  ;;  %v12684_v38 = vpop.f32.mrb[222].mxu0 }
 0xce3   :  { %v5795_v4 = vadd.f32 %v12684_v38, %v17811_v51  ;;  %v5786_v22 = vpop.f32.mrb[223].mxu0  ;;  %v17862_v21 = vadd.f32 %v5792_v8, %v17275_v52  ;;  %v19926_v8 = vld [vmem:[#allocation20_spill] sm:$0xff] }
 0xce4   :  { %v5787_v12 = vadd.f32 %v17811_v51, %v5786_v22  ;;  %v17868_v56 = vadd.f32 %v5784_v49, %v17281_v59 }
 0xce5   :  { %v17865_v20 = vadd.f32 %v5795_v4, %v17278_v25 }
 0xce6   :  { %v17871_v24 = vadd.f32 %v5787_v12, %v17284_v61 }
 0xce7   :  { %v13534_v33 = vpack.i.bf16 %v17865_v20, %v17862_v21 }
 0xce8   :  { %v13529_v9 = vpack.i.bf16 %v17871_v24, %v17868_v56  ;;  %v12687_v30 = vpop.f32.mrb[224].mxu0 }
 0xce9   :  { %v5808_v3 = vadd.f32 %v12687_v30, %v17811_v51  ;;  %13535 = vrot.lane.b32.xlu1 %v13534_v33, %s15325_s3  ;;  %v5799_v52 = vpop.f32.mrb[225].mxu0 }
 0xcea   :  { %v5800_v25 = vadd.f32 %v17811_v51, %v5799_v52  ;;  %13530 = vrot.lane.b32.xlu0 %v13529_v9, %s15325_s3  ;;  %v12688_v59 = vpop.f32.mrb[226].mxu0 }
 0xceb   :  { %v5811_v61 = vadd.f32 %v12688_v59, %v17811_v51  ;;  %v5802_v15 = vpop.f32.mrb[227].mxu0  ;;  %v17884_v11 = vadd.f32 %v5808_v3, %v19919_v18 }
 0xcec   :  { %v5803_v31 = vadd.f32 %v17811_v51, %v5802_v15  ;;  %v17890_v28 = vadd.f32 %v5800_v25, %v19921_v6  ;;  %v19927_v25 = vld [vmem:[#allocation29_spill] sm:$0xff] }
 0xced   :  { %v17887_v36 = vadd.f32 %v5811_v61, %v19920_v39  ;;  %v19928_v61 = vld [vmem:[#allocation31_spill] sm:$0xff]  ;;  %v19930_v39 = vld [vmem:[#allocation32_spill] sm:$0xff] }
 0xcee   :  { %v17893_v44 = vadd.f32 %v5803_v31, %v19922_v1  ;;  %v19929_v31 = vld [vmem:[#allocation30_spill] sm:$0xff] }
 0xcef   :  { %v13544_v60 = vpack.i.bf16 %v17887_v36, %v17884_v11 }
 0xcf0   :  { %v13539_v2 = vpack.i.bf16 %v17893_v44, %v17890_v28  ;;  %v12691_v54 = vpop.f32.mrb[228].mxu0 }
 0xcf1   :  { %v5824_v5 = vadd.f32 %v12691_v54, %v17811_v51  ;;  %13545 = vrot.lane.b32.xlu1 %v13544_v60, %s15325_s3  ;;  %v5815_v7 = vpop.f32.mrb[229].mxu0 }
 0xcf2   :  { %v5816_v23 = vadd.f32 %v17811_v51, %v5815_v7  ;;  %13540 = vrot.lane.b32.xlu0 %v13539_v2, %s15325_s3  ;;  %v12692_v35 = vpop.f32.mrb[230].mxu0 }
 0xcf3   :  { %v5827_v16 = vadd.f32 %v12692_v35, %v17811_v51  ;;  %v5818_v26 = vpop.f32.mrb[231].mxu0  ;;  %v17906_v10 = vadd.f32 %v5824_v5, %v19923_v27 }
 0xcf4   :  { %v5819_v47 = vadd.f32 %v17811_v51, %v5818_v26  ;;  %v17912_v58 = vadd.f32 %v5816_v23, %v19925_v34 }
 0xcf5   :  { %v17909_v14 = vadd.f32 %v5827_v16, %v19924_v48  ;;  %v19933_v48 = vld [vmem:[#allocation35_spill] sm:$0xff] }
 0xcf6   :  { %v17915_v50 = vadd.f32 %v5819_v47, %v19926_v8  ;;  %v19931_v47 = vld [vmem:[#allocation33_spill] sm:$0xff]  ;;  %v19935_v8 = vld [vmem:[#allocation34_spill] sm:$0xff] }
 0xcf7   :  { %v13554_v49 = vpack.i.bf16 %v17909_v14, %v17906_v10 }
 0xcf8   :  { %v13549_v38 = vpack.i.bf16 %v17915_v50, %v17912_v58  ;;  %v12695_v4 = vpop.f32.mrb[232].mxu0 }
 0xcf9   :  { %v5840_v22 = vadd.f32 %v12695_v4, %v17811_v51  ;;  %13555 = vrot.lane.b32.xlu1 %v13554_v49, %s15325_s3  ;;  %v5831_v12 = vpop.f32.mrb[233].mxu0 }
 0xcfa   :  { %v5832_v33 = vadd.f32 %v17811_v51, %v5831_v12  ;;  %13550 = vrot.lane.b32.xlu0 %v13549_v38, %s15325_s3  ;;  %v12696_v9 = vpop.f32.mrb[234].mxu0  ;;  %v19937_v38 = vld [vmem:[#allocation36_spill] sm:$0xff] }
 0xcfb   :  { %v5843_v30 = vadd.f32 %v12696_v9, %v17811_v51  ;;  %v5834_v3 = vpop.f32.mrb[235].mxu0  ;;  %v17928_v59 = vadd.f32 %v5840_v22, %v19927_v25  ;;  %v13760_v9 = vld [vmem:[#allocation4 + $0x68] sm:$0xff]   ;;  %v5728_v25 = vadd.f32 %v17795_v13, %v17811_v51 }
 0xcfc   :  { %v5835_v52 = vadd.f32 %v17811_v51, %v5834_v3  ;;  %v17934_v18 = vadd.f32 %v5832_v33, %v19929_v31  ;;  %v5723_v31 = vadd.f32 %v17811_v51, %v17801_v42  ;;  %v19942_v13 = vld [vmem:[#allocation60_spill] sm:$0xff] }
 0xcfd   :  { %v17931_v15 = vadd.f32 %v5843_v30, %v19928_v61  ;;  %v13761_v30 = vld [vmem:[#allocation4 + $0x70] sm:$0xff]   ;;  %v5731_v61 = vadd.f32 %v17799_v46, %v17811_v51 }
 0xcfe   :  { %v17937_v6 = vadd.f32 %v5835_v52, %v19930_v39  ;;  %v13762_v52 = vld [vmem:[#allocation4 + $0x78] sm:$0xff]  }
 0xcff   :  { %v13564_v1 = vpack.i.bf16 %v17931_v15, %v17928_v59 }
 0xd00   :  { %v13559_v60 = vpack.i.bf16 %v17937_v6, %v17934_v18  ;;  %v12699_v2 = vpop.f32.mrb[236].mxu0 }
 0xd01   :  { %v5856_v54 = vadd.f32 %v12699_v2, %v17811_v51  ;;  %13565 = vrot.lane.b32.xlu1 %v13564_v1, %s15325_s3  ;;  %v5847_v5 = vpop.f32.mrb[237].mxu0  ;;  %v19939_v1 = vld [vmem:[#allocation57_spill] sm:$0xff]  ;;  %v19940_v2 = vld [vmem:[#allocation59_spill] sm:$0xff] }
 0xd02   :  { %v5848_v7 = vadd.f32 %v17811_v51, %v5847_v5  ;;  %v12700_v23 = vpop.f32.mrb[238].mxu0  ;;  %13560 = vrot.lane.b32.xlu0 %v13559_v60, %s15325_s3  ;;  %v5864_v60 = vadd.f32 %v5728_v25, %v19939_v1 }
 0xd03   :  { %v5859_v35 = vadd.f32 %v12700_v23, %v17811_v51  ;;  %v5850_v16 = vpop.f32.mrb[239].mxu0  ;;  %v17950_v27 = vadd.f32 %v5856_v54, %v19931_v47  ;;  %v5865_v54 = vadd.f32 %v5731_v61, %v19940_v2  ;;  %v19944_v61 = vld [vmem:[#allocation25_spill] sm:$0xff] }
 0xd04   :  { %v5851_v26 = vadd.f32 %v17811_v51, %v5850_v16  ;;  %v17956_v49 = vadd.f32 %v5848_v7, %v19935_v8 }
 0xd05   :  { %19932 = vst [vmem:[#allocation41_spill] sm:$0xff] %v17950_v27  ;;  %v17953_v34 = vadd.f32 %v5859_v35, %v19933_v48  ;;  %v19941_v35 = vld [vmem:[#allocation58_spill] sm:$0xff] }
 0xd06   :  { %19936 = vst [vmem:[#allocation42_spill] sm:$0xff] %v17956_v49  ;;  %v17959_v4 = vadd.f32 %v5851_v26, %v19937_v38  ;;  %v5863_v26 = vadd.f32 %v5723_v31, %v19942_v13 }
 0xd07   :  { %19934 = vst [vmem:[#allocation43_spill] sm:$0xff] %v17953_v34  ;;  %v13574_v22 = vpack.i.bf16 %v17953_v34, %v17950_v27  ;;  %v5899_v3 = vpack.c.bf16 %v17953_v34, %v17950_v27 }
 0xd08   :  { %19938 = vst [vmem:[#allocation44_spill] sm:$0xff] %v17959_v4  ;;  %v13569_v12 = vpack.i.bf16 %v17959_v4, %v17956_v49  ;;  %v5898_v33 = vpack.c.bf16 %v17959_v4, %v17956_v49 }
 0xd09   :  { %13575 = vrot.lane.b32.xlu1 %v13574_v22, %s15325_s3  ;;  %v5744_v22 = vadd.f32 %v17803_v55, %v17811_v51 }
 0xd0a   :  { %11226 = vmatmul.mubr.msk.bf16.vlgmr.msra.gmra.mrb[4].mxu1 %vm576_vm2, %v5898_v33  ;;  %13570 = vrot.lane.b32.xlu0 %v13569_v12, %s15325_s3  ;;  %v5747_v12 = vadd.f32 %v17807_v32, %v17811_v51  ;;  %v19945_v32 = vld [vmem:[#allocation17_spill] sm:$0xff] }
 0xd0b   :  { %5973 = vmatprep.mubr.bf16.mxu1 %v19778_v43  ;;  %12702 = vmatpush3.bf16.msra.mxu1 %v17792_v45  ;;  %v5720_v45 = vadd.f32 %v17811_v51, %v17797_v37 }
 0xd0c   :  { %12703 = vmatprep.subr.bf16.mxu1 %v13760_v9 }
 0xd0d   :  { %v5862_v16 = vadd.f32 %v5720_v45, %v19941_v35  ;;  %v5869_v45 = vadd.f32 %v5747_v12, %v19944_v61 }
 0xd0f   :  { %12704 = vmatpush3.bf16.msra.mxu1 %v13760_v9  ;;  %v5736_v9 = vadd.f32 %v17811_v51, %v17805_v62 }
 0xd10   :  { %12705 = vmatprep.subr.bf16.mxu1 %v13761_v30 }
 0xd11   :  { %v5866_v1 = vadd.f32 %v5736_v9, %v19945_v32 }
 0xd12   :  { %11227 = vmatmul.mubr.msk.bf16.gmra.mrb[8].mxu1 %vm576_vm2, %v5899_v3 }
 0xd13   :  { %12706 = vmatpush3.bf16.msra.mxu1 %v13761_v30  ;;  %v5739_v30 = vadd.f32 %v17811_v51, %v17809_v19 }
 0xd14   :  { %12707 = vmatprep.subr.bf16.mxu1 %v13762_v52 }
 0xd17   :  { %12708 = vmatpush3.bf16.msra.mxu1 %v13762_v52  ;;  %v19943_v52 = vld [vmem:[#allocation24_spill] sm:$0xff] }
 0xd18   :  { %v5868_v25 = vadd.f32 %v5744_v22, %v19943_v52 }
 0xd3e   :  { %v13516_v39 = vpop.permute.xlu1 %13515 }
 0xd3f   :  { %v13518_v5 = vunpack.i.h.bf16 %v13516_v39  ;;  %v13517_v7 = vunpack.i.l.bf16 %v13516_v39  ;;  %v13511_v23 = vpop.permute.xlu0 %13510 }
 0xd40   :  { %v13513_v47 = vunpack.i.h.bf16 %v13511_v23  ;;  %v13512_v46 = vunpack.i.l.bf16 %v13511_v23 }
 0xd41   :  { %v6128_v48 = vsel %vm576_vm2, %v5865_v54, %v13518_v5  ;;  %v6127_v37 = vsel %vm576_vm2, %v5864_v60, %v13517_v7  ;;  %v19946_v60 = vld [vmem:[#allocation18_spill] sm:$0xff] }
 0xd42   :  { %v6154_v8 = vpack.c.bf16 %v6128_v48, %v6127_v37  ;;  %v6125_v42 = vsel %vm576_vm2, %v5862_v16, %v13512_v46  ;;  %v6126_v38 = vsel %vm576_vm2, %v5863_v26, %v13513_v47  ;;  %v5867_v2 = vadd.f32 %v5739_v30, %v19946_v60 }
 0xd43   :  { %v6153_v33 = vpack.c.bf16 %v6126_v38, %v6125_v42 }
 0xd45   :  { %12709 = vmatprep.mubr.msk.bf16.mxu1 %vm939_vm3, %v6153_v33 }
 0xd46   :  { %v13526_v3 = vpop.permute.xlu1 %13525  ;;  %12710 = vmatmul.mubr.msk.bf16.vlgmr.msra.gmra.mrb[192].mxu1 %vm939_vm3, %v6154_v8 }
 0xd47   :  { %v13528_v55 = vunpack.i.h.bf16 %v13526_v3  ;;  %v13527_v31 = vunpack.i.l.bf16 %v13526_v3  ;;  %v13521_v39 = vpop.permute.xlu0 %13520 }
 0xd48   :  { %v13523_v62 = vunpack.i.h.bf16 %v13521_v39  ;;  %v13522_v54 = vunpack.i.l.bf16 %v13521_v39 }
 0xd49   :  { %v6132_v19 = vsel %vm576_vm2, %v5869_v45, %v13528_v55  ;;  %v6131_v51 = vsel %vm576_vm2, %v5868_v25, %v13527_v31 }
 0xd4a   :  { %v6129_v5 = vsel %vm576_vm2, %v5866_v1, %v13522_v54  ;;  %v6130_v7 = vsel %vm576_vm2, %v5867_v2, %v13523_v62  ;;  %v6156_v23 = vpack.c.bf16 %v6132_v19, %v6131_v51 }
 0xd4b   :  { %v6155_v35 = vpack.c.bf16 %v6130_v7, %v6129_v5 }
 0xd4d   :  { %12713 = vmatprep.mubr.msk.bf16.mxu1 %vm939_vm3, %v6155_v35 }
 0xd4e   :  { %12714 = vmatmul.mubr.msk.bf16.gmra.mrb[196].mxu1 %vm939_vm3, %v6156_v23 }
 0xd5b   :  { %v13536_v16 = vpop.permute.xlu1 %13535 }
 0xd5c   :  { %v13538_v13 = vunpack.i.h.bf16 %v13536_v16  ;;  %v13537_v26 = vunpack.i.l.bf16 %v13536_v16  ;;  %v13531_v47 = vpop.permute.xlu0 %13530 }
 0xd5d   :  { %v13533_v46 = vunpack.i.h.bf16 %v13531_v47  ;;  %v13532_v48 = vunpack.i.l.bf16 %v13531_v47 }
 0xd5e   :  { %v6136_v37 = vsel %vm576_vm2, %v17821_v40, %v13538_v13  ;;  %v6135_v8 = vsel %vm576_vm2, %v17818_v53, %v13537_v26 }
 0xd5f   :  { %v6134_v42 = vsel %vm576_vm2, %v17827_v0, %v13533_v46  ;;  %v6133_v38 = vsel %vm576_vm2, %v17824_v41, %v13532_v48  ;;  %v6158_v12 = vpack.c.bf16 %v6136_v37, %v6135_v8 }
 0xd60   :  { %v6157_v22 = vpack.c.bf16 %v6134_v42, %v6133_v38 }
 0xd62   :  { %12717 = vmatprep.mubr.msk.bf16.mxu1 %vm939_vm3, %v6157_v22 }
 0xd63   :  { %v13546_v33 = vpop.permute.xlu1 %13545  ;;  %12718 = vmatmul.mubr.msk.bf16.gmra.mrb[200].mxu1 %vm939_vm3, %v6158_v12 }
 0xd64   :  { %v13548_v9 = vunpack.i.h.bf16 %v13546_v33  ;;  %v13547_v30 = vunpack.i.l.bf16 %v13546_v33  ;;  %v13541_v3 = vpop.permute.xlu0 %13540 }
 0xd65   :  { %v13543_v52 = vunpack.i.h.bf16 %v13541_v3  ;;  %v13542_v25 = vunpack.i.l.bf16 %v13541_v3 }
 0xd66   :  { %v6140_v61 = vsel %vm576_vm2, %v17843_v57, %v13548_v9  ;;  %v6139_v45 = vsel %vm576_vm2, %v17840_v63, %v13547_v30 }
 0xd67   :  { %v6138_v55 = vsel %vm576_vm2, %v17849_v17, %v13543_v52  ;;  %v6137_v31 = vsel %vm576_vm2, %v17846_v29, %v13542_v25  ;;  %v6160_v32 = vpack.c.bf16 %v6140_v61, %v6139_v45 }
 0xd68   :  { %v6159_v39 = vpack.c.bf16 %v6138_v55, %v6137_v31 }
 0xd6a   :  { %12721 = vmatprep.mubr.msk.bf16.mxu1 %vm939_vm3, %v6159_v39 }
 0xd6b   :  { %v13556_v1 = vpop.permute.xlu1 %13555  ;;  %12722 = vmatmul.mubr.msk.bf16.gmra.mrb[204].mxu1 %vm939_vm3, %v6160_v32 }
 0xd6c   :  { %v13558_v60 = vunpack.i.h.bf16 %v13556_v1  ;;  %v13557_v2 = vunpack.i.l.bf16 %v13556_v1  ;;  %v13551_v62 = vpop.permute.xlu0 %13550 }
 0xd6d   :  { %v13553_v54 = vunpack.i.h.bf16 %v13551_v62  ;;  %v13552_v19 = vunpack.i.l.bf16 %v13551_v62 }
 0xd6e   :  { %v6144_v51 = vsel %vm576_vm2, %v17865_v20, %v13558_v60  ;;  %v6143_v5 = vsel %vm576_vm2, %v17862_v21, %v13557_v2  ;;  %v18064_v60 = vld [vmem:[%s19606_s5 + $0x3] ss:$0 sm:$0xff] }
 0xd6f   :  { %v6142_v7 = vsel %vm576_vm2, %v17871_v24, %v13553_v54  ;;  %v6141_v23 = vsel %vm576_vm2, %v17868_v56, %v13552_v19  ;;  %v6162_v16 = vpack.c.bf16 %v6144_v51, %v6143_v5 }
 0xd70   :  { %v6161_v35 = vpack.c.bf16 %v6142_v7, %v6141_v23 }
 0xd72   :  { %12725 = vmatprep.mubr.msk.bf16.mxu1 %vm939_vm3, %v6161_v35 }
 0xd73   :  { %v13566_v13 = vpop.permute.xlu1 %13565  ;;  %12726 = vmatmul.mubr.msk.bf16.gmra.mrb[208].mxu1 %vm939_vm3, %v6162_v16 }
 0xd74   :  { %v13568_v26 = vunpack.i.h.bf16 %v13566_v13  ;;  %v13567_v47 = vunpack.i.l.bf16 %v13566_v13  ;;  %v13561_v46 = vpop.permute.xlu0 %13560 }
 0xd75   :  { %v13563_v48 = vunpack.i.h.bf16 %v13561_v46  ;;  %v13562_v37 = vunpack.i.l.bf16 %v13561_v46 }
 0xd76   :  { %v6148_v8 = vsel %vm576_vm2, %v17887_v36, %v13568_v26  ;;  %v6147_v42 = vsel %vm576_vm2, %v17884_v11, %v13567_v47 }
 0xd77   :  { %v6146_v38 = vsel %vm576_vm2, %v17893_v44, %v13563_v48  ;;  %v6145_v22 = vsel %vm576_vm2, %v17890_v28, %v13562_v37  ;;  %v6164_v33 = vpack.c.bf16 %v6148_v8, %v6147_v42 }
 0xd78   :  { %v6163_v12 = vpack.c.bf16 %v6146_v38, %v6145_v22 }
 0xd7a   :  { %12729 = vmatprep.mubr.msk.bf16.mxu1 %vm939_vm3, %v6163_v12 }
 0xd7b   :  { %v13576_v9 = vpop.permute.xlu1 %13575  ;;  %12730 = vmatmul.mubr.msk.bf16.gmra.mrb[212].mxu1 %vm939_vm3, %v6164_v33 }
 0xd7c   :  { %v13578_v30 = vunpack.i.h.bf16 %v13576_v9  ;;  %v13577_v3 = vunpack.i.l.bf16 %v13576_v9  ;;  %v13571_v52 = vpop.permute.xlu0 %13570 }
 0xd7d   :  { %v13573_v25 = vunpack.i.h.bf16 %v13571_v52  ;;  %v13572_v61 = vunpack.i.l.bf16 %v13571_v52 }
 0xd7e   :  { %v6152_v45 = vsel %vm576_vm2, %v17909_v14, %v13578_v30  ;;  %v6151_v55 = vsel %vm576_vm2, %v17906_v10, %v13577_v3 }
 0xd7f   :  { %v6150_v31 = vsel %vm576_vm2, %v17915_v50, %v13573_v25  ;;  %v6149_v39 = vsel %vm576_vm2, %v17912_v58, %v13572_v61  ;;  %v6166_v1 = vpack.c.bf16 %v6152_v45, %v6151_v55 }
 0xd80   :  { %v6165_v32 = vpack.c.bf16 %v6150_v31, %v6149_v39 }
 0xd82   :  { %12733 = vmatprep.mubr.msk.bf16.mxu1 %vm939_vm3, %v6165_v32 }
 0xd83   :  { %12734 = vmatmul.mubr.msk.bf16.gmra.mrb[216].mxu1 %vm939_vm3, %v6166_v1 }
 0xe19   :  { %v12711_v2 = vpop.f32.mrb[192].mxu1 }
 0xe1a   :  { %v18067_v62 = vadd.f32 %v12711_v2, %v18064_v60  ;;  %v6284_v54 = vpop.f32.mrb[193].mxu1 }
 0xe1b   :  { %v18070_v19 = vadd.f32 %v18064_v60, %v6284_v54  ;;  %v12712_v51 = vpop.f32.mrb[194].mxu1 }
 0xe1c   :  { %v11251_v5 = vmul.f32 -1.442695, %v18067_v62  ;;  %v18074_v7 = vadd.f32 %v12712_v51, %v18064_v60  ;;  %v6287_v23 = vpop.f32.mrb[195].mxu1 }
 0xe1d   :  { %v11249_v35 = vmul.f32 -1.442695, %v18070_v19  ;;  %v18078_v16 = vadd.f32 %v18064_v60, %v6287_v23 }
 0xe1e   :  { %14679 = vpow2.f32 %v11251_v5  ;;  %v11252_v13 = vmul.f32 -1.442695, %v18074_v7 }
 0xe1f   :  { %14681 = vpow2.f32 %v11249_v35  ;;  %v11250_v26 = vmul.f32 -1.442695, %v18078_v16 }
 0xe20   :  { %14683 = vpow2.f32 %v11252_v13 }
 0xe21   :  { %v12715_v47 = vpop.f32.mrb[196].mxu1  ;;  %14685 = vpow2.f32 %v11250_v26 }
 0xe22   :  { %v18083_v46 = vadd.f32 %v12715_v47, %v18064_v60  ;;  %v6300_v48 = vpop.f32.mrb[197].mxu1 }
 0xe23   :  { %v18086_v37 = vadd.f32 %v18064_v60, %v6300_v48  ;;  %v12716_v8 = vpop.f32.mrb[198].mxu1 }
 0xe24   :  { %v11255_v42 = vmul.f32 -1.442695, %v18083_v46  ;;  %v18090_v38 = vadd.f32 %v12716_v8, %v18064_v60  ;;  %v6303_v22 = vpop.f32.mrb[199].mxu1 }
 0xe25   :  { %v11253_v12 = vmul.f32 -1.442695, %v18086_v37  ;;  %v18094_v33 = vadd.f32 %v18064_v60, %v6303_v22 }
 0xe26   :  { %14687 = vpow2.f32 %v11255_v42  ;;  %v11256_v9 = vmul.f32 -1.442695, %v18090_v38 }
 0xe27   :  { %14689 = vpow2.f32 %v11253_v12  ;;  %v11254_v52 = vmul.f32 -1.442695, %v18094_v33 }
 0xe28   :  { %v14680_v30 = vpop.eup %14679  ;;  %14691 = vpow2.f32 %v11256_v9 }
 0xe29   :  { %v14682_v3 = vpop.eup %14681  ;;  %v6509_v61 = vadd.f32 1.0, %v14680_v30 }
 0xe2a   :  { %v6507_v25 = vadd.f32 1.0, %v14682_v3  ;;  %v14684_v45 = vpop.eup %14683 }
 0xe2b   :  { %v14686_v55 = vpop.eup %14685  ;;  %v6510_v39 = vadd.f32 1.0, %v14684_v45 }
 0xe2c   :  { %14693 = vrcp.f32 %v6507_v25  ;;  %v6508_v31 = vadd.f32 1.0, %v14686_v55 }
 0xe2d   :  { %14695 = vpow2.f32 %v11254_v52 }
 0xe2e   :  { %14697 = vrcp.f32 %v6509_v61 }
 0xe2f   :  { %14699 = vrcp.f32 %v6508_v31 }
 0xe30   :  { %v14688_v32 = vpop.eup %14687  ;;  %14701 = vrcp.f32 %v6510_v39 }
 0xe31   :  { %v14690_v1 = vpop.eup %14689  ;;  %v6513_v54 = vadd.f32 1.0, %v14688_v32 }
 0xe32   :  { %v6511_v2 = vadd.f32 1.0, %v14690_v1  ;;  %v14692_v51 = vpop.eup %14691 }
 0xe33   :  { %v6514_v35 = vadd.f32 1.0, %v14692_v51 }
 0xe34   :  { %14703 = vrcp.f32 %v6511_v2 }
 0xe35   :  { %14705 = vrcp.f32 %v6513_v54 }
 0xe36   :  { %v14694_v5 = vpop.eup %14693  ;;  %v12719_v26 = vpop.f32.mrb[200].mxu1 }
 0xe37   :  { %v14696_v23 = vpop.eup %14695  ;;  %6619 = vrot.lane.b32.xlu0 %v14694_v5, %s15326_s29  ;;  %v18100_v48 = vadd.f32 %v12719_v26, %v18064_v60  ;;  %v6316_v8 = vpop.f32.mrb[201].mxu1 }
 0xe38   :  { %v6512_v13 = vadd.f32 1.0, %v14696_v23  ;;  %v14698_v47 = vpop.eup %14697  ;;  %v18103_v22 = vadd.f32 %v18064_v60, %v6316_v8  ;;  %v12720_v12 = vpop.f32.mrb[202].mxu1 }
 0xe39   :  { %v14700_v42 = vpop.eup %14699  ;;  %v11259_v9 = vmul.f32 -1.442695, %v18100_v48  ;;  %v18107_v30 = vadd.f32 %v12720_v12, %v18064_v60  ;;  %v6319_v3 = vpop.f32.mrb[203].mxu1 }
 0xe3a   :  { %14707 = vrcp.f32 %v6512_v13  ;;  %6621 = vrot.lane.b32.xlu1 %v14700_v42, %s15326_s29  ;;  %v11257_v52 = vmul.f32 -1.442695, %v18103_v22  ;;  %v18113_v25 = vadd.f32 %v18064_v60, %v6319_v3  ;;  %v14702_v61 = vpop.eup %14701 }
 0xe3b   :  { %6623 = vrot.lane.b32.xlu0 %v14698_v47, %s15326_s29  ;;  %14709 = vrcp.f32 %v6514_v35  ;;  %v11260_v45 = vmul.f32 -1.442695, %v18107_v30 }
 0xe3c   :  { %14711 = vpow2.f32 %v11259_v9  ;;  %v11258_v31 = vmul.f32 -1.442695, %v18113_v25 }
 0xe3d   :  { %14713 = vpow2.f32 %v11257_v52 }
 0xe3e   :  { %v14704_v55 = vpop.eup %14703  ;;  %6625 = vrot.lane.b32.xlu1 %v14702_v61, %s15326_s29  ;;  %14715 = vpow2.f32 %v11260_v45  ;;  %v12723_v39 = vpop.f32.mrb[204].mxu1 }
 0xe3f   :  { %6627 = vrot.lane.b32.xlu0 %v14704_v55, %s15326_s29  ;;  %v18120_v32 = vadd.f32 %v12723_v39, %v18064_v60  ;;  %v6332_v1 = vpop.f32.mrb[205].mxu1  ;;  %v14706_v2 = vpop.eup %14705  ;;  %14717 = vpow2.f32 %v11258_v31 }
 0xe40   :  { %v18123_v54 = vadd.f32 %v18064_v60, %v6332_v1  ;;  %v12724_v51 = vpop.f32.mrb[206].mxu1 }
 0xe41   :  { %v11263_v5 = vmul.f32 -1.442695, %v18120_v32  ;;  %v18127_v23 = vadd.f32 %v12724_v51, %v18064_v60  ;;  %v6335_v35 = vpop.f32.mrb[207].mxu1 }
 0xe42   :  { %v11261_v26 = vmul.f32 -1.442695, %v18123_v54  ;;  %v18132_v47 = vadd.f32 %v18064_v60, %v6335_v35 }
 0xe43   :  { %6631 = vrot.lane.b32.xlu0 %v14706_v2, %s15326_s29  ;;  %14719 = vpow2.f32 %v11263_v5  ;;  %v11264_v42 = vmul.f32 -1.442695, %v18127_v23 }
 0xe44   :  { %v14708_v13 = vpop.eup %14707  ;;  %14721 = vpow2.f32 %v11261_v26  ;;  %v11262_v3 = vmul.f32 -1.442695, %v18132_v47 }
 0xe45   :  { %6629 = vrot.lane.b32.xlu1 %v14708_v13, %s15326_s29  ;;  %v14710_v8 = vpop.eup %14709  ;;  %14723 = vpow2.f32 %v11264_v42 }
 0xe46   :  { %v14712_v12 = vpop.eup %14711  ;;  %v12727_v52 = vpop.f32.mrb[208].mxu1 }
 0xe47   :  { %v14714_v9 = vpop.eup %14713  ;;  %v6348_v45 = vpop.f32.mrb[209].mxu1  ;;  %v6517_v31 = vadd.f32 1.0, %v14712_v12  ;;  %v18139_v39 = vadd.f32 %v12727_v52, %v18064_v60 }
 0xe48   :  { %v6515_v61 = vadd.f32 1.0, %v14714_v9  ;;  %v14716_v55 = vpop.eup %14715  ;;  %v12728_v1 = vpop.f32.mrb[210].mxu1  ;;  %v18142_v5 = vadd.f32 %v18064_v60, %v6348_v45 }
 0xe49   :  { %6633 = vrot.lane.b32.xlu1 %v14710_v8, %s15326_s29  ;;  %v6351_v2 = vpop.f32.mrb[211].mxu1  ;;  %v14718_v51 = vpop.eup %14717  ;;  %v6518_v35 = vadd.f32 1.0, %v14716_v55  ;;  %v11267_v26 = vmul.f32 -1.442695, %v18139_v39  ;;  %v18147_v9 = vadd.f32 %v12728_v1, %v18064_v60 }
 0xe4a   :  { %14725 = vrcp.f32 %v6515_v61  ;;  %v6516_v13 = vadd.f32 1.0, %v14718_v51  ;;  %v11265_v42 = vmul.f32 -1.442695, %v18142_v5  ;;  %v18150_v45 = vadd.f32 %v18064_v60, %v6351_v2 }
 0xe4b   :  { %14727 = vpow2.f32 %v11262_v3 }
 0xe4c   :  { %14729 = vrcp.f32 %v6517_v31  ;;  %v11266_v1 = vmul.f32 -1.442695, %v18150_v45 }
 0xe4d   :  { %v14720_v8 = vpop.eup %14719  ;;  %14731 = vrcp.f32 %v6516_v13  ;;  %v11268_v13 = vmul.f32 -1.442695, %v18147_v9 }
 0xe4e   :  { %v14722_v12 = vpop.eup %14721  ;;  %v12731_v52 = vpop.f32.mrb[212].mxu1  ;;  %14733 = vrcp.f32 %v6518_v35  ;;  %v6521_v31 = vadd.f32 1.0, %v14720_v8 }
 0xe4f   :  { %v6519_v61 = vadd.f32 1.0, %v14722_v12  ;;  %v6364_v3 = vpop.f32.mrb[213].mxu1  ;;  %14735 = vpow2.f32 %v11267_v26  ;;  %v14724_v0 = vpop.eup %14723  ;;  %v18155_v35 = vadd.f32 %v12731_v52, %v18064_v60 }
 0xe50   :  { %v12732_v55 = vpop.f32.mrb[214].mxu1  ;;  %v18159_v26 = vadd.f32 %v18064_v60, %v6364_v3 }
 0xe51   :  { %14737 = vrcp.f32 %v6519_v61  ;;  %v6367_v51 = vpop.f32.mrb[215].mxu1  ;;  %v6522_v61 = vadd.f32 1.0, %v14724_v0  ;;  %v11271_v4 = vmul.f32 -1.442695, %v18155_v35 }
 0xe52   :  { %14739 = vpow2.f32 %v11265_v42  ;;  %v18169_v0 = vadd.f32 %v18064_v60, %v6367_v51 }
 0xe53   :  { %14741 = vrcp.f32 %v6521_v31 }
 0xe54   :  { %v14726_v41 = vpop.eup %14725  ;;  %14743 = vpow2.f32 %v11268_v13  ;;  %v18166_v13 = vadd.f32 %v12732_v55, %v18064_v60  ;;  %v11270_v55 = vmul.f32 -1.442695, %v18169_v0 }
 0xe55   :  { %v14728_v40 = vpop.eup %14727  ;;  %6635 = vrot.lane.b32.xlu0 %v14726_v41, %s15326_s29 }
 0xe56   :  { %v6520_v2 = vadd.f32 1.0, %v14728_v40  ;;  %v14730_v8 = vpop.eup %14729  ;;  %v12735_v12 = vpop.f32.mrb[216].mxu1  ;;  %v11269_v40 = vmul.f32 -1.442695, %v18159_v26 }
 0xe57   :  { %v14732_v42 = vpop.eup %14731  ;;  %v6380_v53 = vpop.f32.mrb[217].mxu1 }
 0xe58   :  { %14745 = vrcp.f32 %v6520_v2  ;;  %6637 = vrot.lane.b32.xlu1 %v14732_v42, %s15326_s29  ;;  %v12736_v41 = vpop.f32.mrb[218].mxu1  ;;  %v14734_v52 = vpop.eup %14733  ;;  %v11272_v42 = vmul.f32 -1.442695, %v18166_v13  ;;  %v18180_v51 = vadd.f32 %v18064_v60, %v6380_v53 }
 0xe59   :  { %14747 = vpow2.f32 %v11266_v1  ;;  %6639 = vrot.lane.b32.xlu0 %v14730_v8, %s15326_s29  ;;  %v6383_v3 = vpop.f32.mrb[219].mxu1  ;;  %v14736_v31 = vpop.eup %14735 }
 0xe5a   :  { %14749 = vrcp.f32 %v6522_v61  ;;  %v6525_v2 = vadd.f32 1.0, %v14736_v31  ;;  %v18176_v61 = vadd.f32 %v12735_v12, %v18064_v60  ;;  %v11273_v12 = vmul.f32 -1.442695, %v18180_v51 }
 0xe5b   :  { %v14738_v49 = vpop.eup %14737  ;;  %14751 = vpow2.f32 %v11271_v4 }
 0xe5c   :  { %v14740_v1 = vpop.eup %14739  ;;  %6641 = vrot.lane.b32.xlu1 %v14734_v52, %s15326_s29  ;;  %14753 = vpow2.f32 %v11269_v40  ;;  %v11275_v31 = vmul.f32 -1.442695, %v18176_v61 }
 0xe5d   :  { %6643 = vrot.lane.b32.xlu0 %v14738_v49, %s15326_s29  ;;  %v6523_v8 = vadd.f32 1.0, %v14740_v1  ;;  %v14742_v34 = vpop.eup %14741 }
 0xe5e   :  { %v14744_v27 = vpop.eup %14743 }
 0xe5f   :  { %14755 = vrcp.f32 %v6523_v8  ;;  %v6526_v52 = vadd.f32 1.0, %v14744_v27 }
 0xe60   :  { %14757 = vrcp.f32 %v6525_v2  ;;  %v18190_v2 = vadd.f32 %v18064_v60, %v6383_v3 }
 0xe61   :  { %6647 = vrot.lane.b32.xlu0 %v14742_v34, %s15326_s29  ;;  %14759 = vpow2.f32 %v11272_v42  ;;  %v18186_v34 = vadd.f32 %v12736_v41, %v18064_v60 }
 0xe62   :  { %v14746_v4 = vpop.eup %14745  ;;  %14761 = vpow2.f32 %v11270_v55  ;;  %v11274_v41 = vmul.f32 -1.442695, %v18190_v2 }
 0xe63   :  { %v14748_v49 = vpop.eup %14747  ;;  %6645 = vrot.lane.b32.xlu1 %v14746_v4, %s15326_s29  ;;  %v11276_v4 = vmul.f32 -1.442695, %v18186_v34 }
 0xe64   :  { %v6524_v40 = vadd.f32 1.0, %v14748_v49  ;;  %v14750_v1 = vpop.eup %14749 }
 0xe65   :  { %v14752_v8 = vpop.eup %14751 }
 0xe66   :  { %14763 = vrcp.f32 %v6524_v40  ;;  %v14754_v53 = vpop.eup %14753  ;;  %v6529_v55 = vadd.f32 1.0, %v14752_v8 }
 0xe67   :  { %6649 = vrot.lane.b32.xlu1 %v14750_v1, %s15326_s29  ;;  %14765 = vrcp.f32 %v6526_v52  ;;  %v6527_v27 = vadd.f32 1.0, %v14754_v53 }
 0xe68   :  { %14767 = vpow2.f32 %v11275_v31 }
 0xe69   :  { %v14756_v42 = vpop.eup %14755  ;;  %14769 = vpow2.f32 %v11273_v12 }
 0xe6a   :  { %14771 = vrcp.f32 %v6527_v27  ;;  %6651 = vrot.lane.b32.xlu0 %v14756_v42, %s15326_s29  ;;  %v14758_v49 = vpop.eup %14757 }
 0xe6b   :  { %v14760_v40 = vpop.eup %14759  ;;  %14773 = vrcp.f32 %v6529_v55 }
 0xe6c   :  { %v14762_v1 = vpop.eup %14761  ;;  %14775 = vpow2.f32 %v11276_v4  ;;  %v6530_v3 = vadd.f32 1.0, %v14760_v40 }
 0xe6d   :  { %v6528_v52 = vadd.f32 1.0, %v14762_v1  ;;  %14777 = vpow2.f32 %v11274_v41 }
 0xe6e   :  { %6655 = vrot.lane.b32.xlu0 %v14758_v49, %s15326_s29 }
 0xe6f   :  { %14779 = vrcp.f32 %v6528_v52 }
 0xe70   :  { %v14764_v60 = vpop.eup %14763  ;;  %14781 = vrcp.f32 %v6530_v3 }
 0xe71   :  { %6653 = vrot.lane.b32.xlu1 %v14764_v60, %s15326_s29  ;;  %v14766_v31 = vpop.eup %14765 }
 0xe72   :  { %v14768_v12 = vpop.eup %14767 }
 0xe73   :  { %v14770_v8 = vpop.eup %14769  ;;  %v6533_v42 = vadd.f32 1.0, %v14768_v12 }
 0xe74   :  { %v14772_v53 = vpop.eup %14771  ;;  %v6531_v27 = vadd.f32 1.0, %v14770_v8 }
 0xe75   :  { %6657 = vrot.lane.b32.xlu1 %v14766_v31, %s15326_s29  ;;  %6659 = vrot.lane.b32.xlu0 %v14772_v53, %s15326_s29  ;;  %v14774_v55 = vpop.eup %14773  ;;  %v18206_v31 = vld [vmem:[%s19602_s1] sm:$0xff]  }
 0xe76   :  { %14783 = vrcp.f32 %v6531_v27  ;;  %v14776_v4 = vpop.eup %14775  ;;  %12781 = vmatprep.mubr.msk.bf16.mxu1 %vm6842_vm4, %v18206_v31 }
 0xe77   :  { %v14778_v49 = vpop.eup %14777  ;;  %14785 = vrcp.f32 %v6533_v42  ;;  %v6534_v1 = vadd.f32 1.0, %v14776_v4 }
 0xe78   :  { %v6532_v40 = vadd.f32 1.0, %v14778_v49 }
 0xe79   :  { %6663 = vrot.lane.b32.xlu0 %v14774_v55, %s15326_s29  ;;  %v14780_v41 = vpop.eup %14779 }
 0xe7a   :  { %6661 = vrot.lane.b32.xlu1 %v14780_v41, %s15326_s29  ;;  %14787 = vrcp.f32 %v6532_v40  ;;  %v14782_v52 = vpop.eup %14781 }
 0xe7b   :  { %14789 = vrcp.f32 %v6534_v1 }
 0xe7c   :  { %14791 = vtanh.f32 %v18070_v19 }
 0xe7d   :  { %14793 = vtanh.f32 %v18078_v16 }
 0xe7e   :  { %6665 = vrot.lane.b32.xlu1 %v14782_v52, %s15326_s29  ;;  %14795 = vtanh.f32 %v18067_v62 }
 0xe7f   :  { %14797 = vtanh.f32 %v18074_v7 }
 0xe80   :  { %v14784_v60 = vpop.eup %14783  ;;  %14799 = vtanh.f32 %v18086_v37 }
 0xe81   :  { %6667 = vrot.lane.b32.xlu0 %v14784_v60, %s15326_s29  ;;  %v14786_v3 = vpop.eup %14785  ;;  %14801 = vtanh.f32 %v18094_v33 }
 0xe82   :  { %14803 = vtanh.f32 %v18083_v46 }
 0xe83   :  { %14805 = vtanh.f32 %v18090_v38 }
 0xe84   :  { %v14788_v12 = vpop.eup %14787  ;;  %14807 = vtanh.f32 %v18103_v22 }
 0xe85   :  { %6671 = vrot.lane.b32.xlu0 %v14786_v3, %s15326_s29  ;;  %6669 = vrot.lane.b32.xlu1 %v14788_v12, %s15326_s29  ;;  %v14790_v8 = vpop.eup %14789  ;;  %14809 = vtanh.f32 %v18113_v25 }
 0xe86   :  { %v14792_v27 = vpop.eup %14791  ;;  %14811 = vtanh.f32 %v18100_v48 }
 0xe87   :  { %v14794_v42 = vpop.eup %14793  ;;  %14813 = vtanh.f32 %v18107_v30 }
 0xe88   :  { %v14796_v40 = vpop.eup %14795  ;;  %14815 = vtanh.f32 %v18123_v54 }
 0xe89   :  { %6673 = vrot.lane.b32.xlu1 %v14790_v8, %s15326_s29  ;;  %v14798_v16 = vpop.eup %14797  ;;  %14817 = vtanh.f32 %v18132_v47 }
 0xe8a   :  { %v14800_v60 = vpop.eup %14799  ;;  %14819 = vtanh.f32 %v18120_v32 }
 0xe8b   :  { %v14802_v33 = vpop.eup %14801  ;;  %14821 = vtanh.f32 %v18127_v23 }
 0xe8c   :  { %v14804_v46 = vpop.eup %14803  ;;  %14823 = vtanh.f32 %v18142_v5 }
 0xe8d   :  { %14825 = vtanh.f32 %v18150_v45  ;;  %v18239_v45 = vld [vmem:[%s19602_s1 + $0x8] sm:$0xff]  }
 0xe8e   :  { %14827 = vtanh.f32 %v18139_v39 }
 0xe8f   :  { %14829 = vtanh.f32 %v18147_v9  ;;  %v18246_v9 = vld [vmem:[%s19602_s1 + $0x10] sm:$0xff]  }
 0xe90   :  { %14831 = vtanh.f32 %v18159_v26 }
 0xe91   :  { %14833 = vtanh.f32 %v18169_v0  ;;  %v15179_v0 = vld [vmem:[%s19602_s1 + $0x18] sm:$0xff]  }
 0xe92   :  { %14835 = vtanh.f32 %v18155_v35 }
 0xea9   :  { %v6620_v53 = vpop.permute.xlu0 %6619 }
 0xeaa   :  { %v6703_v49 = vmul.f32 %v14792_v27, %v6620_v53 }
 0xeac   :  { %v6622_v55 = vpop.permute.xlu1 %6621 }
 0xead   :  { %v6624_v4 = vpop.permute.xlu0 %6623  ;;  %v6704_v41 = vmul.f32 %v14794_v42, %v6622_v55  ;;  %v14806_v42 = vpop.eup %14805  ;;  %14837 = vtanh.f32 %v18166_v13 }
 0xeae   :  { %v6705_v7 = vmul.f32 %v14796_v40, %v6624_v4  ;;  %v14808_v40 = vpop.eup %14807  ;;  %14839 = vtanh.f32 %v18180_v51  ;;  %v15182_v51 = vld [vmem:[%s19602_s1 + $0x30] sm:$0xff]  }
 0xeaf   :  { %v6731_v19 = vpack.c.bf16 %v6704_v41, %v6703_v49 }
 0xeb0   :  { %v6626_v62 = vpop.permute.xlu1 %6625 }
 0xeb1   :  { %v6706_v1 = vmul.f32 %v14798_v16, %v6626_v62  ;;  %12737 = vmatprep.subr.bf16.mxu0 %v6731_v19  ;;  %v6628_v37 = vpop.permute.xlu0 %6627 }
 0xeb2   :  { %12738 = vmatpush3.bf16.msra.mxu0 %v6731_v19  ;;  %v6707_v12 = vmul.f32 %v14800_v60, %v6628_v37  ;;  %v14810_v19 = vpop.eup %14809  ;;  %14841 = vtanh.f32 %v18190_v2 }
 0xeb3   :  { %v6732_v52 = vpack.c.bf16 %v6706_v1, %v6705_v7  ;;  %v14812_v37 = vpop.eup %14811  ;;  %14843 = vtanh.f32 %v18176_v61  ;;  %v15183_v61 = vld [vmem:[%s19602_s1 + $0x38] sm:$0xff]  }
 0xeb4   :  { %v14814_v25 = vpop.eup %14813  ;;  %14845 = vtanh.f32 %v18186_v34 }
 0xeb5   :  { %12739 = vmatprep.subr.bf16.mxu0 %v6732_v52  ;;  %v6632_v53 = vpop.permute.xlu0 %6631 }
 0xeb6   :  { %12740 = vmatpush3.bf16.msra.mxu0 %v6732_v52  ;;  %v6709_v38 = vmul.f32 %v14804_v46, %v6632_v53 }
 0xeb7   :  { %v6630_v3 = vpop.permute.xlu1 %6629 }
 0xeb8   :  { %v6708_v8 = vmul.f32 %v14802_v33, %v6630_v3  ;;  %v14816_v33 = vpop.eup %14815 }
 0xeb9   :  { %v14818_v47 = vpop.eup %14817 }
 0xeba   :  { %v6733_v27 = vpack.c.bf16 %v6708_v8, %v6707_v12  ;;  %v14820_v32 = vpop.eup %14819 }
 0xebb   :  { %v6634_v55 = vpop.permute.xlu1 %6633  ;;  %v14822_v23 = vpop.eup %14821 }
 0xebc   :  { %v6710_v49 = vmul.f32 %v14806_v42, %v6634_v55  ;;  %12741 = vmatprep.subr.bf16.mxu0 %v6733_v27  ;;  %v14824_v5 = vpop.eup %14823 }
 0xebd   :  { %12742 = vmatpush3.bf16.msra.mxu0 %v6733_v27  ;;  %v14826_v39 = vpop.eup %14825 }
 0xebe   :  { %v6734_v4 = vpack.c.bf16 %v6710_v49, %v6709_v38  ;;  %v13763_v49 = vld [vmem:[%s19609_s8 + $0x30] sm:$0xff]  }
 0xec0   :  { %12743 = vmatprep.subr.bf16.mxu0 %v6734_v4 }
 0xec1   :  { %12744 = vmatpush3.bf16.msra.mxu0 %v6734_v4 }
 0xec7   :  { %v6636_v41 = vpop.permute.xlu0 %6635 }
 0xec8   :  { %v6711_v7 = vmul.f32 %v14808_v40, %v6636_v41 }
 0xeca   :  { %v6638_v16 = vpop.permute.xlu1 %6637 }
 0xecb   :  { %v6640_v62 = vpop.permute.xlu0 %6639  ;;  %v6712_v1 = vmul.f32 %v14810_v19, %v6638_v16 }
 0xecc   :  { %v6713_v30 = vmul.f32 %v14812_v37, %v6640_v62  ;;  %v14828_v62 = vpop.eup %14827 }
 0xecd   :  { %v6735_v22 = vpack.c.bf16 %v6712_v1, %v6711_v7  ;;  %v14830_v1 = vpop.eup %14829 }
 0xece   :  { %v6642_v48 = vpop.permute.xlu1 %6641  ;;  %v14832_v35 = vpop.eup %14831 }
 0xecf   :  { %v6714_v52 = vmul.f32 %v14814_v25, %v6642_v48  ;;  %12745 = vmatprep.subr.bf16.mxu0 %v6735_v22  ;;  %v6644_v54 = vpop.permute.xlu0 %6643  ;;  %v14834_v13 = vpop.eup %14833 }
 0xed0   :  { %12746 = vmatpush3.bf16.msra.mxu0 %v6735_v22  ;;  %v6715_v12 = vmul.f32 %v14816_v33, %v6644_v54 }
 0xed1   :  { %v6736_v60 = vpack.c.bf16 %v6714_v52, %v6713_v30  ;;  %v15180_v30 = vld [vmem:[%s19602_s1 + $0x20] sm:$0xff]  }
 0xed3   :  { %12747 = vmatprep.subr.bf16.mxu0 %v6736_v60  ;;  %v6648_v53 = vpop.permute.xlu0 %6647 }
 0xed4   :  { %12748 = vmatpush3.bf16.msra.mxu0 %v6736_v60  ;;  %v6717_v42 = vmul.f32 %v14820_v32, %v6648_v53  ;;  %v15181_v53 = vld [vmem:[%s19602_s1 + $0x28] sm:$0xff]  }
 0xed5   :  { %v6646_v3 = vpop.permute.xlu1 %6645 }
 0xed6   :  { %v6716_v8 = vmul.f32 %v14818_v47, %v6646_v3  ;;  %v14836_v47 = vpop.eup %14835 }
 0xed8   :  { %v6737_v46 = vpack.c.bf16 %v6716_v8, %v6715_v12  ;;  %v14838_v12 = vpop.eup %14837 }
 0xed9   :  { %v6650_v27 = vpop.permute.xlu1 %6649 }
 0xeda   :  { %v6718_v55 = vmul.f32 %v14822_v23, %v6650_v27  ;;  %12749 = vmatprep.subr.bf16.mxu0 %v6737_v46  ;;  %v14840_v27 = vpop.eup %14839 }
 0xedb   :  { %12750 = vmatpush3.bf16.msra.mxu0 %v6737_v46 }
 0xedc   :  { %v6738_v38 = vpack.c.bf16 %v6718_v55, %v6717_v42  ;;  %v6652_v4 = vpop.permute.xlu0 %6651  ;;  %v14842_v42 = vpop.eup %14841 }
 0xedd   :  { %v6719_v40 = vmul.f32 %v14824_v5, %v6652_v4  ;;  %v14844_v5 = vpop.eup %14843 }
 0xede   :  { %12751 = vmatprep.subr.bf16.mxu0 %v6738_v38 }
 0xedf   :  { %12752 = vmatpush3.bf16.msra.mxu0 %v6738_v38 }
 0xee0   :  { %12793 = vmatprep.subr.bf16.mxu0 %v13763_v49  ;;  %v6656_v16 = vpop.permute.xlu0 %6655 }
 0xee1   :  { %v6721_v37 = vmul.f32 %v14828_v62, %v6656_v16  ;;  %v13764_v62 = vld [vmem:[%s19609_s8 + $0x38] sm:$0xff]  }
 0xee2   :  { %12754 = vmatmul.mubr.bf16.vlgmr.msra.gmra.mrb[240].mxu0 %v18239_v45 }
 0xee3   :  { %v6654_v41 = vpop.permute.xlu1 %6653  ;;  %12757 = vmatprep.mubr.bf16.mxu0 %v18246_v9  ;;  %12794 = vmatpush3.bf16.msra.mxu0 %v13763_v49 }
 0xee4   :  { %v6720_v19 = vmul.f32 %v14826_v39, %v6654_v41  ;;  %v14846_v41 = vpop.eup %14845  ;;  %12795 = vmatprep.subr.bf16.mxu0 %v13764_v62 }
 0xee6   :  { %v6739_v7 = vpack.c.bf16 %v6720_v19, %v6719_v40 }
 0xee7   :  { %v6658_v26 = vpop.permute.xlu1 %6657  ;;  %v6660_v48 = vpop.permute.xlu0 %6659  ;;  %12796 = vmatpush3.bf16.msra.mxu0 %v13764_v62 }
 0xee8   :  { %v6722_v22 = vmul.f32 %v14830_v1, %v6658_v26  ;;  %12769 = vmatprep.subr.bf16.mxu1 %v6739_v7  ;;  %v6723_v54 = vmul.f32 %v14832_v35, %v6660_v48 }
 0xee9   :  { %12770 = vmatpush3.bf16.msra.mxu1 %v6739_v7 }
 0xeea   :  { %v6740_v25 = vpack.c.bf16 %v6722_v22, %v6721_v37  ;;  %12758 = vmatmul.mubr.bf16.gmra.mrb[244].mxu0 %v15179_v0 }
 0xeeb   :  { %12761 = vmatprep.mubr.bf16.mxu0 %v15180_v30  ;;  %v6664_v33 = vpop.permute.xlu0 %6663 }
 0xeec   :  { %12771 = vmatprep.subr.bf16.mxu1 %v6740_v25  ;;  %v6662_v52 = vpop.permute.xlu1 %6661  ;;  %v6725_v32 = vmul.f32 %v14836_v47, %v6664_v33 }
 0xeed   :  { %12772 = vmatpush3.bf16.msra.mxu1 %v6740_v25  ;;  %v6724_v60 = vmul.f32 %v14834_v13, %v6662_v52 }
 0xeef   :  { %v6741_v3 = vpack.c.bf16 %v6724_v60, %v6723_v54 }
 0xef0   :  { %v6666_v8 = vpop.permute.xlu1 %6665 }
 0xef1   :  { %v6726_v46 = vmul.f32 %v14838_v12, %v6666_v8  ;;  %12773 = vmatprep.subr.bf16.mxu1 %v6741_v3 }
 0xef2   :  { %12762 = vmatmul.mubr.bf16.gmra.mrb[248].mxu0 %v15181_v53  ;;  %12774 = vmatpush3.bf16.msra.mxu1 %v6741_v3 }
 0xef3   :  { %12765 = vmatprep.mubr.bf16.mxu0 %v15182_v51  ;;  %v6742_v2 = vpack.c.bf16 %v6726_v46, %v6725_v32  ;;  %v6668_v23 = vpop.permute.xlu0 %6667 }
 0xef4   :  { %v6727_v38 = vmul.f32 %v14840_v27, %v6668_v23 }
 0xef5   :  { %12775 = vmatprep.subr.bf16.mxu1 %v6742_v2 }
 0xef6   :  { %12776 = vmatpush3.bf16.msra.mxu1 %v6742_v2 }
 0xef7   :  { %v6670_v55 = vpop.permute.xlu1 %6669  ;;  %v6672_v4 = vpop.permute.xlu0 %6671 }
 0xef8   :  { %v6728_v49 = vmul.f32 %v14842_v42, %v6670_v55  ;;  %v6729_v40 = vmul.f32 %v14844_v5, %v6672_v4 }
 0xefa   :  { %12766 = vmatmul.mubr.bf16.gmra.mrb[252].mxu0 %v15183_v61  ;;  %v6743_v39 = vpack.c.bf16 %v6728_v49, %v6727_v38 }
 0xefb   :  { %v6674_v34 = vpop.permute.xlu1 %6673 }
 0xefc   :  { %v6730_v19 = vmul.f32 %v14846_v41, %v6674_v34  ;;  %12777 = vmatprep.subr.bf16.mxu1 %v6743_v39 }
 0xefd   :  { %12778 = vmatpush3.bf16.msra.mxu1 %v6743_v39 }
 0xefe   :  { %v6744_v16 = vpack.c.bf16 %v6730_v19, %v6729_v40 }
 0xf00   :  { %12779 = vmatprep.subr.bf16.mxu1 %v6744_v16 }
 0xf01   :  { %12780 = vmatpush3.bf16.msra.mxu1 %v6744_v16 }
 0xf04   :  { %12782 = vmatmul.mubr.msk.bf16.vlgmr.msra.gmra.mrb[220].mxu1 %vm6842_vm4, %v18239_v45 }
 0xf05   :  { %12785 = vmatprep.mubr.msk.bf16.mxu1 %vm6842_vm4, %v18246_v9 }
 0xf0c   :  { %12786 = vmatmul.mubr.msk.bf16.gmra.mrb[224].mxu1 %vm6842_vm4, %v15179_v0 }
 0xf0d   :  { %12789 = vmatprep.mubr.msk.bf16.mxu1 %vm6842_vm4, %v15180_v30 }
 0xf14   :  { %12790 = vmatmul.mubr.msk.bf16.gmra.mrb[228].mxu1 %vm6842_vm4, %v15181_v53 }
 0xf15   :  { %7257 = vmatprep.mubr.bf16.mxu1 %v19778_v43 }
 0xfb5   :  { %v12755_v7 = vpop.f32.mrb[240].mxu0 }
 0xfb6   :  { %v6779_v1 = vpop.f32.mrb[241].mxu0 }
 0xfb7   :  { %v12756_v45 = vpop.f32.mrb[242].mxu0 }
 0xfb8   :  { %v6939_v26 = vpack.c.bf16 %v12756_v45, %v12755_v7  ;;  %v6782_v37 = vpop.f32.mrb[243].mxu0  ;;  %v13765_v7 = vld [vmem:[#allocation6 + $0x80] ss:$8 sps:$4 sm:$0xff]   ;;  %v13768_v45 = vld [vmem:[#allocation6 + $0x90] ss:$8 sps:$4 sm:$0xff]  }
 0xfb9   :  { %v6938_v9 = vpack.c.bf16 %v6782_v37, %v6779_v1  ;;  %v13767_v1 = vld [vmem:[#allocation6 + $0x84] ss:$8 sps:$4 sm:$0xff]  }
 0xfba   :  { %7225 = vmatprep.subr.bf16.mxu1 %v13767_v1  ;;  %v18297_v37 = vld [vmem:[#allocation4 + $0x80] sm:$0xff]  }
 0xfbb   :  { %12797 = vmatprep.mubr.msk.bf16.mxu0 %vm576_vm2, %v6938_v9  ;;  %7226 = vmatpush1.bf16.msra.mxu1 %v13765_v7  ;;  %v18300_v9 = vld [vmem:[#allocation7 + $0x3] ss:$0 sm:$0xff] }
 0xfbc   :  { %12798 = vmatmul.mubr.msk.bf16.vlgmr.msra.gmra.mrb[0].mxu0 %vm576_vm2, %v6939_v26  ;;  %v13770_v26 = vld [vmem:[#allocation6 + $0x94] ss:$8 sps:$4 sm:$0xff]  }
 0xfbd   :  { %v12759_v22 = vpop.f32.mrb[244].mxu0  ;;  %7227 = vmatprep.subr.bf16.mxu1 %v13770_v26 }
 0xfbe   :  { %v6795_v25 = vpop.f32.mrb[245].mxu0 }
 0xfbf   :  { %v12760_v48 = vpop.f32.mrb[246].mxu0  ;;  %7228 = vmatpush1.bf16.msra.mxu1 %v13768_v45 }
 0xfc0   :  { %v6941_v0 = vpack.c.bf16 %v12760_v48, %v12759_v22  ;;  %v6798_v30 = vpop.f32.mrb[247].mxu0  ;;  %12825 = vmatprep.subr.bf16.mxu1 %v18297_v37 }
 0xfc1   :  { %v6940_v35 = vpack.c.bf16 %v6798_v30, %v6795_v25 }
 0xfc3   :  { %12801 = vmatprep.mubr.msk.bf16.mxu0 %vm576_vm2, %v6940_v35 }
 0xfc4   :  { %12802 = vmatmul.mubr.msk.bf16.gmra.mrb[4].mxu0 %vm576_vm2, %v6941_v0 }
 0xfc5   :  { %v12763_v13 = vpop.f32.mrb[248].mxu0 }
 0xfc6   :  { %v6811_v52 = vpop.f32.mrb[249].mxu0 }
 0xfc7   :  { %v12764_v54 = vpop.f32.mrb[250].mxu0 }
 0xfc8   :  { %v6943_v60 = vpack.c.bf16 %v12764_v54, %v12763_v13  ;;  %v6814_v33 = vpop.f32.mrb[251].mxu0 }
 0xfc9   :  { %v6942_v47 = vpack.c.bf16 %v6814_v33, %v6811_v52 }
 0xfcb   :  { %12805 = vmatprep.mubr.msk.bf16.mxu0 %vm576_vm2, %v6942_v47 }
 0xfcc   :  { %12806 = vmatmul.mubr.msk.bf16.gmra.mrb[8].mxu0 %vm576_vm2, %v6943_v60 }
 0xfcd   :  { %v12767_v3 = vpop.f32.mrb[252].mxu0 }
 0xfce   :  { %v6827_v12 = vpop.f32.mrb[253].mxu0 }
 0xfcf   :  { %v12768_v8 = vpop.f32.mrb[254].mxu0 }
 0xfd0   :  { %v6945_v53 = vpack.c.bf16 %v12768_v8, %v12767_v3  ;;  %v6830_v32 = vpop.f32.mrb[255].mxu0 }
 0xfd1   :  { %v6944_v46 = vpack.c.bf16 %v6830_v32, %v6827_v12 }
 0xfd3   :  { %12809 = vmatprep.mubr.msk.bf16.mxu0 %vm576_vm2, %v6944_v46 }
 0xfd4   :  { %12810 = vmatmul.mubr.msk.bf16.gmra.mrb[12].mxu0 %vm576_vm2, %v6945_v53 }
 0xfd7   :  { %v12783_v51 = vpop.f32.mrb[220].mxu1 }
 0xfd8   :  { %v6891_v2 = vpop.f32.mrb[221].mxu1 }
 0xfd9   :  { %v12784_v23 = vpop.f32.mrb[222].mxu1 }
 0xfda   :  { %v6947_v27 = vpack.c.bf16 %v12784_v23, %v12783_v51  ;;  %v6894_v42 = vpop.f32.mrb[223].mxu1 }
 0xfdb   :  { %v6946_v55 = vpack.c.bf16 %v6894_v42, %v6891_v2 }
 0xfdd   :  { %12813 = vmatprep.mubr.msk.bf16.mxu0 %vm576_vm2, %v6946_v55 }
 0xfde   :  { %12814 = vmatmul.mubr.msk.bf16.gmra.mrb[16].mxu0 %vm576_vm2, %v6947_v27 }
 0xfdf   :  { %v12787_v61 = vpop.f32.mrb[224].mxu1 }
 0xfe0   :  { %v6907_v38 = vpop.f32.mrb[225].mxu1 }
 0xfe1   :  { %v12788_v49 = vpop.f32.mrb[226].mxu1 }
 0xfe2   :  { %v6949_v4 = vpack.c.bf16 %v12788_v49, %v12787_v61  ;;  %v6910_v5 = vpop.f32.mrb[227].mxu1 }
 0xfe3   :  { %v6948_v39 = vpack.c.bf16 %v6910_v5, %v6907_v38 }
 0xfe5   :  { %12817 = vmatprep.mubr.msk.bf16.mxu0 %vm576_vm2, %v6948_v39 }
 0xfe6   :  { %12818 = vmatmul.mubr.msk.bf16.gmra.mrb[20].mxu0 %vm576_vm2, %v6949_v4 }
 0xfe7   :  { %v12791_v41 = vpop.f32.mrb[228].mxu1 }
 0xfe8   :  { %v6923_v34 = vpop.f32.mrb[229].mxu1 }
 0xfe9   :  { %v12792_v40 = vpop.f32.mrb[230].mxu1 }
 0xfea   :  { %v6951_v19 = vpack.c.bf16 %v12792_v40, %v12791_v41  ;;  %v6926_v16 = vpop.f32.mrb[231].mxu1 }
 0xfeb   :  { %v6950_v62 = vpack.c.bf16 %v6926_v16, %v6923_v34 }
 0xfed   :  { %12821 = vmatprep.mubr.msk.bf16.mxu0 %vm576_vm2, %v6950_v62 }
 0xfee   :  { %12822 = vmatmul.mubr.msk.bf16.gmra.mrb[24].mxu0 %vm576_vm2, %v6951_v19 }
 0xfef   :  { %12873 = vmatprep.mubr.bf16.mxu0 %v18206_v31 }
0x108f   :  { %v12799_v22 = vpop.f32.mrb[0].mxu0 }
0x1090   :  { %v18303_v25 = vadd.f32 %v12799_v22, %v18300_v9  ;;  %v7053_v48 = vpop.f32.mrb[1].mxu0 }
0x1091   :  { %v18306_v0 = vadd.f32 %v18300_v9, %v7053_v48  ;;  %v12800_v30 = vpop.f32.mrb[2].mxu0 }
0x1092   :  { %v18309_v35 = vadd.f32 %v12800_v30, %v18300_v9  ;;  %v7056_v13 = vpop.f32.mrb[3].mxu0 }
0x1093   :  { %v18312_v52 = vadd.f32 %v18300_v9, %v7056_v13 }
0x1097   :  { %v12803_v54 = vpop.f32.mrb[4].mxu0 }
0x1098   :  { %v7078_v60 = vadd.f32 %v12803_v54, %v18300_v9  ;;  %v7069_v33 = vpop.f32.mrb[5].mxu0 }
0x1099   :  { %v7070_v47 = vadd.f32 %v18300_v9, %v7069_v33  ;;  %v12804_v3 = vpop.f32.mrb[6].mxu0 }
0x109a   :  { %v7081_v12 = vadd.f32 %v12804_v3, %v18300_v9  ;;  %v7072_v8 = vpop.f32.mrb[7].mxu0  ;;  %v18319_v32 = vadd.f32 %v7078_v60, %v17840_v63 }
0x109b   :  { %v7073_v53 = vadd.f32 %v18300_v9, %v7072_v8  ;;  %v18325_v51 = vadd.f32 %v7070_v47, %v17846_v29 }
0x109c   :  { %v18322_v46 = vadd.f32 %v7081_v12, %v17843_v57 }
0x109d   :  { %v18328_v2 = vadd.f32 %v7073_v53, %v17849_v17 }
0x109e   :  { %v13584_v23 = vpack.i.bf16 %v18322_v46, %v18319_v32 }
0x109f   :  { %v13579_v27 = vpack.i.bf16 %v18328_v2, %v18325_v51  ;;  %v12807_v42 = vpop.f32.mrb[8].mxu0 }
0x10a0   :  { %v7094_v55 = vadd.f32 %v12807_v42, %v18300_v9  ;;  %v7085_v63 = vpop.f32.mrb[9].mxu0  ;;  %13585 = vrot.lane.b32.xlu1 %v13584_v23, %s15325_s3 }
0x10a1   :  { %v7086_v57 = vadd.f32 %v18300_v9, %v7085_v63  ;;  %v12808_v61 = vpop.f32.mrb[10].mxu0  ;;  %13580 = vrot.lane.b32.xlu0 %v13579_v27, %s15325_s3 }
0x10a2   :  { %v7097_v29 = vadd.f32 %v12808_v61, %v18300_v9  ;;  %v7088_v17 = vpop.f32.mrb[11].mxu0  ;;  %v18341_v49 = vadd.f32 %v7094_v55, %v17862_v21 }
0x10a3   :  { %v7089_v38 = vadd.f32 %v18300_v9, %v7088_v17  ;;  %v18347_v5 = vadd.f32 %v7086_v57, %v17868_v56 }
0x10a4   :  { %v18344_v4 = vadd.f32 %v7097_v29, %v17865_v20 }
0x10a5   :  { %v18350_v39 = vadd.f32 %v7089_v38, %v17871_v24 }
0x10a6   :  { %v13594_v41 = vpack.i.bf16 %v18344_v4, %v18341_v49 }
0x10a7   :  { %v13589_v34 = vpack.i.bf16 %v18350_v39, %v18347_v5  ;;  %v12811_v40 = vpop.f32.mrb[12].mxu0 }
0x10a8   :  { %v7110_v19 = vadd.f32 %v12811_v40, %v18300_v9  ;;  %v7101_v21 = vpop.f32.mrb[13].mxu0  ;;  %13595 = vrot.lane.b32.xlu1 %v13594_v41, %s15325_s3 }
0x10a9   :  { %v7102_v20 = vadd.f32 %v18300_v9, %v7101_v21  ;;  %v12812_v16 = vpop.f32.mrb[14].mxu0  ;;  %13590 = vrot.lane.b32.xlu0 %v13589_v34, %s15325_s3  ;;  %v19947_v21 = vld [vmem:[#allocation41_spill] sm:$0xff] }
0x10aa   :  { %v7113_v56 = vadd.f32 %v12812_v16, %v18300_v9  ;;  %v7104_v24 = vpop.f32.mrb[15].mxu0  ;;  %v18363_v7 = vadd.f32 %v7110_v19, %v17884_v11  ;;  %v19948_v16 = vld [vmem:[#allocation43_spill] sm:$0xff] }
0x10ab   :  { %v7105_v62 = vadd.f32 %v18300_v9, %v7104_v24  ;;  %v18369_v45 = vadd.f32 %v7102_v20, %v17890_v28  ;;  %v19949_v24 = vld [vmem:[#allocation42_spill] sm:$0xff] }
0x10ac   :  { %v18366_v1 = vadd.f32 %v7113_v56, %v17887_v36 }
0x10ad   :  { %v18372_v26 = vadd.f32 %v7105_v62, %v17893_v44 }
0x10ae   :  { %v13604_v22 = vpack.i.bf16 %v18366_v1, %v18363_v7 }
0x10af   :  { %v13599_v48 = vpack.i.bf16 %v18372_v26, %v18369_v45 }
0x10b0   :  { %13605 = vrot.lane.b32.xlu1 %v13604_v22, %s15325_s3  ;;  %v19950_v22 = vld [vmem:[#allocation44_spill] sm:$0xff] }
0x10b1   :  { %13600 = vrot.lane.b32.xlu0 %v13599_v48, %s15325_s3  ;;  %v12815_v11 = vpop.f32.mrb[16].mxu0 }
0x10b2   :  { %v7126_v36 = vadd.f32 %v12815_v11, %v18300_v9  ;;  %v7117_v30 = vpop.f32.mrb[17].mxu0 }
0x10b3   :  { %v7118_v28 = vadd.f32 %v18300_v9, %v7117_v30  ;;  %v12816_v13 = vpop.f32.mrb[18].mxu0  ;;  %v13772_v30 = vld [vmem:[#allocation4 + $0x88] sm:$0xff]  }
0x10b4   :  { %v7129_v44 = vadd.f32 %v12816_v13, %v18300_v9  ;;  %v7120_v54 = vpop.f32.mrb[19].mxu0  ;;  %v18385_v33 = vadd.f32 %v7126_v36, %v17906_v10 }
0x10b5   :  { %v7121_v60 = vadd.f32 %v18300_v9, %v7120_v54  ;;  %v18391_v3 = vadd.f32 %v7118_v28, %v17912_v58  ;;  %v13773_v28 = vld [vmem:[#allocation4 + $0x90] sm:$0xff]  }
0x10b6   :  { %v18388_v47 = vadd.f32 %v7129_v44, %v17909_v14  ;;  %v13774_v44 = vld [vmem:[#allocation4 + $0x98] sm:$0xff]  }
0x10b7   :  { %v18394_v12 = vadd.f32 %v7121_v60, %v17915_v50  ;;  %v19951_v60 = vld [vmem:[#allocation37_spill] sm:$0xff] }
0x10b8   :  { %v13614_v8 = vpack.i.bf16 %v18388_v47, %v18385_v33 }
0x10b9   :  { %v13609_v53 = vpack.i.bf16 %v18394_v12, %v18391_v3  ;;  %v12819_v23 = vpop.f32.mrb[20].mxu0 }
0x10ba   :  { %v7142_v27 = vadd.f32 %v12819_v23, %v18300_v9  ;;  %13615 = vrot.lane.b32.xlu1 %v13614_v8, %s15325_s3  ;;  %v7133_v10 = vpop.f32.mrb[21].mxu0  ;;  %v7166_v8 = vadd.f32 %v18303_v25, %v19951_v60 }
0x10bb   :  { %v7134_v14 = vadd.f32 %v18300_v9, %v7133_v10  ;;  %13610 = vrot.lane.b32.xlu0 %v13609_v53, %s15325_s3  ;;  %v12820_v58 = vpop.f32.mrb[22].mxu0  ;;  %v19952_v53 = vld [vmem:[#allocation39_spill] sm:$0xff] }
0x10bc   :  { %v7145_v50 = vadd.f32 %v12820_v58, %v18300_v9  ;;  %v7136_v42 = vpop.f32.mrb[23].mxu0  ;;  %v18407_v63 = vadd.f32 %v7142_v27, %v17928_v59 }
0x10bd   :  { %v7137_v55 = vadd.f32 %v18300_v9, %v7136_v42  ;;  %v18413_v61 = vadd.f32 %v7134_v14, %v17934_v18  ;;  %v19953_v14 = vld [vmem:[#allocation38_spill] sm:$0xff] }
0x10be   :  { %v18410_v57 = vadd.f32 %v7145_v50, %v17931_v15  ;;  %v7164_v58 = vadd.f32 %v18306_v0, %v19953_v14  ;;  %v19954_v50 = vld [vmem:[#allocation40_spill] sm:$0xff] }
0x10bf   :  { %v18416_v29 = vadd.f32 %v7137_v55, %v17937_v6  ;;  %v7165_v42 = vadd.f32 %v18312_v52, %v19954_v50 }
0x10c0   :  { %v13624_v17 = vpack.i.bf16 %v18410_v57, %v18407_v63 }
0x10c1   :  { %v13619_v38 = vpack.i.bf16 %v18416_v29, %v18413_v61  ;;  %v12823_v41 = vpop.f32.mrb[24].mxu0 }
0x10c2   :  { %v7158_v34 = vadd.f32 %v12823_v41, %v18300_v9  ;;  %13625 = vrot.lane.b32.xlu1 %v13624_v17, %s15325_s3  ;;  %v7149_v59 = vpop.f32.mrb[25].mxu0 }
0x10c3   :  { %v7150_v15 = vadd.f32 %v18300_v9, %v7149_v59  ;;  %13620 = vrot.lane.b32.xlu0 %v13619_v38, %s15325_s3  ;;  %v12824_v18 = vpop.f32.mrb[26].mxu0 }
0x10c4   :  { %v7161_v6 = vadd.f32 %v12824_v18, %v18300_v9  ;;  %v7152_v40 = vpop.f32.mrb[27].mxu0  ;;  %v18429_v20 = vadd.f32 %v7158_v34, %v19947_v21 }
0x10c5   :  { %v7153_v19 = vadd.f32 %v18300_v9, %v7152_v40  ;;  %v18435_v62 = vadd.f32 %v7150_v15, %v19949_v24 }
0x10c6   :  { %v18432_v56 = vadd.f32 %v7161_v6, %v19948_v16 }
0x10c7   :  { %v18438_v48 = vadd.f32 %v7153_v19, %v19950_v22 }
0x10c8   :  { %v13634_v11 = vpack.i.bf16 %v18432_v56, %v18429_v20  ;;  %v7193_v13 = vpack.c.bf16 %v18432_v56, %v18429_v20 }
0x10c9   :  { %v13629_v36 = vpack.i.bf16 %v18438_v48, %v18435_v62  ;;  %v7192_v9 = vpack.c.bf16 %v18438_v48, %v18435_v62 }
0x10ca   :  { %13635 = vrot.lane.b32.xlu1 %v13634_v11, %s15325_s3 }
0x10cb   :  { %13630 = vrot.lane.b32.xlu0 %v13629_v36, %s15325_s3  ;;  %11308 = vmatmul.mubr.msk.bf16.vlgmr.msra.gmra.mrb[4].mxu1 %vm576_vm2, %v7192_v9 }
0x10cc   :  { %7267 = vmatprep.mubr.bf16.mxu1 %v19778_v43  ;;  %12826 = vmatpush3.bf16.msra.mxu1 %v18297_v37  ;;  %v7167_v37 = vadd.f32 %v18309_v35, %v19952_v53 }
0x10cd   :  { %12827 = vmatprep.subr.bf16.mxu1 %v13772_v30 }
0x10d0   :  { %12828 = vmatpush3.bf16.msra.mxu1 %v13772_v30 }
0x10d1   :  { %12829 = vmatprep.subr.bf16.mxu1 %v13773_v28 }
0x10d3   :  { %11309 = vmatmul.mubr.msk.bf16.gmra.mrb[8].mxu1 %vm576_vm2, %v7193_v13 }
0x10d4   :  { %12830 = vmatpush3.bf16.msra.mxu1 %v13773_v28 }
0x10d5   :  { %12831 = vmatprep.subr.bf16.mxu1 %v13774_v44 }
0x10d8   :  { %12832 = vmatpush3.bf16.msra.mxu1 %v13774_v44 }
0x1112   :  { %v13586_v54 = vpop.permute.xlu1 %13585 }
0x1113   :  { %v13588_v23 = vunpack.i.h.bf16 %v13586_v54  ;;  %v13587_v27 = vunpack.i.l.bf16 %v13586_v54  ;;  %v13581_v10 = vpop.permute.xlu0 %13580 }
0x1114   :  { %v13583_v55 = vunpack.i.h.bf16 %v13581_v10  ;;  %v13582_v17 = vunpack.i.l.bf16 %v13581_v10 }
0x1115   :  { %v7406_v38 = vsel %vm576_vm2, %v7167_v37, %v13588_v23  ;;  %v7405_v41 = vsel %vm576_vm2, %v7166_v8, %v13587_v27 }
0x1116   :  { %v7428_v34 = vpack.c.bf16 %v7406_v38, %v7405_v41  ;;  %v7404_v25 = vsel %vm576_vm2, %v7165_v42, %v13583_v55  ;;  %v7403_v35 = vsel %vm576_vm2, %v7164_v58, %v13582_v17 }
0x1117   :  { %v7427_v59 = vpack.c.bf16 %v7404_v25, %v7403_v35 }
0x1119   :  { %12833 = vmatprep.mubr.msk.bf16.mxu1 %vm939_vm3, %v7427_v59 }
0x111a   :  { %v13596_v15 = vpop.permute.xlu1 %13595  ;;  %12834 = vmatmul.mubr.msk.bf16.vlgmr.msra.gmra.mrb[232].mxu1 %vm939_vm3, %v7428_v34 }
0x111b   :  { %v13598_v0 = vunpack.i.h.bf16 %v13596_v15  ;;  %v13597_v18 = vunpack.i.l.bf16 %v13596_v15  ;;  %v13591_v52 = vpop.permute.xlu0 %13590 }
0x111c   :  { %v13593_v6 = vunpack.i.h.bf16 %v13591_v52  ;;  %v13592_v40 = vunpack.i.l.bf16 %v13591_v52 }
0x111d   :  { %v7410_v19 = vsel %vm576_vm2, %v18322_v46, %v13598_v0  ;;  %v7409_v21 = vsel %vm576_vm2, %v18319_v32, %v13597_v18 }
0x111e   :  { %v7408_v16 = vsel %vm576_vm2, %v18328_v2, %v13593_v6  ;;  %v7407_v24 = vsel %vm576_vm2, %v18325_v51, %v13592_v40  ;;  %v7430_v11 = vpack.c.bf16 %v7410_v19, %v7409_v21 }
0x111f   :  { %v7429_v22 = vpack.c.bf16 %v7408_v16, %v7407_v24 }
0x1121   :  { %12837 = vmatprep.mubr.msk.bf16.mxu1 %vm939_vm3, %v7429_v22 }
0x1122   :  { %v13606_v36 = vpop.permute.xlu1 %13605  ;;  %12838 = vmatmul.mubr.msk.bf16.gmra.mrb[236].mxu1 %vm939_vm3, %v7430_v11 }
0x1123   :  { %v13608_v9 = vunpack.i.h.bf16 %v13606_v36  ;;  %v13607_v30 = vunpack.i.l.bf16 %v13606_v36  ;;  %v13601_v28 = vpop.permute.xlu0 %13600 }
0x1124   :  { %v13603_v13 = vunpack.i.h.bf16 %v13601_v28  ;;  %v13602_v44 = vunpack.i.l.bf16 %v13601_v28 }
0x1125   :  { %v7414_v54 = vsel %vm576_vm2, %v18344_v4, %v13608_v9  ;;  %v7413_v60 = vsel %vm576_vm2, %v18341_v49, %v13607_v30 }
0x1126   :  { %v7412_v8 = vsel %vm576_vm2, %v18350_v39, %v13603_v13  ;;  %v7411_v53 = vsel %vm576_vm2, %v18347_v5, %v13602_v44  ;;  %v7432_v23 = vpack.c.bf16 %v7414_v54, %v7413_v60 }
0x1127   :  { %v7431_v37 = vpack.c.bf16 %v7412_v8, %v7411_v53 }
0x1129   :  { %12841 = vmatprep.mubr.msk.bf16.mxu1 %vm939_vm3, %v7431_v37  ;;  %v18523_v37 = vld [vmem:[%s19606_s5 + $0x4] ss:$0 sm:$0xff] }
0x112a   :  { %12842 = vmatmul.mubr.msk.bf16.gmra.mrb[240].mxu1 %vm939_vm3, %v7432_v23 }
0x112c   :  { %v13616_v27 = vpop.permute.xlu1 %13615 }
0x112d   :  { %v13618_v10 = vunpack.i.h.bf16 %v13616_v27  ;;  %v13617_v14 = vunpack.i.l.bf16 %v13616_v27  ;;  %v13611_v58 = vpop.permute.xlu0 %13610 }
0x112e   :  { %v13613_v50 = vunpack.i.h.bf16 %v13611_v58  ;;  %v13612_v42 = vunpack.i.l.bf16 %v13611_v58 }
0x112f   :  { %v7418_v55 = vsel %vm576_vm2, %v18366_v1, %v13618_v10  ;;  %v7417_v17 = vsel %vm576_vm2, %v18363_v7, %v13617_v14 }
0x1130   :  { %v7416_v38 = vsel %vm576_vm2, %v18372_v26, %v13613_v50  ;;  %v7415_v41 = vsel %vm576_vm2, %v18369_v45, %v13612_v42  ;;  %v7434_v25 = vpack.c.bf16 %v7418_v55, %v7417_v17 }
0x1131   :  { %v7433_v34 = vpack.c.bf16 %v7416_v38, %v7415_v41 }
0x1133   :  { %12845 = vmatprep.mubr.msk.bf16.mxu1 %vm939_vm3, %v7433_v34 }
0x1134   :  { %v13626_v35 = vpop.permute.xlu1 %13625  ;;  %12846 = vmatmul.mubr.msk.bf16.gmra.mrb[244].mxu1 %vm939_vm3, %v7434_v25 }
0x1135   :  { %v13628_v59 = vunpack.i.h.bf16 %v13626_v35  ;;  %v13627_v15 = vunpack.i.l.bf16 %v13626_v35  ;;  %v13621_v0 = vpop.permute.xlu0 %13620 }
0x1136   :  { %v13623_v18 = vunpack.i.h.bf16 %v13621_v0  ;;  %v13622_v52 = vunpack.i.l.bf16 %v13621_v0 }
0x1137   :  { %v7422_v6 = vsel %vm576_vm2, %v18388_v47, %v13628_v59  ;;  %v7421_v40 = vsel %vm576_vm2, %v18385_v33, %v13627_v15 }
0x1138   :  { %v7420_v19 = vsel %vm576_vm2, %v18394_v12, %v13623_v18  ;;  %v7419_v21 = vsel %vm576_vm2, %v18391_v3, %v13622_v52  ;;  %v7436_v24 = vpack.c.bf16 %v7422_v6, %v7421_v40 }
0x1139   :  { %v7435_v16 = vpack.c.bf16 %v7420_v19, %v7419_v21 }
0x113b   :  { %12849 = vmatprep.mubr.msk.bf16.mxu1 %vm939_vm3, %v7435_v16 }
0x113c   :  { %v13636_v22 = vpop.permute.xlu1 %13635  ;;  %12850 = vmatmul.mubr.msk.bf16.gmra.mrb[248].mxu1 %vm939_vm3, %v7436_v24 }
0x113d   :  { %v13638_v11 = vunpack.i.h.bf16 %v13636_v22  ;;  %v13637_v36 = vunpack.i.l.bf16 %v13636_v22  ;;  %v13631_v9 = vpop.permute.xlu0 %13630 }
0x113e   :  { %v13633_v30 = vunpack.i.h.bf16 %v13631_v9  ;;  %v13632_v28 = vunpack.i.l.bf16 %v13631_v9 }
0x113f   :  { %v7426_v13 = vsel %vm576_vm2, %v18410_v57, %v13638_v11  ;;  %v7425_v44 = vsel %vm576_vm2, %v18407_v63, %v13637_v36 }
0x1140   :  { %v7424_v54 = vsel %vm576_vm2, %v18416_v29, %v13633_v30  ;;  %v7423_v60 = vsel %vm576_vm2, %v18413_v61, %v13632_v28  ;;  %v7438_v53 = vpack.c.bf16 %v7426_v13, %v7425_v44 }
0x1141   :  { %v7437_v8 = vpack.c.bf16 %v7424_v54, %v7423_v60 }
0x1143   :  { %12853 = vmatprep.mubr.msk.bf16.mxu1 %vm939_vm3, %v7437_v8 }
0x1144   :  { %12854 = vmatmul.mubr.msk.bf16.gmra.mrb[252].mxu1 %vm939_vm3, %v7438_v53 }
0x1145   :  { %12897 = vmatprep.mubr.msk.bf16.mxu1 %vm939_vm3, %v18206_v31 }
0x11ed   :  { %v12835_v23 = vpop.f32.mrb[232].mxu1 }
0x11ee   :  { %v18526_v27 = vadd.f32 %v12835_v23, %v18523_v37  ;;  %v7550_v10 = vpop.f32.mrb[233].mxu1 }
0x11ef   :  { %v18529_v14 = vadd.f32 %v18523_v37, %v7550_v10  ;;  %v12836_v58 = vpop.f32.mrb[234].mxu1 }
0x11f0   :  { %v11331_v50 = vmul.f32 -1.442695, %v18526_v27  ;;  %v18533_v42 = vadd.f32 %v12836_v58, %v18523_v37  ;;  %v7553_v31 = vpop.f32.mrb[235].mxu1 }
0x11f1   :  { %v11329_v55 = vmul.f32 -1.442695, %v18529_v14  ;;  %v18537_v17 = vadd.f32 %v18523_v37, %v7553_v31 }
0x11f2   :  { %14847 = vpow2.f32 %v11331_v50  ;;  %v11332_v38 = vmul.f32 -1.442695, %v18533_v42 }
0x11f3   :  { %14849 = vpow2.f32 %v11329_v55  ;;  %v11330_v41 = vmul.f32 -1.442695, %v18537_v17 }
0x11f4   :  { %14851 = vpow2.f32 %v11332_v38 }
0x11f5   :  { %v12839_v34 = vpop.f32.mrb[236].mxu1  ;;  %14853 = vpow2.f32 %v11330_v41 }
0x11f6   :  { %v18542_v25 = vadd.f32 %v12839_v34, %v18523_v37  ;;  %v7566_v35 = vpop.f32.mrb[237].mxu1 }
0x11f7   :  { %v18545_v59 = vadd.f32 %v18523_v37, %v7566_v35  ;;  %v12840_v15 = vpop.f32.mrb[238].mxu1 }
0x11f8   :  { %v11335_v0 = vmul.f32 -1.442695, %v18542_v25  ;;  %v18549_v18 = vadd.f32 %v12840_v15, %v18523_v37  ;;  %v7569_v52 = vpop.f32.mrb[239].mxu1 }
0x11f9   :  { %v11333_v6 = vmul.f32 -1.442695, %v18545_v59  ;;  %v18553_v40 = vadd.f32 %v18523_v37, %v7569_v52 }
0x11fa   :  { %14855 = vpow2.f32 %v11335_v0  ;;  %v11336_v19 = vmul.f32 -1.442695, %v18549_v18 }
0x11fb   :  { %14857 = vpow2.f32 %v11333_v6  ;;  %v11334_v24 = vmul.f32 -1.442695, %v18553_v40 }
0x11fc   :  { %v14848_v21 = vpop.eup %14847  ;;  %14859 = vpow2.f32 %v11336_v19 }
0x11fd   :  { %v14850_v16 = vpop.eup %14849  ;;  %v12843_v22 = vpop.f32.mrb[240].mxu1  ;;  %v7743_v30 = vadd.f32 1.0, %v14848_v21 }
0x11fe   :  { %v7741_v11 = vadd.f32 1.0, %v14850_v16  ;;  %v7582_v36 = vpop.f32.mrb[241].mxu1  ;;  %v14852_v9 = vpop.eup %14851  ;;  %v18558_v28 = vadd.f32 %v12843_v22, %v18523_v37 }
0x11ff   :  { %v12844_v13 = vpop.f32.mrb[242].mxu1  ;;  %v14854_v54 = vpop.eup %14853  ;;  %v18561_v60 = vadd.f32 %v18523_v37, %v7582_v36  ;;  %v7744_v8 = vadd.f32 1.0, %v14852_v9 }
0x1200   :  { %14861 = vrcp.f32 %v7741_v11  ;;  %v7585_v44 = vpop.f32.mrb[243].mxu1  ;;  %v7742_v53 = vadd.f32 1.0, %v14854_v54  ;;  %v11339_v23 = vmul.f32 -1.442695, %v18558_v28  ;;  %v18566_v31 = vadd.f32 %v12844_v13, %v18523_v37 }
0x1201   :  { %14863 = vpow2.f32 %v11334_v24  ;;  %v11337_v50 = vmul.f32 -1.442695, %v18561_v60  ;;  %v18569_v38 = vadd.f32 %v18523_v37, %v7585_v44 }
0x1202   :  { %14865 = vrcp.f32 %v7743_v30  ;;  %v11340_v35 = vmul.f32 -1.442695, %v18566_v31 }
0x1203   :  { %14867 = vrcp.f32 %v7742_v53  ;;  %v11338_v6 = vmul.f32 -1.442695, %v18569_v38 }
0x1204   :  { %v14856_v10 = vpop.eup %14855  ;;  %14869 = vrcp.f32 %v7744_v8 }
0x1205   :  { %v14858_v58 = vpop.eup %14857  ;;  %14871 = vpow2.f32 %v11339_v23  ;;  %v7747_v41 = vadd.f32 1.0, %v14856_v10 }
0x1206   :  { %v7745_v55 = vadd.f32 1.0, %v14858_v58  ;;  %v14860_v34 = vpop.eup %14859 }
0x1207   :  { %v12847_v0 = vpop.f32.mrb[244].mxu1  ;;  %v7748_v30 = vadd.f32 1.0, %v14860_v34 }
0x1208   :  { %14873 = vrcp.f32 %v7745_v55  ;;  %v18574_v19 = vadd.f32 %v12847_v0, %v18523_v37  ;;  %v7598_v21 = vpop.f32.mrb[245].mxu1 }
0x1209   :  { %14875 = vpow2.f32 %v11337_v50  ;;  %v18578_v24 = vadd.f32 %v18523_v37, %v7598_v21  ;;  %v12848_v22 = vpop.f32.mrb[246].mxu1 }
0x120a   :  { %v14862_v15 = vpop.eup %14861  ;;  %14877 = vrcp.f32 %v7747_v41  ;;  %v7601_v36 = vpop.f32.mrb[247].mxu1  ;;  %v11343_v13 = vmul.f32 -1.442695, %v18574_v19  ;;  %v18585_v53 = vadd.f32 %v12848_v22, %v18523_v37 }
0x120b   :  { %v14864_v52 = vpop.eup %14863  ;;  %7837 = vrot.lane.b32.xlu0 %v14862_v15, %s15326_s29  ;;  %14879 = vpow2.f32 %v11340_v35  ;;  %v11341_v54 = vmul.f32 -1.442695, %v18578_v24  ;;  %v18588_v10 = vadd.f32 %v18523_v37, %v7601_v36 }
0x120c   :  { %v7746_v16 = vadd.f32 1.0, %v14864_v52  ;;  %v14866_v11 = vpop.eup %14865  ;;  %v11344_v15 = vmul.f32 -1.442695, %v18585_v53 }
0x120d   :  { %v14868_v9 = vpop.eup %14867 }
0x120e   :  { %14881 = vrcp.f32 %v7746_v16  ;;  %7839 = vrot.lane.b32.xlu1 %v14868_v9, %s15326_s29  ;;  %v14870_v44 = vpop.eup %14869 }
0x120f   :  { %14883 = vpow2.f32 %v11338_v6  ;;  %7841 = vrot.lane.b32.xlu0 %v14866_v11, %s15326_s29  ;;  %v14872_v8 = vpop.eup %14871  ;;  %v12851_v58 = vpop.f32.mrb[248].mxu1  ;;  %v11342_v6 = vmul.f32 -1.442695, %v18588_v10 }
0x1210   :  { %14885 = vrcp.f32 %v7748_v30  ;;  %v7614_v55 = vpop.f32.mrb[249].mxu1  ;;  %v7751_v41 = vadd.f32 1.0, %v14872_v8  ;;  %v18595_v16 = vadd.f32 %v12851_v58, %v18523_v37 }
0x1211   :  { %14887 = vpow2.f32 %v11343_v13  ;;  %v12852_v35 = vpop.f32.mrb[250].mxu1  ;;  %v18599_v11 = vadd.f32 %v18523_v37, %v7614_v55 }
0x1212   :  { %v14874_v23 = vpop.eup %14873  ;;  %7843 = vrot.lane.b32.xlu1 %v14870_v44, %s15326_s29  ;;  %14889 = vpow2.f32 %v11341_v54  ;;  %v7617_v0 = vpop.f32.mrb[251].mxu1  ;;  %v11347_v44 = vmul.f32 -1.442695, %v18595_v16  ;;  %v18605_v55 = vadd.f32 %v12852_v35, %v18523_v37 }
0x1213   :  { %v14876_v50 = vpop.eup %14875  ;;  %7845 = vrot.lane.b32.xlu0 %v14874_v23, %s15326_s29  ;;  %v11345_v23 = vmul.f32 -1.442695, %v18599_v11 }
0x1214   :  { %v7749_v34 = vadd.f32 1.0, %v14876_v50  ;;  %v14878_v52 = vpop.eup %14877  ;;  %v11348_v35 = vmul.f32 -1.442695, %v18605_v55 }
0x1215   :  { %v14880_v21 = vpop.eup %14879 }
0x1216   :  { %14891 = vrcp.f32 %v7749_v34  ;;  %v7752_v9 = vadd.f32 1.0, %v14880_v21 }
0x1217   :  { %7849 = vrot.lane.b32.xlu0 %v14878_v52, %s15326_s29  ;;  %14893 = vrcp.f32 %v7751_v41  ;;  %v12855_v13 = vpop.f32.mrb[252].mxu1  ;;  %v18612_v52 = vadd.f32 %v18523_v37, %v7617_v0 }
0x1218   :  { %v14882_v22 = vpop.eup %14881  ;;  %14895 = vpow2.f32 %v11344_v15  ;;  %v7630_v54 = vpop.f32.mrb[253].mxu1 }
0x1219   :  { %v14884_v36 = vpop.eup %14883  ;;  %7847 = vrot.lane.b32.xlu1 %v14882_v22, %s15326_s29  ;;  %14897 = vpow2.f32 %v11342_v6  ;;  %v12856_v58 = vpop.f32.mrb[254].mxu1  ;;  %v18621_v0 = vadd.f32 %v18523_v37, %v7630_v54 }
0x121a   :  { %v7750_v30 = vadd.f32 1.0, %v14884_v36  ;;  %v14886_v8 = vpop.eup %14885  ;;  %v18608_v41 = vadd.f32 %v12856_v58, %v18523_v37  ;;  %v7633_v34 = vpop.f32.mrb[255].mxu1 }
0x121b   :  { %v14888_v50 = vpop.eup %14887  ;;  %v18628_v54 = vadd.f32 %v18523_v37, %v7633_v34 }
0x121c   :  { %14899 = vrcp.f32 %v7750_v30  ;;  %v14890_v15 = vpop.eup %14889  ;;  %v7755_v22 = vadd.f32 1.0, %v14888_v50  ;;  %v11346_v30 = vmul.f32 -1.442695, %v18612_v52 }
0x121d   :  { %7851 = vrot.lane.b32.xlu1 %v14886_v8, %s15326_s29  ;;  %14901 = vrcp.f32 %v7752_v9  ;;  %v7753_v6 = vadd.f32 1.0, %v14890_v15  ;;  %v18618_v8 = vadd.f32 %v12855_v13, %v18523_v37  ;;  %v11349_v13 = vmul.f32 -1.442695, %v18621_v0 }
0x121e   :  { %14903 = vpow2.f32 %v11347_v44 }
0x121f   :  { %14905 = vpow2.f32 %v11345_v23  ;;  %v11351_v15 = vmul.f32 -1.442695, %v18618_v8 }
0x1220   :  { %v14892_v21 = vpop.eup %14891  ;;  %14907 = vrcp.f32 %v7753_v6 }
0x1221   :  { %7853 = vrot.lane.b32.xlu0 %v14892_v21, %s15326_s29  ;;  %v14894_v36 = vpop.eup %14893  ;;  %14909 = vrcp.f32 %v7755_v22 }
0x1222   :  { %v14896_v58 = vpop.eup %14895  ;;  %14911 = vpow2.f32 %v11348_v35 }
0x1223   :  { %v14898_v9 = vpop.eup %14897  ;;  %v7756_v50 = vadd.f32 1.0, %v14896_v58  ;;  %14913 = vpow2.f32 %v11346_v30  ;;  %v11352_v30 = vmul.f32 -1.442695, %v18608_v41 }
0x1224   :  { %v7754_v44 = vadd.f32 1.0, %v14898_v9 }
0x1225   :  { %7857 = vrot.lane.b32.xlu0 %v14894_v36, %s15326_s29 }
0x1226   :  { %v14900_v23 = vpop.eup %14899  ;;  %14915 = vrcp.f32 %v7754_v44  ;;  %v11350_v44 = vmul.f32 -1.442695, %v18628_v54 }
0x1227   :  { %7855 = vrot.lane.b32.xlu1 %v14900_v23, %s15326_s29  ;;  %v14902_v6 = vpop.eup %14901  ;;  %14917 = vrcp.f32 %v7756_v50 }
0x1228   :  { %v14904_v21 = vpop.eup %14903  ;;  %14919 = vpow2.f32 %v11351_v15 }
0x1229   :  { %v14906_v22 = vpop.eup %14905  ;;  %v7759_v36 = vadd.f32 1.0, %v14904_v21  ;;  %14921 = vpow2.f32 %v11349_v13 }
0x122a   :  { %v14908_v35 = vpop.eup %14907  ;;  %v7757_v9 = vadd.f32 1.0, %v14906_v22 }
0x122b   :  { %7859 = vrot.lane.b32.xlu1 %v14902_v6, %s15326_s29  ;;  %7861 = vrot.lane.b32.xlu0 %v14908_v35, %s15326_s29  ;;  %v14910_v58 = vpop.eup %14909 }
0x122c   :  { %14923 = vrcp.f32 %v7757_v9  ;;  %v14912_v23 = vpop.eup %14911 }
0x122d   :  { %v14914_v50 = vpop.eup %14913  ;;  %14925 = vrcp.f32 %v7759_v36  ;;  %v7760_v15 = vadd.f32 1.0, %v14912_v23 }
0x122e   :  { %v7758_v34 = vadd.f32 1.0, %v14914_v50  ;;  %14927 = vpow2.f32 %v11352_v30 }
0x122f   :  { %7865 = vrot.lane.b32.xlu0 %v14910_v58, %s15326_s29  ;;  %14929 = vpow2.f32 %v11350_v44 }
0x1230   :  { %v14916_v37 = vpop.eup %14915  ;;  %14931 = vrcp.f32 %v7758_v34 }
0x1231   :  { %7863 = vrot.lane.b32.xlu1 %v14916_v37, %s15326_s29  ;;  %v14918_v6 = vpop.eup %14917  ;;  %14933 = vrcp.f32 %v7760_v15 }
0x1232   :  { %v14920_v13 = vpop.eup %14919 }
0x1233   :  { %v14922_v21 = vpop.eup %14921  ;;  %v7763_v9 = vadd.f32 1.0, %v14920_v13 }
0x1234   :  { %v7761_v35 = vadd.f32 1.0, %v14922_v21 }
0x1235   :  { %7867 = vrot.lane.b32.xlu1 %v14918_v6, %s15326_s29 }
0x1236   :  { %v14924_v22 = vpop.eup %14923  ;;  %14935 = vrcp.f32 %v7761_v35 }
0x1237   :  { %7869 = vrot.lane.b32.xlu0 %v14924_v22, %s15326_s29  ;;  %v14926_v36 = vpop.eup %14925  ;;  %14937 = vrcp.f32 %v7763_v9 }
0x1238   :  { %v14928_v58 = vpop.eup %14927 }
0x1239   :  { %v14930_v30 = vpop.eup %14929  ;;  %v7764_v50 = vadd.f32 1.0, %v14928_v58 }
0x123a   :  { %v14932_v44 = vpop.eup %14931  ;;  %v7762_v23 = vadd.f32 1.0, %v14930_v30 }
0x123b   :  { %7873 = vrot.lane.b32.xlu0 %v14926_v36, %s15326_s29  ;;  %7871 = vrot.lane.b32.xlu1 %v14932_v44, %s15326_s29  ;;  %v14934_v37 = vpop.eup %14933 }
0x123c   :  { %14939 = vrcp.f32 %v7762_v23 }
0x123d   :  { %14941 = vrcp.f32 %v7764_v50 }
0x123e   :  { %14943 = vtanh.f32 %v18529_v14 }
0x123f   :  { %7875 = vrot.lane.b32.xlu1 %v14934_v37, %s15326_s29  ;;  %14945 = vtanh.f32 %v18537_v17 }
0x1240   :  { %v14936_v34 = vpop.eup %14935  ;;  %14947 = vtanh.f32 %v18526_v27 }
0x1241   :  { %7877 = vrot.lane.b32.xlu0 %v14936_v34, %s15326_s29  ;;  %v14938_v15 = vpop.eup %14937  ;;  %14949 = vtanh.f32 %v18533_v42 }
0x1242   :  { %14951 = vtanh.f32 %v18545_v59 }
0x1243   :  { %14953 = vtanh.f32 %v18553_v40 }
0x1244   :  { %14955 = vtanh.f32 %v18542_v25 }
0x1245   :  { %7881 = vrot.lane.b32.xlu0 %v14938_v15, %s15326_s29  ;;  %14957 = vtanh.f32 %v18549_v18 }
0x1246   :  { %v14940_v6 = vpop.eup %14939  ;;  %14959 = vtanh.f32 %v18561_v60 }
0x1247   :  { %7879 = vrot.lane.b32.xlu1 %v14940_v6, %s15326_s29  ;;  %v14942_v13 = vpop.eup %14941  ;;  %14961 = vtanh.f32 %v18569_v38 }
0x1248   :  { %v14944_v22 = vpop.eup %14943  ;;  %14963 = vtanh.f32 %v18558_v28 }
0x1249   :  { %v14946_v35 = vpop.eup %14945  ;;  %14965 = vtanh.f32 %v18566_v31 }
0x124a   :  { %v14948_v44 = vpop.eup %14947  ;;  %14967 = vtanh.f32 %v18578_v24 }
0x124b   :  { %7883 = vrot.lane.b32.xlu1 %v14942_v13, %s15326_s29  ;;  %v14950_v17 = vpop.eup %14949  ;;  %14969 = vtanh.f32 %v18588_v10 }
0x124c   :  { %v14952_v37 = vpop.eup %14951  ;;  %14971 = vtanh.f32 %v18574_v19 }
0x124d   :  { %v14954_v40 = vpop.eup %14953  ;;  %14973 = vtanh.f32 %v18585_v53 }
0x124e   :  { %v14956_v25 = vpop.eup %14955  ;;  %14975 = vtanh.f32 %v18599_v11 }
0x124f   :  { %v14958_v18 = vpop.eup %14957  ;;  %14977 = vtanh.f32 %v18612_v52 }
0x1250   :  { %14979 = vtanh.f32 %v18595_v16  ;;  %v18669_v16 = vld [vmem:[%s19602_s1 + $0x8] sm:$0xff]  }
0x1251   :  { %14981 = vtanh.f32 %v18605_v55 }
0x1252   :  { %14983 = vtanh.f32 %v18621_v0 }
0x1253   :  { %14985 = vtanh.f32 %v18628_v54 }
0x1254   :  { %14987 = vtanh.f32 %v18618_v8  ;;  %v18690_v8 = vld [vmem:[%s19602_s1 + $0x20] sm:$0xff]  }
0x1255   :  { %14989 = vtanh.f32 %v18608_v41 }
0x127d   :  { %v7838_v21 = vpop.permute.xlu0 %7837 }
0x127e   :  { %v7909_v58 = vmul.f32 %v14944_v22, %v7838_v21 }
0x1280   :  { %v7840_v9 = vpop.permute.xlu1 %7839 }
0x1281   :  { %v7842_v36 = vpop.permute.xlu0 %7841  ;;  %v7910_v30 = vmul.f32 %v14946_v35, %v7840_v9 }
0x1282   :  { %v7911_v42 = vmul.f32 %v14948_v44, %v7842_v36 }
0x1283   :  { %v7933_v14 = vpack.c.bf16 %v7910_v30, %v7909_v58  ;;  %v14960_v30 = vpop.eup %14959 }
0x1284   :  { %v7844_v27 = vpop.permute.xlu1 %7843  ;;  %v14962_v44 = vpop.eup %14961 }
0x1285   :  { %v7912_v23 = vmul.f32 %v14950_v17, %v7844_v27  ;;  %12857 = vmatprep.subr.bf16.mxu0 %v7933_v14  ;;  %v7846_v50 = vpop.permute.xlu0 %7845  ;;  %v14964_v27 = vpop.eup %14963 }
0x1286   :  { %12858 = vmatpush3.bf16.msra.mxu0 %v7933_v14  ;;  %v7913_v15 = vmul.f32 %v14952_v37, %v7846_v50 }
0x1287   :  { %v7934_v59 = vpack.c.bf16 %v7912_v23, %v7911_v42  ;;  %v14966_v23 = vpop.eup %14965 }
0x1288   :  { %v14968_v37 = vpop.eup %14967 }
0x1289   :  { %12859 = vmatprep.subr.bf16.mxu0 %v7934_v59  ;;  %v7850_v13 = vpop.permute.xlu0 %7849  ;;  %v14970_v10 = vpop.eup %14969 }
0x128a   :  { %12860 = vmatpush3.bf16.msra.mxu0 %v7934_v59  ;;  %v7915_v35 = vmul.f32 %v14956_v25, %v7850_v13 }
0x128b   :  { %v7848_v34 = vpop.permute.xlu1 %7847 }
0x128c   :  { %v7914_v6 = vmul.f32 %v14954_v40, %v7848_v34 }
0x128e   :  { %v7935_v21 = vpack.c.bf16 %v7914_v6, %v7913_v15  ;;  %v14972_v6 = vpop.eup %14971 }
0x128f   :  { %v7852_v22 = vpop.permute.xlu1 %7851  ;;  %v14974_v13 = vpop.eup %14973 }
0x1290   :  { %v7916_v9 = vmul.f32 %v14958_v18, %v7852_v22  ;;  %12861 = vmatprep.subr.bf16.mxu0 %v7935_v21  ;;  %v14976_v11 = vpop.eup %14975 }
0x1291   :  { %12862 = vmatpush3.bf16.msra.mxu0 %v7935_v21 }
0x1292   :  { %v7936_v36 = vpack.c.bf16 %v7916_v9, %v7915_v35  ;;  %v14978_v9 = vpop.eup %14977 }
0x1293   :  { %v7854_v58 = vpop.permute.xlu0 %7853  ;;  %v14980_v0 = vpop.eup %14979 }
0x1294   :  { %12863 = vmatprep.subr.bf16.mxu0 %v7936_v36  ;;  %v7917_v38 = vmul.f32 %v14960_v30, %v7854_v58  ;;  %v18676_v30 = vld [vmem:[%s19602_s1 + $0x10] sm:$0xff]  }
0x1295   :  { %12864 = vmatpush3.bf16.msra.mxu0 %v7936_v36 }
0x1297   :  { %v7858_v17 = vpop.permute.xlu0 %7857 }
0x1298   :  { %v7919_v31 = vmul.f32 %v14964_v27, %v7858_v17 }
0x1299   :  { %v7856_v60 = vpop.permute.xlu1 %7855 }
0x129a   :  { %v7918_v14 = vmul.f32 %v14962_v44, %v7856_v60  ;;  %v14982_v60 = vpop.eup %14981 }
0x129b   :  { %v14984_v41 = vpop.eup %14983 }
0x129c   :  { %v7937_v42 = vpack.c.bf16 %v7918_v14, %v7917_v38 }
0x129d   :  { %v7860_v28 = vpop.permute.xlu1 %7859  ;;  %v7862_v24 = vpop.permute.xlu0 %7861 }
0x129e   :  { %v7920_v50 = vmul.f32 %v14966_v23, %v7860_v28  ;;  %12865 = vmatprep.subr.bf16.mxu0 %v7937_v42  ;;  %v7921_v34 = vmul.f32 %v14968_v37, %v7862_v24  ;;  %v14986_v23 = vpop.eup %14985 }
0x129f   :  { %12866 = vmatpush3.bf16.msra.mxu0 %v7937_v42  ;;  %v18684_v42 = vld [vmem:[%s19602_s1 + $0x18] sm:$0xff]   ;;  %v14988_v24 = vpop.eup %14987 }
0x12a0   :  { %v7938_v59 = vpack.c.bf16 %v7920_v50, %v7919_v31 }
0x12a1   :  { %v7866_v19 = vpop.permute.xlu0 %7865 }
0x12a2   :  { %12867 = vmatprep.subr.bf16.mxu0 %v7938_v59  ;;  %v7923_v21 = vmul.f32 %v14972_v6, %v7866_v19  ;;  %v18696_v19 = vld [vmem:[%s19602_s1 + $0x28] sm:$0xff]   ;;  %v18702_v6 = vld [vmem:[%s19602_s1 + $0x30] sm:$0xff]  }
0x12a3   :  { %12868 = vmatpush3.bf16.msra.mxu0 %v7938_v59  ;;  %v7864_v40 = vpop.permute.xlu1 %7863 }
0x12a4   :  { %v7922_v15 = vmul.f32 %v14970_v10, %v7864_v40  ;;  %v14990_v10 = vpop.eup %14989 }
0x12a6   :  { %v7939_v53 = vpack.c.bf16 %v7922_v15, %v7921_v34 }
0x12a7   :  { %v7868_v25 = vpop.permute.xlu1 %7867 }
0x12a8   :  { %v7924_v18 = vmul.f32 %v14974_v13, %v7868_v25  ;;  %12869 = vmatprep.subr.bf16.mxu0 %v7939_v53  ;;  %v13775_v13 = vld [vmem:[%s19609_s8 + $0x40] sm:$0xff]   ;;  %v18711_v25 = vld [vmem:[%s19602_s1 + $0x38] sm:$0xff]  }
0x12a9   :  { %12870 = vmatpush3.bf16.msra.mxu0 %v7939_v53  ;;  %v7870_v35 = vpop.permute.xlu0 %7869 }
0x12aa   :  { %v7940_v22 = vpack.c.bf16 %v7924_v18, %v7923_v21  ;;  %v7925_v36 = vmul.f32 %v14976_v11, %v7870_v35  ;;  %v13776_v21 = vld [vmem:[%s19609_s8 + $0x48] sm:$0xff]  }
0x12ac   :  { %12871 = vmatprep.subr.bf16.mxu0 %v7940_v22 }
0x12ad   :  { %12872 = vmatpush3.bf16.msra.mxu0 %v7940_v22  ;;  %v7872_v52 = vpop.permute.xlu1 %7871  ;;  %v7874_v55 = vpop.permute.xlu0 %7873 }
0x12ae   :  { %v7926_v58 = vmul.f32 %v14978_v9, %v7872_v52  ;;  %v7927_v14 = vmul.f32 %v14980_v0, %v7874_v55 }
0x12b0   :  { %12874 = vmatmul.mubr.bf16.vlgmr.msra.gmra.mrb[28].mxu0 %v18669_v16  ;;  %v7941_v44 = vpack.c.bf16 %v7926_v58, %v7925_v36 }
0x12b1   :  { %12877 = vmatprep.mubr.bf16.mxu0 %v18676_v30  ;;  %v7876_v38 = vpop.permute.xlu1 %7875 }
0x12b2   :  { %v7928_v17 = vmul.f32 %v14982_v60, %v7876_v38  ;;  %12889 = vmatprep.subr.bf16.mxu1 %v7941_v44 }
0x12b3   :  { %12890 = vmatpush3.bf16.msra.mxu1 %v7941_v44  ;;  %v7878_v27 = vpop.permute.xlu0 %7877 }
0x12b4   :  { %v7942_v54 = vpack.c.bf16 %v7928_v17, %v7927_v14  ;;  %v7929_v31 = vmul.f32 %v14984_v41, %v7878_v27 }
0x12b6   :  { %12891 = vmatprep.subr.bf16.mxu1 %v7942_v54 }
0x12b7   :  { %12892 = vmatpush3.bf16.msra.mxu1 %v7942_v54  ;;  %v7882_v59 = vpop.permute.xlu0 %7881 }
0x12b8   :  { %12878 = vmatmul.mubr.bf16.gmra.mrb[32].mxu0 %v18684_v42  ;;  %v7931_v34 = vmul.f32 %v14988_v24, %v7882_v59 }
0x12b9   :  { %12881 = vmatprep.mubr.bf16.mxu0 %v18690_v8  ;;  %v7880_v28 = vpop.permute.xlu1 %7879 }
0x12ba   :  { %v7930_v50 = vmul.f32 %v14986_v23, %v7880_v28 }
0x12bc   :  { %v7943_v37 = vpack.c.bf16 %v7930_v50, %v7929_v31 }
0x12bd   :  { %v7884_v40 = vpop.permute.xlu1 %7883 }
0x12be   :  { %v7932_v15 = vmul.f32 %v14990_v10, %v7884_v40  ;;  %12893 = vmatprep.subr.bf16.mxu1 %v7943_v37 }
0x12bf   :  { %12894 = vmatpush3.bf16.msra.mxu1 %v7943_v37 }
0x12c0   :  { %12882 = vmatmul.mubr.bf16.gmra.mrb[36].mxu0 %v18696_v19  ;;  %v7944_v53 = vpack.c.bf16 %v7932_v15, %v7931_v34 }
0x12c1   :  { %12885 = vmatprep.mubr.bf16.mxu0 %v18702_v6 }
0x12c2   :  { %12895 = vmatprep.subr.bf16.mxu1 %v7944_v53 }
0x12c3   :  { %12896 = vmatpush3.bf16.msra.mxu1 %v7944_v53 }
0x12c4   :  { %12905 = vmatprep.subr.bf16.mxu1 %v13775_v13 }
0x12c6   :  { %12898 = vmatmul.mubr.msk.bf16.vlgmr.msra.gmra.mrb[0].mxu1 %vm939_vm3, %v18669_v16 }
0x12c7   :  { %12901 = vmatprep.mubr.msk.bf16.mxu1 %vm939_vm3, %v18676_v30  ;;  %12906 = vmatpush3.bf16.msra.mxu1 %v13775_v13 }
0x12c8   :  { %12886 = vmatmul.mubr.bf16.gmra.mrb[40].mxu0 %v18711_v25  ;;  %12907 = vmatprep.subr.bf16.mxu1 %v13776_v21 }
0x12cb   :  { %12908 = vmatpush3.bf16.msra.mxu1 %v13776_v21 }
0x12ce   :  { %12902 = vmatmul.mubr.msk.bf16.gmra.mrb[12].mxu1 %vm939_vm3, %v18684_v42 }
0x1383   :  { %v12875_v18 = vpop.f32.mrb[28].mxu0 }
0x1384   :  { %v7979_v22 = vpop.f32.mrb[29].mxu0 }
0x1385   :  { %v12876_v35 = vpop.f32.mrb[30].mxu0 }
0x1386   :  { %v8108_v11 = vpack.c.bf16 %v12876_v35, %v12875_v18  ;;  %v7982_v9 = vpop.f32.mrb[31].mxu0 }
0x1387   :  { %v8107_v52 = vpack.c.bf16 %v7982_v9, %v7979_v22  ;;  %v13777_v9 = vld [vmem:[#allocation6 + $0xa0] ss:$8 sps:$4 sm:$0xff]  }
0x1389   :  { %12909 = vmatprep.mubr.msk.bf16.mxu1 %vm576_vm2, %v8107_v52  ;;  %v13779_v52 = vld [vmem:[#allocation6 + $0xa4] ss:$8 sps:$4 sm:$0xff]  }
0x138a   :  { %12910 = vmatmul.mubr.msk.bf16.vlgmr.msra.gmra.mrb[16].mxu1 %vm576_vm2, %v8108_v11  ;;  %8366 = vmatprep.subr.bf16.mxu1 %v13779_v52 }
0x138b   :  { %v12879_v36 = vpop.f32.mrb[32].mxu0  ;;  %8367 = vmatpush1.bf16.msra.mxu1 %v13777_v9 }
0x138c   :  { %v7995_v58 = vpop.f32.mrb[33].mxu0 }
0x138d   :  { %v12880_v55 = vpop.f32.mrb[34].mxu0 }
0x138e   :  { %v8110_v0 = vpack.c.bf16 %v12880_v55, %v12879_v36  ;;  %v7998_v44 = vpop.f32.mrb[35].mxu0  ;;  %v13782_v36 = vld [vmem:[#allocation6 + $0xb4] ss:$8 sps:$4 sm:$0xff]   ;;  %v13783_v55 = vld [vmem:[#allocation4 + $0xa0] sm:$0xff]  }
0x138f   :  { %v8109_v60 = vpack.c.bf16 %v7998_v44, %v7995_v58  ;;  %v13780_v58 = vld [vmem:[#allocation6 + $0xb0] ss:$8 sps:$4 sm:$0xff]   ;;  %8368 = vmatprep.subr.bf16.mxu1 %v13782_v36  ;;  %12933 = vmatprep.subr.bf16.mxu0 %v13783_v55 }
0x1390   :  { %8369 = vmatpush1.bf16.msra.mxu1 %v13780_v58  ;;  %12934 = vmatpush3.bf16.msra.mxu0 %v13783_v55  ;;  %v13785_v44 = vld [vmem:[#allocation4 + $0xb0] sm:$0xff]  }
0x1391   :  { %12913 = vmatprep.mubr.msk.bf16.mxu1 %vm576_vm2, %v8109_v60  ;;  %v18736_v60 = vld [vmem:[#allocation7 + $0x4] ss:$0 sm:$0xff] }
0x1392   :  { %12914 = vmatmul.mubr.msk.bf16.gmra.mrb[20].mxu1 %vm576_vm2, %v8110_v0  ;;  %v13784_v0 = vld [vmem:[#allocation4 + $0xa8] sm:$0xff]  }
0x1393   :  { %v12883_v38 = vpop.f32.mrb[36].mxu0  ;;  %12935 = vmatprep.subr.bf16.mxu0 %v13784_v0 }
0x1394   :  { %v8011_v14 = vpop.f32.mrb[37].mxu0  ;;  %12936 = vmatpush3.bf16.msra.mxu0 %v13784_v0 }
0x1395   :  { %v12884_v17 = vpop.f32.mrb[38].mxu0  ;;  %12937 = vmatprep.subr.bf16.mxu0 %v13785_v44 }
0x1396   :  { %v8112_v54 = vpack.c.bf16 %v12884_v17, %v12883_v38  ;;  %v8014_v27 = vpop.f32.mrb[39].mxu0 }
0x1397   :  { %v8111_v41 = vpack.c.bf16 %v8014_v27, %v8011_v14 }
0x1398   :  { %12938 = vmatpush3.bf16.msra.mxu0 %v13785_v44 }
0x1399   :  { %12917 = vmatprep.mubr.msk.bf16.mxu1 %vm576_vm2, %v8111_v41  ;;  %v12899_v28 = vpop.f32.mrb[0].mxu1 }
0x139a   :  { %12918 = vmatmul.mubr.msk.bf16.gmra.mrb[24].mxu1 %vm576_vm2, %v8112_v54  ;;  %v8076_v50 = vpop.f32.mrb[1].mxu1 }
0x139b   :  { %v12887_v23 = vpop.f32.mrb[40].mxu0  ;;  %v12900_v24 = vpop.f32.mrb[2].mxu1 }
0x139c   :  { %v8027_v31 = vpop.f32.mrb[41].mxu0  ;;  %v8116_v40 = vpack.c.bf16 %v12900_v24, %v12899_v28  ;;  %v8079_v34 = vpop.f32.mrb[3].mxu1 }
0x139d   :  { %v12888_v59 = vpop.f32.mrb[42].mxu0  ;;  %v8115_v53 = vpack.c.bf16 %v8079_v34, %v8076_v50 }
0x139e   :  { %v8114_v37 = vpack.c.bf16 %v12888_v59, %v12887_v23  ;;  %v8030_v10 = vpop.f32.mrb[43].mxu0 }
0x139f   :  { %v8113_v15 = vpack.c.bf16 %v8030_v10, %v8027_v31 }
0x13a1   :  { %12921 = vmatprep.mubr.msk.bf16.mxu1 %vm576_vm2, %v8113_v15  ;;  %v12903_v13 = vpop.f32.mrb[12].mxu1 }
0x13a2   :  { %12922 = vmatmul.mubr.msk.bf16.gmra.mrb[28].mxu1 %vm576_vm2, %v8114_v37  ;;  %v8092_v21 = vpop.f32.mrb[13].mxu1 }
0x13a3   :  { %12925 = vmatprep.mubr.msk.bf16.mxu1 %vm576_vm2, %v8115_v53  ;;  %v12904_v18 = vpop.f32.mrb[14].mxu1  ;;  %v13786_v53 = vld [vmem:[#allocation4 + $0xb8] sm:$0xff]  }
0x13a4   :  { %v8118_v22 = vpack.c.bf16 %v12904_v18, %v12903_v13  ;;  %v8095_v35 = vpop.f32.mrb[15].mxu1  ;;  %12939 = vmatprep.subr.bf16.mxu0 %v13786_v53 }
0x13a5   :  { %v8117_v11 = vpack.c.bf16 %v8095_v35, %v8092_v21  ;;  %12940 = vmatpush3.bf16.msra.mxu0 %v13786_v53 }
0x13aa   :  { %12926 = vmatmul.mubr.msk.bf16.gmra.mrb[32].mxu1 %vm576_vm2, %v8116_v40 }
0x13ab   :  { %12929 = vmatprep.mubr.msk.bf16.mxu1 %vm576_vm2, %v8117_v11 }
0x13b2   :  { %12930 = vmatmul.mubr.msk.bf16.gmra.mrb[36].mxu1 %vm576_vm2, %v8118_v22 }
0x13b3   :  { %8398 = vmatprep.mubr.bf16.mxu1 %v19778_v43 }
0x145d   :  { %v12911_v38 = vpop.f32.mrb[16].mxu1 }
0x145e   :  { %v18739_v14 = vadd.f32 %v12911_v38, %v18736_v60  ;;  %v8214_v17 = vpop.f32.mrb[17].mxu1 }
0x145f   :  { %v18742_v54 = vadd.f32 %v18736_v60, %v8214_v17  ;;  %v12912_v27 = vpop.f32.mrb[18].mxu1 }
0x1460   :  { %v18745_v41 = vadd.f32 %v12912_v27, %v18736_v60  ;;  %v8217_v23 = vpop.f32.mrb[19].mxu1 }
0x1461   :  { %v18748_v28 = vadd.f32 %v18736_v60, %v8217_v23 }
0x1465   :  { %v12915_v31 = vpop.f32.mrb[20].mxu1 }
0x1466   :  { %v18751_v50 = vadd.f32 %v12915_v31, %v18736_v60  ;;  %v8230_v59 = vpop.f32.mrb[21].mxu1 }
0x1467   :  { %v18754_v24 = vadd.f32 %v18736_v60, %v8230_v59  ;;  %v12916_v37 = vpop.f32.mrb[22].mxu1 }
0x1468   :  { %v18757_v10 = vadd.f32 %v12916_v37, %v18736_v60  ;;  %v8233_v40 = vpop.f32.mrb[23].mxu1 }
0x1469   :  { %v18760_v34 = vadd.f32 %v18736_v60, %v8233_v40 }
0x146d   :  { %v12919_v15 = vpop.f32.mrb[24].mxu1 }
0x146e   :  { %v8255_v13 = vadd.f32 %v12919_v15, %v18736_v60  ;;  %v8246_v21 = vpop.f32.mrb[25].mxu1 }
0x146f   :  { %v8247_v18 = vadd.f32 %v18736_v60, %v8246_v21  ;;  %v12920_v22 = vpop.f32.mrb[26].mxu1 }
0x1470   :  { %v8258_v35 = vadd.f32 %v12920_v22, %v18736_v60  ;;  %v8249_v11 = vpop.f32.mrb[27].mxu1  ;;  %v18767_v52 = vadd.f32 %v8255_v13, %v18363_v7 }
0x1471   :  { %v8250_v9 = vadd.f32 %v18736_v60, %v8249_v11  ;;  %v18773_v58 = vadd.f32 %v8247_v18, %v18369_v45 }
0x1472   :  { %v18770_v36 = vadd.f32 %v8258_v35, %v18366_v1 }
0x1473   :  { %v18776_v55 = vadd.f32 %v8250_v9, %v18372_v26 }
0x1474   :  { %v13644_v0 = vpack.i.bf16 %v18770_v36, %v18767_v52 }
0x1475   :  { %v13639_v44 = vpack.i.bf16 %v18776_v55, %v18773_v58  ;;  %v12923_v38 = vpop.f32.mrb[28].mxu1 }
0x1476   :  { %v8271_v17 = vadd.f32 %v12923_v38, %v18736_v60  ;;  %13645 = vrot.lane.b32.xlu1 %v13644_v0, %s15325_s3  ;;  %v8262_v7 = vpop.f32.mrb[29].mxu1 }
0x1477   :  { %v8263_v1 = vadd.f32 %v18736_v60, %v8262_v7  ;;  %13640 = vrot.lane.b32.xlu0 %v13639_v44, %s15325_s3  ;;  %v12924_v45 = vpop.f32.mrb[30].mxu1 }
0x1478   :  { %v8274_v26 = vadd.f32 %v12924_v45, %v18736_v60  ;;  %v8265_v27 = vpop.f32.mrb[31].mxu1  ;;  %v18789_v31 = vadd.f32 %v8271_v17, %v18385_v33 }
0x1479   :  { %v8266_v23 = vadd.f32 %v18736_v60, %v8265_v27  ;;  %v18795_v37 = vadd.f32 %v8263_v1, %v18391_v3 }
0x147a   :  { %v18792_v59 = vadd.f32 %v8274_v26, %v18388_v47 }
0x147b   :  { %v18798_v40 = vadd.f32 %v8266_v23, %v18394_v12 }
0x147c   :  { %v13654_v15 = vpack.i.bf16 %v18792_v59, %v18789_v31 }
0x147d   :  { %v13649_v53 = vpack.i.bf16 %v18798_v40, %v18795_v37  ;;  %v12927_v13 = vpop.f32.mrb[32].mxu1 }
0x147e   :  { %v8287_v21 = vadd.f32 %v12927_v13, %v18736_v60  ;;  %13655 = vrot.lane.b32.xlu1 %v13654_v15, %s15325_s3  ;;  %v8278_v33 = vpop.f32.mrb[33].mxu1 }
0x147f   :  { %v8279_v47 = vadd.f32 %v18736_v60, %v8278_v33  ;;  %v12928_v18 = vpop.f32.mrb[34].mxu1  ;;  %13650 = vrot.lane.b32.xlu0 %v13649_v53, %s15325_s3 }
0x1480   :  { %v8290_v3 = vadd.f32 %v12928_v18, %v18736_v60  ;;  %v8281_v12 = vpop.f32.mrb[35].mxu1  ;;  %v18811_v35 = vadd.f32 %v8287_v21, %v18407_v63  ;;  %v8309_v18 = vadd.f32 %v18742_v54, %v18325_v51  ;;  %v8316_v54 = vadd.f32 %v18757_v10, %v18344_v4 }
0x1481   :  { %v8282_v22 = vadd.f32 %v18736_v60, %v8281_v12  ;;  %v18817_v9 = vadd.f32 %v8279_v47, %v18413_v61 }
0x1482   :  { %v18814_v11 = vadd.f32 %v8290_v3, %v18410_v57  ;;  %v8310_v3 = vadd.f32 %v18748_v28, %v18328_v2  ;;  %v8315_v2 = vadd.f32 %v18751_v50, %v18341_v49 }
0x1483   :  { %v18820_v0 = vadd.f32 %v8282_v22, %v18416_v29 }
0x1484   :  { %v13664_v44 = vpack.i.bf16 %v18814_v11, %v18811_v35 }
0x1485   :  { %v13659_v38 = vpack.i.bf16 %v18820_v0, %v18817_v9  ;;  %v12931_v17 = vpop.f32.mrb[36].mxu1 }
0x1486   :  { %v8303_v7 = vadd.f32 %v12931_v17, %v18736_v60  ;;  %13665 = vrot.lane.b32.xlu1 %v13664_v44, %s15325_s3  ;;  %v8294_v63 = vpop.f32.mrb[37].mxu1 }
0x1487   :  { %v8295_v57 = vadd.f32 %v18736_v60, %v8294_v63  ;;  %v12932_v1 = vpop.f32.mrb[38].mxu1  ;;  %13660 = vrot.lane.b32.xlu0 %v13659_v38, %s15325_s3  ;;  %v8313_v63 = vadd.f32 %v18754_v24, %v18347_v5 }
0x1488   :  { %v8306_v61 = vadd.f32 %v12932_v1, %v18736_v60  ;;  %v8297_v29 = vpop.f32.mrb[39].mxu1  ;;  %v18833_v26 = vadd.f32 %v8303_v7, %v18429_v20 }
0x1489   :  { %v8298_v45 = vadd.f32 %v18736_v60, %v8297_v29  ;;  %v18839_v23 = vadd.f32 %v8295_v57, %v18435_v62  ;;  %v8311_v62 = vadd.f32 %v18739_v14, %v18319_v32  ;;  %v8314_v57 = vadd.f32 %v18760_v34, %v18350_v39 }
0x148a   :  { %v18836_v27 = vadd.f32 %v8306_v61, %v18432_v56 }
0x148b   :  { %v18842_v15 = vadd.f32 %v8298_v45, %v18438_v48  ;;  %v8312_v48 = vadd.f32 %v18745_v41, %v18322_v46 }
0x148c   :  { %v13674_v53 = vpack.i.bf16 %v18836_v27, %v18833_v26  ;;  %v8334_v20 = vpack.c.bf16 %v18836_v27, %v18833_v26 }
0x148d   :  { %v13669_v13 = vpack.i.bf16 %v18842_v15, %v18839_v23  ;;  %v8333_v60 = vpack.c.bf16 %v18842_v15, %v18839_v23 }
0x148e   :  { %13675 = vrot.lane.b32.xlu1 %v13674_v53, %s15325_s3 }
0x148f   :  { %11380 = vmatmul.mubr.msk.bf16.vlgmr.msra.gmra.mrb[4].mxu1 %vm576_vm2, %v8333_v60  ;;  %13670 = vrot.lane.b32.xlu0 %v13669_v13, %s15325_s3 }
0x1490   :  { %8408 = vmatprep.mubr.bf16.mxu1 %v19778_v43 }
0x1497   :  { %11381 = vmatmul.mubr.msk.bf16.gmra.mrb[8].mxu1 %vm576_vm2, %v8334_v20 }
0x14e8   :  { %v13646_v56 = vpop.permute.xlu1 %13645 }
0x14e9   :  { %v13648_v21 = vunpack.i.h.bf16 %v13646_v56  ;;  %v13647_v33 = vunpack.i.l.bf16 %v13646_v56  ;;  %v13641_v47 = vpop.permute.xlu0 %13640 }
0x14ea   :  { %v13643_v12 = vunpack.i.h.bf16 %v13641_v47  ;;  %v13642_v22 = vunpack.i.l.bf16 %v13641_v47 }
0x14eb   :  { %v8515_v44 = vsel %vm576_vm2, %v8312_v48, %v13648_v21  ;;  %v8514_v38 = vsel %vm576_vm2, %v8311_v62, %v13647_v33 }
0x14ec   :  { %v8529_v17 = vpack.c.bf16 %v8515_v44, %v8514_v38  ;;  %v8513_v32 = vsel %vm576_vm2, %v8310_v3, %v13643_v12  ;;  %v8512_v46 = vsel %vm576_vm2, %v8309_v18, %v13642_v22 }
0x14ed   :  { %v8528_v14 = vpack.c.bf16 %v8513_v32, %v8512_v46 }
0x14ef   :  { %12941 = vmatprep.mubr.msk.bf16.mxu0 %vm939_vm3, %v8528_v14 }
0x14f0   :  { %12942 = vmatmul.mubr.msk.bf16.vlgmr.msra.gmra.mrb[44].mxu0 %vm939_vm3, %v8529_v17  ;;  %v13656_v51 = vpop.permute.xlu1 %13655 }
0x14f1   :  { %v13658_v41 = vunpack.i.h.bf16 %v13656_v51  ;;  %v13657_v28 = vunpack.i.l.bf16 %v13656_v51  ;;  %v13651_v7 = vpop.permute.xlu0 %13650  ;;  %v18908_v51 = vld [vmem:[%s19602_s1] sm:$0xff]  }
0x14f2   :  { %v13653_v1 = vunpack.i.h.bf16 %v13651_v7  ;;  %v13652_v61 = vunpack.i.l.bf16 %v13651_v7 }
0x14f3   :  { %v8519_v29 = vsel %vm576_vm2, %v8316_v54, %v13658_v41  ;;  %v8518_v45 = vsel %vm576_vm2, %v8315_v2, %v13657_v28  ;;  %v18914_v2 = vld [vmem:[%s19606_s5 + $0x5] ss:$0 sm:$0xff] }
0x14f4   :  { %v8531_v53 = vpack.c.bf16 %v8519_v29, %v8518_v45  ;;  %v8517_v49 = vsel %vm576_vm2, %v8314_v57, %v13653_v1  ;;  %v8516_v4 = vsel %vm576_vm2, %v8313_v63, %v13652_v61 }
0x14f5   :  { %v8530_v50 = vpack.c.bf16 %v8517_v49, %v8516_v4 }
0x14f7   :  { %12945 = vmatprep.mubr.msk.bf16.mxu0 %vm939_vm3, %v8530_v50 }
0x14f8   :  { %v13666_v10 = vpop.permute.xlu1 %13665  ;;  %12946 = vmatmul.mubr.msk.bf16.gmra.mrb[48].mxu0 %vm939_vm3, %v8531_v53 }
0x14f9   :  { %v13668_v5 = vunpack.i.h.bf16 %v13666_v10  ;;  %v13667_v24 = vunpack.i.l.bf16 %v13666_v10  ;;  %v13661_v39 = vpop.permute.xlu0 %13660 }
0x14fa   :  { %v13663_v34 = vunpack.i.h.bf16 %v13661_v39  ;;  %v13662_v13 = vunpack.i.l.bf16 %v13661_v39 }
0x14fb   :  { %v8523_v60 = vsel %vm576_vm2, %v18770_v36, %v13668_v5  ;;  %v8522_v20 = vsel %vm576_vm2, %v18767_v52, %v13667_v24 }
0x14fc   :  { %v8521_v56 = vsel %vm576_vm2, %v18776_v55, %v13663_v34  ;;  %v8520_v62 = vsel %vm576_vm2, %v18773_v58, %v13662_v13  ;;  %v8533_v21 = vpack.c.bf16 %v8523_v60, %v8522_v20 }
0x14fd   :  { %v8532_v48 = vpack.c.bf16 %v8521_v56, %v8520_v62 }
0x14ff   :  { %12949 = vmatprep.mubr.msk.bf16.mxu0 %vm939_vm3, %v8532_v48 }
0x1500   :  { %v13676_v33 = vpop.permute.xlu1 %13675  ;;  %12950 = vmatmul.mubr.msk.bf16.gmra.mrb[52].mxu0 %vm939_vm3, %v8533_v21 }
0x1501   :  { %v13678_v47 = vunpack.i.h.bf16 %v13676_v33  ;;  %v13677_v18 = vunpack.i.l.bf16 %v13676_v33  ;;  %v13671_v3 = vpop.permute.xlu0 %13670 }
0x1502   :  { %v13673_v12 = vunpack.i.h.bf16 %v13671_v3  ;;  %v13672_v22 = vunpack.i.l.bf16 %v13671_v3 }
0x1503   :  { %v8527_v44 = vsel %vm576_vm2, %v18792_v59, %v13678_v47  ;;  %v8526_v38 = vsel %vm576_vm2, %v18789_v31, %v13677_v18 }
0x1504   :  { %v8525_v17 = vsel %vm576_vm2, %v18798_v40, %v13673_v12  ;;  %v8524_v32 = vsel %vm576_vm2, %v18795_v37, %v13672_v22  ;;  %v8535_v14 = vpack.c.bf16 %v8527_v44, %v8526_v38 }
0x1505   :  { %v8534_v46 = vpack.c.bf16 %v8525_v17, %v8524_v32 }
0x1507   :  { %12953 = vmatprep.mubr.msk.bf16.mxu0 %vm939_vm3, %v8534_v46 }
0x1508   :  { %12954 = vmatmul.mubr.msk.bf16.gmra.mrb[56].mxu0 %vm939_vm3, %v8535_v14 }
0x1509   :  { %12973 = vmatprep.mubr.bf16.mxu0 %v18908_v51 }
0x15c3   :  { %v12943_v54 = vpop.f32.mrb[44].mxu0 }
0x15c4   :  { %v18917_v41 = vadd.f32 %v12943_v54, %v18914_v2  ;;  %v8635_v28 = vpop.f32.mrb[45].mxu0 }
0x15c5   :  { %v18920_v7 = vadd.f32 %v18914_v2, %v8635_v28  ;;  %v12944_v63 = vpop.f32.mrb[46].mxu0 }
0x15c6   :  { %v11399_v57 = vmul.f32 -1.442695, %v18917_v41  ;;  %v18924_v1 = vadd.f32 %v12944_v63, %v18914_v2  ;;  %v8638_v61 = vpop.f32.mrb[47].mxu0 }
0x15c7   :  { %v11397_v29 = vmul.f32 -1.442695, %v18920_v7  ;;  %v18928_v45 = vadd.f32 %v18914_v2, %v8638_v61 }
0x15c8   :  { %14991 = vpow2.f32 %v11399_v57  ;;  %v11400_v53 = vmul.f32 -1.442695, %v18924_v1 }
0x15c9   :  { %14993 = vpow2.f32 %v11397_v29  ;;  %v11398_v49 = vmul.f32 -1.442695, %v18928_v45 }
0x15ca   :  { %14995 = vpow2.f32 %v11400_v53 }
0x15cb   :  { %v12947_v4 = vpop.f32.mrb[48].mxu0  ;;  %14997 = vpow2.f32 %v11398_v49 }
0x15cc   :  { %v18933_v50 = vadd.f32 %v12947_v4, %v18914_v2  ;;  %v8651_v10 = vpop.f32.mrb[49].mxu0 }
0x15cd   :  { %v18936_v5 = vadd.f32 %v18914_v2, %v8651_v10  ;;  %v12948_v24 = vpop.f32.mrb[50].mxu0 }
0x15ce   :  { %v11403_v39 = vmul.f32 -1.442695, %v18933_v50  ;;  %v18940_v34 = vadd.f32 %v12948_v24, %v18914_v2  ;;  %v8654_v13 = vpop.f32.mrb[51].mxu0 }
0x15cf   :  { %v11401_v60 = vmul.f32 -1.442695, %v18936_v5  ;;  %v18944_v20 = vadd.f32 %v18914_v2, %v8654_v13 }
0x15d0   :  { %14999 = vpow2.f32 %v11403_v39  ;;  %v11404_v56 = vmul.f32 -1.442695, %v18940_v34 }
0x15d1   :  { %15001 = vpow2.f32 %v11401_v60  ;;  %v11402_v21 = vmul.f32 -1.442695, %v18944_v20 }
0x15d2   :  { %v14992_v62 = vpop.eup %14991  ;;  %15003 = vpow2.f32 %v11404_v56 }
0x15d3   :  { %v14994_v48 = vpop.eup %14993  ;;  %v12951_v33 = vpop.f32.mrb[52].mxu0  ;;  %v8764_v12 = vadd.f32 1.0, %v14992_v62 }
0x15d4   :  { %v8762_v47 = vadd.f32 1.0, %v14994_v48  ;;  %v8667_v18 = vpop.f32.mrb[53].mxu0  ;;  %v14996_v3 = vpop.eup %14995  ;;  %v18949_v22 = vadd.f32 %v12951_v33, %v18914_v2 }
0x15d5   :  { %v12952_v44 = vpop.f32.mrb[54].mxu0  ;;  %v14998_v17 = vpop.eup %14997  ;;  %v18952_v32 = vadd.f32 %v18914_v2, %v8667_v18  ;;  %v8765_v46 = vadd.f32 1.0, %v14996_v3 }
0x15d6   :  { %15005 = vrcp.f32 %v8762_v47  ;;  %v8670_v38 = vpop.f32.mrb[55].mxu0  ;;  %v8763_v14 = vadd.f32 1.0, %v14998_v17  ;;  %v11407_v54 = vmul.f32 -1.442695, %v18949_v22  ;;  %v18957_v61 = vadd.f32 %v12952_v44, %v18914_v2 }
0x15d7   :  { %15007 = vpow2.f32 %v11402_v21  ;;  %v11405_v57 = vmul.f32 -1.442695, %v18952_v32  ;;  %v18960_v4 = vadd.f32 %v18914_v2, %v8670_v38 }
0x15d8   :  { %15009 = vrcp.f32 %v8764_v12  ;;  %v11408_v60 = vmul.f32 -1.442695, %v18957_v61 }
0x15d9   :  { %15011 = vrcp.f32 %v8763_v14  ;;  %v11406_v48 = vmul.f32 -1.442695, %v18960_v4 }
0x15da   :  { %v15000_v28 = vpop.eup %14999  ;;  %15013 = vrcp.f32 %v8765_v46 }
0x15db   :  { %v15002_v63 = vpop.eup %15001  ;;  %v12955_v29 = vpop.f32.mrb[56].mxu0  ;;  %15015 = vpow2.f32 %v11407_v54  ;;  %v8768_v24 = vadd.f32 1.0, %v15000_v28 }
0x15dc   :  { %v8766_v53 = vadd.f32 1.0, %v15002_v63  ;;  %v8683_v49 = vpop.f32.mrb[57].mxu0  ;;  %v15004_v13 = vpop.eup %15003  ;;  %v18965_v21 = vadd.f32 %v12955_v29, %v18914_v2 }
0x15dd   :  { %v12956_v10 = vpop.f32.mrb[58].mxu0  ;;  %v18969_v47 = vadd.f32 %v18914_v2, %v8683_v49  ;;  %v8769_v12 = vadd.f32 1.0, %v15004_v13 }
0x15de   :  { %15017 = vrcp.f32 %v8766_v53  ;;  %v8686_v39 = vpop.f32.mrb[59].mxu0  ;;  %v11411_v44 = vmul.f32 -1.442695, %v18965_v21  ;;  %v18976_v14 = vadd.f32 %v12956_v10, %v18914_v2 }
0x15df   :  { %15019 = vpow2.f32 %v11405_v57  ;;  %v11409_v17 = vmul.f32 -1.442695, %v18969_v47  ;;  %v18979_v28 = vadd.f32 %v18914_v2, %v8686_v39 }
0x15e0   :  { %v15006_v56 = vpop.eup %15005  ;;  %15021 = vrcp.f32 %v8768_v24  ;;  %v11412_v53 = vmul.f32 -1.442695, %v18976_v14 }
0x15e1   :  { %v15008_v62 = vpop.eup %15007  ;;  %8826 = vrot.lane.b32.xlu0 %v15006_v56, %s15326_s29  ;;  %15023 = vpow2.f32 %v11408_v60  ;;  %v11410_v10 = vmul.f32 -1.442695, %v18979_v28 }
0x15e2   :  { %v8767_v33 = vadd.f32 1.0, %v15008_v62  ;;  %v15010_v18 = vpop.eup %15009 }
0x15e3   :  { %v15012_v3 = vpop.eup %15011 }
0x15e4   :  { %15025 = vrcp.f32 %v8767_v33  ;;  %8828 = vrot.lane.b32.xlu1 %v15012_v3, %s15326_s29  ;;  %v15014_v38 = vpop.eup %15013 }
0x15e5   :  { %15027 = vpow2.f32 %v11406_v48  ;;  %8830 = vrot.lane.b32.xlu0 %v15010_v18, %s15326_s29  ;;  %v15016_v46 = vpop.eup %15015 }
0x15e6   :  { %15029 = vrcp.f32 %v8769_v12  ;;  %v8772_v57 = vadd.f32 1.0, %v15016_v46 }
0x15e7   :  { %15031 = vpow2.f32 %v11411_v44 }
0x15e8   :  { %v15018_v54 = vpop.eup %15017  ;;  %8832 = vrot.lane.b32.xlu1 %v15014_v38, %s15326_s29  ;;  %15033 = vpow2.f32 %v11409_v17 }
0x15e9   :  { %v15020_v63 = vpop.eup %15019  ;;  %8834 = vrot.lane.b32.xlu0 %v15018_v54, %s15326_s29 }
0x15ea   :  { %v8770_v29 = vadd.f32 1.0, %v15020_v63  ;;  %v15022_v49 = vpop.eup %15021 }
0x15eb   :  { %v15024_v24 = vpop.eup %15023 }
0x15ec   :  { %15035 = vrcp.f32 %v8770_v29  ;;  %v8773_v56 = vadd.f32 1.0, %v15024_v24 }
0x15ed   :  { %8838 = vrot.lane.b32.xlu0 %v15022_v49, %s15326_s29  ;;  %15037 = vrcp.f32 %v8772_v57 }
0x15ee   :  { %v15026_v2 = vpop.eup %15025  ;;  %15039 = vpow2.f32 %v11412_v53 }
0x15ef   :  { %v15028_v39 = vpop.eup %15027  ;;  %8836 = vrot.lane.b32.xlu1 %v15026_v2, %s15326_s29  ;;  %15041 = vpow2.f32 %v11410_v10  ;;  %v13787_v10 = vld [vmem:[%s19609_s8 + $0x50] sm:$0xff]  }
0x15f0   :  { %v8771_v13 = vadd.f32 1.0, %v15028_v39  ;;  %v15030_v60 = vpop.eup %15029  ;;  %12989 = vmatprep.subr.bf16.mxu1 %v13787_v10 }
0x15f1   :  { %v15032_v62 = vpop.eup %15031  ;;  %12990 = vmatpush3.bf16.msra.mxu1 %v13787_v10 }
0x15f2   :  { %15043 = vrcp.f32 %v8771_v13  ;;  %v15034_v48 = vpop.eup %15033  ;;  %v8776_v3 = vadd.f32 1.0, %v15032_v62 }
0x15f3   :  { %8840 = vrot.lane.b32.xlu1 %v15030_v60, %s15326_s29  ;;  %v8774_v33 = vadd.f32 1.0, %v15034_v48  ;;  %15045 = vrcp.f32 %v8773_v56 }
0x15f5   :  { %15047 = vrcp.f32 %v8774_v33 }
0x15f6   :  { %v15036_v18 = vpop.eup %15035  ;;  %15049 = vrcp.f32 %v8776_v3 }
0x15f7   :  { %8842 = vrot.lane.b32.xlu0 %v15036_v18, %s15326_s29  ;;  %v15038_v12 = vpop.eup %15037 }
0x15f8   :  { %v15040_v44 = vpop.eup %15039 }
0x15f9   :  { %v15042_v38 = vpop.eup %15041  ;;  %v8777_v54 = vadd.f32 1.0, %v15040_v44 }
0x15fa   :  { %v8775_v17 = vadd.f32 1.0, %v15042_v38 }
0x15fb   :  { %8846 = vrot.lane.b32.xlu0 %v15038_v12, %s15326_s29 }
0x15fc   :  { %v15044_v46 = vpop.eup %15043  ;;  %15051 = vrcp.f32 %v8775_v17 }
0x15fd   :  { %8844 = vrot.lane.b32.xlu1 %v15044_v46, %s15326_s29  ;;  %v15046_v63 = vpop.eup %15045  ;;  %15053 = vrcp.f32 %v8777_v54 }
0x15fe   :  { %15055 = vtanh.f32 %v18920_v7 }
0x15ff   :  { %v15048_v57 = vpop.eup %15047  ;;  %15057 = vtanh.f32 %v18928_v45 }
0x1600   :  { %8850 = vrot.lane.b32.xlu0 %v15048_v57, %s15326_s29  ;;  %v15050_v29 = vpop.eup %15049  ;;  %15059 = vtanh.f32 %v18917_v41 }
0x1601   :  { %8848 = vrot.lane.b32.xlu1 %v15046_v63, %s15326_s29  ;;  %15061 = vtanh.f32 %v18924_v1 }
0x1602   :  { %15063 = vtanh.f32 %v18936_v5 }
0x1603   :  { %15065 = vtanh.f32 %v18944_v20 }
0x1604   :  { %8854 = vrot.lane.b32.xlu0 %v15050_v29, %s15326_s29  ;;  %15067 = vtanh.f32 %v18933_v50 }
0x1605   :  { %15069 = vtanh.f32 %v18940_v34 }
0x1606   :  { %v15052_v53 = vpop.eup %15051  ;;  %15071 = vtanh.f32 %v18952_v32 }
0x1607   :  { %8852 = vrot.lane.b32.xlu1 %v15052_v53, %s15326_s29  ;;  %v15054_v49 = vpop.eup %15053  ;;  %15073 = vtanh.f32 %v18960_v4 }
0x1608   :  { %v15056_v2 = vpop.eup %15055  ;;  %15075 = vtanh.f32 %v18949_v22 }
0x1609   :  { %v15058_v39 = vpop.eup %15057  ;;  %15077 = vtanh.f32 %v18957_v61 }
0x160a   :  { %v15060_v48 = vpop.eup %15059  ;;  %15079 = vtanh.f32 %v18969_v47 }
0x160b   :  { %8856 = vrot.lane.b32.xlu1 %v15054_v49, %s15326_s29  ;;  %v15062_v45 = vpop.eup %15061  ;;  %15081 = vtanh.f32 %v18979_v28 }
0x160c   :  { %v15064_v3 = vpop.eup %15063  ;;  %15083 = vtanh.f32 %v18965_v21 }
0x160d   :  { %v15066_v20 = vpop.eup %15065  ;;  %15085 = vtanh.f32 %v18976_v14 }
0x160e   :  { %v15068_v50 = vpop.eup %15067 }
0x160f   :  { %v15070_v34 = vpop.eup %15069 }
0x1610   :  { %v15072_v49 = vpop.eup %15071 }
0x1611   :  { %v15074_v10 = vpop.eup %15073 }
0x1653   :  { %v8827_v24 = vpop.permute.xlu0 %8826 }
0x1654   :  { %v8874_v56 = vmul.f32 %v15056_v2, %v8827_v24 }
0x1656   :  { %v8829_v13 = vpop.permute.xlu1 %8828 }
0x1657   :  { %v8831_v60 = vpop.permute.xlu0 %8830  ;;  %v8875_v62 = vmul.f32 %v15058_v39, %v8829_v13  ;;  %v15076_v39 = vpop.eup %15075 }
0x1658   :  { %v8876_v1 = vmul.f32 %v15060_v48, %v8831_v60  ;;  %v15078_v60 = vpop.eup %15077 }
0x1659   :  { %v8890_v7 = vpack.c.bf16 %v8875_v62, %v8874_v56  ;;  %v15080_v48 = vpop.eup %15079 }
0x165a   :  { %v8833_v41 = vpop.permute.xlu1 %8832  ;;  %v15082_v28 = vpop.eup %15081 }
0x165b   :  { %v8877_v33 = vmul.f32 %v15062_v45, %v8833_v41  ;;  %12957 = vmatprep.subr.bf16.mxu0 %v8890_v7  ;;  %v8835_v5 = vpop.permute.xlu0 %8834 }
0x165c   :  { %12958 = vmatpush3.bf16.msra.mxu0 %v8890_v7  ;;  %v8878_v44 = vmul.f32 %v15064_v3, %v8835_v5 }
0x165d   :  { %v8891_v18 = vpack.c.bf16 %v8877_v33, %v8876_v1  ;;  %v15084_v33 = vpop.eup %15083 }
0x165e   :  { %v15086_v21 = vpop.eup %15085 }
0x165f   :  { %12959 = vmatprep.subr.bf16.mxu0 %v8891_v18  ;;  %v8839_v17 = vpop.permute.xlu0 %8838 }
0x1660   :  { %12960 = vmatpush3.bf16.msra.mxu0 %v8891_v18  ;;  %v8880_v63 = vmul.f32 %v15068_v50, %v8839_v17 }
0x1661   :  { %v8837_v12 = vpop.permute.xlu1 %8836 }
0x1662   :  { %v8879_v38 = vmul.f32 %v15066_v20, %v8837_v12  ;;  %v13788_v12 = vld [vmem:[%s19609_s8 + $0x58] sm:$0xff]  }
0x1663   :  { %12991 = vmatprep.subr.bf16.mxu1 %v13788_v12 }
0x1664   :  { %v8892_v46 = vpack.c.bf16 %v8879_v38, %v8878_v44  ;;  %12992 = vmatpush3.bf16.msra.mxu1 %v13788_v12 }
0x1665   :  { %v8841_v54 = vpop.permute.xlu1 %8840 }
0x1666   :  { %v8881_v57 = vmul.f32 %v15070_v34, %v8841_v54  ;;  %12961 = vmatprep.subr.bf16.mxu0 %v8892_v46 }
0x1667   :  { %12962 = vmatpush3.bf16.msra.mxu0 %v8892_v46 }
0x1668   :  { %v8893_v29 = vpack.c.bf16 %v8881_v57, %v8880_v63 }
0x1669   :  { %v8843_v53 = vpop.permute.xlu0 %8842 }
0x166a   :  { %12963 = vmatprep.subr.bf16.mxu0 %v8893_v29  ;;  %v8882_v4 = vmul.f32 %v15072_v49, %v8843_v53 }
0x166b   :  { %12964 = vmatpush3.bf16.msra.mxu0 %v8893_v29 }
0x166d   :  { %v8847_v2 = vpop.permute.xlu0 %8846 }
0x166e   :  { %v8884_v61 = vmul.f32 %v15076_v39, %v8847_v2  ;;  %v13791_v39 = vld [vmem:[#allocation6 + $0xc4] ss:$8 sps:$4 sm:$0xff]  }
0x166f   :  { %v8845_v32 = vpop.permute.xlu1 %8844  ;;  %9198 = vmatprep.subr.bf16.mxu1 %v13791_v39 }
0x1670   :  { %v8883_v24 = vmul.f32 %v15074_v10, %v8845_v32 }
0x1672   :  { %v8894_v13 = vpack.c.bf16 %v8883_v24, %v8882_v4  ;;  %v8851_v47 = vpop.permute.xlu0 %8850 }
0x1673   :  { %v8849_v22 = vpop.permute.xlu1 %8848  ;;  %v8886_v45 = vmul.f32 %v15080_v48, %v8851_v47  ;;  %v11417_v47 = vld [vmem:[#allocation7 + $0x5] ss:$0 sm:$0xff] }
0x1674   :  { %v8885_v56 = vmul.f32 %v15078_v60, %v8849_v22  ;;  %12965 = vmatprep.subr.bf16.mxu0 %v8894_v13  ;;  %v13794_v60 = vld [vmem:[#allocation6 + $0xd4] ss:$8 sps:$4 sm:$0xff]   ;;  %v13792_v22 = vld [vmem:[#allocation6 + $0xd0] ss:$8 sps:$4 sm:$0xff]  }
0x1675   :  { %12966 = vmatpush3.bf16.msra.mxu0 %v8894_v13  ;;  %v13789_v13 = vld [vmem:[#allocation6 + $0xc0] ss:$8 sps:$4 sm:$0xff]  }
0x1676   :  { %v8895_v62 = vpack.c.bf16 %v8885_v56, %v8884_v61  ;;  %v8855_v1 = vpop.permute.xlu0 %8854  ;;  %v13795_v61 = vld [vmem:[#allocation4 + $0xc0] sm:$0xff]   ;;  %v13796_v56 = vld [vmem:[#allocation4 + $0xc8] sm:$0xff]  }
0x1677   :  { %v8888_v3 = vmul.f32 %v15084_v33, %v8855_v1 }
0x1678   :  { %12967 = vmatprep.subr.bf16.mxu0 %v8895_v62 }
0x1679   :  { %12968 = vmatpush3.bf16.msra.mxu0 %v8895_v62  ;;  %v8853_v7 = vpop.permute.xlu1 %8852  ;;  %v13797_v62 = vld [vmem:[#allocation4 + $0xd0] sm:$0xff]  }
0x167a   :  { %v8887_v41 = vmul.f32 %v15082_v28, %v8853_v7 }
0x167c   :  { %v8896_v5 = vpack.c.bf16 %v8887_v41, %v8886_v45 }
0x167d   :  { %v8857_v18 = vpop.permute.xlu1 %8856 }
0x167e   :  { %v8889_v14 = vmul.f32 %v15086_v21, %v8857_v18  ;;  %12969 = vmatprep.subr.bf16.mxu0 %v8896_v5  ;;  %v13798_v21 = vld [vmem:[#allocation4 + $0xd8] sm:$0xff]  }
0x167f   :  { %12970 = vmatpush3.bf16.msra.mxu0 %v8896_v5 }
0x1680   :  { %v8897_v20 = vpack.c.bf16 %v8889_v14, %v8888_v3 }
0x1682   :  { %12971 = vmatprep.subr.bf16.mxu0 %v8897_v20 }
0x1683   :  { %12972 = vmatpush3.bf16.msra.mxu0 %v8897_v20 }
0x1684   :  { %13009 = vmatprep.subr.bf16.mxu0 %v13795_v61 }
0x1686   :  { %12974 = vmatmul.mubr.bf16.vlgmr.msra.gmra.mrb[60].mxu0 %v18669_v16 }
0x1687   :  { %12977 = vmatprep.mubr.bf16.mxu0 %v18676_v30  ;;  %13010 = vmatpush3.bf16.msra.mxu0 %v13795_v61 }
0x1688   :  { %13011 = vmatprep.subr.bf16.mxu0 %v13796_v56 }
0x168b   :  { %13012 = vmatpush3.bf16.msra.mxu0 %v13796_v56 }
0x168c   :  { %13013 = vmatprep.subr.bf16.mxu0 %v13797_v62 }
0x168e   :  { %12978 = vmatmul.mubr.bf16.gmra.mrb[64].mxu0 %v18684_v42 }
0x168f   :  { %12981 = vmatprep.mubr.bf16.mxu0 %v18690_v8  ;;  %13014 = vmatpush3.bf16.msra.mxu0 %v13797_v62 }
0x1690   :  { %13015 = vmatprep.subr.bf16.mxu0 %v13798_v21 }
0x1693   :  { %13016 = vmatpush3.bf16.msra.mxu0 %v13798_v21 }
0x1696   :  { %12982 = vmatmul.mubr.bf16.gmra.mrb[68].mxu0 %v18696_v19 }
0x1697   :  { %12985 = vmatprep.mubr.bf16.mxu0 %v18702_v6 }
0x169e   :  { %12986 = vmatmul.mubr.bf16.gmra.mrb[72].mxu0 %v18711_v25 }
0x1759   :  { %v12975_v44 = vpop.f32.mrb[60].mxu0 }
0x175a   :  { %v8932_v16 = vpop.f32.mrb[61].mxu0 }
0x175b   :  { %v12976_v38 = vpop.f32.mrb[62].mxu0 }
0x175c   :  { %v8996_v30 = vpack.c.bf16 %v12976_v38, %v12975_v44  ;;  %v8935_v17 = vpop.f32.mrb[63].mxu0 }
0x175d   :  { %v8995_v42 = vpack.c.bf16 %v8935_v17, %v8932_v16 }
0x175f   :  { %12993 = vmatprep.mubr.msk.bf16.mxu1 %vm576_vm2, %v8995_v42 }
0x1760   :  { %12994 = vmatmul.mubr.msk.bf16.vlgmr.msra.gmra.mrb[40].mxu1 %vm576_vm2, %v8996_v30 }
0x1761   :  { %v12979_v8 = vpop.f32.mrb[64].mxu0  ;;  %9199 = vmatpush1.bf16.msra.mxu1 %v13789_v13 }
0x1762   :  { %v8948_v19 = vpop.f32.mrb[65].mxu0  ;;  %9200 = vmatprep.subr.bf16.mxu1 %v13794_v60 }
0x1763   :  { %v12980_v6 = vpop.f32.mrb[66].mxu0 }
0x1764   :  { %v8998_v25 = vpack.c.bf16 %v12980_v6, %v12979_v8  ;;  %v8951_v50 = vpop.f32.mrb[67].mxu0 }
0x1765   :  { %v8997_v46 = vpack.c.bf16 %v8951_v50, %v8948_v19  ;;  %9201 = vmatpush1.bf16.msra.mxu1 %v13792_v22 }
0x1767   :  { %12997 = vmatprep.mubr.msk.bf16.mxu1 %vm576_vm2, %v8997_v46 }
0x1768   :  { %12998 = vmatmul.mubr.msk.bf16.gmra.mrb[44].mxu1 %vm576_vm2, %v8998_v25 }
0x1769   :  { %v12983_v34 = vpop.f32.mrb[68].mxu0 }
0x176a   :  { %v8964_v54 = vpop.f32.mrb[69].mxu0 }
0x176b   :  { %v12984_v63 = vpop.f32.mrb[70].mxu0 }
0x176c   :  { %v9000_v57 = vpack.c.bf16 %v12984_v63, %v12983_v34  ;;  %v8967_v29 = vpop.f32.mrb[71].mxu0 }
0x176d   :  { %v8999_v53 = vpack.c.bf16 %v8967_v29, %v8964_v54 }
0x176f   :  { %13001 = vmatprep.mubr.msk.bf16.mxu1 %vm576_vm2, %v8999_v53 }
0x1770   :  { %13002 = vmatmul.mubr.msk.bf16.gmra.mrb[48].mxu1 %vm576_vm2, %v9000_v57 }
0x1771   :  { %v12987_v49 = vpop.f32.mrb[72].mxu0 }
0x1772   :  { %v8980_v10 = vpop.f32.mrb[73].mxu0 }
0x1773   :  { %v12988_v32 = vpop.f32.mrb[74].mxu0 }
0x1774   :  { %v9002_v4 = vpack.c.bf16 %v12988_v32, %v12987_v49  ;;  %v8983_v24 = vpop.f32.mrb[75].mxu0 }
0x1775   :  { %v9001_v2 = vpack.c.bf16 %v8983_v24, %v8980_v10 }
0x1777   :  { %13005 = vmatprep.mubr.msk.bf16.mxu1 %vm576_vm2, %v9001_v2 }
0x1778   :  { %13006 = vmatmul.mubr.msk.bf16.gmra.mrb[52].mxu1 %vm576_vm2, %v9002_v4 }
0x1779   :  { %9230 = vmatprep.mubr.bf16.mxu1 %v19778_v43 }
0x1833   :  { %v12995_v48 = vpop.f32.mrb[40].mxu1 }
0x1834   :  { %v19034_v28 = vadd.f32 %v12995_v48, %v11417_v47  ;;  %v9086_v7 = vpop.f32.mrb[41].mxu1 }
0x1835   :  { %v19036_v45 = vadd.f32 %v11417_v47, %v9086_v7  ;;  %v12996_v41 = vpop.f32.mrb[42].mxu1 }
0x1836   :  { %v9098_v1 = vadd.f32 %v12996_v41, %v11417_v47  ;;  %v9089_v33 = vpop.f32.mrb[43].mxu1 }
0x1837   :  { %v19038_v5 = vadd.f32 %v11417_v47, %v9089_v33  ;;  %v9149_v7 = vadd.f32 %v19036_v45, %v18773_v58 }
0x1839   :  { %v9150_v41 = vadd.f32 %v19038_v5, %v18776_v55 }
0x183b   :  { %v12999_v18 = vpop.f32.mrb[44].mxu1 }
0x183c   :  { %v9111_v3 = vadd.f32 %v12999_v18, %v11417_v47  ;;  %v9102_v14 = vpop.f32.mrb[45].mxu1 }
0x183d   :  { %v9103_v20 = vadd.f32 %v11417_v47, %v9102_v14  ;;  %v13000_v12 = vpop.f32.mrb[46].mxu1 }
0x183e   :  { %v9114_v44 = vadd.f32 %v13000_v12, %v11417_v47  ;;  %v9105_v16 = vpop.f32.mrb[47].mxu1  ;;  %v19041_v30 = vadd.f32 %v9111_v3, %v18789_v31 }
0x183f   :  { %v9106_v38 = vadd.f32 %v11417_v47, %v9105_v16  ;;  %v19047_v42 = vadd.f32 %v9103_v20, %v18795_v37 }
0x1840   :  { %v19044_v17 = vadd.f32 %v9114_v44, %v18792_v59 }
0x1841   :  { %v19050_v8 = vadd.f32 %v9106_v38, %v18798_v40 }
0x1842   :  { %v13684_v19 = vpack.i.bf16 %v19044_v17, %v19041_v30 }
0x1843   :  { %v13679_v6 = vpack.i.bf16 %v19050_v8, %v19047_v42  ;;  %v13003_v25 = vpop.f32.mrb[48].mxu1 }
0x1844   :  { %v9127_v50 = vadd.f32 %v13003_v25, %v11417_v47  ;;  %13685 = vrot.lane.b32.xlu1 %v13684_v19, %s15325_s3  ;;  %v9118_v31 = vpop.f32.mrb[49].mxu1 }
0x1845   :  { %v9119_v46 = vadd.f32 %v11417_v47, %v9118_v31  ;;  %13680 = vrot.lane.b32.xlu0 %v13679_v6, %s15325_s3  ;;  %v13004_v59 = vpop.f32.mrb[50].mxu1 }
0x1846   :  { %v9130_v37 = vadd.f32 %v13004_v59, %v11417_v47  ;;  %v9121_v34 = vpop.f32.mrb[51].mxu1  ;;  %v19059_v40 = vadd.f32 %v9127_v50, %v18811_v35 }
0x1847   :  { %v9122_v54 = vadd.f32 %v11417_v47, %v9121_v34  ;;  %v19065_v57 = vadd.f32 %v9119_v46, %v18817_v9 }
0x1848   :  { %v19062_v63 = vadd.f32 %v9130_v37, %v18814_v11 }
0x1849   :  { %v19068_v29 = vadd.f32 %v9122_v54, %v18820_v0 }
0x184a   :  { %v13694_v53 = vpack.i.bf16 %v19062_v63, %v19059_v40 }
0x184b   :  { %v13689_v49 = vpack.i.bf16 %v19068_v29, %v19065_v57  ;;  %v13007_v10 = vpop.f32.mrb[52].mxu1 }
0x184c   :  { %v9143_v32 = vadd.f32 %v13007_v10, %v11417_v47  ;;  %13695 = vrot.lane.b32.xlu1 %v13694_v53, %s15325_s3  ;;  %v9134_v35 = vpop.f32.mrb[53].mxu1 }
0x184d   :  { %v9135_v4 = vadd.f32 %v11417_v47, %v9134_v35  ;;  %13690 = vrot.lane.b32.xlu0 %v13689_v49, %s15325_s3  ;;  %v13008_v11 = vpop.f32.mrb[54].mxu1 }
0x184e   :  { %v9146_v9 = vadd.f32 %v13008_v11, %v11417_v47  ;;  %v9137_v24 = vpop.f32.mrb[55].mxu1  ;;  %v19077_v0 = vadd.f32 %v9143_v32, %v18833_v26 }
0x184f   :  { %v9138_v2 = vadd.f32 %v11417_v47, %v9137_v24  ;;  %v19083_v13 = vadd.f32 %v9135_v4, %v18839_v23  ;;  %v9151_v23 = vadd.f32 %v19034_v28, %v18767_v52 }
0x1850   :  { %v19080_v39 = vadd.f32 %v9146_v9, %v18836_v27 }
0x1851   :  { %v19086_v60 = vadd.f32 %v9138_v2, %v18842_v15  ;;  %v9152_v15 = vadd.f32 %v9098_v1, %v18770_v36 }
0x1852   :  { %v13704_v22 = vpack.i.bf16 %v19080_v39, %v19077_v0  ;;  %v9166_v26 = vpack.c.bf16 %v19080_v39, %v19077_v0 }
0x1853   :  { %v13699_v61 = vpack.i.bf16 %v19086_v60, %v19083_v13  ;;  %v9165_v56 = vpack.c.bf16 %v19086_v60, %v19083_v13 }
0x1854   :  { %13705 = vrot.lane.b32.xlu1 %v13704_v22, %s15325_s3 }
0x1855   :  { %13700 = vrot.lane.b32.xlu0 %v13699_v61, %s15325_s3  ;;  %11432 = vmatmul.mubr.msk.bf16.vlgmr.msra.gmra.mrb[4].mxu1 %vm576_vm2, %v9165_v56 }
0x1856   :  { %9240 = vmatprep.mubr.bf16.mxu1 %v19778_v43 }
0x185d   :  { %11433 = vmatmul.mubr.msk.bf16.gmra.mrb[8].mxu1 %vm576_vm2, %v9166_v26 }
0x18b6   :  { %v13686_v27 = vpop.permute.xlu1 %13685 }
0x18b7   :  { %v13688_v62 = vunpack.i.h.bf16 %v13686_v27  ;;  %v13687_v47 = vunpack.i.l.bf16 %v13686_v27  ;;  %v13681_v48 = vpop.permute.xlu0 %13680 }
0x18b8   :  { %v13683_v33 = vunpack.i.h.bf16 %v13681_v48  ;;  %v13682_v21 = vunpack.i.l.bf16 %v13681_v48 }
0x18b9   :  { %v9331_v18 = vsel %vm576_vm2, %v9152_v15, %v13688_v62  ;;  %v9330_v3 = vsel %vm576_vm2, %v9151_v23, %v13687_v47 }
0x18ba   :  { %v9341_v14 = vpack.c.bf16 %v9331_v18, %v9330_v3  ;;  %v9329_v52 = vsel %vm576_vm2, %v9150_v41, %v13683_v33  ;;  %v9328_v36 = vsel %vm576_vm2, %v9149_v7, %v13682_v21 }
0x18bb   :  { %v9340_v28 = vpack.c.bf16 %v9329_v52, %v9328_v36 }
0x18bd   :  { %13017 = vmatprep.mubr.msk.bf16.mxu0 %vm939_vm3, %v9340_v28 }
0x18be   :  { %13018 = vmatmul.mubr.msk.bf16.vlgmr.msra.gmra.mrb[76].mxu0 %vm939_vm3, %v9341_v14  ;;  %v13696_v58 = vpop.permute.xlu1 %13695 }
0x18bf   :  { %v13698_v45 = vunpack.i.h.bf16 %v13696_v58  ;;  %v13697_v1 = vunpack.i.l.bf16 %v13696_v58  ;;  %v13691_v55 = vpop.permute.xlu0 %13690 }
0x18c0   :  { %v13693_v5 = vunpack.i.h.bf16 %v13691_v55  ;;  %v13692_v20 = vunpack.i.l.bf16 %v13691_v55 }
0x18c1   :  { %v9335_v12 = vsel %vm576_vm2, %v19044_v17, %v13698_v45  ;;  %v9334_v44 = vsel %vm576_vm2, %v19041_v30, %v13697_v1 }
0x18c2   :  { %v9333_v16 = vsel %vm576_vm2, %v19050_v8, %v13693_v5  ;;  %v9332_v38 = vsel %vm576_vm2, %v19047_v42, %v13692_v20  ;;  %v9343_v6 = vpack.c.bf16 %v9335_v12, %v9334_v44 }
0x18c3   :  { %v9342_v19 = vpack.c.bf16 %v9333_v16, %v9332_v38 }
0x18c5   :  { %13021 = vmatprep.mubr.msk.bf16.mxu0 %vm939_vm3, %v9342_v19 }
0x18c6   :  { %13022 = vmatmul.mubr.msk.bf16.gmra.mrb[80].mxu0 %vm939_vm3, %v9343_v6  ;;  %v13706_v25 = vpop.permute.xlu1 %13705 }
0x18c7   :  { %v13708_v50 = vunpack.i.h.bf16 %v13706_v25  ;;  %v13707_v31 = vunpack.i.l.bf16 %v13706_v25  ;;  %v13701_v46 = vpop.permute.xlu0 %13700 }
0x18c8   :  { %v13703_v17 = vunpack.i.h.bf16 %v13701_v46  ;;  %v13702_v59 = vunpack.i.l.bf16 %v13701_v46 }
0x18c9   :  { %v9339_v30 = vsel %vm576_vm2, %v19062_v63, %v13708_v50  ;;  %v9338_v8 = vsel %vm576_vm2, %v19059_v40, %v13707_v31  ;;  %v11436_v63 = vld [vmem:[%s19606_s5 + $0x6] ss:$0 sm:$0xff] }
0x18ca   :  { %v9337_v42 = vsel %vm576_vm2, %v19068_v29, %v13703_v17  ;;  %v9336_v37 = vsel %vm576_vm2, %v19065_v57, %v13702_v59  ;;  %v9345_v54 = vpack.c.bf16 %v9339_v30, %v9338_v8 }
0x18cb   :  { %v9344_v34 = vpack.c.bf16 %v9337_v42, %v9336_v37 }
0x18cd   :  { %13025 = vmatprep.mubr.msk.bf16.mxu0 %vm939_vm3, %v9344_v34 }
0x18ce   :  { %13026 = vmatmul.mubr.msk.bf16.gmra.mrb[84].mxu0 %vm939_vm3, %v9345_v54 }
0x18cf   :  { %13041 = vmatprep.mubr.msk.bf16.mxu0 %vm6842_vm4, %v18908_v51 }
0x1991   :  { %v13019_v40 = vpop.f32.mrb[76].mxu0 }
0x1992   :  { %v19139_v53 = vadd.f32 %v13019_v40, %v11436_v63  ;;  %v9439_v29 = vpop.f32.mrb[77].mxu0 }
0x1993   :  { %v19141_v49 = vadd.f32 %v11436_v63, %v9439_v29  ;;  %v13020_v57 = vpop.f32.mrb[78].mxu0 }
0x1994   :  { %v11449_v10 = vmul.f32 -1.442695, %v19139_v53  ;;  %v19144_v32 = vadd.f32 %v13020_v57, %v11436_v63  ;;  %v9442_v35 = vpop.f32.mrb[79].mxu0 }
0x1995   :  { %v11447_v4 = vmul.f32 -1.442695, %v19141_v49  ;;  %v19147_v11 = vadd.f32 %v11436_v63, %v9442_v35 }
0x1996   :  { %15087 = vpow2.f32 %v11449_v10  ;;  %v11450_v51 = vmul.f32 -1.442695, %v19144_v32 }
0x1997   :  { %15089 = vpow2.f32 %v11447_v4  ;;  %v11448_v9 = vmul.f32 -1.442695, %v19147_v11 }
0x1998   :  { %15091 = vpow2.f32 %v11450_v51 }
0x1999   :  { %v13023_v24 = vpop.f32.mrb[80].mxu0  ;;  %15093 = vpow2.f32 %v11448_v9 }
0x199a   :  { %v19151_v2 = vadd.f32 %v13023_v24, %v11436_v63  ;;  %v9455_v22 = vpop.f32.mrb[81].mxu0 }
0x199b   :  { %v19153_v61 = vadd.f32 %v11436_v63, %v9455_v22  ;;  %v13024_v56 = vpop.f32.mrb[82].mxu0 }
0x199c   :  { %v11453_v26 = vmul.f32 -1.442695, %v19151_v2  ;;  %v19156_v27 = vadd.f32 %v13024_v56, %v11436_v63  ;;  %v9458_v23 = vpop.f32.mrb[83].mxu0 }
0x199d   :  { %v11451_v15 = vmul.f32 -1.442695, %v19153_v61  ;;  %v19159_v62 = vadd.f32 %v11436_v63, %v9458_v23 }
0x199e   :  { %15095 = vpow2.f32 %v11453_v26  ;;  %v11454_v47 = vmul.f32 -1.442695, %v19156_v27 }
0x199f   :  { %15097 = vpow2.f32 %v11451_v15  ;;  %v11452_v41 = vmul.f32 -1.442695, %v19159_v62  ;;  %v13799_v15 = vld [vmem:[%s19609_s8 + $0x60] sm:$0xff]  }
0x19a0   :  { %v15088_v48 = vpop.eup %15087  ;;  %15099 = vpow2.f32 %v11454_v47  ;;  %13053 = vmatprep.subr.bf16.mxu1 %v13799_v15 }
0x19a1   :  { %v15090_v7 = vpop.eup %15089  ;;  %v13027_v33 = vpop.f32.mrb[84].mxu0  ;;  %v9536_v14 = vadd.f32 1.0, %v15088_v48  ;;  %13054 = vmatpush3.bf16.msra.mxu1 %v13799_v15 }
0x19a2   :  { %v9534_v21 = vadd.f32 1.0, %v15090_v7  ;;  %v9471_v18 = vpop.f32.mrb[85].mxu0  ;;  %v15092_v3 = vpop.eup %15091  ;;  %v19163_v52 = vadd.f32 %v13027_v33, %v11436_v63 }
0x19a3   :  { %v13028_v36 = vpop.f32.mrb[86].mxu0  ;;  %v15094_v58 = vpop.eup %15093  ;;  %v19165_v45 = vadd.f32 %v11436_v63, %v9471_v18  ;;  %v9537_v1 = vadd.f32 1.0, %v15092_v3 }
0x19a4   :  { %15101 = vrcp.f32 %v9534_v21  ;;  %v9474_v28 = vpop.f32.mrb[87].mxu0  ;;  %v9535_v55 = vadd.f32 1.0, %v15094_v58  ;;  %v11457_v5 = vmul.f32 -1.442695, %v19163_v52  ;;  %v19169_v16 = vadd.f32 %v13028_v36, %v11436_v63 }
0x19a5   :  { %15103 = vpow2.f32 %v11452_v41  ;;  %v11455_v44 = vmul.f32 -1.442695, %v19165_v45  ;;  %v19171_v19 = vadd.f32 %v11436_v63, %v9474_v28 }
0x19a6   :  { %15105 = vrcp.f32 %v9536_v14  ;;  %v11458_v50 = vmul.f32 -1.442695, %v19169_v16 }
0x19a7   :  { %15107 = vrcp.f32 %v9535_v55  ;;  %v11456_v17 = vmul.f32 -1.442695, %v19171_v19 }
0x19a8   :  { %v15096_v20 = vpop.eup %15095  ;;  %15109 = vrcp.f32 %v9537_v1 }
0x19a9   :  { %v15098_v12 = vpop.eup %15097  ;;  %15111 = vpow2.f32 %v11457_v5  ;;  %v9540_v6 = vadd.f32 1.0, %v15096_v20 }
0x19aa   :  { %v9538_v38 = vadd.f32 1.0, %v15098_v12  ;;  %v15100_v25 = vpop.eup %15099 }
0x19ab   :  { %v9541_v42 = vadd.f32 1.0, %v15100_v25 }
0x19ac   :  { %15113 = vrcp.f32 %v9538_v38 }
0x19ad   :  { %15115 = vpow2.f32 %v11455_v44 }
0x19ae   :  { %v15102_v31 = vpop.eup %15101  ;;  %15117 = vrcp.f32 %v9540_v6 }
0x19af   :  { %v15104_v46 = vpop.eup %15103  ;;  %9582 = vrot.lane.b32.xlu0 %v15102_v31, %s15326_s29  ;;  %15119 = vpow2.f32 %v11458_v50 }
0x19b0   :  { %v9539_v59 = vadd.f32 1.0, %v15104_v46  ;;  %v15106_v30 = vpop.eup %15105 }
0x19b1   :  { %v15108_v8 = vpop.eup %15107 }
0x19b2   :  { %15121 = vrcp.f32 %v9539_v59  ;;  %9584 = vrot.lane.b32.xlu1 %v15108_v8, %s15326_s29  ;;  %v15110_v37 = vpop.eup %15109 }
0x19b3   :  { %15123 = vpow2.f32 %v11456_v17  ;;  %9586 = vrot.lane.b32.xlu0 %v15106_v30, %s15326_s29  ;;  %v15112_v34 = vpop.eup %15111 }
0x19b4   :  { %15125 = vrcp.f32 %v9541_v42  ;;  %v9544_v57 = vadd.f32 1.0, %v15112_v34 }
0x19b6   :  { %v15114_v54 = vpop.eup %15113  ;;  %9588 = vrot.lane.b32.xlu1 %v15110_v37, %s15326_s29 }
0x19b7   :  { %v15116_v63 = vpop.eup %15115  ;;  %9590 = vrot.lane.b32.xlu0 %v15114_v54, %s15326_s29  ;;  %v15193_v54 = vld [vmem:[%s19602_s1 + $0x10] sm:$0xff]  }
0x19b8   :  { %v9542_v40 = vadd.f32 1.0, %v15116_v63  ;;  %v15118_v29 = vpop.eup %15117  ;;  %v15194_v63 = vld [vmem:[%s19602_s1 + $0x18] sm:$0xff]  }
0x19b9   :  { %v15120_v10 = vpop.eup %15119 }
0x19ba   :  { %15127 = vrcp.f32 %v9542_v40  ;;  %v9545_v24 = vadd.f32 1.0, %v15120_v10  ;;  %v15195_v40 = vld [vmem:[%s19602_s1 + $0x20] sm:$0xff]  }
0x19bb   :  { %9594 = vrot.lane.b32.xlu0 %v15118_v29, %s15326_s29  ;;  %15129 = vrcp.f32 %v9544_v57  ;;  %v15196_v29 = vld [vmem:[%s19602_s1 + $0x28] sm:$0xff]  }
0x19bc   :  { %v15122_v35 = vpop.eup %15121  ;;  %v13800_v57 = vld [vmem:[%s19609_s8 + $0x68] sm:$0xff]  }
0x19bd   :  { %v15124_v4 = vpop.eup %15123  ;;  %9592 = vrot.lane.b32.xlu1 %v15122_v35, %s15326_s29  ;;  %13055 = vmatprep.subr.bf16.mxu1 %v13800_v57 }
0x19be   :  { %v9543_v51 = vadd.f32 1.0, %v15124_v4  ;;  %v15126_v9 = vpop.eup %15125  ;;  %13056 = vmatpush3.bf16.msra.mxu1 %v13800_v57 }
0x19c0   :  { %15131 = vrcp.f32 %v9543_v51 }
0x19c1   :  { %9596 = vrot.lane.b32.xlu1 %v15126_v9, %s15326_s29  ;;  %15133 = vrcp.f32 %v9545_v24 }
0x19c2   :  { %15135 = vtanh.f32 %v19141_v49 }
0x19c3   :  { %15137 = vtanh.f32 %v19147_v11 }
0x19c4   :  { %v15128_v22 = vpop.eup %15127  ;;  %15139 = vtanh.f32 %v19139_v53 }
0x19c5   :  { %9598 = vrot.lane.b32.xlu0 %v15128_v22, %s15326_s29  ;;  %v15130_v56 = vpop.eup %15129  ;;  %15141 = vtanh.f32 %v19144_v32 }
0x19c6   :  { %15143 = vtanh.f32 %v19153_v61 }
0x19c7   :  { %15145 = vtanh.f32 %v19159_v62 }
0x19c8   :  { %15147 = vtanh.f32 %v19151_v2 }
0x19c9   :  { %9602 = vrot.lane.b32.xlu0 %v15130_v56, %s15326_s29  ;;  %15149 = vtanh.f32 %v19156_v27 }
0x19ca   :  { %v15132_v26 = vpop.eup %15131  ;;  %15151 = vtanh.f32 %v19165_v45 }
0x19cb   :  { %9600 = vrot.lane.b32.xlu1 %v15132_v26, %s15326_s29  ;;  %v15134_v23 = vpop.eup %15133  ;;  %15153 = vtanh.f32 %v19171_v19 }
0x19cc   :  { %v15136_v48 = vpop.eup %15135  ;;  %15155 = vtanh.f32 %v19163_v52 }
0x19cd   :  { %v15138_v7 = vpop.eup %15137  ;;  %15157 = vtanh.f32 %v19169_v16  ;;  %v15192_v16 = vld [vmem:[%s19602_s1 + $0x8] sm:$0xff]  }
0x19ce   :  { %v15140_v3 = vpop.eup %15139 }
0x19cf   :  { %9604 = vrot.lane.b32.xlu1 %v15134_v23, %s15326_s29  ;;  %v15142_v11 = vpop.eup %15141 }
0x19d0   :  { %v15144_v28 = vpop.eup %15143 }
0x19d1   :  { %v15146_v62 = vpop.eup %15145 }
0x19d2   :  { %v15148_v2 = vpop.eup %15147 }
0x19d3   :  { %v15150_v27 = vpop.eup %15149 }
0x19d4   :  { %v15152_v50 = vpop.eup %15151 }
0x19d5   :  { %v15154_v31 = vpop.eup %15153 }
0x19d6   :  { %v15156_v19 = vpop.eup %15155 }
0x19d7   :  { %v15158_v8 = vpop.eup %15157 }
0x1a21   :  { %v9583_v47 = vpop.permute.xlu0 %9582 }
0x1a22   :  { %v9618_v21 = vmul.f32 %v15136_v48, %v9583_v47 }
0x1a24   :  { %v9585_v41 = vpop.permute.xlu1 %9584 }
0x1a25   :  { %v9587_v33 = vpop.permute.xlu0 %9586  ;;  %v9619_v18 = vmul.f32 %v15138_v7, %v9585_v41 }
0x1a26   :  { %v9620_v32 = vmul.f32 %v15140_v3, %v9587_v33  ;;  %v13803_v3 = vld [vmem:[#allocation6 + $0xe4] ss:$8 sps:$4 sm:$0xff]  }
0x1a27   :  { %v9630_v49 = vpack.c.bf16 %v9619_v18, %v9618_v21  ;;  %9876 = vmatprep.subr.bf16.mxu1 %v13803_v3  ;;  %v13840_v3 = vld [vmem:[%s19611_s10 + $0xa8] ss:$16 sps:$4 sm:$0xff]  }
0x1a28   :  { %v9589_v53 = vpop.permute.xlu1 %9588 }
0x1a29   :  { %v9621_v14 = vmul.f32 %v15142_v11, %v9589_v53  ;;  %13029 = vmatprep.subr.bf16.mxu0 %v9630_v49  ;;  %v9591_v61 = vpop.permute.xlu0 %9590  ;;  %v13806_v11 = vld [vmem:[#allocation6 + $0xf4] ss:$8 sps:$4 sm:$0xff]   ;;  %v13804_v53 = vld [vmem:[#allocation6 + $0xf0] ss:$8 sps:$4 sm:$0xff]  }
0x1a2a   :  { %13030 = vmatpush3.bf16.msra.mxu0 %v9630_v49  ;;  %v9622_v1 = vmul.f32 %v15144_v28, %v9591_v61  ;;  %v13801_v49 = vld [vmem:[#allocation6 + $0xe0] ss:$8 sps:$4 sm:$0xff]  }
0x1a2b   :  { %v9631_v36 = vpack.c.bf16 %v9621_v14, %v9620_v32  ;;  %v13807_v32 = vld [vmem:[%s19611_s10] ss:$16 sps:$4 sm:$0xff]   ;;  %v13809_v14 = vld [vmem:[%s19611_s10 + $0x4] ss:$16 sps:$4 sm:$0xff]   ;;  %v13812_v61 = vld [vmem:[%s19611_s10 + $0xc] ss:$16 sps:$4 sm:$0xff]  }
0x1a2c   :  { %v13813_v28 = vld [vmem:[%s19611_s10 + $0x20] ss:$16 sps:$4 sm:$0xff]  }
0x1a2d   :  { %13031 = vmatprep.subr.bf16.mxu0 %v9631_v36  ;;  %v9595_v5 = vpop.permute.xlu0 %9594 }
0x1a2e   :  { %13032 = vmatpush3.bf16.msra.mxu0 %v9631_v36  ;;  %v9624_v44 = vmul.f32 %v15148_v2, %v9595_v5  ;;  %v13815_v36 = vld [vmem:[%s19611_s10 + $0x24] ss:$16 sps:$4 sm:$0xff]   ;;  %v13831_v2 = vld [vmem:[%s19611_s10 + $0x80] ss:$16 sps:$4 sm:$0xff]  }
0x1a2f   :  { %v9593_v58 = vpop.permute.xlu1 %9592  ;;  %v13833_v5 = vld [vmem:[%s19611_s10 + $0x84] ss:$16 sps:$4 sm:$0xff]  }
0x1a30   :  { %v9623_v55 = vmul.f32 %v15146_v62, %v9593_v58  ;;  %v13821_v62 = vld [vmem:[%s19611_s10 + $0x44] ss:$16 sps:$4 sm:$0xff]   ;;  %v13819_v58 = vld [vmem:[%s19611_s10 + $0x40] ss:$16 sps:$4 sm:$0xff]  }
0x1a32   :  { %v9632_v20 = vpack.c.bf16 %v9623_v55, %v9622_v1  ;;  %v13827_v1 = vld [vmem:[%s19611_s10 + $0x64] ss:$16 sps:$4 sm:$0xff]   ;;  %v13825_v55 = vld [vmem:[%s19611_s10 + $0x60] ss:$16 sps:$4 sm:$0xff]  }
0x1a33   :  { %v9597_v12 = vpop.permute.xlu1 %9596 }
0x1a34   :  { %v9625_v38 = vmul.f32 %v15150_v27, %v9597_v12  ;;  %13033 = vmatprep.subr.bf16.mxu0 %v9632_v20  ;;  %v13837_v27 = vld [vmem:[%s19611_s10 + $0xa0] ss:$16 sps:$4 sm:$0xff]   ;;  %v13845_v12 = vld [vmem:[%s19611_s10 + $0xc4] ss:$16 sps:$4 sm:$0xff]  }
0x1a35   :  { %13034 = vmatpush3.bf16.msra.mxu0 %v9632_v20  ;;  %v13839_v20 = vld [vmem:[%s19611_s10 + $0xa4] ss:$16 sps:$4 sm:$0xff]  }
0x1a36   :  { %v9633_v6 = vpack.c.bf16 %v9625_v38, %v9624_v44  ;;  %v13843_v44 = vld [vmem:[%s19611_s10 + $0xc0] ss:$16 sps:$4 sm:$0xff]   ;;  %v13851_v38 = vld [vmem:[%s19611_s10 + $0xe4] ss:$16 sps:$4 sm:$0xff]  }
0x1a37   :  { %v9599_v25 = vpop.permute.xlu0 %9598 }
0x1a38   :  { %13035 = vmatprep.subr.bf16.mxu0 %v9633_v6  ;;  %v9626_v46 = vmul.f32 %v15152_v50, %v9599_v25  ;;  %v13857_v25 = vld [vmem:[%s19611_s10 + $0x104] ss:$16 sps:$4 sm:$0xff]   ;;  %v13855_v50 = vld [vmem:[%s19611_s10 + $0x100] ss:$16 sps:$4 sm:$0xff]  }
0x1a39   :  { %13036 = vmatpush3.bf16.msra.mxu0 %v9633_v6  ;;  %v13849_v6 = vld [vmem:[%s19611_s10 + $0xe0] ss:$16 sps:$4 sm:$0xff]  }
0x1a3b   :  { %v9603_v59 = vpop.permute.xlu0 %9602 }
0x1a3c   :  { %v9628_v37 = vmul.f32 %v15156_v19, %v9603_v59  ;;  %v13875_v59 = vld [vmem:[%s19611_s10 + $0x164] ss:$16 sps:$4 sm:$0xff]   ;;  %v13873_v19 = vld [vmem:[%s19611_s10 + $0x160] ss:$16 sps:$4 sm:$0xff]  }
0x1a3d   :  { %v9601_v45 = vpop.permute.xlu1 %9600 }
0x1a3e   :  { %v9627_v17 = vmul.f32 %v15154_v31, %v9601_v45  ;;  %v13863_v31 = vld [vmem:[%s19611_s10 + $0x124] ss:$16 sps:$4 sm:$0xff]   ;;  %v13861_v45 = vld [vmem:[%s19611_s10 + $0x120] ss:$16 sps:$4 sm:$0xff]  }
0x1a40   :  { %v9634_v30 = vpack.c.bf16 %v9627_v17, %v9626_v46  ;;  %v13869_v46 = vld [vmem:[%s19611_s10 + $0x144] ss:$16 sps:$4 sm:$0xff]   ;;  %v13867_v17 = vld [vmem:[%s19611_s10 + $0x140] ss:$16 sps:$4 sm:$0xff]  }
0x1a41   :  { %v9605_v42 = vpop.permute.xlu1 %9604 }
0x1a42   :  { %v9629_v34 = vmul.f32 %v15158_v8, %v9605_v42  ;;  %13037 = vmatprep.subr.bf16.mxu0 %v9634_v30  ;;  %v13879_v8 = vld [vmem:[%s19611_s10 + $0x180] ss:$16 sps:$4 sm:$0xff]  }
0x1a43   :  { %13038 = vmatpush3.bf16.msra.mxu0 %v9634_v30  ;;  %v13881_v30 = vld [vmem:[%s19611_s10 + $0x184] ss:$16 sps:$4 sm:$0xff]  }
0x1a44   :  { %v9635_v52 = vpack.c.bf16 %v9629_v34, %v9628_v37 }
0x1a46   :  { %13039 = vmatprep.subr.bf16.mxu0 %v9635_v52 }
0x1a47   :  { %13040 = vmatpush3.bf16.msra.mxu0 %v9635_v52 }
0x1a48   :  { %10376 = vmatprep.subr.bf16.mxu0 %v13809_v14  ;;  %v13860_v14 = vld [vmem:[%s19611_s10 + $0x10c] ss:$16 sps:$4 sm:$0xff]  }
0x1a4a   :  { %13042 = vmatmul.mubr.msk.bf16.vlgmr.msra.gmra.mrb[88].mxu0 %vm6842_vm4, %v15192_v16 }
0x1a4b   :  { %13045 = vmatprep.mubr.msk.bf16.mxu0 %vm6842_vm4, %v15193_v54  ;;  %10377 = vmatpush1.bf16.msra.mxu0 %v13807_v32  ;;  %v13852_v32 = vld [vmem:[%s19611_s10 + $0xe8] ss:$16 sps:$4 sm:$0xff]  }
0x1a4c   :  { %10378 = vmatprep.subr.bf16.mxu0 %v13815_v36  ;;  %v13866_v36 = vld [vmem:[%s19611_s10 + $0x12c] ss:$16 sps:$4 sm:$0xff]  }
0x1a4f   :  { %10379 = vmatpush1.bf16.msra.mxu0 %v13813_v28  ;;  %v13864_v28 = vld [vmem:[%s19611_s10 + $0x128] ss:$16 sps:$4 sm:$0xff]  }
0x1a50   :  { %10380 = vmatprep.subr.bf16.mxu0 %v13821_v62  ;;  %v13872_v62 = vld [vmem:[%s19611_s10 + $0x14c] ss:$16 sps:$4 sm:$0xff]  }
0x1a52   :  { %13046 = vmatmul.mubr.msk.bf16.gmra.mrb[92].mxu0 %vm6842_vm4, %v15194_v63 }
0x1a53   :  { %13049 = vmatprep.mubr.msk.bf16.mxu0 %vm6842_vm4, %v15195_v40  ;;  %10381 = vmatpush1.bf16.msra.mxu0 %v13819_v58  ;;  %v13870_v58 = vld [vmem:[%s19611_s10 + $0x148] ss:$16 sps:$4 sm:$0xff]  }
0x1a54   :  { %10382 = vmatprep.subr.bf16.mxu0 %v13827_v1  ;;  %v13878_v1 = vld [vmem:[%s19611_s10 + $0x16c] ss:$16 sps:$4 sm:$0xff]  }
0x1a57   :  { %10383 = vmatpush1.bf16.msra.mxu0 %v13825_v55  ;;  %v13876_v55 = vld [vmem:[%s19611_s10 + $0x168] ss:$16 sps:$4 sm:$0xff]  }
0x1a58   :  { %10384 = vmatprep.subr.bf16.mxu0 %v13833_v5  ;;  %v13884_v5 = vld [vmem:[%s19611_s10 + $0x18c] ss:$16 sps:$4 sm:$0xff]  }
0x1a5a   :  { %13050 = vmatmul.mubr.msk.bf16.gmra.mrb[96].mxu0 %vm6842_vm4, %v15196_v29  ;;  %v11469_v29 = vld [vmem:[#allocation7 + $0x6] ss:$0 sm:$0xff] }
0x1a5b   :  { %10385 = vmatpush1.bf16.msra.mxu0 %v13831_v2  ;;  %v13882_v2 = vld [vmem:[%s19611_s10 + $0x188] ss:$16 sps:$4 sm:$0xff]  }
0x1a5c   :  { %10386 = vmatprep.subr.bf16.mxu0 %v13839_v20  ;;  %v13887_v20 = vld [vmem:[%s19611_s10 + $0x1a4] ss:$16 sps:$4 sm:$0xff]  }
0x1a5f   :  { %10387 = vmatpush1.bf16.msra.mxu0 %v13837_v27  ;;  %v13890_v27 = vld [vmem:[%s19611_s10 + $0x1ac] ss:$16 sps:$4 sm:$0xff]  }
0x1a60   :  { %10388 = vmatprep.subr.bf16.mxu0 %v13845_v12  ;;  %v13885_v12 = vld [vmem:[%s19611_s10 + $0x1a0] ss:$16 sps:$4 sm:$0xff]  }
0x1a63   :  { %10389 = vmatpush1.bf16.msra.mxu0 %v13843_v44  ;;  %v13888_v44 = vld [vmem:[%s19611_s10 + $0x1a8] ss:$16 sps:$4 sm:$0xff]  }
0x1a64   :  { %10390 = vmatprep.subr.bf16.mxu0 %v13851_v38  ;;  %v13893_v38 = vld [vmem:[%s19611_s10 + $0x1c4] ss:$16 sps:$4 sm:$0xff]  }
0x1a67   :  { %10391 = vmatpush1.bf16.msra.mxu0 %v13849_v6  ;;  %v13896_v6 = vld [vmem:[%s19611_s10 + $0x1cc] ss:$16 sps:$4 sm:$0xff]  }
0x1a68   :  { %10392 = vmatprep.subr.bf16.mxu0 %v13857_v25  ;;  %v13891_v25 = vld [vmem:[%s19611_s10 + $0x1c0] ss:$16 sps:$4 sm:$0xff]  }
0x1a6b   :  { %10393 = vmatpush1.bf16.msra.mxu0 %v13855_v50  ;;  %v13894_v50 = vld [vmem:[%s19611_s10 + $0x1c8] ss:$16 sps:$4 sm:$0xff]  }
0x1a6c   :  { %10394 = vmatprep.subr.bf16.mxu0 %v13863_v31  ;;  %v13899_v31 = vld [vmem:[%s19611_s10 + $0x1e4] ss:$16 sps:$4 sm:$0xff]  }
0x1a6f   :  { %10395 = vmatpush1.bf16.msra.mxu0 %v13861_v45  ;;  %v13902_v45 = vld [vmem:[%s19611_s10 + $0x1ec] ss:$16 sps:$4 sm:$0xff]  }
0x1a70   :  { %10396 = vmatprep.subr.bf16.mxu0 %v13869_v46  ;;  %v13897_v46 = vld [vmem:[%s19611_s10 + $0x1e0] ss:$16 sps:$4 sm:$0xff]  }
0x1a73   :  { %10397 = vmatpush1.bf16.msra.mxu0 %v13867_v17  ;;  %v13900_v17 = vld [vmem:[%s19611_s10 + $0x1e8] ss:$16 sps:$4 sm:$0xff]  }
0x1a74   :  { %10398 = vmatprep.subr.bf16.mxu0 %v13875_v59  ;;  %v13903_v59 = vld [vmem:[%s19613_s12 + $0x40] sm:$0xff]  }
0x1a77   :  { %10399 = vmatpush1.bf16.msra.mxu0 %v13873_v19  ;;  %v546_v19 = vlaneseq }
0x1a78   :  { %10400 = vmatprep.subr.bf16.mxu0 %v13881_v30 }
0x1a79   :  { %v19434_v30 = vshrl.u32 %v546_v19, 7 }
0x1a7b   :  { %10401 = vmatpush1.bf16.msra.mxu0 %v13879_v8  ;;  %v19437_v8 = vsub.s32 0, %v19434_v30 }
0x1a7c   :  { %10402 = vmatprep.subr.bf16.mxu0 %v13887_v20 }
0x1a7f   :  { %10403 = vmatpush1.bf16.msra.mxu0 %v13885_v12 }
0x1a80   :  { %10404 = vmatprep.subr.bf16.mxu0 %v13893_v38 }
0x1a83   :  { %10405 = vmatpush1.bf16.msra.mxu0 %v13891_v25 }
0x1a84   :  { %10406 = vmatprep.subr.bf16.mxu0 %v13899_v31 }
0x1a87   :  { %10407 = vmatpush1.bf16.msra.mxu0 %v13897_v46 }
0x1a88   :  { %12059 = vmatprep.subr.bf16.mxu0 %v13903_v59  ;;  %v13904_v59 = vld [vmem:[%s19613_s12] sm:$0xff]  }
0x1b1d   :  { %v13043_v10 = vpop.f32.mrb[88].mxu0 }
0x1b1e   :  { %v9670_v35 = vpop.f32.mrb[89].mxu0 }
0x1b1f   :  { %v13044_v4 = vpop.f32.mrb[90].mxu0 }
0x1b20   :  { %v9718_v51 = vpack.c.bf16 %v13044_v4, %v13043_v10  ;;  %v9673_v9 = vpop.f32.mrb[91].mxu0 }
0x1b21   :  { %v9717_v24 = vpack.c.bf16 %v9673_v9, %v9670_v35 }
0x1b23   :  { %13057 = vmatprep.mubr.msk.bf16.mxu1 %vm576_vm2, %v9717_v24 }
0x1b24   :  { %13058 = vmatmul.mubr.msk.bf16.vlgmr.msra.gmra.mrb[56].mxu1 %vm576_vm2, %v9718_v51 }
0x1b25   :  { %v13047_v22 = vpop.f32.mrb[92].mxu0  ;;  %9877 = vmatpush1.bf16.msra.mxu1 %v13801_v49  ;;  %v13848_v49 = vld [vmem:[%s19611_s10 + $0xcc] ss:$16 sps:$4 sm:$0xff]  }
0x1b26   :  { %v9686_v56 = vpop.f32.mrb[93].mxu0  ;;  %9878 = vmatprep.subr.bf16.mxu1 %v13806_v11  ;;  %v13846_v11 = vld [vmem:[%s19611_s10 + $0xc8] ss:$16 sps:$4 sm:$0xff]  }
0x1b27   :  { %v13048_v26 = vpop.f32.mrb[94].mxu0 }
0x1b28   :  { %v9720_v23 = vpack.c.bf16 %v13048_v26, %v13047_v22  ;;  %v9689_v15 = vpop.f32.mrb[95].mxu0 }
0x1b29   :  { %v9719_v47 = vpack.c.bf16 %v9689_v15, %v9686_v56  ;;  %9879 = vmatpush1.bf16.msra.mxu1 %v13804_v53  ;;  %v13854_v53 = vld [vmem:[%s19611_s10 + $0xec] ss:$16 sps:$4 sm:$0xff]  }
0x1b2a   :  { %10429 = vmatprep.subr.bf16.mxu1 %v13812_v61  ;;  %v13858_v61 = vld [vmem:[%s19611_s10 + $0x108] ss:$16 sps:$4 sm:$0xff]  }
0x1b2b   :  { %13061 = vmatprep.mubr.msk.bf16.mxu1 %vm576_vm2, %v9719_v47 }
0x1b2c   :  { %13062 = vmatmul.mubr.msk.bf16.gmra.mrb[60].mxu1 %vm576_vm2, %v9720_v23 }
0x1b2d   :  { %v13051_v48 = vpop.f32.mrb[96].mxu0 }
0x1b2e   :  { %v9702_v7 = vpop.f32.mrb[97].mxu0 }
0x1b2f   :  { %v13052_v41 = vpop.f32.mrb[98].mxu0 }
0x1b30   :  { %v9722_v33 = vpack.c.bf16 %v13052_v41, %v13051_v48  ;;  %v9705_v21 = vpop.f32.mrb[99].mxu0  ;;  %v13810_v48 = vld [vmem:[%s19611_s10 + $0x8] ss:$16 sps:$4 sm:$0xff]   ;;  %v13818_v41 = vld [vmem:[%s19611_s10 + $0x2c] ss:$16 sps:$4 sm:$0xff]  }
0x1b31   :  { %v9721_v18 = vpack.c.bf16 %v9705_v21, %v9702_v7  ;;  %v13834_v21 = vld [vmem:[%s19611_s10 + $0x88] ss:$16 sps:$4 sm:$0xff]  }
0x1b33   :  { %13065 = vmatprep.mubr.msk.bf16.mxu1 %vm576_vm2, %v9721_v18  ;;  %v13842_v18 = vld [vmem:[%s19611_s10 + $0xac] ss:$16 sps:$4 sm:$0xff]  }
0x1b34   :  { %13066 = vmatmul.mubr.msk.bf16.gmra.mrb[64].mxu1 %vm576_vm2, %v9722_v33  ;;  %v13836_v33 = vld [vmem:[%s19611_s10 + $0x8c] ss:$16 sps:$4 sm:$0xff]  }
0x1b35   :  { %9908 = vmatprep.mubr.bf16.mxu1 %v19778_v43 }
0x1bf7   :  { %v13059_v42 = vpop.f32.mrb[56].mxu1 }
0x1bf8   :  { %v9800_v37 = vpop.f32.mrb[57].mxu1  ;;  %v544_v42 = vld [vmem:[%s19608_s7] sm:$0x3] }
0x1bf9   :  { %v13060_v34 = vpop.f32.mrb[58].mxu1  ;;  %v11030_v37 = vld [vmem:[%s19608_s7 + $0x2] sm:$0x3] }
0x1bfa   :  { %v9802_v52 = vpop.f32.mrb[59].mxu1  ;;  %v19446_v34 = vsub.s32 1, %v19434_v30 }
0x1bfb   :  { %v549_v52 = vrot.slane %v544_v42, %v19437_v8 }
0x1bff   :  { %v13063_v16 = vpop.f32.mrb[60].mxu1 }
0x1c00   :  { %v9812_v54 = vpop.f32.mrb[61].mxu1  ;;  %v2668_v16 = vrot.slane %v11030_v37, %v19437_v8 }
0x1c01   :  { %v13064_v63 = vpop.f32.mrb[62].mxu1  ;;  %v11134_v54 = vld [vmem:[%s19608_s7 + $0x4] sm:$0x3] }
0x1c02   :  { %v9814_v40 = vpop.f32.mrb[63].mxu1  ;;  %v553_v63 = vrot.slane %v544_v42, %v19446_v34 }
0x1c03   :  { %v2672_v40 = vrot.slane %v11030_v37, %v19446_v34 }
0x1c07   :  { %v13067_v57 = vpop.f32.mrb[64].mxu1 }
0x1c08   :  { %v9833_v10 = vadd.f32 %v13067_v57, %v11469_v29  ;;  %v9824_v35 = vpop.f32.mrb[65].mxu1  ;;  %v13071_v57 = vadd.f32 %v2668_v16, %v549_v52  ;;  %v13905_v52 = vld [vmem:[%s19613_s12 + $0x48] sm:$0xff]  }
0x1c09   :  { %v9825_v4 = vadd.f32 %v11469_v29, %v9824_v35  ;;  %v13068_v51 = vpop.f32.mrb[66].mxu1  ;;  %v4410_v35 = vrot.slane %v11134_v54, %v19446_v34 }
0x1c0a   :  { %v9836_v9 = vadd.f32 %v13068_v51, %v11469_v29  ;;  %v9827_v24 = vpop.f32.mrb[67].mxu1  ;;  %v9841_v56 = vadd.f32 %v9833_v10, %v19077_v0  ;;  %v13816_v0 = vld [vmem:[%s19611_s10 + $0x28] ss:$16 sps:$4 sm:$0xff]   ;;  %v11228_v10 = vld [vmem:[%s19608_s7 + $0x6] sm:$0x3] }
0x1c0b   :  { %v9828_v22 = vadd.f32 %v11469_v29, %v9827_v24  ;;  %v9839_v23 = vadd.f32 %v9825_v4, %v19083_v13  ;;  %v13822_v13 = vld [vmem:[%s19611_s10 + $0x48] ss:$16 sps:$4 sm:$0xff]   ;;  %v4406_v29 = vrot.slane %v11134_v54, %v19437_v8  ;;  %v13078_v4 = vadd.f32 %v2672_v40, %v553_v63 }
0x1c0c   :  { %v9842_v26 = vadd.f32 %v9836_v9, %v19080_v39  ;;  %v13824_v39 = vld [vmem:[%s19611_s10 + $0x4c] ss:$16 sps:$4 sm:$0xff]   ;;  %v5998_v51 = vrot.slane %v11228_v10, %v19437_v8  ;;  %v11310_v24 = vld [vmem:[%s19608_s7 + $0x8] sm:$0x3] }
0x1c0d   :  { %v9840_v15 = vadd.f32 %v9828_v22, %v19086_v60  ;;  %v13828_v60 = vld [vmem:[%s19611_s10 + $0x68] ss:$16 sps:$4 sm:$0xff]   ;;  %v13072_v9 = vadd.f32 %v13071_v57, %v4406_v29  ;;  %v6002_v22 = vrot.slane %v11228_v10, %v19446_v34 }
0x1c0e   :  { %v9844_v47 = vpack.c.bf16 %v9842_v26, %v9841_v56  ;;  %v13079_v56 = vadd.f32 %v13078_v4, %v4410_v35  ;;  %v7292_v26 = vrot.slane %v11310_v24, %v19437_v8  ;;  %v13906_v29 = vld [vmem:[%s19613_s12 + $0x8] sm:$0xff]   ;;  %v13907_v35 = vld [vmem:[%s19613_s12 + $0x50] sm:$0xff]  }
0x1c0f   :  { %v9843_v7 = vpack.c.bf16 %v9840_v15, %v9839_v23  ;;  %v13073_v23 = vadd.f32 %v13072_v9, %v5998_v51  ;;  %v11382_v15 = vld [vmem:[%s19608_s7 + $0xa] sm:$0x3] }
0x1c11   :  { %11482 = vmatmul.mubr.msk.bf16.vlgmr.msra.gmra.mrb[4].mxu1 %vm576_vm2, %v9843_v7  ;;  %v8433_v7 = vrot.slane %v11382_v15, %v19437_v8 }
0x1c12   :  { %9918 = vmatprep.mubr.bf16.mxu1 %v19778_v43  ;;  %10430 = vmatpush1.bf16.msra.mxu1 %v13810_v48  ;;  %v13830_v43 = vld [vmem:[%s19611_s10 + $0x6c] ss:$16 sps:$4 sm:$0xff]   ;;  %v13080_v48 = vadd.f32 %v13079_v56, %v6002_v22  ;;  %v13908_v22 = vld [vmem:[%s19613_s12 + $0x10] sm:$0xff]  }
0x1c13   :  { %10431 = vmatprep.subr.bf16.mxu1 %v13818_v41  ;;  %v13074_v41 = vadd.f32 %v13073_v23, %v7292_v26  ;;  %v13909_v56 = vld [vmem:[%s19613_s12 + $0x58] sm:$0xff]   ;;  %v13911_v23 = vld [vmem:[%s19613_s12 + $0x60] sm:$0xff]  }
0x1c14   :  { %v13910_v26 = vld [vmem:[%s19613_s12 + $0x18] sm:$0xff]  }
0x1c16   :  { %10432 = vmatpush1.bf16.msra.mxu1 %v13816_v0  ;;  %v11434_v0 = vld [vmem:[%s19608_s7 + $0xc] sm:$0x3] }
0x1c17   :  { %10433 = vmatprep.subr.bf16.mxu1 %v13824_v39  ;;  %v8437_v39 = vrot.slane %v11382_v15, %v19446_v34  ;;  %v13912_v15 = vld [vmem:[%s19613_s12 + $0x20] sm:$0xff]  }
0x1c19   :  { %11483 = vmatmul.mubr.msk.bf16.gmra.mrb[8].mxu1 %vm576_vm2, %v9844_v47  ;;  %v7296_v47 = vrot.slane %v11310_v24, %v19446_v34 }
0x1c1a   :  { %10434 = vmatpush1.bf16.msra.mxu1 %v13822_v13 }
0x1c1b   :  { %10435 = vmatprep.subr.bf16.mxu1 %v13830_v43  ;;  %v13081_v13 = vadd.f32 %v13080_v48, %v7296_v47  ;;  %v9265_v43 = vrot.slane %v11434_v0, %v19437_v8  ;;  %v13913_v47 = vld [vmem:[%s19613_s12 + $0x68] sm:$0xff]  }
0x1c1c   :  { %v13914_v48 = vld [vmem:[%s19613_s12 + $0x28] sm:$0xff]  }
0x1c1e   :  { %10436 = vmatpush1.bf16.msra.mxu1 %v13828_v60  ;;  %v13075_v60 = vadd.f32 %v13074_v41, %v8433_v7  ;;  %v13915_v7 = vld [vmem:[%s19613_s12 + $0x70] sm:$0xff]  }
0x1c1f   :  { %10437 = vmatprep.subr.bf16.mxu1 %v13836_v33  ;;  %v9269_v33 = vrot.slane %v11434_v0, %v19446_v34  ;;  %v13916_v41 = vld [vmem:[%s19613_s12 + $0x30] sm:$0xff]   ;;  %v13917_v0 = vld [vmem:[%s19613_s12 + $0x78] sm:$0xff]  }
0x1c22   :  { %10438 = vmatpush1.bf16.msra.mxu1 %v13834_v21  ;;  %v13082_v21 = vadd.f32 %v13081_v13, %v8437_v39  ;;  %v13918_v39 = vld [vmem:[%s19613_s12 + $0x38] sm:$0xff]   ;;  %v13919_v13 = vld [vmem:[%s19613_s12 + $0xc0] sm:$0xff]  }
0x1c23   :  { %10439 = vmatprep.subr.bf16.mxu1 %v13842_v18  ;;  %v11484_v18 = vld [vmem:[%s19608_s7 + $0xe] sm:$0x3] }
0x1c26   :  { %10440 = vmatpush1.bf16.msra.mxu1 %v13840_v3  ;;  %v13076_v3 = vadd.f32 %v13075_v60, %v9265_v43  ;;  %v10046_v43 = vsub.s32 2, %v19434_v30  ;;  %v10034_v60 = vld [vmem:[#allocation9] sm:$0xf] }
0x1c27   :  { %10441 = vmatprep.subr.bf16.mxu1 %v13848_v49  ;;  %v13083_v49 = vadd.f32 %v13082_v21, %v9269_v33  ;;  %v10050_v33 = vsub.s32 3, %v19434_v30  ;;  %v10039_v21 = vrot.slane %v10034_v60, %v19437_v8 }
0x1c2a   :  { %10442 = vmatpush1.bf16.msra.mxu1 %v13846_v11  ;;  %v9943_v11 = vrot.slane %v11484_v18, %v19437_v8 }
0x1c2b   :  { %10443 = vmatprep.subr.bf16.mxu1 %v13854_v53 }
0x1c2e   :  { %10444 = vmatpush1.bf16.msra.mxu1 %v13852_v32  ;;  %v9947_v32 = vrot.slane %v11484_v18, %v19446_v34  ;;  %v10047_v18 = vrot.slane %v10034_v60, %v10046_v43 }
0x1c2f   :  { %10445 = vmatprep.subr.bf16.mxu1 %v13860_v14 }
0x1c32   :  { %10446 = vmatpush1.bf16.msra.mxu1 %v13858_v61 }
0x1c33   :  { %10447 = vmatprep.subr.bf16.mxu1 %v13866_v36 }
0x1c36   :  { %10448 = vmatpush1.bf16.msra.mxu1 %v13864_v28 }
0x1c37   :  { %10449 = vmatprep.subr.bf16.mxu1 %v13872_v62 }
0x1c3a   :  { %10450 = vmatpush1.bf16.msra.mxu1 %v13870_v58 }
0x1c3b   :  { %10451 = vmatprep.subr.bf16.mxu1 %v13878_v1 }
0x1c3e   :  { %10452 = vmatpush1.bf16.msra.mxu1 %v13876_v55 }
0x1c3f   :  { %10453 = vmatprep.subr.bf16.mxu1 %v13884_v5 }
0x1c42   :  { %10454 = vmatpush1.bf16.msra.mxu1 %v13882_v2 }
0x1c43   :  { %10455 = vmatprep.subr.bf16.mxu1 %v13890_v27 }
0x1c46   :  { %10456 = vmatpush1.bf16.msra.mxu1 %v13888_v44 }
0x1c47   :  { %10457 = vmatprep.subr.bf16.mxu1 %v13896_v6 }
0x1c4a   :  { %10458 = vmatpush1.bf16.msra.mxu1 %v13894_v50 }
0x1c4b   :  { %10459 = vmatprep.subr.bf16.mxu1 %v13902_v45 }
0x1c4e   :  { %10460 = vmatpush1.bf16.msra.mxu1 %v13900_v17 }
0x1ce4   :  { %v9910_v53 = vpop.f32.mrb[4].mxu1 }
0x1ce5   :  { %v13077_v14 = vadd.f32 %v13076_v3, %v9910_v53  ;;  %v9912_v61 = vpop.f32.mrb[5].mxu1 }
0x1ce6   :  { %v13084_v36 = vadd.f32 %v13083_v49, %v9912_v61  ;;  %v9914_v28 = vpop.f32.mrb[6].mxu1 }
0x1ce7   :  { %v9950_v62 = vadd.f32 %v13077_v14, %v9943_v11  ;;  %v13091_v58 = vadd.f32 %v13076_v3, %v9914_v28  ;;  %v9916_v1 = vpop.f32.mrb[7].mxu1 }
0x1ce8   :  { %v9951_v55 = vadd.f32 %v13084_v36, %v9947_v32  ;;  %v13098_v5 = vadd.f32 %v13083_v49, %v9916_v1 }
0x1ce9   :  { %v9952_v2 = vadd.f32 %v13091_v58, %v9943_v11  ;;  %v9958_v27 = vmax.f32 %v9950_v62, 0.0 }
0x1cea   :  { %v9953_v20 = vadd.f32 %v13098_v5, %v9947_v32  ;;  %v9959_v44 = vmax.f32 %v9951_v55, 0.0 }
0x1ceb   :  { %v9960_v12 = vmax.f32 %v9952_v2, 0.0 }
0x1cec   :  { %v9961_v38 = vmax.f32 %v9953_v20, 0.0  ;;  %v9920_v6 = vpop.f32.mrb[8].mxu1 }
0x1ced   :  { %v9966_v25 = vpack.c.bf16 %v9960_v12, %v9958_v27  ;;  %v13105_v50 = vadd.f32 %v13076_v3, %v9920_v6  ;;  %v9922_v31 = vpop.f32.mrb[9].mxu1 }
0x1cee   :  { %v13112_v45 = vadd.f32 %v13083_v49, %v9922_v31  ;;  %v9924_v46 = vpop.f32.mrb[10].mxu1  ;;  %v9967_v17 = vpack.c.bf16 %v9961_v38, %v9959_v44 }
0x1cef   :  { %v9954_v19 = vadd.f32 %v13105_v50, %v9943_v11  ;;  %v13119_v42 = vadd.f32 %v13076_v3, %v9924_v46  ;;  %v9926_v37 = vpop.f32.mrb[11].mxu1  ;;  %v10043_v3 = vrot.slane %v10034_v60, %v19446_v34 }
0x1cf0   :  { %v9955_v16 = vadd.f32 %v13112_v45, %v9947_v32  ;;  %v13126_v54 = vadd.f32 %v13083_v49, %v9926_v37  ;;  %10408 = vmatprep.mubr.bf16.mxu0 %v9967_v17  ;;  %10461 = vmatprep.mubr.bf16.mxu1 %v9967_v17  ;;  %v10051_v49 = vrot.slane %v10034_v60, %v10050_v33 }
0x1cf1   :  { %v9956_v63 = vadd.f32 %v13119_v42, %v9943_v11  ;;  %10409 = vmatmul.mubr.bf16.vlgmr.msra.gmra.mrb[100].mxu0 %v9966_v25  ;;  %10462 = vmatmul.mubr.bf16.vlgmr.msra.gmra.mrb[68].mxu1 %v9966_v25  ;;  %v9962_v57 = vmax.f32 %v9954_v19, 0.0  ;;  %v13920_v42 = vld [vmem:[%s19613_s12 + $0x80] sm:$0xff]  }
0x1cf2   :  { %v9957_v40 = vadd.f32 %v13126_v54, %v9947_v32  ;;  %12060 = vmatpush3.bf16.msra.mxu0 %v13904_v59  ;;  %v9963_v4 = vmax.f32 %v9955_v16, 0.0 }
0x1cf3   :  { %v9964_v10 = vmax.f32 %v9956_v63, 0.0  ;;  %12061 = vmatprep.subr.bf16.mxu0 %v13905_v52  ;;  %v13921_v63 = vld [vmem:[%s19613_s12 + $0xc8] sm:$0xff]  }
0x1cf4   :  { %v9965_v51 = vmax.f32 %v9957_v40, 0.0 }
0x1cf5   :  { %v9968_v9 = vpack.c.bf16 %v9964_v10, %v9962_v57 }
0x1cf6   :  { %v9969_v24 = vpack.c.bf16 %v9965_v51, %v9963_v4  ;;  %12062 = vmatpush3.bf16.msra.mxu0 %v13906_v29 }
0x1cf7   :  { %12063 = vmatprep.subr.bf16.mxu0 %v13907_v35 }
0x1cf8   :  { %10418 = vmatprep.mubr.bf16.mxu0 %v9969_v24  ;;  %10471 = vmatprep.mubr.bf16.mxu1 %v9969_v24 }
0x1cf9   :  { %10419 = vmatmul.mubr.bf16.gmra.mrb[104].mxu0 %v9968_v9  ;;  %10472 = vmatmul.mubr.bf16.gmra.mrb[72].mxu1 %v9968_v9 }
0x1cfa   :  { %12064 = vmatpush3.bf16.msra.mxu0 %v13908_v22 }
0x1cfb   :  { %12065 = vmatprep.subr.bf16.mxu0 %v13909_v56  ;;  %v13922_v56 = vld [vmem:[%s19613_s12 + $0x88] sm:$0xff]  }
0x1cfe   :  { %12066 = vmatpush3.bf16.msra.mxu0 %v13910_v26 }
0x1cff   :  { %12067 = vmatprep.subr.bf16.mxu0 %v13911_v23 }
0x1d02   :  { %12068 = vmatpush3.bf16.msra.mxu0 %v13912_v15 }
0x1d03   :  { %12069 = vmatprep.subr.bf16.mxu0 %v13913_v47 }
0x1d06   :  { %12070 = vmatpush3.bf16.msra.mxu0 %v13914_v48  ;;  %v13923_v48 = vld [vmem:[%s19613_s12 + $0xd0] sm:$0xff]  }
0x1d07   :  { %12071 = vmatprep.subr.bf16.mxu0 %v13915_v7 }
0x1d0a   :  { %12072 = vmatpush3.bf16.msra.mxu0 %v13916_v41 }
0x1d0b   :  { %12073 = vmatprep.subr.bf16.mxu0 %v13917_v0 }
0x1d0e   :  { %12074 = vmatpush3.bf16.msra.mxu0 %v13918_v39 }
0x1d0f   :  { %12087 = vmatprep.subr.bf16.mxu0 %v13919_v13 }
0x1dc4   :  { %v10410_v11 = vpop.f32.mrb[100].mxu0  ;;  %v10463_v53 = vpop.f32.mrb[68].mxu1 }
0x1dc5   :  { %v10411_v32 = vadd.f32 %v10410_v11, %v10039_v21  ;;  %v10464_v14 = vadd.f32 %v10463_v53, %v10047_v18  ;;  %v10412_v61 = vpop.f32.mrb[101].mxu0  ;;  %v10465_v36 = vpop.f32.mrb[69].mxu1  ;;  %v13928_v11 = vld [vmem:[%s19613_s12 + $0xa0] sm:$0xff]   ;;  %v13929_v53 = vld [vmem:[%s19613_s12 + $0xe8] sm:$0xff]  }
0x1dc6   :  { %v10413_v28 = vadd.f32 %v10412_v61, %v10043_v3  ;;  %v10466_v62 = vadd.f32 %v10465_v36, %v10051_v49  ;;  %v10414_v58 = vpop.f32.mrb[102].mxu0  ;;  %v10467_v1 = vpop.f32.mrb[70].mxu1  ;;  %v13932_v61 = vld [vmem:[%s19613_s12 + $0xb0] sm:$0xff]   ;;  %v13933_v36 = vld [vmem:[%s19613_s12 + $0xf8] sm:$0xff]  }
0x1dc7   :  { %v10415_v55 = vadd.f32 %v10414_v58, %v10039_v21  ;;  %v10468_v5 = vadd.f32 %v10467_v1, %v10047_v18  ;;  %v10416_v2 = vpop.f32.mrb[103].mxu0  ;;  %v10469_v30 = vpop.f32.mrb[71].mxu1  ;;  %v10482_v27 = vmax.f32 %v10411_v32, 0.0  ;;  %v10484_v12 = vmax.f32 %v10464_v14, 0.0  ;;  %v13930_v32 = vld [vmem:[%s19613_s12 + $0xa8] sm:$0xff]   ;;  %v13931_v14 = vld [vmem:[%s19613_s12 + $0xf0] sm:$0xff]  }
0x1dc8   :  { %v10417_v20 = vadd.f32 %v10416_v2, %v10043_v3  ;;  %v10470_v8 = vadd.f32 %v10469_v30, %v10051_v49  ;;  %v10483_v38 = vmax.f32 %v10413_v28, 0.0  ;;  %v10485_v6 = vmax.f32 %v10466_v62, 0.0  ;;  %v13934_v28 = vld [vmem:[%s19613_s12 + $0xb8] sm:$0xff]  }
0x1dc9   :  { %v10486_v34 = vmax.f32 %v10415_v55, 0.0  ;;  %v10488_v44 = vmax.f32 %v10468_v5, 0.0 }
0x1dca   :  { %v10487_v25 = vmax.f32 %v10417_v20, 0.0  ;;  %v10489_v50 = vmax.f32 %v10470_v8, 0.0 }
0x1dcb   :  { %v10498_v31 = vpack.c.bf16 %v10486_v34, %v10482_v27  ;;  %v19534_v45 = vpack.c.bf16 %v10488_v44, %v10484_v12  ;;  %v11549_v44 = vld [vmem:[%s19614_s13] ss:$0 sm:$0xff] }
0x1dcc   :  { %v10499_v46 = vpack.c.bf16 %v10487_v25, %v10483_v38  ;;  %v10501_v17 = vpack.c.bf16 %v10489_v50, %v10485_v6  ;;  %v10420_v59 = vpop.f32.mrb[104].mxu0  ;;  %v10473_v19 = vpop.f32.mrb[72].mxu1 }
0x1dcd   :  { %v10421_v37 = vadd.f32 %v10420_v59, %v10039_v21  ;;  %v10474_v52 = vadd.f32 %v10473_v19, %v10047_v18  ;;  %v10422_v16 = vpop.f32.mrb[105].mxu0  ;;  %v10475_v54 = vpop.f32.mrb[73].mxu1 }
0x1dce   :  { %v10423_v40 = vadd.f32 %v10422_v16, %v10043_v3  ;;  %v10476_v29 = vadd.f32 %v10475_v54, %v10051_v49  ;;  %v10424_v57 = vpop.f32.mrb[106].mxu0  ;;  %v10477_v10 = vpop.f32.mrb[74].mxu1  ;;  %10801 = vmatprep.mubr.bf16.mxu0 %v10499_v46 }
0x1dcf   :  { %v10425_v35 = vadd.f32 %v10424_v57, %v10039_v21  ;;  %v10478_v4 = vadd.f32 %v10477_v10, %v10047_v18  ;;  %v10426_v51 = vpop.f32.mrb[107].mxu0  ;;  %v10479_v9 = vpop.f32.mrb[75].mxu1  ;;  %10802 = vmatmul.mubr.bf16.vlgmr.msra.gmra.mrb[108].mxu0 %v10498_v31  ;;  %v10490_v26 = vmax.f32 %v10421_v37, 0.0  ;;  %v10492_v23 = vmax.f32 %v10474_v52, 0.0  ;;  %v13924_v21 = vld [vmem:[%s19613_s12 + $0x90] sm:$0xff]   ;;  %v13925_v18 = vld [vmem:[%s19613_s12 + $0xd8] sm:$0xff]  }
0x1dd0   :  { %v10427_v24 = vadd.f32 %v10426_v51, %v10043_v3  ;;  %v10480_v22 = vadd.f32 %v10479_v9, %v10051_v49  ;;  %12088 = vmatpush3.bf16.msra.mxu0 %v13920_v42  ;;  %v10491_v7 = vmax.f32 %v10423_v40, 0.0  ;;  %v10493_v41 = vmax.f32 %v10476_v29, 0.0  ;;  %v13926_v3 = vld [vmem:[%s19613_s12 + $0x98] sm:$0xff]   ;;  %v13927_v49 = vld [vmem:[%s19613_s12 + $0xe0] sm:$0xff]  }
0x1dd1   :  { %v10494_v15 = vmax.f32 %v10425_v35, 0.0  ;;  %v10496_v47 = vmax.f32 %v10478_v4, 0.0  ;;  %12089 = vmatprep.subr.bf16.mxu0 %v13921_v63 }
0x1dd2   :  { %v10495_v0 = vmax.f32 %v10427_v24, 0.0  ;;  %v10497_v39 = vmax.f32 %v10480_v22, 0.0 }
0x1dd3   :  { %v10502_v13 = vpack.c.bf16 %v10494_v15, %v10490_v26  ;;  %v10504_v43 = vpack.c.bf16 %v10496_v47, %v10492_v23 }
0x1dd4   :  { %v10503_v60 = vpack.c.bf16 %v10495_v0, %v10491_v7  ;;  %v10505_v33 = vpack.c.bf16 %v10497_v39, %v10493_v41  ;;  %12090 = vmatpush3.bf16.msra.mxu0 %v13922_v56 }
0x1dd5   :  { %12091 = vmatprep.subr.bf16.mxu0 %v13923_v48 }
0x1dd6   :  { %10809 = vmatprep.mubr.bf16.mxu0 %v10503_v60 }
0x1dd7   :  { %10810 = vmatmul.mubr.bf16.gmra.mrb[112].mxu0 %v10502_v13 }
0x1dd8   :  { %12092 = vmatpush3.bf16.msra.mxu0 %v13924_v21  ;;  %10850 = vmatprep.mubr.bf16.mxu0 %v10501_v17 }
0x1dd9   :  { %12093 = vmatprep.subr.bf16.mxu0 %v13925_v18 }
0x1ddc   :  { %12094 = vmatpush3.bf16.msra.mxu0 %v13926_v3 }
0x1ddd   :  { %12095 = vmatprep.subr.bf16.mxu0 %v13927_v49 }
0x1de0   :  { %12096 = vmatpush3.bf16.msra.mxu0 %v13928_v11 }
0x1de1   :  { %12097 = vmatprep.subr.bf16.mxu0 %v13929_v53 }
0x1de4   :  { %12098 = vmatpush3.bf16.msra.mxu0 %v13930_v32 }
0x1de5   :  { %12099 = vmatprep.subr.bf16.mxu0 %v13931_v14 }
0x1de8   :  { %12100 = vmatpush3.bf16.msra.mxu0 %v13932_v61 }
0x1de9   :  { %12101 = vmatprep.subr.bf16.mxu0 %v13933_v36 }
0x1dec   :  { %12102 = vmatpush3.bf16.msra.mxu0 %v13934_v28 }
0x1def   :  { %10851 = vmatmul.mubr.bf16.vlgmr.msra.gmra.mrb[116].mxu0 %v19534_v45 }
0x1df0   :  { %10858 = vmatprep.mubr.bf16.mxu0 %v10505_v33 }
0x1df7   :  { %10859 = vmatmul.mubr.bf16.gmra.mrb[120].mxu0 %v10504_v43 }
0x1ea2   :  { %v12075_v62 = vpop.f32.mrb[108].mxu0 }
0x1ea3   :  { %v12076_v58 = vpop.f32.mrb[109].mxu0 }
0x1ea4   :  { %v12077_v1 = vadd.f32 %v12076_v58, %v12075_v62  ;;  %v12078_v55 = vpop.f32.mrb[110].mxu0 }
0x1ea5   :  { %v12079_v5 = vpop.f32.mrb[111].mxu0 }
0x1ea6   :  { %v12080_v2 = vadd.f32 %v12079_v5, %v12078_v55  ;;  %v10804_v25 = vadd.f32 %v12077_v1, %v11549_v44 }
0x1ea8   :  { %v10807_v46 = vadd.f32 %v12080_v2, %v11549_v44 }
0x1eaa   :  { %v12081_v30 = vpop.f32.mrb[112].mxu0 }
0x1eab   :  { %v12082_v20 = vpop.f32.mrb[113].mxu0 }
0x1eac   :  { %v12083_v8 = vadd.f32 %v12082_v20, %v12081_v30  ;;  %v12084_v27 = vpop.f32.mrb[114].mxu0 }
0x1ead   :  { %v12085_v12 = vpop.f32.mrb[115].mxu0 }
0x1eae   :  { %v12086_v34 = vadd.f32 %v12085_v12, %v12084_v27  ;;  %v10812_v52 = vadd.f32 %v12083_v8, %v11549_v44 }
0x1eb0   :  { %v10815_v40 = vadd.f32 %v12086_v34, %v11549_v44 }
0x1ec2   :  { %v12103_v38 = vpop.f32.mrb[116].mxu0 }
0x1ec3   :  { %v12104_v6 = vpop.f32.mrb[117].mxu0 }
0x1ec4   :  { %v12105_v50 = vadd.f32 %v12104_v6, %v12103_v38  ;;  %v12106_v31 = vpop.f32.mrb[118].mxu0 }
0x1ec5   :  { %v12107_v45 = vpop.f32.mrb[119].mxu0 }
0x1ec6   :  { %v10853_v17 = vadd.f32 %v12105_v50, %v10804_v25  ;;  %v12108_v59 = vadd.f32 %v12107_v45, %v12106_v31 }
0x1ec8   :  { %10868 = vst.msk [vmem:[%s19615_s14] sm:$0xff] %vm10867_vm5, %v10853_v17  ;;  %v10856_v19 = vadd.f32 %v12108_v59, %v10807_v46 }
0x1eca   :  { %10869 = vst.msk [vmem:[%s19615_s14 + $0x8] sm:$0xff] %vm10867_vm5, %v10856_v19  ;;  %v12109_v42 = vpop.f32.mrb[120].mxu0 }
0x1ecb   :  { %v12110_v37 = vpop.f32.mrb[121].mxu0 }
0x1ecc   :  { %v12111_v16 = vadd.f32 %v12110_v37, %v12109_v42  ;;  %v12112_v54 = vpop.f32.mrb[122].mxu0 }
0x1ecd   :  { %v12113_v63 = vpop.f32.mrb[123].mxu0 }
0x1ece   :  { %v10861_v29 = vadd.f32 %v12111_v16, %v10812_v52  ;;  %v12114_v57 = vadd.f32 %v12113_v63, %v12112_v54 }
0x1ed0   :  { %10870 = vst.msk [vmem:[%s19615_s14 + $0x10] sm:$0xff] %vm10867_vm5, %v10861_v29  ;;  %v10864_v10 = vadd.f32 %v12114_v57, %v10815_v40 }
0x1ed2   :  { %10871 = vst.msk [vmem:[%s19615_s14 + $0x18] sm:$0xff] %vm10867_vm5, %v10864_v10 }
0x1ed3   :  { %10876 = vsyncpa [#allocation3], 1 }
0x1ed4   :  { %10877 = vsyncpa [#allocation5], 1 }
0x1ed5   :  { %10878 = vsyncpa [#allocation8], 1 }

</bundles_post_ra>
